<compile_context>
chip_gen: v5e
topology: v5e:2x2
jax: 0.10.0
libtpu: 0.0.40
codegen_flags: <defaults>
</compile_context>

<pallas_src>
import functools

import jax
import jax.numpy as jnp
import numpy as np
from jax import lax
from jax.experimental import pallas as pl
from jax.experimental.pallas import tpu as pltpu

MAX_CH = 4   # spatial X extent (== kernel extent of the 2nd msg conv)
MAX_MZ = 8   # spatial Z extent (== kernel extent of the 1st msg conv)

_INV_SQRT2 = 0.7071067811865476
_HP = lax.Precision.HIGHEST


def _gelu_exact(v):
    # matches torch.nn.GELU() (approximate='none').  On v5e, if the VALU is
    # the binding slot, jax.nn.gelu(approximate=True) moves this to the EUP.
    return 0.5 * v * (1.0 + lax.erf(v * _INV_SQRT2))


# ------------------------------ Pallas kernel ------------------------------ #

def _fuse_block_kernel(x_ref, Nt_ref, nb_ref, P_ref, EM_ref, emb_ref,
                       M2_ref, b2_ref, Ct_ref, cb_ref, o_ref, *, bt, y, c):
    """FuseBlockChMz forward for BT whole batch elements on a (BT*Y, C) slab."""
    xb = x_ref[...]                                   # (BT, Y, C) f32
    x2 = xb.reshape(bt * y, c)                        # (M, C)  M = BT*Y

    # ---- norm: 1x1 conv (bf16 MXU, f32 accum) ------------------------------ #
    t1 = jnp.dot(x2.astype(jnp.bfloat16), Nt_ref[...],
                 preferred_element_type=jnp.float32) + nb_ref[...]

    # ---- GroupNorm(affine=False): one-pass, per-batch segmented stats ------ #
    t3 = t1.reshape(bt, y, c)
    col_sum = jnp.sum(t3, axis=1)                     # (BT, C) sublane reduce
    sq_sum = jnp.sum(t3 * t3, axis=1)                 # (BT, C)
    stats = jnp.concatenate([col_sum, sq_sum], axis=0)        # (2*BT, C)
    red = jnp.dot(stats, P_ref[...], preferred_element_type=jnp.float32)
    mu = red[:bt]                                     # per-group means
    var = red[bt:] - mu * mu                          # E[x^2] - mu^2
    inv = lax.rsqrt(var + 1e-5)
    n = ((t3 - mu[:, None, :]) * inv[:, None, :]).reshape(bt * y, c)

    # ---- eye (grouped 1x1) and msg conv 1 ([1,1,Z]) fused into one dot ----- #
    em = jnp.dot(n.astype(jnp.bfloat16), EM_ref[...],
                 preferred_element_type=jnp.float32) + emb_ref[...]
    e = _gelu_exact(em[:, :c])                        # eye branch + GELU
    m1 = em[:, c:]                                    # msg branch, stage 1

    # ---- msg conv 2 ([X,1,1]) with GateLayer folded in, then GELU ---------- #
    m2 = jnp.dot(m1.astype(jnp.bfloat16), M2_ref[...],
                 preferred_element_type=jnp.float32) + b2_ref[...]
    m = _gelu_exact(m2)

    # ---- mix: 1x1 conv (wres folded in) + residual -------------------------- #
    u = jnp.dot((e + m).astype(jnp.bfloat16), Ct_ref[...],
                preferred_element_type=jnp.float32) + cb_ref[...]
    o_ref[...] = xb + u.reshape(bt, y, c)


# ------------------------------- wrapper ------------------------------------ #

def _pick_bt(B, Y, target_rows=256):
    """Whole batch elements per M tile; keep grid >= 2 when possible."""
    bt = max(1, min(B, target_rows // max(Y, 1)))
    while B % bt:
        bt -= 1
    if B // bt < 2 and B >= 2:
        bt = max(1, bt // 2)
        while B % bt:
            bt -= 1
    return bt


def fuse_block_chmz(x, params, bt=None):
    (Nt, nb, P, EM, emb, M2, b2, Ct, cb) = params
    B, W, X, Y, Z = x.shape
    C = X * Z * W

    # NCDHW -> lane-dense (B, Y, X*Z*W) slabs (w fastest, then z, then x)
    x_slab = jnp.transpose(x, (0, 3, 2, 4, 1)).reshape(B, Y, C)

    if bt is None:
        bt = _pick_bt(B, Y)

    slab_spec = pl.BlockSpec((bt, Y, C), lambda i: (i, 0, 0))
    # Whole-array, single-buffered VMEM residency for the constant weights.
    const_spec = pl.BlockSpec(memory_space=pltpu.MemorySpace.VMEM)

    out_slab = pl.pallas_call(
        functools.partial(_fuse_block_kernel, bt=bt, y=Y, c=C),
        grid=(B // bt,),
        in_specs=[slab_spec] + [const_spec] * 9,
        out_specs=slab_spec,
        out_shape=jax.ShapeDtypeStruct((B, Y, C), jnp.float32),
        input_output_aliases={0: 0},                  # residual writes in place
        compiler_params=pltpu.CompilerParams(
            dimension_semantics=("parallel",),
            vmem_limit_bytes=32 * 1024 * 1024),
    )(x_slab, Nt, nb, P, EM, emb, M2, b2, Ct, cb)

    # back to NCDHW
    return jnp.transpose(out_slab.reshape(B, Y, X, Z, W), (0, 4, 2, 1, 3))


# -------------------- deterministic parameter construction ------------------ #

def init_raw_params(key, W, G, X, Z):
    Wg = W // G
    ks = jax.random.split(key, 11)
    sc = 0.2
    return dict(
        A=jax.random.normal(ks[0], (W, W), jnp.float32) * sc,            # norm conv
        a=jax.random.normal(ks[1], (W,), jnp.float32) * sc,
        Ew=jax.random.normal(ks[2], (W, Wg), jnp.float32) * sc,          # eye grouped 1x1
        eb=jax.random.normal(ks[3], (W,), jnp.float32) * sc,
        W1=jax.random.normal(ks[4], (W * Z, Wg, Z), jnp.float32) * sc,   # msg conv [1,1,Z]
        b1=jax.random.normal(ks[5], (W * Z,), jnp.float32) * sc,
        W2=jax.random.normal(ks[6], (W * X, Wg, X), jnp.float32) * sc,   # msg conv [X,1,1]
        b2=jax.random.normal(ks[7], (W * X,), jnp.float32) * sc,
        gamma=jax.random.normal(ks[8], (G,), jnp.float32) * 0.1,         # GateLayer.init0
        C=jax.random.normal(ks[9], (W, W), jnp.float32) * sc,            # mix conv
        cb=jax.random.normal(ks[10], (W,), jnp.float32) * sc,
    )


def pack_params(raw, W, G, X, Y, Z, wres=1.0):
    """Pack all convs into matrices acting on the (x, z, w) column axis (w
    fastest).  Host-side numpy so the packing itself is exact.  Weight
    matrices are emitted in bf16 (MXU-native); biases / projector stay f32.
    NOTE: packed params are Y- and wres-specific."""
    Wg = W // G
    XZ = X * Z
    C = X * Z * W

    A = np.asarray(raw['A'], np.float32)
    a = np.asarray(raw['a'], np.float32)
    Ew = np.asarray(raw['Ew'], np.float32)
    eb = np.asarray(raw['eb'], np.float32)
    W1 = np.asarray(raw['W1'], np.float32)
    b1 = np.asarray(raw['b1'], np.float32)
    W2 = np.asarray(raw['W2'], np.float32)
    b2 = np.asarray(raw['b2'], np.float32)
    gm = np.asarray(raw['gamma'], np.float32)
    Cm = np.asarray(raw['C'], np.float32)
    cb = np.asarray(raw['cb'], np.float32)

    eye_xz = np.eye(XZ, dtype=np.float32)
    eye_x = np.eye(X, dtype=np.float32)
    eye_z = np.eye(Z, dtype=np.float32)
    eye_g = np.eye(G, dtype=np.float32)

    # norm conv (dense 1x1): (x,z,w) -> (x,z,wo)
    Nt = np.kron(eye_xz, A.T)                                            # (C, C)
    nb = np.tile(a, XZ).reshape(1, C)

    # GroupNorm projector: broadcasts group sums; includes 1/count
    gmask = (np.arange(W)[:, None] // Wg == np.arange(W)[None, :] // Wg)
    P = np.kron(np.ones((XZ, XZ), np.float32), gmask.astype(np.float32))
    P /= float(Wg * X * Y * Z)                                           # (C, C)

    # eye grouped 1x1 conv
    E_full = np.einsum('gpc,gh->gphc', Ew.reshape(G, Wg, Wg), eye_g).reshape(W, W)
    Et = np.kron(eye_xz, E_full.T)                                       # (C, C)
    ebr = np.tile(eb, XZ).reshape(1, C)

    # msg conv 1 ([1,1,Z], grouped) + ReshapeLayer: (x,z,w) -> (x,u,pw)
    W1r = W1.reshape(G, Wg, Z, Wg, Z)                                    # [g,p,u,c,z]
    B1 = np.einsum('gpucz,gh->zgcuhp', W1r, eye_g).reshape(Z * W, Z * W)
    M1 = np.kron(eye_x, B1)                                              # (C, C)
    b1r = np.tile(b1.reshape(W, Z).T.reshape(Z * W), X).reshape(1, C)

    # msg conv 2 ([X,1,1], grouped) + ReshapeLayer: (x,z,w) -> (x_new,z,pw)
    W2r = W2.reshape(G, Wg, X, Wg, X)                                    # [g,p,v,c,x]
    M2 = np.einsum('gpvcx,zy,gh->xzgcvyhp', W2r, eye_z, eye_g).reshape(C, C)
    b2r = np.tile(b2.reshape(W, X).T[:, None, :], (1, Z, 1)).reshape(1, C)

    # GateLayer: per-group scalar exp(gamma), broadcast over (x, z) — folded
    # into the columns of M2 and into b2.
    gate = np.tile(np.repeat(np.exp(gm), Wg), XZ).reshape(1, C)
    M2g = M2 * gate
    b2g = b2r * gate

    # mix conv (dense 1x1), with the residual weight wres folded in
    Ct = np.kron(eye_xz, Cm.T) * float(wres)                             # (C, C)
    cbr = np.tile(cb, XZ).reshape(1, C) * float(wres)

    # eye + msg-1 fused RHS
    EM = np.concatenate([Et, M1], axis=1)                                # (C, 2C)
    emb = np.concatenate([ebr, b1r], axis=1)                             # (1, 2C)

    def f32(v): return jnp.asarray(v, jnp.float32)
    def bf16(v): return jnp.asarray(v, jnp.bfloat16)

    return (bf16(Nt), f32(nb), f32(P), bf16(EM), f32(emb),
            bf16(M2g), f32(b2g), bf16(Ct), f32(cbr))


# --------------------------- pure-JAX reference ------------------------------ #

def reference_forward(x, raw, G, wres=1.0):
    B, W, X, Y, Z = x.shape
    Wg = W // G
    t1 = jnp.einsum('oc,bcxyz->boxyz', raw['A'], x, precision=_HP) \
        + raw['a'][None, :, None, None, None]
    t1g = t1.reshape(B, G, Wg, X, Y, Z)
    mu = t1g.mean(axis=(2, 3, 4, 5), keepdims=True)
    var = ((t1g - mu) ** 2).mean(axis=(2, 3, 4, 5), keepdims=True)
    n = ((t1g - mu) / jnp.sqrt(var + 1e-5)).reshape(B, W, X, Y, Z)
    ng = n.reshape(B, G, Wg, X, Y, Z)

    Ew = raw['Ew'].reshape(G, Wg, Wg)
    e = jnp.einsum('gpc,bgcxyz->bgpxyz', Ew, ng, precision=_HP).reshape(B, W, X, Y, Z) \
        + raw['eb'][None, :, None, None, None]
    e = _gelu_exact(e)

    W1 = raw['W1'].reshape(G, Wg, Z, Wg, Z)
    m1 = jnp.einsum('gpucz,bgcxyz->bgpxyu', W1, ng, precision=_HP).reshape(B, W, X, Y, Z) \
        + raw['b1'].reshape(W, Z)[None, :, None, None, :]
    m1g = m1.reshape(B, G, Wg, X, Y, Z)
    W2 = raw['W2'].reshape(G, Wg, X, Wg, X)
    m2 = jnp.einsum('gpucx,bgcxyz->bgpuyz', W2, m1g, precision=_HP).reshape(B, W, X, Y, Z) \
        + raw['b2'].reshape(W, X)[None, :, :, None, None]
    scale = jnp.exp(raw['gamma'])[jnp.arange(W) // Wg]
    m = _gelu_exact(m2 * scale[None, :, None, None, None])

    u = jnp.einsum('oc,bcxyz->boxyz', raw['C'], e + m, precision=_HP) \
        + raw['cb'][None, :, None, None, None]
    return x + u * wres


# ----------------------------------- main ------------------------------------ #

if __name__ == "__main__":
    B, W, G = 8, 8, 4
    X, Y, Z = MAX_CH, 32, MAX_MZ     # spatial dims must be (MAX_CH, *, MAX_MZ)

    key = jax.random.PRNGKey(0)
    kx, kp = jax.random.split(key)
    x = jax.random.normal(kx, (B, W, X, Y, Z), jnp.float32)

    raw = init_raw_params(kp, W, G, X, Z)
    params = pack_params(raw, W, G, X, Y, Z, wres=1.0)

    fwd = jax.jit(fuse_block_chmz)
    out = jax.block_until_ready(fwd(x, params))

    ref = reference_forward(x, raw, G, wres=1.0)
    assert out.shape == x.shape
    max_err = float(jnp.max(jnp.abs(out - ref)))
    # bf16 MXU operands (f32 accumulation) vs. a HIGHEST-precision f32
    # reference across a 5-matmul chain on O(1) data: expected max |err| ~1e-2.
    assert max_err < 2.5e-2, f"max abs error too large: {max_err}"
    print("KERNEL_OK")
</pallas_src>

<mosaic_0001>
module attributes {stable_mosaic.version = 11 : i64} {
  func.func @_fuse_block_kernel(%arg0: i32, %arg1: memref<4x32x256xf32, #tpu.memory_space<vmem>>, %arg2: memref<256x256xbf16, #tpu.memory_space<vmem>>, %arg3: memref<1x256xf32, #tpu.memory_space<vmem>>, %arg4: memref<256x256xf32, #tpu.memory_space<vmem>>, %arg5: memref<256x512xbf16, #tpu.memory_space<vmem>>, %arg6: memref<1x512xf32, #tpu.memory_space<vmem>>, %arg7: memref<256x256xbf16, #tpu.memory_space<vmem>>, %arg8: memref<1x256xf32, #tpu.memory_space<vmem>>, %arg9: memref<256x256xbf16, #tpu.memory_space<vmem>>, %arg10: memref<1x256xf32, #tpu.memory_space<vmem>>, %arg11: memref<4x32x256xf32, #tpu.memory_space<vmem>>) attributes {dimension_semantics = [#tpu.dimension_semantics<parallel>], iteration_bounds = array<i64: 2>, scalar_prefetch = 0 : i64, scratch_operands = 0 : i64, tpu.core_type = #tpu.core_type<tc>, window_params = [{transform_indices = @transform_0, window_bounds = array<i64: 4, 32, 256>}, {pipeline_mode = #tpu.pipeline_mode<synchronous>, transform_indices = @transform_1, window_bounds = array<i64: 256, 256>}, {pipeline_mode = #tpu.pipeline_mode<synchronous>, transform_indices = @transform_2, window_bounds = array<i64: 1, 256>}, {pipeline_mode = #tpu.pipeline_mode<synchronous>, transform_indices = @transform_3, window_bounds = array<i64: 256, 256>}, {pipeline_mode = #tpu.pipeline_mode<synchronous>, transform_indices = @transform_4, window_bounds = array<i64: 256, 512>}, {pipeline_mode = #tpu.pipeline_mode<synchronous>, transform_indices = @transform_5, window_bounds = array<i64: 1, 512>}, {pipeline_mode = #tpu.pipeline_mode<synchronous>, transform_indices = @transform_6, window_bounds = array<i64: 256, 256>}, {pipeline_mode = #tpu.pipeline_mode<synchronous>, transform_indices = @transform_7, window_bounds = array<i64: 1, 256>}, {pipeline_mode = #tpu.pipeline_mode<synchronous>, transform_indices = @transform_8, window_bounds = array<i64: 256, 256>}, {pipeline_mode = #tpu.pipeline_mode<synchronous>, transform_indices = @transform_9, window_bounds = array<i64: 1, 256>}, {transform_indices = @transform_10, window_bounds = array<i64: 4, 32, 256>}]} {
    %c0 = arith.constant 0 : index
    %c0_0 = arith.constant 0 : index
    %c0_1 = arith.constant 0 : index
    %0 = vector.load %arg1[%c0, %c0_0, %c0_1] : memref<4x32x256xf32, #tpu.memory_space<vmem>>, vector<4x32x256xf32>
    %1 = vector.shape_cast %0 : vector<4x32x256xf32> to vector<128x256xf32>
    %2 = arith.truncf %1 : vector<128x256xf32> to vector<128x256xbf16>
    %c0_2 = arith.constant 0 : index
    %c0_3 = arith.constant 0 : index
    %3 = vector.load %arg2[%c0_2, %c0_3] : memref<256x256xbf16, #tpu.memory_space<vmem>>, vector<256x256xbf16>
    %cst = arith.constant dense<0.000000e+00> : vector<128x256xf32>
    %4 = tpu.matmul %2, %3, %cst {dimension_numbers = #tpu.dot_dimension_numbers<[1], [0], [0], [1], [0, 0, 1, 1], [], []>} : vector<128x256xbf16>, vector<256x256xbf16>, vector<128x256xf32> -> vector<128x256xf32>
    %c0_4 = arith.constant 0 : index
    %c0_5 = arith.constant 0 : index
    %5 = vector.load %arg3[%c0_4, %c0_5] : memref<1x256xf32, #tpu.memory_space<vmem>>, vector<1x256xf32>
    %6 = vector.broadcast %5 : vector<1x256xf32> to vector<128x256xf32>
    %7 = arith.addf %4, %6 : vector<128x256xf32>
    %8 = vector.shape_cast %7 : vector<128x256xf32> to vector<4x32x256xf32>
    %cst_6 = arith.constant dense<0.000000e+00> : vector<4x256xf32>
    %9 = vector.multi_reduction <add>, %8, %cst_6 [1] : vector<4x32x256xf32> to vector<4x256xf32>
    %10 = arith.mulf %8, %8 : vector<4x32x256xf32>
    %cst_7 = arith.constant dense<0.000000e+00> : vector<4x256xf32>
    %11 = vector.multi_reduction <add>, %10, %cst_7 [1] : vector<4x32x256xf32> to vector<4x256xf32>
    %12 = tpu.concatenate %9, %11 in 0 : vector<4x256xf32>, vector<4x256xf32> -> vector<8x256xf32>
    %c0_8 = arith.constant 0 : index
    %c0_9 = arith.constant 0 : index
    %13 = vector.load %arg4[%c0_8, %c0_9] : memref<256x256xf32, #tpu.memory_space<vmem>>, vector<256x256xf32>
    %cst_10 = arith.constant dense<0.000000e+00> : vector<8x256xf32>
    %14 = tpu.matmul %12, %13, %cst_10 {dimension_numbers = #tpu.dot_dimension_numbers<[1], [0], [0], [1], [0, 0, 1, 1], [], []>} : vector<8x256xf32>, vector<256x256xf32>, vector<8x256xf32> -> vector<8x256xf32>
    %15 = vector.extract_strided_slice %14 {offsets = [0, 0], sizes = [4, 256], strides = [1, 1]} : vector<8x256xf32> to vector<4x256xf32>
    %16 = vector.extract_strided_slice %14 {offsets = [4, 0], sizes = [4, 256], strides = [1, 1]} : vector<8x256xf32> to vector<4x256xf32>
    %17 = arith.mulf %15, %15 : vector<4x256xf32>
    %18 = arith.subf %16, %17 : vector<4x256xf32>
    %cst_11 = arith.constant 9.99999974E-6 : f32
    %19 = vector.broadcast %cst_11 : f32 to vector<4x256xf32>
    %20 = arith.addf %18, %19 : vector<4x256xf32>
    %21 = math.rsqrt %20 : vector<4x256xf32>
    %22 = vector.shape_cast %15 : vector<4x256xf32> to vector<4x1x256xf32>
    %23 = vector.broadcast %22 : vector<4x1x256xf32> to vector<4x32x256xf32>
    %24 = arith.subf %8, %23 : vector<4x32x256xf32>
    %25 = vector.shape_cast %21 : vector<4x256xf32> to vector<4x1x256xf32>
    %26 = vector.broadcast %25 : vector<4x1x256xf32> to vector<4x32x256xf32>
    %27 = arith.mulf %24, %26 : vector<4x32x256xf32>
    %28 = vector.shape_cast %27 : vector<4x32x256xf32> to vector<128x256xf32>
    %29 = arith.truncf %28 : vector<128x256xf32> to vector<128x256xbf16>
    %c0_12 = arith.constant 0 : index
    %c0_13 = arith.constant 0 : index
    %30 = vector.load %arg5[%c0_12, %c0_13] : memref<256x512xbf16, #tpu.memory_space<vmem>>, vector<256x512xbf16>
    %cst_14 = arith.constant dense<0.000000e+00> : vector<128x512xf32>
    %31 = tpu.matmul %29, %30, %cst_14 {dimension_numbers = #tpu.dot_dimension_numbers<[1], [0], [0], [1], [0, 0, 1, 1], [], []>} : vector<128x256xbf16>, vector<256x512xbf16>, vector<128x512xf32> -> vector<128x512xf32>
    %c0_15 = arith.constant 0 : index
    %c0_16 = arith.constant 0 : index
    %32 = vector.load %arg6[%c0_15, %c0_16] : memref<1x512xf32, #tpu.memory_space<vmem>>, vector<1x512xf32>
    %33 = vector.broadcast %32 : vector<1x512xf32> to vector<128x512xf32>
    %34 = arith.addf %31, %33 : vector<128x512xf32>
    %35 = vector.extract_strided_slice %34 {offsets = [0, 0], sizes = [128, 256], strides = [1, 1]} : vector<128x512xf32> to vector<128x256xf32>
    %cst_17 = arith.constant 5.000000e-01 : f32
    %36 = vector.broadcast %cst_17 : f32 to vector<128x256xf32>
    %37 = arith.mulf %36, %35 : vector<128x256xf32>
    %cst_18 = arith.constant 0.707106769 : f32
    %38 = vector.broadcast %cst_18 : f32 to vector<128x256xf32>
    %39 = arith.mulf %35, %38 : vector<128x256xf32>
    %40 = math.erf %39 : vector<128x256xf32>
    %cst_19 = arith.constant 1.000000e+00 : f32
    %41 = vector.broadcast %cst_19 : f32 to vector<128x256xf32>
    %42 = arith.addf %41, %40 : vector<128x256xf32>
    %43 = arith.mulf %37, %42 : vector<128x256xf32>
    %44 = vector.extract_strided_slice %34 {offsets = [0, 256], sizes = [128, 256], strides = [1, 1]} : vector<128x512xf32> to vector<128x256xf32>
    %45 = arith.truncf %44 : vector<128x256xf32> to vector<128x256xbf16>
    %c0_20 = arith.constant 0 : index
    %c0_21 = arith.constant 0 : index
    %46 = vector.load %arg7[%c0_20, %c0_21] : memref<256x256xbf16, #tpu.memory_space<vmem>>, vector<256x256xbf16>
    %cst_22 = arith.constant dense<0.000000e+00> : vector<128x256xf32>
    %47 = tpu.matmul %45, %46, %cst_22 {dimension_numbers = #tpu.dot_dimension_numbers<[1], [0], [0], [1], [0, 0, 1, 1], [], []>} : vector<128x256xbf16>, vector<256x256xbf16>, vector<128x256xf32> -> vector<128x256xf32>
    %c0_23 = arith.constant 0 : index
    %c0_24 = arith.constant 0 : index
    %48 = vector.load %arg8[%c0_23, %c0_24] : memref<1x256xf32, #tpu.memory_space<vmem>>, vector<1x256xf32>
    %49 = vector.broadcast %48 : vector<1x256xf32> to vector<128x256xf32>
    %50 = arith.addf %47, %49 : vector<128x256xf32>
    %cst_25 = arith.constant 5.000000e-01 : f32
    %51 = vector.broadcast %cst_25 : f32 to vector<128x256xf32>
    %52 = arith.mulf %51, %50 : vector<128x256xf32>
    %cst_26 = arith.constant 0.707106769 : f32
    %53 = vector.broadcast %cst_26 : f32 to vector<128x256xf32>
    %54 = arith.mulf %50, %53 : vector<128x256xf32>
    %55 = math.erf %54 : vector<128x256xf32>
    %cst_27 = arith.constant 1.000000e+00 : f32
    %56 = vector.broadcast %cst_27 : f32 to vector<128x256xf32>
    %57 = arith.addf %56, %55 : vector<128x256xf32>
    %58 = arith.mulf %52, %57 : vector<128x256xf32>
    %59 = arith.addf %43, %58 : vector<128x256xf32>
    %60 = arith.truncf %59 : vector<128x256xf32> to vector<128x256xbf16>
    %c0_28 = arith.constant 0 : index
    %c0_29 = arith.constant 0 : index
    %61 = vector.load %arg9[%c0_28, %c0_29] : memref<256x256xbf16, #tpu.memory_space<vmem>>, vector<256x256xbf16>
    %cst_30 = arith.constant dense<0.000000e+00> : vector<128x256xf32>
    %62 = tpu.matmul %60, %61, %cst_30 {dimension_numbers = #tpu.dot_dimension_numbers<[1], [0], [0], [1], [0, 0, 1, 1], [], []>} : vector<128x256xbf16>, vector<256x256xbf16>, vector<128x256xf32> -> vector<128x256xf32>
    %c0_31 = arith.constant 0 : index
    %c0_32 = arith.constant 0 : index
    %63 = vector.load %arg10[%c0_31, %c0_32] : memref<1x256xf32, #tpu.memory_space<vmem>>, vector<1x256xf32>
    %64 = vector.broadcast %63 : vector<1x256xf32> to vector<128x256xf32>
    %65 = arith.addf %62, %64 : vector<128x256xf32>
    %66 = vector.shape_cast %65 : vector<128x256xf32> to vector<4x32x256xf32>
    %67 = arith.addf %0, %66 : vector<4x32x256xf32>
    %c0_33 = arith.constant 0 : index
    %c0_34 = arith.constant 0 : index
    %c0_35 = arith.constant 0 : index
    %68 = vector.load %arg11[%c0_33, %c0_34, %c0_35] : memref<4x32x256xf32, #tpu.memory_space<vmem>>, vector<4x32x256xf32>
    tpu.vector_store %arg11[%c0_33, %c0_34, %c0_35], %67 {strides = array<i32>} : memref<4x32x256xf32, #tpu.memory_space<vmem>>, vector<4x32x256xf32>,
    return
  }
  func.func @transform_0(%arg0: i32) -> (i32, i32, i32) {
    %c0_i32 = arith.constant 0 : i32
    %c0_i32_0 = arith.constant 0 : i32
    %c0_i32_1 = arith.constant 0 : i32
    return %arg0, %c0_i32, %c0_i32_0 : i32, i32, i32
  }
  func.func @transform_1(%arg0: i32) -> (i32, i32) {
    %c0_i32 = arith.constant 0 : i32
    %c0_i32_0 = arith.constant 0 : i32
    %c0_i32_1 = arith.constant 0 : i32
    return %c0_i32, %c0_i32_0 : i32, i32
  }
  func.func @transform_2(%arg0: i32) -> (i32, i32) {
    %c0_i32 = arith.constant 0 : i32
    %c0_i32_0 = arith.constant 0 : i32
    %c0_i32_1 = arith.constant 0 : i32
    return %c0_i32, %c0_i32_0 : i32, i32
  }
  func.func @transform_3(%arg0: i32) -> (i32, i32) {
    %c0_i32 = arith.constant 0 : i32
    %c0_i32_0 = arith.constant 0 : i32
    %c0_i32_1 = arith.constant 0 : i32
    return %c0_i32, %c0_i32_0 : i32, i32
  }
  func.func @transform_4(%arg0: i32) -> (i32, i32) {
    %c0_i32 = arith.constant 0 : i32
    %c0_i32_0 = arith.constant 0 : i32
    %c0_i32_1 = arith.constant 0 : i32
    return %c0_i32, %c0_i32_0 : i32, i32
  }
  func.func @transform_5(%arg0: i32) -> (i32, i32) {
    %c0_i32 = arith.constant 0 : i32
    %c0_i32_0 = arith.constant 0 : i32
    %c0_i32_1 = arith.constant 0 : i32
    return %c0_i32, %c0_i32_0 : i32, i32
  }
  func.func @transform_6(%arg0: i32) -> (i32, i32) {
    %c0_i32 = arith.constant 0 : i32
    %c0_i32_0 = arith.constant 0 : i32
    %c0_i32_1 = arith.constant 0 : i32
    return %c0_i32, %c0_i32_0 : i32, i32
  }
  func.func @transform_7(%arg0: i32) -> (i32, i32) {
    %c0_i32 = arith.constant 0 : i32
    %c0_i32_0 = arith.constant 0 : i32
    %c0_i32_1 = arith.constant 0 : i32
    return %c0_i32, %c0_i32_0 : i32, i32
  }
  func.func @transform_8(%arg0: i32) -> (i32, i32) {
    %c0_i32 = arith.constant 0 : i32
    %c0_i32_0 = arith.constant 0 : i32
    %c0_i32_1 = arith.constant 0 : i32
    return %c0_i32, %c0_i32_0 : i32, i32
  }
  func.func @transform_9(%arg0: i32) -> (i32, i32) {
    %c0_i32 = arith.constant 0 : i32
    %c0_i32_0 = arith.constant 0 : i32
    %c0_i32_1 = arith.constant 0 : i32
    return %c0_i32, %c0_i32_0 : i32, i32
  }
  func.func @transform_10(%arg0: i32) -> (i32, i32, i32) {
    %c0_i32 = arith.constant 0 : i32
    %c0_i32_0 = arith.constant 0 : i32
    %c0_i32_1 = arith.constant 0 : i32
    return %arg0, %c0_i32, %c0_i32_0 : i32, i32, i32
  }
}

</mosaic_0001>

<bundles_post_ra>
// kernel: fuse_block_chmz.1
= control target key start
LH: loop header
LB: loop body
LE: loop exit
PB: predicated region body
PF: predicated region fallthrough
CT: control target
= control target key end

     0   :  { %s7005_s13 = smov 0   ;;  %s12648_s0 = inlined_call_operand.vmem [shape: f32[8,32,256], index: 0, kind: input, shape index: {}, may-alias: {0,10}]   ;;  %s12649_s1 = inlined_call_operand.vmem [shape: bf16[256,256], index: 1, kind: input, shape index: {}]   ;;  %s12650_s2 = inlined_call_operand.vmem [shape: f32[1,256], index: 2, kind: input, shape index: {}]   ;;  %s12651_s3 = inlined_call_operand.vmem [shape: f32[256,256], index: 3, kind: input, shape index: {}]   ;;  %s12652_s4 = inlined_call_operand.vmem [shape: bf16[256,512], index: 4, kind: input, shape index: {}]   ;;  %s12653_s5 = inlined_call_operand.vmem [shape: f32[1,512], index: 5, kind: input, shape index: {}]   ;;  %s12654_s6 = inlined_call_operand.vmem [shape: bf16[256,256], index: 6, kind: input, shape index: {}]   ;;  %s12655_s7 = inlined_call_operand.vmem [shape: f32[1,256], index: 7, kind: input, shape index: {}]   ;;  %s12656_s8 = inlined_call_operand.vmem [shape: bf16[256,256], index: 8, kind: input, shape index: {}]   ;;  %s12657_s9 = inlined_call_operand.vmem [shape: f32[1,256], index: 9, kind: input, shape index: {}]   ;;  %s12658_s10 = inlined_call_operand.vmem [shape: f32[8,32,256], index: 10, kind: output, shape index: {}, may-alias: {0,10}]  }
   0x1 LB: > { %s5914_s14 = sadd.s32 4294967295, %s6948_s13   ;;  %p5918_p0 = scmp.ge.s32.totalorder %s6948_s13, 1  ;;  %s6948_s13 = sphi %s7005_s13, %s20_s13  }
   0x2   : > { %p314_p1 = scmp.lt.s32.totalorder %s6948_s13, 3 }
   0x4   : > { %p315_p2 = pnand %p5918_p0, %p314_p1 }
   0x6   : > { %318 = sbr.rel (%p315_p2) target bundleno = 1630 (0x65e), region = 60 }
   0xb   : > { %v5983_v0 = vld [vmem:[%s12649_s1 + $0x70] sm:$0xf]  ;;  %v6648_v1 = vld [vmem:[%s12649_s1 + $0x74] sm:$0xf0]  ;;  %v6647_v5 = vld [vmem:[%s12649_s1 + $0x74] sm:$0xf] }
   0xc   : > { %v6047_v2 = vld [vmem:[%s12649_s1 + $0xf0] sm:$0xf]  ;;  %v5984_v3 = vor.u32 %v6648_v1, %v5983_v0  ;;  %v6664_v4 = vld [vmem:[%s12649_s1 + $0xf4] sm:$0xf0]  ;;  %v5985_v6 = vld [vmem:[%s12649_s1 + $0x78] sm:$0xf0] }
   0xd   : > { %v6048_v7 = vor.u32 %v6664_v4, %v6047_v2  ;;  %v5988_v8 = vor.u32 %v6647_v5, %v5985_v6  ;;  %v6663_v9 = vld [vmem:[%s12649_s1 + $0xf4] sm:$0xf]  ;;  %v6049_v10 = vld [vmem:[%s12649_s1 + $0xf8] sm:$0xf0]  ;;  %v5975_v11 = vld [vmem:[%s12649_s1 + $0x60] sm:$0xf] }
   0xe   : > { %614 = vmatpush.bf16.msra.mxu0 %v5984_v3  ;;  %v6052_v12 = vor.u32 %v6663_v9, %v6049_v10  ;;  %v6646_v13 = vld [vmem:[%s12649_s1 + $0x64] sm:$0xf0]  ;;  %v6039_v14 = vld [vmem:[%s12649_s1 + $0xe0] sm:$0xf]  ;;  %v6645_v18 = vld [vmem:[%s12649_s1 + $0x64] sm:$0xf] }
   0xf   : > { %v6662_v15 = vld [vmem:[%s12649_s1 + $0xe4] sm:$0xf0]  ;;  %663 = vmatpush.bf16.msra.mxu1 %v6048_v7  ;;  %712 = vmatpush.bf16.msra.mxu2 %v5988_v8  ;;  %v5976_v16 = vor.u32 %v6646_v13, %v5975_v11  ;;  %v5977_v19 = vld [vmem:[%s12649_s1 + $0x68] sm:$0xf0]  ;;  %v6661_v20 = vld [vmem:[%s12649_s1 + $0xe4] sm:$0xf] }
  0x10   : > { %v6040_v17 = vor.u32 %v6662_v15, %v6039_v14  ;;  %761 = vmatpush.bf16.msra.mxu3 %v6052_v12  ;;  %v5980_v21 = vor.u32 %v6645_v18, %v5977_v19  ;;  %v6041_v22 = vld [vmem:[%s12649_s1 + $0xe8] sm:$0xf0]  ;;  %v5967_v23 = vld [vmem:[%s12649_s1 + $0x50] sm:$0xf]  ;;  %v6644_v24 = vld [vmem:[%s12649_s1 + $0x54] sm:$0xf0] }
  0x11   : > { %v6044_v25 = vor.u32 %v6661_v20, %v6041_v22  ;;  %v6031_v26 = vld [vmem:[%s12649_s1 + $0xd0] sm:$0xf]  ;;  %v6660_v27 = vld [vmem:[%s12649_s1 + $0xd4] sm:$0xf0]  ;;  %v6643_v28 = vld [vmem:[%s12649_s1 + $0x54] sm:$0xf]  ;;  %v5968_v29 = vor.u32 %v6644_v24, %v5967_v23 }
  0x12   : > { %615 = vmatpush.bf16.msra.mxu0 %v5976_v16  ;;  %v5969_v30 = vld [vmem:[%s12649_s1 + $0x58] sm:$0xf0]  ;;  %v6659_v31 = vld [vmem:[%s12649_s1 + $0xd4] sm:$0xf]  ;;  %v6032_v33 = vor.u32 %v6660_v27, %v6031_v26  ;;  %v5959_v35 = vld [vmem:[%s12649_s1 + $0x40] sm:$0xf] }
  0x13   : > { %v6033_v32 = vld [vmem:[%s12649_s1 + $0xd8] sm:$0xf0]  ;;  %664 = vmatpush.bf16.msra.mxu1 %v6040_v17  ;;  %713 = vmatpush.bf16.msra.mxu2 %v5980_v21  ;;  %v5972_v34 = vor.u32 %v6643_v28, %v5969_v30  ;;  %v6642_v36 = vld [vmem:[%s12649_s1 + $0x44] sm:$0xf0]  ;;  %v6023_v37 = vld [vmem:[%s12649_s1 + $0xc0] sm:$0xf] }
  0x14   : > { %762 = vmatpush.bf16.msra.mxu3 %v6044_v25  ;;  %v6036_v38 = vor.u32 %v6659_v31, %v6033_v32  ;;  %v6658_v39 = vld [vmem:[%s12649_s1 + $0xc4] sm:$0xf0]  ;;  %v6641_v40 = vld [vmem:[%s12649_s1 + $0x44] sm:$0xf]  ;;  %v5961_v41 = vld [vmem:[%s12649_s1 + $0x48] sm:$0xf0]  ;;  %v5960_v44 = vor.u32 %v6642_v36, %v5959_v35 }
  0x15   : > { %v6657_v42 = vld [vmem:[%s12649_s1 + $0xc4] sm:$0xf]  ;;  %v6025_v43 = vld [vmem:[%s12649_s1 + $0xc8] sm:$0xf0]  ;;  %v6024_v45 = vor.u32 %v6658_v39, %v6023_v37  ;;  %v5964_v46 = vor.u32 %v6641_v40, %v5961_v41  ;;  %v5951_v47 = vld [vmem:[%s12649_s1 + $0x30] sm:$0xf] }
  0x16   : > { %616 = vmatpush.bf16.msra.mxu0 %v5968_v29  ;;  %v6640_v48 = vld [vmem:[%s12649_s1 + $0x34] sm:$0xf0]  ;;  %v6015_v49 = vld [vmem:[%s12649_s1 + $0xb0] sm:$0xf]  ;;  %v6028_v50 = vor.u32 %v6657_v42, %v6025_v43  ;;  %v6639_v52 = vld [vmem:[%s12649_s1 + $0x34] sm:$0xf] }
  0x17   : > { %665 = vmatpush.bf16.msra.mxu1 %v6032_v33  ;;  %714 = vmatpush.bf16.msra.mxu2 %v5972_v34  ;;  %v6656_v51 = vld [vmem:[%s12649_s1 + $0xb4] sm:$0xf0]  ;;  %v5953_v53 = vld [vmem:[%s12649_s1 + $0x38] sm:$0xf0]  ;;  %v6655_v54 = vld [vmem:[%s12649_s1 + $0xb4] sm:$0xf]  ;;  %v5952_v56 = vor.u32 %v6640_v48, %v5951_v47 }
  0x18   : > { %763 = vmatpush.bf16.msra.mxu3 %v6036_v38  ;;  %v6017_v55 = vld [vmem:[%s12649_s1 + $0xb8] sm:$0xf0]  ;;  %v6016_v57 = vor.u32 %v6656_v51, %v6015_v49  ;;  %v5956_v58 = vor.u32 %v6639_v52, %v5953_v53  ;;  %v5943_v59 = vld [vmem:[%s12649_s1 + $0x20] sm:$0xf]  ;;  %v6638_v60 = vld [vmem:[%s12649_s1 + $0x24] sm:$0xf0] }
  0x19   : > { %v6007_v61 = vld [vmem:[%s12649_s1 + $0xa0] sm:$0xf]  ;;  %v6020_v62 = vor.u32 %v6655_v54, %v6017_v55  ;;  %v6654_v63 = vld [vmem:[%s12649_s1 + $0xa4] sm:$0xf0]  ;;  %v6637_v0 = vld [vmem:[%s12649_s1 + $0x24] sm:$0xf]  ;;  %v5944_v4 = vor.u32 %v6638_v60, %v5943_v59 }
  0x1a   : > { %617 = vmatpush.bf16.msra.mxu0 %v5960_v44  ;;  %v5945_v1 = vld [vmem:[%s12649_s1 + $0x28] sm:$0xf0]  ;;  %v6653_v2 = vld [vmem:[%s12649_s1 + $0xa4] sm:$0xf]  ;;  %v5935_v5 = vld [vmem:[%s12649_s1 + $0x10] sm:$0xf]  ;;  %v6008_v6 = vor.u32 %v6654_v63, %v6007_v61 }
  0x1b   : > { %666 = vmatpush.bf16.msra.mxu1 %v6024_v45  ;;  %715 = vmatpush.bf16.msra.mxu2 %v5964_v46  ;;  %v6009_v3 = vld [vmem:[%s12649_s1 + $0xa8] sm:$0xf0]  ;;  %v5948_v7 = vor.u32 %v6637_v0, %v5945_v1  ;;  %v6636_v8 = vld [vmem:[%s12649_s1 + $0x14] sm:$0xf0]  ;;  %v5999_v9 = vld [vmem:[%s12649_s1 + $0x90] sm:$0xf] }
  0x1c   : > { %764 = vmatpush.bf16.msra.mxu3 %v6028_v50  ;;  %v6652_v10 = vld [vmem:[%s12649_s1 + $0x94] sm:$0xf0]  ;;  %v6012_v11 = vor.u32 %v6653_v2, %v6009_v3  ;;  %v6635_v12 = vld [vmem:[%s12649_s1 + $0x14] sm:$0xf]  ;;  %v5937_v13 = vld [vmem:[%s12649_s1 + $0x18] sm:$0xf0]  ;;  %v5936_v16 = vor.u32 %v6636_v8, %v5935_v5 }
  0x1d   : > { %s5919_s15 = sshll.u32 %s5914_s14, 2  ;;  %v6651_v14 = vld [vmem:[%s12649_s1 + $0x94] sm:$0xf]  ;;  %v6001_v15 = vld [vmem:[%s12649_s1 + $0x98] sm:$0xf0]  ;;  %v6000_v18 = vor.u32 %v6652_v10, %v5999_v9  ;;  %v5940_v19 = vor.u32 %v6635_v12, %v5937_v13  ;;  %vm994_vm0 = vcmask 1041409  }
  0x1e   : > { %618 = vmatpush.bf16.msra.mxu0 %v5952_v56  ;;  %p355_p3 = scmp.lt.s32.totalorder %s5919_s15, 7  ;;  %v5927_v17 = vld [vmem:[%s12649_s1] sm:$0xf]  ;;  %v6634_v20 = vld [vmem:[%s12649_s1 + $0x4] sm:$0xf0]  ;;  %v6004_v22 = vor.u32 %v6651_v14, %v6001_v15  ;;  %vm1013_vm1 = vcmask 1045509  }
  0x1f   : > { %667 = vmatpush.bf16.msra.mxu1 %v6016_v57  ;;  %716 = vmatpush.bf16.msra.mxu2 %v5956_v58  ;;  %v5991_v21 = vld [vmem:[%s12649_s1 + $0x80] sm:$0xf]  ;;  %v6650_v23 = vld [vmem:[%s12649_s1 + $0x84] sm:$0xf0]  ;;  %v6633_v24 = vld [vmem:[%s12649_s1 + $0x4] sm:$0xf]  ;;  %v5928_v28 = vor.u32 %v6634_v20, %v5927_v17 }
  0x20   : > { %765 = vmatpush.bf16.msra.mxu3 %v6020_v62  ;;  %s13120_s15 = smov (!%p355_p3, %s5919_s15), 7  ;;  %v5929_v25 = vld [vmem:[%s12649_s1 + $0x8] sm:$0xf0]  ;;  %v6649_v26 = vld [vmem:[%s12649_s1 + $0x84] sm:$0xf]  ;;  %v5992_v29 = vor.u32 %v6650_v23, %v5991_v21  ;;  %v1090_v17 = vld [vmem:[%s12651_s3 + $0x1f8] sm:$0xff] }
  0x21   : > { %v5993_v27 = vld [vmem:[%s12649_s1 + $0x88] sm:$0xf0]  ;;  %s6631_s18 = sshll.u32 %s13120_s15, 6  ;;  %v5932_v30 = vor.u32 %v6633_v24, %v5929_v25  ;;  %v448_v20 = vld [vmem:[%s12650_s2] sm:$0x3]  ;;  %vm996_vm2 = vcmask 1042434  }
  0x22   : > { %619 = vmatpush.bf16.msra.mxu0 %v5944_v4  ;;  %s7215_s21 = scalar_lea.vmem %s12648_s0, %s6631_s18  ;;  %v5996_v34 = vor.u32 %v6649_v26, %v5993_v27  ;;  %v7334_v21 = vperm.slane %v448_v20, 0  ;;  %v1057_v27 = vld [vmem:[%s12651_s3 + $0xf0] sm:$0xff]  ;;  %vm1015_vm3 = vcmask 1046534   ;;  %vm998_vm4 = vcmask 1043459   ;;  %s12530_s16 = scalar_lea.vmem %s12658_s10, %s6631_s18 }
  0x23   : > { %668 = vmatpush.bf16.msra.mxu1 %v6008_v6  ;;  %717 = vmatpush.bf16.msra.mxu2 %v5948_v7  ;;  %v368_v31 = vld [vmem:[%s7215_s21] sm:$0xff]  ;;  %v370_v32 = vld [vmem:[%s7215_s21 + $0x10] sm:$0xff]  ;;  %v369_v33 = vld [vmem:[%s7215_s21 + $0x8] sm:$0xff]  ;;  %vm1017_vm5 = vcmask 1047559   ;;  %vm1024_vm6 = vcmask 1043456   ;;  %vm1206_vm12 = vcmask 1040384  }
  0x24   : > { %766 = vmatpush.bf16.msra.mxu3 %v6012_v11  ;;  %v371_v35 = vld [vmem:[%s7215_s21 + $0x18] sm:$0xff]  ;;  %v400_v36 = vpack.c.bf16 %v370_v32, %v368_v31  ;;  %v372_v38 = vld [vmem:[%s7215_s21 + $0x20] sm:$0xff]  ;;  %v374_v39 = vld [vmem:[%s7215_s21 + $0x30] sm:$0xff]  ;;  %v7355_v32 = vperm.slane %v448_v20, 1 }
  0x25   : > { %v401_v37 = vpack.c.bf16 %v371_v35, %v369_v33  ;;  %v373_v40 = vld [vmem:[%s7215_s21 + $0x28] sm:$0xff]  ;;  %v375_v41 = vld [vmem:[%s7215_s21 + $0x38] sm:$0xff]  ;;  %v402_v42 = vpack.c.bf16 %v374_v39, %v372_v38  ;;  %v7226_v44 = vld [vmem:[%s7215_s21 + $0x40] sm:$0xff] }
  0x26   : > { %620 = vmatpush.bf16.msra.mxu0 %v5936_v16  ;;  %v403_v43 = vpack.c.bf16 %v375_v41, %v373_v40  ;;  %12707 = vst [vmem:[#allocation2_spill] sm:$0xff] %v7226_v44  ;;  %v7229_v45 = vld [vmem:[%s7215_s21 + $0x50] sm:$0xff]  ;;  %v7232_v46 = vld [vmem:[%s7215_s21 + $0x48] sm:$0xff]  ;;  %v7235_v47 = vld [vmem:[%s7215_s21 + $0x58] sm:$0xff] }
  0x27   : > { %669 = vmatpush.bf16.msra.mxu1 %v6000_v18  ;;  %718 = vmatpush.bf16.msra.mxu2 %v5940_v19  ;;  %12708 = vst [vmem:[#allocation3_spill] sm:$0xff] %v7229_v45  ;;  %v404_v48 = vpack.c.bf16 %v7229_v45, %v7226_v44  ;;  %v405_v49 = vpack.c.bf16 %v7235_v47, %v7232_v46  ;;  %v7242_v50 = vld [vmem:[%s7215_s21 + $0x60] sm:$0xff]  ;;  %v7245_v51 = vld [vmem:[%s7215_s21 + $0x70] sm:$0xff]  ;;  %v7248_v52 = vld [vmem:[%s7215_s21 + $0x68] sm:$0xff] }
  0x28   : > { %767 = vmatpush.bf16.msra.mxu3 %v6004_v22  ;;  %12709 = vst [vmem:[#allocation4_spill] sm:$0xff] %v7232_v46  ;;  %v7251_v53 = vld [vmem:[%s7215_s21 + $0x78] sm:$0xff]  ;;  %v406_v54 = vpack.c.bf16 %v7245_v51, %v7242_v50  ;;  %v7258_v56 = vld [vmem:[%s7215_s21 + $0x80] sm:$0xff]  ;;  %v7261_v57 = vld [vmem:[%s7215_s21 + $0x90] sm:$0xff] }
  0x29   : > { %12710 = vst [vmem:[#allocation5_spill] sm:$0xff] %v7235_v47  ;;  %v407_v55 = vpack.c.bf16 %v7251_v53, %v7248_v52  ;;  %v7264_v58 = vld [vmem:[%s7215_s21 + $0x88] sm:$0xff]  ;;  %v7267_v59 = vld [vmem:[%s7215_s21 + $0x98] sm:$0xff]  ;;  %v408_v60 = vpack.c.bf16 %v7261_v57, %v7258_v56  ;;  %v7274_v62 = vld [vmem:[%s7215_s21 + $0xa0] sm:$0xff] }
  0x2a   : > { %621 = vmatpush.bf16.msra.mxu0 %v5928_v28  ;;  %12711 = vst [vmem:[#allocation6_spill] sm:$0xff] %v7242_v50  ;;  %v409_v61 = vpack.c.bf16 %v7267_v59, %v7264_v58  ;;  %v7277_v63 = vld [vmem:[%s7215_s21 + $0xb0] sm:$0xff]  ;;  %v7280_v0 = vld [vmem:[%s7215_s21 + $0xa8] sm:$0xff]  ;;  %v7283_v1 = vld [vmem:[%s7215_s21 + $0xb8] sm:$0xff] }
  0x2b   : > { %670 = vmatpush.bf16.msra.mxu1 %v5992_v29  ;;  %719 = vmatpush.bf16.msra.mxu2 %v5932_v30  ;;  %12712 = vst [vmem:[#allocation7_spill] sm:$0xff] %v7245_v51  ;;  %v410_v2 = vpack.c.bf16 %v7277_v63, %v7274_v62  ;;  %v411_v3 = vpack.c.bf16 %v7283_v1, %v7280_v0  ;;  %v7290_v4 = vld [vmem:[%s7215_s21 + $0xc0] sm:$0xff]  ;;  %v7293_v5 = vld [vmem:[%s7215_s21 + $0xd0] sm:$0xff]  ;;  %v7296_v6 = vld [vmem:[%s7215_s21 + $0xc8] sm:$0xff] }
  0x2c   : > { %768 = vmatpush.bf16.msra.mxu3 %v5996_v34  ;;  %12713 = vst [vmem:[#allocation8_spill] sm:$0xff] %v7248_v52  ;;  %v7299_v7 = vld [vmem:[%s7215_s21 + $0xd8] sm:$0xff]  ;;  %v412_v8 = vpack.c.bf16 %v7293_v5, %v7290_v4  ;;  %v7306_v10 = vld [vmem:[%s7215_s21 + $0xe0] sm:$0xff]  ;;  %v7309_v11 = vld [vmem:[%s7215_s21 + $0xf0] sm:$0xff] }
  0x2d   : > { %622 = vmatmul.bf16.vlgmr.msra.gmra.mxu0 %v400_v36  ;;  %12714 = vst [vmem:[#allocation9_spill] sm:$0xff] %v7251_v53  ;;  %v413_v9 = vpack.c.bf16 %v7299_v7, %v7296_v6  ;;  %v7312_v12 = vld [vmem:[%s7215_s21 + $0xe8] sm:$0xff]  ;;  %v7315_v13 = vld [vmem:[%s7215_s21 + $0xf8] sm:$0xff]  ;;  %v414_v14 = vpack.c.bf16 %v7309_v11, %v7306_v10  ;;  %v1089_v28 = vld [vmem:[%s12651_s3 + $0x1f0] sm:$0xff] }
  0x2e   : > { %671 = vmatmul.bf16.vlgmr.msra.gmra.mxu1 %v401_v37  ;;  %720 = vmatmul.bf16.vlgmr.msra.gmra.mxu2 %v400_v36  ;;  %12715 = vst [vmem:[#allocation10_spill] sm:$0xff] %v7258_v56  ;;  %v415_v15 = vpack.c.bf16 %v7315_v13, %v7312_v12  ;;  %v1058_v16 = vld [vmem:[%s12651_s3 + $0xf8] sm:$0xff]  ;;  %v1056_v29 = vld [vmem:[%s12651_s3 + $0xe8] sm:$0xff]  ;;  %v1087_v38 = vld [vmem:[%s12651_s3 + $0x1e0] sm:$0xff] }
  0x2f   : > { %769 = vmatmul.bf16.vlgmr.msra.gmra.mxu3 %v401_v37  ;;  %12716 = vst [vmem:[#allocation11_spill] sm:$0xff] %v7261_v57  ;;  %1131 = vmatpush.msrb.mxu2 %v1058_v16  ;;  %v1088_v30 = vld [vmem:[%s12651_s3 + $0x1e8] sm:$0xff]  ;;  %v1055_v37 = vld [vmem:[%s12651_s3 + $0xe0] sm:$0xff]  ;;  %v1054_v39 = vld [vmem:[%s12651_s3 + $0xd8] sm:$0xff] }
  0x30   : > { %12717 = vst [vmem:[#allocation12_spill] sm:$0xff] %v7264_v58  ;;  %1151 = vmatpush.msrb.mxu3 %v1090_v17  ;;  %1091 = vmatpush.msrb.mxu0 %v1057_v27  ;;  %v1086_v41 = vld [vmem:[%s12651_s3 + $0x1d8] sm:$0xff] }
  0x31   : > { %12718 = vst [vmem:[#allocation13_spill] sm:$0xff] %v7267_v59  ;;  %1111 = vmatpush.msrb.mxu1 %v1089_v28  ;;  %1132 = vmatpush.msrb.mxu2 %v1056_v29 }
  0x32   : > { %12719 = vst [vmem:[#allocation14_spill] sm:$0xff] %v7274_v62  ;;  %1152 = vmatpush.msrb.mxu3 %v1088_v30  ;;  %1092 = vmatpush.msrb.mxu0 %v1055_v37  ;;  %v1081_v37 = vld [vmem:[%s12651_s3 + $0x1b0] sm:$0xff] }
  0x33   : > { %12720 = vst [vmem:[#allocation15_spill] sm:$0xff] %v7277_v63  ;;  %1112 = vmatpush.msrb.mxu1 %v1087_v38  ;;  %1133 = vmatpush.msrb.mxu2 %v1054_v39  ;;  %v1048_v38 = vld [vmem:[%s12651_s3 + $0xa8] sm:$0xff] }
  0x34   : > { %12721 = vst [vmem:[#allocation16_spill] sm:$0xff] %v7280_v0  ;;  %1153 = vmatpush.msrb.mxu3 %v1086_v41  ;;  %v1080_v39 = vld [vmem:[%s12651_s3 + $0x1a8] sm:$0xff]  ;;  %v1035_v0 = vld [vmem:[%s12651_s3 + $0x40] sm:$0xff] }
  0x35   : > { %12722 = vst [vmem:[#allocation17_spill] sm:$0xff] %v7283_v1 }
  0x36   : > { %12723 = vst [vmem:[#allocation18_spill] sm:$0xff] %v7290_v4 }
  0x37   : > { %12724 = vst [vmem:[#allocation19_spill] sm:$0xff] %v7293_v5 }
  0x38   : > { %12725 = vst [vmem:[#allocation20_spill] sm:$0xff] %v7296_v6 }
  0x39   : > { %12726 = vst [vmem:[#allocation21_spill] sm:$0xff] %v7299_v7 }
  0x3a   : > { %12727 = vst [vmem:[#allocation22_spill] sm:$0xff] %v7306_v10 }
  0x3b   : > { %12728 = vst [vmem:[#allocation23_spill] sm:$0xff] %v7309_v11 }
  0x3c   : > { %12729 = vst [vmem:[#allocation24_spill] sm:$0xff] %v7312_v12 }
  0x3d   : > { %627 = vmatmul.bf16.gmra.mxu0 %v402_v42  ;;  %12730 = vst [vmem:[#allocation25_spill] sm:$0xff] %v7315_v13 }
  0x3e   : > { %676 = vmatmul.bf16.gmra.mxu1 %v403_v43  ;;  %725 = vmatmul.bf16.gmra.mxu2 %v402_v42  ;;  %v1053_v42 = vld [vmem:[%s12651_s3 + $0xd0] sm:$0xff] }
  0x3f   : > { %774 = vmatmul.bf16.gmra.mxu3 %v403_v43  ;;  %v1085_v43 = vld [vmem:[%s12651_s3 + $0x1d0] sm:$0xff]  ;;  %1093 = vmatpush.msrb.mxu0 %v1053_v42 }
  0x40   : > { %1113 = vmatpush.msrb.mxu1 %v1085_v43 }
  0x4d   : > { %632 = vmatmul.bf16.gmra.mxu0 %v404_v48 }
  0x4e   : > { %681 = vmatmul.bf16.gmra.mxu1 %v405_v49  ;;  %730 = vmatmul.bf16.gmra.mxu2 %v404_v48 }
  0x4f   : > { %779 = vmatmul.bf16.gmra.mxu3 %v405_v49  ;;  %v1052_v49 = vld [vmem:[%s12651_s3 + $0xc8] sm:$0xff] }
  0x50   : > { %1134 = vmatpush.msrb.mxu2 %v1052_v49 }
  0x5d   : > { %637 = vmatmul.bf16.gmra.mxu0 %v406_v54 }
  0x5e   : > { %686 = vmatmul.bf16.gmra.mxu1 %v407_v55  ;;  %735 = vmatmul.bf16.gmra.mxu2 %v406_v54  ;;  %v1084_v54 = vld [vmem:[%s12651_s3 + $0x1c8] sm:$0xff] }
  0x5f   : > { %784 = vmatmul.bf16.gmra.mxu3 %v407_v55 }
  0x60   : > { %1154 = vmatpush.msrb.mxu3 %v1084_v54 }
  0x6d   : > { %642 = vmatmul.bf16.gmra.mxu0 %v408_v60 }
  0x6e   : > { %691 = vmatmul.bf16.gmra.mxu1 %v409_v61  ;;  %740 = vmatmul.bf16.gmra.mxu2 %v408_v60  ;;  %v1051_v60 = vld [vmem:[%s12651_s3 + $0xc0] sm:$0xff] }
  0x6f   : > { %789 = vmatmul.bf16.gmra.mxu3 %v409_v61  ;;  %v1083_v61 = vld [vmem:[%s12651_s3 + $0x1c0] sm:$0xff]  ;;  %1094 = vmatpush.msrb.mxu0 %v1051_v60 }
  0x70   : > { %1114 = vmatpush.msrb.mxu1 %v1083_v61  ;;  %v1047_v60 = vld [vmem:[%s12651_s3 + $0xa0] sm:$0xff] }
  0x71   : > { %v1079_v61 = vld [vmem:[%s12651_s3 + $0x1a0] sm:$0xff] }
  0x72   : > { %1115 = vmatpush.msrb.mxu1 %v1081_v37 }
  0x74   : > { %1116 = vmatpush.msrb.mxu1 %v1079_v61 }
  0x7d   : > { %647 = vmatmul.bf16.gmra.mxu0 %v410_v2 }
  0x7e   : > { %696 = vmatmul.bf16.gmra.mxu1 %v411_v3  ;;  %745 = vmatmul.bf16.gmra.mxu2 %v410_v2  ;;  %v1050_v2 = vld [vmem:[%s12651_s3 + $0xb8] sm:$0xff] }
  0x7f   : > { %794 = vmatmul.bf16.gmra.mxu3 %v411_v3  ;;  %1135 = vmatpush.msrb.mxu2 %v1050_v2  ;;  %v1046_v2 = vld [vmem:[%s12651_s3 + $0x98] sm:$0xff] }
  0x81   : > { %1136 = vmatpush.msrb.mxu2 %v1048_v38 }
  0x83   : > { %1137 = vmatpush.msrb.mxu2 %v1046_v2 }
  0x8d   : > { %652 = vmatmul.bf16.gmra.mxu0 %v412_v8 }
  0x8e   : > { %701 = vmatmul.bf16.gmra.mxu1 %v413_v9  ;;  %750 = vmatmul.bf16.gmra.mxu2 %v412_v8 }
  0x8f   : > { %799 = vmatmul.bf16.gmra.mxu3 %v413_v9  ;;  %v1082_v9 = vld [vmem:[%s12651_s3 + $0x1b8] sm:$0xff] }
  0x90   : > { %1155 = vmatpush.msrb.mxu3 %v1082_v9  ;;  %v1078_v9 = vld [vmem:[%s12651_s3 + $0x198] sm:$0xff] }
  0x92   : > { %1156 = vmatpush.msrb.mxu3 %v1080_v39  ;;  %v1074_v39 = vld [vmem:[%s12651_s3 + $0x178] sm:$0xff] }
  0x94   : > { %1157 = vmatpush.msrb.mxu3 %v1078_v9 }
  0x9d   : > { %657 = vmatmul.bf16.gmra.mxu0 %v414_v14 }
  0x9e   : > { %706 = vmatmul.bf16.gmra.mxu1 %v415_v15  ;;  %755 = vmatmul.bf16.gmra.mxu2 %v414_v14 }
  0x9f   : > { %804 = vmatmul.bf16.gmra.mxu3 %v415_v15 }
  0xaa   : > { %v7327_v18 = vpop.f32.mrf.mxu0 }
  0xab   : > { %v7329_v19 = vpop.f32.mrf.mxu1 }
  0xb1   : > { %v7336_v22 = vpop.f32.mrf.mxu2 }
  0xb2   : > { %v7338_v23 = vpop.f32.mrf.mxu3  ;;  %v625_v24 = vpop.f32.mrf.mxu0  ;;  %v722_v12 = vadd.f32 %v7336_v22, %v7355_v32  ;;  %v1038_v22 = vld [vmem:[%s12651_s3 + $0x58] sm:$0xff] }
  0xb3   : > { %v626_v25 = vadd.f32 %v625_v24, %v7334_v21  ;;  %v674_v26 = vpop.f32.mrf.mxu1 }
  0xb5   : > { %v7353_v31 = vadd.f32 %v674_v26, %v626_v25 }
  0xb9   : > { %v723_v33 = vpop.f32.mrf.mxu2 }
  0xba   : > { %v724_v34 = vadd.f32 %v723_v33, %v7355_v32  ;;  %v772_v35 = vpop.f32.mrf.mxu3  ;;  %v7358_v36 = vpop.f32.mrf.mxu0 }
  0xbb   : > { %v7369_v40 = vpop.f32.mrf.mxu1 }
  0xbc   : > { %v7380_v48 = vadd.f32 %v772_v35, %v724_v34  ;;  %v1049_v35 = vld [vmem:[%s12651_s3 + $0xb0] sm:$0xff] }
  0xbd   : > { %1095 = vmatpush.msrb.mxu0 %v1049_v35  ;;  %v1042_v35 = vld [vmem:[%s12651_s3 + $0x78] sm:$0xff] }
  0xbf   : > { %1096 = vmatpush.msrb.mxu0 %v1047_v60 }
  0xc1   : > { %v7388_v55 = vpop.f32.mrf.mxu2 }
  0xc2   : > { %v7399_v3 = vpop.f32.mrf.mxu3  ;;  %v630_v8 = vpop.f32.mrf.mxu0  ;;  %v727_v10 = vadd.f32 %v7388_v55, %v7355_v32 }
  0xc3   : > { %v631_v14 = vadd.f32 %v630_v8, %v7334_v21  ;;  %v679_v15 = vpop.f32.mrf.mxu1 }
  0xc4   : > { %v7551_v55 = vadd.f32 %v7399_v3, %v727_v10  ;;  %v1036_v3 = vld [vmem:[%s12651_s3 + $0x48] sm:$0xff] }
  0xc5   : > { %v7405_v16 = vadd.f32 %v679_v15, %v631_v14  ;;  %v1045_v14 = vld [vmem:[%s12651_s3 + $0x90] sm:$0xff] }
  0xc6   : > { %v1077_v15 = vld [vmem:[%s12651_s3 + $0x190] sm:$0xff]  ;;  %1097 = vmatpush.msrb.mxu0 %v1045_v14  ;;  %v887_v6 = vmul.f32 %v7551_v55, %v7551_v55 }
  0xc7   : > { %1117 = vmatpush.msrb.mxu1 %v1077_v15  ;;  %v888_v13 = vmul.f32 %v7405_v16, %v7405_v16 }
  0xc9   : > { %v728_v17 = vpop.f32.mrf.mxu2 }
  0xca   : > { %v729_v20 = vadd.f32 %v728_v17, %v7355_v32  ;;  %v777_v24 = vpop.f32.mrf.mxu3  ;;  %v7408_v25 = vpop.f32.mrf.mxu0 }
  0xcb   : > { %v7410_v26 = vpop.f32.mrf.mxu1 }
  0xcc   : > { %v7412_v27 = vadd.f32 %v777_v24, %v729_v20  ;;  %v1044_v20 = vld [vmem:[%s12651_s3 + $0x88] sm:$0xff] }
  0xcd   : > { %v1076_v24 = vld [vmem:[%s12651_s3 + $0x188] sm:$0xff]  ;;  %1138 = vmatpush.msrb.mxu2 %v1044_v20 }
  0xce   : > { %1158 = vmatpush.msrb.mxu3 %v1076_v24 }
  0xcf   : > { %1139 = vmatpush.msrb.mxu2 %v1042_v35 }
  0xd0   : > { %1159 = vmatpush.msrb.mxu3 %v1074_v39  ;;  %v1072_v39 = vld [vmem:[%s12651_s3 + $0x168] sm:$0xff] }
  0xd1   : > { %v7414_v28 = vpop.f32.mrf.mxu2 }
  0xd2   : > { %v7416_v29 = vpop.f32.mrf.mxu3  ;;  %v635_v30 = vpop.f32.mrf.mxu0  ;;  %1160 = vmatpush.msrb.mxu3 %v1072_v39  ;;  %v1037_v39 = vld [vmem:[%s12651_s3 + $0x50] sm:$0xff] }
  0xd3   : > { %v636_v33 = vadd.f32 %v635_v30, %v7334_v21  ;;  %v684_v34 = vpop.f32.mrf.mxu1 }
  0xd5   : > { %v7431_v41 = vadd.f32 %v684_v34, %v636_v33  ;;  %v1043_v33 = vld [vmem:[%s12651_s3 + $0x80] sm:$0xff] }
  0xd6   : > { %v1075_v34 = vld [vmem:[%s12651_s3 + $0x180] sm:$0xff]  ;;  %1098 = vmatpush.msrb.mxu0 %v1043_v33  ;;  %v1041_v33 = vld [vmem:[%s12651_s3 + $0x70] sm:$0xff] }
  0xd7   : > { %1118 = vmatpush.msrb.mxu1 %v1075_v34 }
  0xd8   : > { %1099 = vmatpush.msrb.mxu0 %v1041_v33 }
  0xd9   : > { %v733_v42 = vpop.f32.mrf.mxu2 }
  0xda   : > { %v734_v43 = vadd.f32 %v733_v42, %v7355_v32  ;;  %v782_v49 = vpop.f32.mrf.mxu3  ;;  %v7434_v54 = vpop.f32.mrf.mxu0 }
  0xdb   : > { %v7445_v8 = vpop.f32.mrf.mxu1 }
  0xdc   : > { %v7456_v17 = vadd.f32 %v782_v49, %v734_v43  ;;  %v624_v43 = vadd.f32 %v7327_v18, %v7334_v21  ;;  %v629_v49 = vadd.f32 %v7358_v36, %v7334_v21  ;;  %v884_v18 = vmul.f32 %v7353_v31, %v7353_v31 }
  0xde   : > { %v7497_v14 = vadd.f32 %v7329_v19, %v624_v43  ;;  %v7500_v15 = vadd.f32 %v7369_v40, %v629_v49  ;;  %v1073_v19 = vld [vmem:[%s12651_s3 + $0x170] sm:$0xff]  ;;  %v1040_v40 = vld [vmem:[%s12651_s3 + $0x68] sm:$0xff] }
  0xdf   : > { %1119 = vmatpush.msrb.mxu1 %v1073_v19  ;;  %1140 = vmatpush.msrb.mxu2 %v1040_v40 }
  0xe0   : > { %v882_v36 = vmul.f32 %v7497_v14, %v7497_v14  ;;  %v886_v20 = vmul.f32 %v7500_v15, %v7500_v15  ;;  %v810_v43 = vadd.f32 %v7353_v31, %v7497_v14 }
  0xe1   : > { %v7464_v30 = vpop.f32.mrf.mxu2  ;;  %1141 = vmatpush.msrb.mxu2 %v1038_v22 }
  0xe2   : > { %v7475_v37 = vpop.f32.mrf.mxu3  ;;  %v7477_v38 = vpop.f32.mrf.mxu0  ;;  %v914_v49 = vadd.f32 %v884_v18, %v882_v36  ;;  %v811_v33 = vadd.f32 %v810_v43, %v7500_v15  ;;  %v1039_v18 = vld [vmem:[%s12651_s3 + $0x60] sm:$0xff]  ;;  %v1068_v43 = vld [vmem:[%s12651_s3 + $0x148] sm:$0xff] }
  0xe3   : > { %v7482_v42 = vpop.f32.mrf.mxu1  ;;  %v1071_v36 = vld [vmem:[%s12651_s3 + $0x160] sm:$0xff]  ;;  %1100 = vmatpush.msrb.mxu0 %v1039_v18  ;;  %1142 = vmatpush.msrb.mxu2 %v1036_v3  ;;  %v639_v3 = vadd.f32 %v7434_v54, %v7334_v21  ;;  %v641_v54 = vadd.f32 %v7477_v38, %v7334_v21 }
  0xe4   : > { %v915_v19 = vadd.f32 %v914_v49, %v886_v20  ;;  %v812_v7 = vadd.f32 %v811_v33, %v7405_v16  ;;  %v7548_v20 = vadd.f32 %v7338_v23, %v722_v12  ;;  %1120 = vmatpush.msrb.mxu1 %v1071_v36  ;;  %v1069_v12 = vld [vmem:[%s12651_s3 + $0x150] sm:$0xff]  ;;  %v885_v36 = vmul.f32 %v7380_v48, %v7380_v48 }
  0xe5   : > { %1101 = vmatpush.msrb.mxu0 %v1037_v39  ;;  %v634_v39 = vadd.f32 %v7408_v25, %v7334_v21 }
  0xe6   : > { %v916_v5 = vadd.f32 %v915_v19, %v888_v13  ;;  %v1070_v13 = vld [vmem:[%s12651_s3 + $0x158] sm:$0xff]  ;;  %v819_v49 = vadd.f32 %v7380_v48, %v7548_v20  ;;  %v813_v33 = vrot.slane %v812_v7, 4  ;;  %1121 = vmatpush.msrb.mxu1 %v1069_v12 }
  0xe7   : > { %1161 = vmatpush.msrb.mxu3 %v1070_v13  ;;  %v883_v13 = vmul.f32 %v7548_v20, %v7548_v20  ;;  %1102 = vmatpush.msrb.mxu0 %v1035_v0  ;;  %v7609_v59 = vadd.f32 %v7410_v26, %v634_v39  ;;  %v892_v0 = vmul.f32 %v7431_v41, %v7431_v41 }
  0xe8   : > { %v917_v19 = vrot.slane %v916_v5, 4  ;;  %v820_v22 = vadd.f32 %v819_v49, %v7551_v55  ;;  %v814_v4 = vadd.f32 %v813_v33, %v812_v7  ;;  %v1034_v7 = vld [vmem:[%s12651_s3 + $0x38] sm:$0xff] }
  0xe9   : > { %v7488_v60 = vpop.f32.mrf.mxu2  ;;  %1162 = vmatpush.msrb.mxu3 %v1068_v43  ;;  %v923_v12 = vadd.f32 %v885_v36, %v883_v13  ;;  %v889_v43 = vmul.f32 %v7412_v27, %v7412_v27  ;;  %v1066_v36 = vld [vmem:[%s12651_s3 + $0x138] sm:$0xff]  ;;  %1143 = vmatpush.msrb.mxu2 %v1034_v7  ;;  %v890_v39 = vmul.f32 %v7609_v59, %v7609_v59 }
  0xea   : > { %v7490_v61 = vpop.f32.mrf.mxu3  ;;  %v7492_v2 = vpop.f32.mrf.mxu0  ;;  %v918_v1 = vadd.f32 %v917_v19, %v916_v5  ;;  %v821_v63 = vadd.f32 %v820_v22, %v7412_v27  ;;  %v1067_v5 = vld [vmem:[%s12651_s3 + $0x140] sm:$0xff]  ;;  %v815_v22 = vrot.slane %v814_v4, 2 }
  0xeb   : > { %v7494_v9 = vpop.f32.mrf.mxu1  ;;  %v924_v25 = vadd.f32 %v923_v12, %v887_v6  ;;  %1122 = vmatpush.msrb.mxu1 %v1067_v5  ;;  %1163 = vmatpush.msrb.mxu3 %v1066_v36  ;;  %v7612_v6 = vadd.f32 %v7445_v8, %v639_v3  ;;  %v828_v12 = vadd.f32 %v7431_v41, %v7609_v59 }
  0xec   : > { %v919_v13 = vrot.slane %v918_v1, 2  ;;  %v822_v62 = vrot.slane %v821_v63, 4  ;;  %v7619_v5 = vadd.f32 %v7482_v42, %v641_v54  ;;  %v816_v58 = vadd.f32 %v815_v22, %v814_v4 }
  0xed   : > { %v925_v38 = vadd.f32 %v924_v25, %v889_v43  ;;  %v829_v7 = vadd.f32 %v828_v12, %v7612_v6  ;;  %v894_v8 = vmul.f32 %v7612_v6, %v7612_v6  ;;  %v732_v25 = vadd.f32 %v7414_v28, %v7355_v32 }
  0xee   : > { %v920_v56 = vadd.f32 %v919_v13, %v918_v1  ;;  %v823_v26 = vadd.f32 %v822_v62, %v821_v63  ;;  %v932_v42 = vadd.f32 %v892_v0, %v890_v39  ;;  %v896_v62 = vmul.f32 %v7619_v5, %v7619_v5 }
  0xef   : > { %v926_v43 = vrot.slane %v925_v38, 4  ;;  %v830_v1 = vadd.f32 %v829_v7, %v7619_v5  ;;  %v644_v63 = vadd.f32 %v7492_v2, %v7334_v21  ;;  %v7649_v2 = vadd.f32 %v7416_v29, %v732_v25  ;;  %v1033_v29 = vld [vmem:[%s12651_s3 + $0x30] sm:$0xff] }
  0xf0   : > { %v921_v13 = vrot.slane %v920_v56, 1  ;;  %v824_v12 = vrot.slane %v823_v26, 2  ;;  %v933_v0 = vadd.f32 %v932_v42, %v894_v8  ;;  %1103 = vmatpush.msrb.mxu0 %v1033_v29 }
  0xf1   : > { %v7508_v24 = vpop.f32.mrf.mxu2  ;;  %v7646_v53 = vadd.f32 %v926_v43, %v925_v38  ;;  %v831_v51 = vrot.slane %v830_v1, 4  ;;  %v7654_v50 = vadd.f32 %v7494_v9, %v644_v63  ;;  %v1032_v9 = vld [vmem:[%s12651_s3 + $0x28] sm:$0xff] }
  0xf2   : > { %v7519_v34 = vpop.f32.mrf.mxu3  ;;  %v7521_v35 = vpop.f32.mrf.mxu0  ;;  %v934_v52 = vadd.f32 %v933_v0, %v896_v62  ;;  %1144 = vmatpush.msrb.mxu2 %v1032_v9  ;;  %v742_v0 = vadd.f32 %v7508_v24, %v7355_v32 }
  0xf3   : > { %v7530_v11 = vpop.f32.mrf.mxu1  ;;  %v646_v3 = vadd.f32 %v7521_v35, %v7334_v21  ;;  %v817_v35 = vrot.slane %v816_v58, 1  ;;  %v928_v43 = vrot.slane %v7646_v53, 2 }
  0xf4   : > { %v935_v63 = vrot.slane %v934_v52, 4 }
  0xf5   : > { %v7643_v39 = vadd.f32 %v7530_v11, %v646_v3  ;;  %v7659_v11 = vadd.f32 %v817_v35, %v816_v58  ;;  %v7661_v3 = vadd.f32 %v824_v12, %v823_v26  ;;  %v893_v58 = vmul.f32 %v7456_v17, %v7456_v17  ;;  %v1064_v26 = vld [vmem:[%s12651_s3 + $0x128] sm:$0xff] }
  0xf6   : > { %1164 = vmatpush.msrb.mxu3 %v1064_v26  ;;  %v936_v26 = vadd.f32 %v935_v63, %v934_v52  ;;  %v7736_v52 = vadd.f32 %v7519_v34, %v742_v0 }
  0xf9   : > { %v7553_v40 = vpop.f32.mrf.mxu2 }
  0xfa   : > { %v7564_v23 = vpop.f32.mrf.mxu3  ;;  %v648_v10 = vpop.f32.mrf.mxu0  ;;  %v744_v42 = vadd.f32 %v7553_v40, %v7355_v32 }
  0xfb   : > { %v7574_v18 = vpop.f32.mrf.mxu1  ;;  %v649_v4 = vadd.f32 %v648_v10, %v7334_v21  ;;  %v737_v10 = vadd.f32 %v7464_v30, %v7355_v32  ;;  %v1065_v30 = vld [vmem:[%s12651_s3 + $0x130] sm:$0xff] }
  0xfc   : > { %1123 = vmatpush.msrb.mxu1 %v1065_v30 }
  0xfd   : > { %v7657_v8 = vadd.f32 %v7574_v18, %v649_v4  ;;  %v7674_v18 = vadd.f32 %v921_v13, %v920_v56  ;;  %v891_v56 = vmul.f32 %v7649_v2, %v7649_v2  ;;  %v7689_v25 = vadd.f32 %v7475_v37, %v737_v10 }
  0xfe   : > { %v898_v4 = vmul.f32 %v7654_v50, %v7654_v50  ;;  %v837_v37 = vadd.f32 %v7456_v17, %v7649_v2  ;;  %v846_v10 = vadd.f32 %v7643_v39, %v7654_v50 }
  0xff   : > { %12731 = vst [vmem:[#allocation26_spill] sm:$0xff] %v7657_v8  ;;  %v902_v35 = vmul.f32 %v7657_v8, %v7657_v8 }
 0x100   : > { %v838_v9 = vadd.f32 %v837_v37, %v7689_v25  ;;  %v1061_v37 = vld [vmem:[%s12651_s3 + $0x110] sm:$0xff] }
 0x101   : > { %v7590_v49 = vpop.f32.mrf.mxu2 }
 0x102   : > { %v7603_v33 = vpop.f32.mrf.mxu3  ;;  %v650_v19 = vpop.f32.mrf.mxu0 }
 0x103   : > { %v699_v57 = vpop.f32.mrf.mxu1  ;;  %v651_v7 = vadd.f32 %v650_v19, %v7334_v21  ;;  %v739_v19 = vadd.f32 %v7488_v60, %v7355_v32  ;;  %v900_v60 = vmul.f32 %v7643_v39, %v7643_v39 }
 0x105   : > { %v7680_v38 = vadd.f32 %v699_v57, %v651_v7  ;;  %v832_v57 = vadd.f32 %v831_v51, %v830_v1  ;;  %v7704_v40 = vadd.f32 %v7490_v61, %v739_v19  ;;  %v747_v51 = vadd.f32 %v7590_v49, %v7355_v32  ;;  %v1031_v49 = vld [vmem:[%s12651_s3 + $0x20] sm:$0xff] }
 0x106   : > { %v941_v7 = vadd.f32 %v893_v58, %v891_v56  ;;  %v950_v29 = vadd.f32 %v900_v60, %v898_v4  ;;  %v895_v61 = vmul.f32 %v7689_v25, %v7689_v25  ;;  %v7718_v19 = vadd.f32 %v7564_v23, %v744_v42  ;;  %1104 = vmatpush.msrb.mxu0 %v1031_v49  ;;  %v1063_v4 = vld [vmem:[%s12651_s3 + $0x120] sm:$0xff]  ;;  %v1030_v23 = vld [vmem:[%s12651_s3 + $0x18] sm:$0xff] }
 0x107   : > { %12732 = vst [vmem:[#allocation27_spill] sm:$0xff] %v7680_v38  ;;  %v904_v30 = vmul.f32 %v7680_v38, %v7680_v38  ;;  %v833_v58 = vrot.slane %v832_v57, 2  ;;  %v847_v60 = vadd.f32 %v846_v10, %v7657_v8  ;;  %v839_v42 = vadd.f32 %v838_v9, %v7704_v40  ;;  %1124 = vmatpush.msrb.mxu1 %v1063_v4  ;;  %v1028_v10 = vld [vmem:[%s12651_s3 + $0x8] sm:$0xff] }
 0x108   : > { %12733 = vst [vmem:[#allocation28_spill] sm:$0xff] %v7718_v19  ;;  %v951_v56 = vadd.f32 %v950_v29, %v902_v35  ;;  %v7739_v63 = vadd.f32 %v7603_v33, %v747_v51  ;;  %1145 = vmatpush.msrb.mxu2 %v1030_v23  ;;  %v1029_v35 = vld [vmem:[%s12651_s3 + $0x10] sm:$0xff]  ;;  %v897_v34 = vmul.f32 %v7704_v40, %v7704_v40  ;;  %v1060_v51 = vld [vmem:[%s12651_s3 + $0x108] sm:$0xff]  ;;  %v1027_v29 = vld [vmem:[%s12651_s3] sm:$0xff] }
 0x109   : > { %v748_v54 = vpop.f32.mrf.mxu2  ;;  %v848_v33 = vadd.f32 %v847_v60, %v7680_v38  ;;  %1105 = vmatpush.msrb.mxu0 %v1029_v35  ;;  %v901_v9 = vmul.f32 %v7718_v19, %v7718_v19  ;;  %1125 = vmatpush.msrb.mxu1 %v1061_v37  ;;  %v942_v23 = vadd.f32 %v941_v7, %v895_v61  ;;  %v937_v35 = vrot.slane %v936_v26, 2 }
 0x10a   : > { %v7636_v36 = vpop.f32.mrf.mxu3  ;;  %v7638_v22 = vpop.f32.mrf.mxu0  ;;  %v749_v24 = vadd.f32 %v748_v54, %v7355_v32  ;;  %v1062_v54 = vld [vmem:[%s12651_s3 + $0x118] sm:$0xff]  ;;  %v952_v0 = vadd.f32 %v951_v56, %v904_v30  ;;  %1146 = vmatpush.msrb.mxu2 %v1028_v10  ;;  %v1059_v30 = vld [vmem:[%s12651_s3 + $0x100] sm:$0xff]  ;;  %v7769_v56 = vadd.f32 %v928_v43, %v7646_v53  ;;  %v840_v43 = vrot.slane %v839_v42, 4 }
 0x10b   : > { %v7640_v28 = vpop.f32.mrf.mxu1  ;;  %1165 = vmatpush.msrb.mxu3 %v1062_v54  ;;  %v834_v54 = vadd.f32 %v833_v58, %v832_v57  ;;  %1106 = vmatpush.msrb.mxu0 %v1027_v29  ;;  %v855_v57 = vadd.f32 %v7718_v19, %v7736_v52  ;;  %v849_v7 = vrot.slane %v848_v33, 4  ;;  %v943_v58 = vadd.f32 %v942_v23, %v897_v34 }
 0x10c   : > { %v7762_v49 = vadd.f32 %v7636_v36, %v749_v24  ;;  %v899_v36 = vmul.f32 %v7736_v52, %v7736_v52  ;;  %v654_v24 = vadd.f32 %v7638_v22, %v7334_v21  ;;  %1126 = vmatpush.msrb.mxu1 %v1059_v30  ;;  %v953_v61 = vrot.slane %v952_v0, 4 }
 0x10d   : > { %1166 = vmatpush.msrb.mxu3 %v1060_v51  ;;  %v835_v46 = vrot.slane %v834_v54, 1  ;;  %v856_v30 = vadd.f32 %v855_v57, %v7739_v63  ;;  %v944_v22 = vrot.slane %v943_v58, 4 }
 0x10e   : > { %v959_v10 = vadd.f32 %v901_v9, %v899_v36  ;;  %v905_v51 = vmul.f32 %v7762_v49, %v7762_v49  ;;  %v7788_v8 = vadd.f32 %v7640_v28, %v654_v24  ;;  %v850_v9 = vadd.f32 %v849_v7, %v848_v33 }
 0x10f   : > { %v954_v23 = vadd.f32 %v953_v61, %v952_v0  ;;  %v841_v36 = vadd.f32 %v840_v43, %v839_v42  ;;  %v836_v57 = vadd.f32 %v835_v46, %v834_v54 }
 0x110   : > { %v851_v46 = vrot.slane %v850_v9, 2 }
 0x111   : > { %v7693_v62 = vpop.f32.mrf.mxu2  ;;  %v955_v54 = vrot.slane %v954_v23, 2 }
 0x112   : > { %v7699_v13 = vpop.f32.mrf.mxu3  ;;  %v655_v12 = vpop.f32.mrf.mxu0  ;;  %v752_v28 = vadd.f32 %v7693_v62, %v7355_v32 }
 0x113   : > { %v704_v1 = vpop.f32.mrf.mxu1  ;;  %v656_v4 = vadd.f32 %v655_v12, %v7334_v21  ;;  %v903_v12 = vmul.f32 %v7739_v63, %v7739_v63 }
 0x114   : > { %v7812_v44 = vadd.f32 %v7699_v13, %v752_v28 }
 0x115   : > { %v7782_v29 = vadd.f32 %v704_v1, %v656_v4  ;;  %v960_v38 = vadd.f32 %v959_v10, %v903_v12  ;;  %v857_v1 = vadd.f32 %v856_v30, %v7762_v49  ;;  %v842_v30 = vrot.slane %v841_v36, 2 }
 0x117   : > { %12734 = vst [vmem:[#allocation29_spill] sm:$0xff] %v7782_v29  ;;  %v961_v19 = vadd.f32 %v960_v38, %v905_v51  ;;  %v864_v42 = vadd.f32 %v7782_v29, %v7788_v8 }
 0x119   : > { %v753_v60 = vpop.f32.mrf.mxu2  ;;  %v962_v7 = vrot.slane %v961_v19, 4 }
 0x11a   : > { %v802_v47 = vpop.f32.mrf.mxu3  ;;  %v658_v45 = vpop.f32.mrf.mxu0  ;;  %v754_v4 = vadd.f32 %v753_v60, %v7355_v32 }
 0x11b   : > { %v659_v37 = vadd.f32 %v658_v45, %v7334_v21  ;;  %v707_v53 = vpop.f32.mrf.mxu1  ;;  %v938_v45 = vadd.f32 %v937_v35, %v936_v26  ;;  %v908_v26 = vmul.f32 %v7782_v29, %v7782_v29  ;;  %v963_v13 = vadd.f32 %v962_v7, %v961_v19 }
 0x11c   : > { %v7806_v43 = vadd.f32 %v802_v47, %v754_v4 }
 0x11d   : > { %v7790_v34 = vadd.f32 %v707_v53, %v659_v37  ;;  %v939_v12 = vrot.slane %v938_v45, 1  ;;  %v906_v37 = vmul.f32 %v7788_v8, %v7788_v8  ;;  %v858_v53 = vrot.slane %v857_v1, 4 }
 0x11e   : > { %v964_v7 = vrot.slane %v963_v13, 2 }
 0x11f   : > { %v910_v38 = vmul.f32 %v7790_v34, %v7790_v34  ;;  %v968_v61 = vadd.f32 %v908_v26, %v906_v37  ;;  %v865_v10 = vadd.f32 %v864_v42, %v7790_v34  ;;  %v940_v4 = vadd.f32 %v939_v12, %v938_v45 }
 0x120   : > { %v852_v26 = vadd.f32 %v851_v46, %v850_v9  ;;  %v956_v37 = vadd.f32 %v955_v54, %v954_v23  ;;  %v909_v42 = vmul.f32 %v7806_v43, %v7806_v43  ;;  %v843_v23 = vadd.f32 %v842_v30, %v841_v36 }
 0x121   : > { %v756_v35 = vpop.f32.mrf.mxu2 }
 0x122   : > { %v757_v24 = vadd.f32 %v756_v35, %v7355_v32  ;;  %v805_v33 = vpop.f32.mrf.mxu3  ;;  %v660_v0 = vpop.f32.mrf.mxu0  ;;  %v945_v35 = vadd.f32 %v944_v22, %v943_v58  ;;  %v995_v58 = vsel %vm994_vm0, %v836_v57, %v7659_v11  ;;  %v859_v22 = vadd.f32 %v858_v53, %v857_v1 }
 0x123   : > { %v661_v60 = vadd.f32 %v660_v0, %v7334_v21  ;;  %v709_v62 = vpop.f32.mrf.mxu1  ;;  %v969_v21 = vadd.f32 %v968_v61, %v910_v38  ;;  %v907_v38 = vmul.f32 %v7812_v44, %v7812_v44  ;;  %v853_v19 = vrot.slane %v852_v26, 1 }
 0x124   : > { %v7814_v29 = vadd.f32 %v805_v33, %v757_v24  ;;  %v946_v12 = vrot.slane %v945_v35, 2  ;;  %v957_v36 = vrot.slane %v956_v37, 1 }
 0x125   : > { %v7809_v51 = vadd.f32 %v709_v62, %v661_v60  ;;  %v873_v60 = vadd.f32 %v7806_v43, %v7812_v44  ;;  %v977_v57 = vadd.f32 %v909_v42, %v907_v38  ;;  %v860_v62 = vrot.slane %v859_v22, 2 }
 0x126   : > { %12736 = vst [vmem:[#allocation31_spill] sm:$0xff] %v7814_v29  ;;  %v911_v45 = vmul.f32 %v7814_v29, %v7814_v29  ;;  %v947_v30 = vadd.f32 %v946_v12, %v945_v35  ;;  %v844_v42 = vrot.slane %v843_v23, 1 }
 0x127   : > { %12735 = vst [vmem:[#allocation30_spill] sm:$0xff] %v7809_v51  ;;  %v866_v0 = vadd.f32 %v865_v10, %v7809_v51  ;;  %v912_v47 = vmul.f32 %v7809_v51, %v7809_v51  ;;  %v874_v54 = vadd.f32 %v873_v60, %v7814_v29  ;;  %v1014_v60 = vsel %vm1013_vm1, %v940_v4, %v7674_v18 }
 0x128   : > { %v958_v29 = vadd.f32 %v957_v36, %v956_v37 }
 0x129   : > { %v867_v28 = vrot.slane %v866_v0, 4  ;;  %v970_v24 = vadd.f32 %v969_v21, %v912_v47  ;;  %v758_v33 = vpop.f32.mrf.mxu2  ;;  %v978_v21 = vadd.f32 %v977_v57, %v911_v45 }
 0x12a   : > { %v759_v9 = vadd.f32 %v758_v33, %v7355_v32  ;;  %v807_v1 = vpop.f32.mrf.mxu3 }
 0x12b   : > { %v868_v46 = vadd.f32 %v867_v28, %v866_v0  ;;  %v971_v11 = vrot.slane %v970_v24, 4 }
 0x12c   : > { %v7831_v53 = vadd.f32 %v807_v1, %v759_v9  ;;  %v861_v9 = vadd.f32 %v860_v62, %v859_v22  ;;  %v965_v1 = vadd.f32 %v964_v7, %v963_v13  ;;  %v1016_v62 = vsel %vm1015_vm3, %v958_v29, %v1014_v60 }
 0x12d   : > { %v869_v61 = vrot.slane %v868_v46, 2  ;;  %v972_v10 = vadd.f32 %v971_v11, %v970_v24  ;;  %v12739_v29 = vrot.slane %v7769_v56, 1 }
 0x12e   : > { %12737 = vst [vmem:[#allocation32_spill] sm:$0xff] %v7831_v53  ;;  %v875_v47 = vadd.f32 %v874_v54, %v7831_v53  ;;  %v913_v32 = vmul.f32 %v7831_v53, %v7831_v53  ;;  %v854_v54 = vadd.f32 %v853_v19, %v852_v26  ;;  %v948_v53 = vrot.slane %v947_v30, 1 }
 0x12f   : > { %v870_v0 = vadd.f32 %v869_v61, %v868_v46  ;;  %v973_v28 = vrot.slane %v972_v10, 2  ;;  %v862_v61 = vrot.slane %v861_v9, 1  ;;  %v966_v18 = vrot.slane %v965_v1, 1 }
 0x130   : > { %v876_v33 = vrot.slane %v875_v47, 4  ;;  %v979_v38 = vadd.f32 %v978_v21, %v913_v32  ;;  %v997_v13 = vsel %vm996_vm2, %v854_v54, %v995_v58  ;;  %v845_v26 = vadd.f32 %v844_v42, %v843_v23  ;;  %v6693_v54 = vld [vmem:[%s12652_s4 + $0xe4] sm:$0xf] }
 0x131   : > { %v871_v24 = vrot.slane %v870_v0, 1  ;;  %v974_v45 = vadd.f32 %v973_v28, %v972_v10  ;;  %v863_v36 = vadd.f32 %v862_v61, %v861_v9  ;;  %v12738_v28 = vrot.slane %v7661_v3, 1  ;;  %v6725_v61 = vld [vmem:[%s12652_s4 + $0x1e4] sm:$0xf] }
 0x132   : > { %v877_v11 = vadd.f32 %v876_v33, %v875_v47  ;;  %v980_v57 = vrot.slane %v979_v38, 4  ;;  %v949_v47 = vadd.f32 %v948_v53, %v947_v30 }
 0x133   : > { %v872_v51 = vadd.f32 %v871_v24, %v870_v0  ;;  %v975_v35 = vrot.slane %v974_v45, 1  ;;  %v967_v0 = vadd.f32 %v966_v18, %v965_v1  ;;  %v827_v58 = vadd.f32 %v12738_v28, %v7661_v3  ;;  %v6695_v24 = vld [vmem:[%s12652_s4 + $0xec] sm:$0xf0] }
 0x134   : > { %v878_v12 = vrot.slane %v877_v11, 2  ;;  %v981_v46 = vadd.f32 %v980_v57, %v979_v38  ;;  %v6727_v57 = vld [vmem:[%s12652_s4 + $0x1ec] sm:$0xf0] }
 0x135   : > { %v976_v21 = vadd.f32 %v975_v35, %v974_v45  ;;  %v999_v37 = vsel %vm998_vm4, %v872_v51, %v997_v13  ;;  %v931_v51 = vadd.f32 %v12739_v29, %v7769_v56  ;;  %v1000_v38 = vsel %vm994_vm0, %v845_v26, %v827_v58  ;;  %v6167_v56 = vld [vmem:[%s12652_s4 + $0xe0] sm:$0xf]  ;;  %v6169_v35 = vld [vmem:[%s12652_s4 + $0xf0] sm:$0xf0]  ;;  %v6723_v26 = vld [vmem:[%s12652_s4 + $0x1cc] sm:$0xf0] }
 0x136   : > { %v879_v4 = vadd.f32 %v878_v12, %v877_v11  ;;  %v982_v22 = vrot.slane %v981_v46, 2  ;;  %v1001_v30 = vsel %vm996_vm2, %v863_v36, %v1000_v38  ;;  %v6295_v45 = vld [vmem:[%s12652_s4 + $0x1e0] sm:$0xf]  ;;  %v6168_v11 = vor.u32 %v6695_v24, %v6167_v56  ;;  %v6687_v28 = vld [vmem:[%s12652_s4 + $0xac] sm:$0xf0] }
 0x137   : > { %v1018_v19 = vsel %vm1017_vm5, %v976_v21, %v1016_v62  ;;  %v1019_v53 = vsel %vm1013_vm1, %v949_v47, %v931_v51  ;;  %v6296_v12 = vor.u32 %v6727_v57, %v6295_v45  ;;  %v6297_v21 = vld [vmem:[%s12652_s4 + $0x1f0] sm:$0xf0]  ;;  %v6279_v13 = vld [vmem:[%s12652_s4 + $0x1c0] sm:$0xf]  ;;  %v6721_v47 = vld [vmem:[%s12652_s4 + $0x1c4] sm:$0xf] }
 0x138   : > { %v1025_v7 = vsel %vm1024_vm6, %v999_v37, %v1018_v19  ;;  %v880_v10 = vrot.slane %v879_v4, 1  ;;  %v983_v32 = vadd.f32 %v982_v22, %v981_v46  ;;  %v1020_v60 = vsel %vm1015_vm3, %v967_v0, %v1019_v53  ;;  %1732 = vmatpush.bf16.msra.mxu0 %v6168_v11  ;;  %v6691_v22 = vld [vmem:[%s12652_s4 + $0xcc] sm:$0xf0]  ;;  %v6689_v37 = vld [vmem:[%s12652_s4 + $0xc4] sm:$0xf] }
 0x139   : > { %1107 = vmatmul.f32.vlgmr.msrb.gmra.mxu0 %v1025_v7  ;;  %1147 = vmatmul.f32.vlgmr.msrb.gmra.mxu2 %v1025_v7  ;;  %v6172_v46 = vor.u32 %v6693_v54, %v6169_v35  ;;  %v6300_v18 = vor.u32 %v6725_v61, %v6297_v21  ;;  %v6153_v19 = vld [vmem:[%s12652_s4 + $0xd0] sm:$0xf0]  ;;  %v6280_v7 = vor.u32 %v6723_v26, %v6279_v13  ;;  %v6135_v0 = vld [vmem:[%s12652_s4 + $0xa0] sm:$0xf]  ;;  %v6719_v29 = vld [vmem:[%s12652_s4 + $0x1ac] sm:$0xf0] }
 0x13a   : > { %v881_v33 = vadd.f32 %v880_v10, %v879_v4  ;;  %v984_v23 = vrot.slane %v983_v32, 1  ;;  %1781 = vmatpush.bf16.msra.mxu1 %v6296_v12  ;;  %v6151_v4 = vld [vmem:[%s12652_s4 + $0xc0] sm:$0xf]  ;;  %v6156_v10 = vor.u32 %v6689_v37, %v6153_v19  ;;  %v6685_v51 = vld [vmem:[%s12652_s4 + $0xa4] sm:$0xf] }
 0x13b   : > { %1830 = vmatpush.bf16.msra.mxu2 %v6172_v46  ;;  %1879 = vmatpush.bf16.msra.mxu3 %v6300_v18  ;;  %v6152_v62 = vor.u32 %v6691_v22, %v6151_v4  ;;  %v6263_v58 = vld [vmem:[%s12652_s4 + $0x1a0] sm:$0xf]  ;;  %v6717_v53 = vld [vmem:[%s12652_s4 + $0x1a4] sm:$0xf]  ;;  %v6715_v24 = vld [vmem:[%s12652_s4 + $0x18c] sm:$0xf0] }
 0x13c   : > { %v985_v42 = vadd.f32 %v984_v23, %v983_v32  ;;  %v1002_v9 = vsel %vm998_vm4, %v881_v33, %v1001_v30  ;;  %v6281_v32 = vld [vmem:[%s12652_s4 + $0x1d0] sm:$0xf0]  ;;  %v6136_v33 = vor.u32 %v6687_v28, %v6135_v0  ;;  %v6681_v45 = vld [vmem:[%s12652_s4 + $0x84] sm:$0xf]  ;;  %v6103_v4 = vld [vmem:[%s12652_s4 + $0x60] sm:$0xf] }
 0x13d   : > { %1733 = vmatpush.bf16.msra.mxu0 %v6152_v62  ;;  %v6284_v36 = vor.u32 %v6721_v47, %v6281_v32  ;;  %v6137_v23 = vld [vmem:[%s12652_s4 + $0xb0] sm:$0xf0]  ;;  %v6713_v35 = vld [vmem:[%s12652_s4 + $0x184] sm:$0xf]  ;;  %v6679_v22 = vld [vmem:[%s12652_s4 + $0x6c] sm:$0xf0] }
 0x13e   : > { %v1021_v1 = vsel %vm1017_vm5, %v985_v42, %v1020_v60  ;;  %1782 = vmatpush.bf16.msra.mxu1 %v6280_v7  ;;  %v6264_v42 = vor.u32 %v6719_v29, %v6263_v58  ;;  %v6140_v38 = vor.u32 %v6685_v51, %v6137_v23  ;;  %v6265_v30 = vld [vmem:[%s12652_s4 + $0x1b0] sm:$0xf0]  ;;  %v6231_v13 = vld [vmem:[%s12652_s4 + $0x160] sm:$0xf]  ;;  %v6104_v62 = vor.u32 %v6679_v22, %v6103_v4  ;;  %v6711_v26 = vld [vmem:[%s12652_s4 + $0x16c] sm:$0xf0] }
 0x13f   : > { %v1026_v3 = vsel %vm1024_vm6, %v1002_v9, %v1021_v1  ;;  %1831 = vmatpush.bf16.msra.mxu2 %v6156_v10  ;;  %1880 = vmatpush.bf16.msra.mxu3 %v6284_v36  ;;  %v6268_v60 = vor.u32 %v6717_v53, %v6265_v30  ;;  %v6119_v9 = vld [vmem:[%s12652_s4 + $0x80] sm:$0xf]  ;;  %v6683_v1 = vld [vmem:[%s12652_s4 + $0x8c] sm:$0xf0]  ;;  %v6121_v11 = vld [vmem:[%s12652_s4 + $0x90] sm:$0xf0]  ;;  %v6232_v10 = vor.u32 %v6711_v26, %v6231_v13 }
 0x140   : > { %1127 = vmatmul.f32.vlgmr.msrb.gmra.mxu1 %v1026_v3  ;;  %1167 = vmatmul.f32.vlgmr.msrb.gmra.mxu3 %v1026_v3  ;;  %v6247_v3 = vld [vmem:[%s12652_s4 + $0x180] sm:$0xf]  ;;  %v6120_v56 = vor.u32 %v6683_v1, %v6119_v9  ;;  %v6124_v54 = vor.u32 %v6681_v45, %v6121_v11  ;;  %v6249_v12 = vld [vmem:[%s12652_s4 + $0x190] sm:$0xf0]  ;;  %v6677_v37 = vld [vmem:[%s12652_s4 + $0x64] sm:$0xf] }
 0x141   : > { %1734 = vmatpush.bf16.msra.mxu0 %v6136_v33  ;;  %v6248_v57 = vor.u32 %v6715_v24, %v6247_v3  ;;  %v6252_v21 = vor.u32 %v6713_v35, %v6249_v12  ;;  %v6105_v19 = vld [vmem:[%s12652_s4 + $0x70] sm:$0xf0]  ;;  %v6709_v32 = vld [vmem:[%s12652_s4 + $0x164] sm:$0xf]  ;;  %v6087_v0 = vld [vmem:[%s12652_s4 + $0x40] sm:$0xf] }
 0x142   : > { %1783 = vmatpush.bf16.msra.mxu1 %v6264_v42  ;;  %v6108_v47 = vor.u32 %v6677_v37, %v6105_v19  ;;  %v6233_v36 = vld [vmem:[%s12652_s4 + $0x170] sm:$0xf0]  ;;  %v6675_v58 = vld [vmem:[%s12652_s4 + $0x4c] sm:$0xf0]  ;;  %v6215_v33 = vld [vmem:[%s12652_s4 + $0x140] sm:$0xf] }
 0x143   : > { %1832 = vmatpush.bf16.msra.mxu2 %v6140_v38  ;;  %1881 = vmatpush.bf16.msra.mxu3 %v6268_v60  ;;  %v6236_v28 = vor.u32 %v6709_v32, %v6233_v36  ;;  %v6707_v29 = vld [vmem:[%s12652_s4 + $0x14c] sm:$0xf0]  ;;  %v6088_v23 = vor.u32 %v6675_v58, %v6087_v0  ;;  %v6673_v38 = vld [vmem:[%s12652_s4 + $0x44] sm:$0xf]  ;;  %v6089_v53 = vld [vmem:[%s12652_s4 + $0x50] sm:$0xf0] }
 0x144   : > { %v6216_v42 = vor.u32 %v6707_v29, %v6215_v33  ;;  %v6092_v9 = vor.u32 %v6673_v38, %v6089_v53  ;;  %v6705_v1 = vld [vmem:[%s12652_s4 + $0x144] sm:$0xf]  ;;  %v6217_v3 = vld [vmem:[%s12652_s4 + $0x150] sm:$0xf0]  ;;  %v6703_v35 = vld [vmem:[%s12652_s4 + $0x12c] sm:$0xf0] }
 0x145   : > { %1735 = vmatpush.bf16.msra.mxu0 %v6120_v56  ;;  %v6071_v56 = vld [vmem:[%s12652_s4 + $0x20] sm:$0xf]  ;;  %v6220_v11 = vor.u32 %v6705_v1, %v6217_v3  ;;  %v6701_v4 = vld [vmem:[%s12652_s4 + $0x124] sm:$0xf]  ;;  %v6201_v37 = vld [vmem:[%s12652_s4 + $0x130] sm:$0xf0] }
 0x146   : > { %1784 = vmatpush.bf16.msra.mxu1 %v6248_v57  ;;  %v6671_v57 = vld [vmem:[%s12652_s4 + $0x2c] sm:$0xf0]  ;;  %v6204_v19 = vor.u32 %v6701_v4, %v6201_v37  ;;  %v6665_v0 = vld [vmem:[%s12652_s4 + $0x4] sm:$0xf]  ;;  %v6057_v58 = vld [vmem:[%s12652_s4 + $0x10] sm:$0xf0] }
 0x147   : > { %1833 = vmatpush.bf16.msra.mxu2 %v6124_v54  ;;  %1882 = vmatpush.bf16.msra.mxu3 %v6252_v21  ;;  %v6199_v54 = vld [vmem:[%s12652_s4 + $0x120] sm:$0xf]  ;;  %v6072_v12 = vor.u32 %v6671_v57, %v6071_v56  ;;  %v6073_v21 = vld [vmem:[%s12652_s4 + $0x30] sm:$0xf0]  ;;  %v6699_v36 = vld [vmem:[%s12652_s4 + $0x10c] sm:$0xf0]  ;;  %v6060_v38 = vor.u32 %v6665_v0, %v6057_v58 }
 0x148   : > { %v6697_v29 = vld [vmem:[%s12652_s4 + $0x104] sm:$0xf]  ;;  %v6694_v1 = vld [vmem:[%s12652_s4 + $0xec] sm:$0xf]  ;;  %v6177_v3 = vld [vmem:[%s12652_s4 + $0xf8] sm:$0xf0] }
 0x149   : > { %1736 = vmatpush.bf16.msra.mxu0 %v6104_v62  ;;  %v6726_v56 = vld [vmem:[%s12652_s4 + $0x1ec] sm:$0xf] }
 0x14a   : > { %1785 = vmatpush.bf16.msra.mxu1 %v6232_v10  ;;  %v6667_v10 = vld [vmem:[%s12652_s4 + $0xc] sm:$0xf0]  ;;  %v6690_v58 = vld [vmem:[%s12652_s4 + $0xcc] sm:$0xf] }
 0x14b   : > { %1834 = vmatpush.bf16.msra.mxu2 %v6108_v47  ;;  %1883 = vmatpush.bf16.msra.mxu3 %v6236_v28  ;;  %v6183_v47 = vld [vmem:[%s12652_s4 + $0x100] sm:$0xf] }
 0x14d   : > { %1737 = vmatpush.bf16.msra.mxu0 %v6088_v23 }
 0x14e   : > { %1786 = vmatpush.bf16.msra.mxu1 %v6216_v42  ;;  %v6184_v42 = vor.u32 %v6699_v36, %v6183_v47 }
 0x14f   : > { %1835 = vmatpush.bf16.msra.mxu2 %v6092_v9  ;;  %1884 = vmatpush.bf16.msra.mxu3 %v6220_v11  ;;  %v6175_v11 = vld [vmem:[%s12652_s4 + $0xe8] sm:$0xf] }
 0x151   : > { %1738 = vmatpush.bf16.msra.mxu0 %v6072_v12  ;;  %v6303_v12 = vld [vmem:[%s12652_s4 + $0x1e8] sm:$0xf] }
 0x153   : > { %1885 = vmatpush.bf16.msra.mxu3 %v6204_v19 }
 0x1b6   : > { %v1108_v46 = vpop.f32.mrf.mxu0 }
 0x1bc   : > { %v1148_v30 = vpop.f32.mrf.mxu2 }
 0x1bd   : > { %v1128_v61 = vpop.f32.mrf.mxu1 }
 0x1be   : > { %v7952_v18 = vadd.f32 %v1128_v61, %v1108_v46  ;;  %v6200_v46 = vor.u32 %v6703_v35, %v6199_v54  ;;  %v6669_v61 = vld [vmem:[%s12652_s4 + $0x24] sm:$0xf]  ;;  %v6696_v35 = vld [vmem:[%s12652_s4 + $0xf4] sm:$0xf0] }
 0x1bf   : > { %v6076_v26 = vor.u32 %v6669_v61, %v6073_v21  ;;  %v6176_v61 = vor.u32 %v6696_v35, %v6175_v11 }
 0x1c0   : > { %v1171_v7 = vmul.f32 %v7952_v18, %v7952_v18  ;;  %1787 = vmatpush.bf16.msra.mxu1 %v6200_v46  ;;  %v6728_v46 = vld [vmem:[%s12652_s4 + $0x1f4] sm:$0xf0] }
 0x1c1   : > { %1836 = vmatpush.bf16.msra.mxu2 %v6076_v26  ;;  %v6304_v21 = vor.u32 %v6728_v46, %v6303_v12 }
 0x1c2   : > { %v1175_v51 = vrot.slane %v1171_v7, 4  ;;  %v6055_v7 = vld [vmem:[%s12652_s4] sm:$0xf] }
 0x1c3   : > { %v1168_v60 = vpop.f32.mrf.mxu3  ;;  %v6056_v23 = vor.u32 %v6667_v10, %v6055_v7 }
 0x1c4   : > { %v1179_v24 = vsub.f32 %v7952_v18, %v1175_v51  ;;  %v1169_v45 = vadd.f32 %v1168_v60, %v1148_v30  ;;  %v6185_v51 = vld [vmem:[%s12652_s4 + $0x110] sm:$0xf0]  ;;  %1788 = vmatpush.bf16.msra.mxu1 %v6184_v42  ;;  %v6159_v42 = vld [vmem:[%s12652_s4 + $0xc8] sm:$0xf] }
 0x1c5   : > { %1739 = vmatpush.bf16.msra.mxu0 %v6056_v23  ;;  %v6188_v30 = vor.u32 %v6697_v29, %v6185_v51  ;;  %1837 = vmatpush.bf16.msra.mxu2 %v6060_v38  ;;  %v6289_v23 = vld [vmem:[%s12652_s4 + $0x1d8] sm:$0xf0] }
 0x1c6   : > { %v1181_v22 = vadd.f32 1e-05, %v1179_v24  ;;  %v1172_v13 = vmul.f32 %v1169_v45, %v1169_v45  ;;  %v8026_v62 = vrot.slane %v1169_v45, 7  ;;  %v6180_v24 = vor.u32 %v6694_v1, %v6177_v3 }
 0x1c7   : > { %1886 = vmatpush.bf16.msra.mxu3 %v6188_v30  ;;  %v6287_v30 = vld [vmem:[%s12652_s4 + $0x1c8] sm:$0xf] }
 0x1c8   : > { %6801 = vrsqrt.f32 %v1181_v22  ;;  %v1176_v32 = vrot.slane %v1172_v13, 4  ;;  %v8049_v28 = vsel %vm998_vm4, %v7952_v18, %v8026_v62  ;;  %1977 = vmatpush.bf16.msrb.mxu1 %v6304_v21  ;;  %vm1189_vm8 = vweird.f32 %v1181_v22 }
 0x1c9   : > { %2026 = vmatpush.bf16.msrb.mxu2 %v6180_v24  ;;  %1928 = vmatpush.bf16.msrb.mxu0 %v6176_v61  ;;  %v1207_v29 = vsel %vm1206_vm12, %v7952_v18, %v8026_v62 }
 0x1ca   : > { %v1180_v33 = vsub.f32 %v1169_v45, %v1176_v32  ;;  %v6305_v45 = vld [vmem:[%s12652_s4 + $0x1f8] sm:$0xf0]  ;;  %v1214_v3 = vperm.slane %v1207_v29, 0 }
 0x1cb   : > { %v6308_v54 = vor.u32 %v6726_v56, %v6305_v45  ;;  %v1215_v56 = vperm.slane %v1207_v29, 1 }
 0x1cc   : > { %v1182_v53 = vadd.f32 1e-05, %v1180_v33  ;;  %v6722_v33 = vld [vmem:[%s12652_s4 + $0x1cc] sm:$0xf]  ;;  %v1230_v24 = vsub.f32 %v7497_v14, %v1214_v3  ;;  %v1232_v45 = vsub.f32 %v7353_v31, %v1214_v3 }
 0x1cd   : > { %2075 = vmatpush.bf16.msrb.mxu3 %v6308_v54  ;;  %v6292_v38 = vor.u32 %v6722_v33, %v6289_v23  ;;  %v1231_v54 = vsub.f32 %v7548_v20, %v1215_v56  ;;  %v1233_v35 = vsub.f32 %v7380_v48, %v1215_v56  ;;  %v6686_v31 = vld [vmem:[%s12652_s4 + $0xac] sm:$0xf]  ;;  %v6145_v48 = vld [vmem:[%s12652_s4 + $0xb8] sm:$0xf0]  ;;  %v1235_v33 = vsub.f32 %v7551_v55, %v1215_v56 }
 0x1ce   : > { %v6802_v60 = vpop.eup %6801  ;;  %6803 = vrsqrt.f32 %v1182_v53  ;;  %vm1199_vm11 = vweird.f32 %v1182_v53  ;;  %v6718_v14 = vld [vmem:[%s12652_s4 + $0x1ac] sm:$0xf]  ;;  %v6148_v20 = vor.u32 %v6686_v31, %v6145_v48  ;;  %v1237_v29 = vsub.f32 %v7412_v27, %v1215_v56  ;;  %v6129_v27 = vld [vmem:[%s12652_s4 + $0x98] sm:$0xf0]  ;;  %v6684_v56 = vld [vmem:[%s12652_s4 + $0x94] sm:$0xf0] }
 0x1cf   : > { %v1184_v9 = vmul.f32 %v6802_v60, %v1181_v22  ;;  %vm1190_vm7 = vweird.f32 %v6802_v60  ;;  %v6161_v22 = vld [vmem:[%s12652_s4 + $0xd8] sm:$0xf0] }
 0x1d0   : > { %vm1191_vm9 = vmor %vm1189_vm8, %vm1190_vm7  ;;  %v6164_v51 = vor.u32 %v6690_v58, %v6161_v22  ;;  %v1234_v58 = vsub.f32 %v7500_v15, %v1214_v3  ;;  %v1236_v22 = vsub.f32 %v7405_v16, %v1214_v3  ;;  %v6682_v16 = vld [vmem:[%s12652_s4 + $0x8c] sm:$0xf]  ;;  %v6127_v3 = vld [vmem:[%s12652_s4 + $0x88] sm:$0xf] }
 0x1d1   : > { %v1185_v57 = vmul.f32 %v6802_v60, %v1184_v9  ;;  %2076 = vmatpush.bf16.msrb.mxu3 %v6292_v38  ;;  %v6714_v15 = vld [vmem:[%s12652_s4 + $0x18c] sm:$0xf]  ;;  %v6132_v55 = vor.u32 %v6682_v16, %v6129_v27 }
 0x1d2   : > { %2027 = vmatpush.bf16.msrb.mxu2 %v6164_v51 }
 0x1d3   : > { %v1186_v4 = vmul.f32 0.5, %v1185_v57 }
 0x1d4   : > { %v6804_v13 = vpop.eup %6803 }
 0x1d5   : > { %v1187_v26 = vsub.f32 1.5, %v1186_v4  ;;  %v1194_v37 = vmul.f32 %v6804_v13, %v1182_v53  ;;  %vm1200_vm10 = vweird.f32 %v6804_v13  ;;  %v6692_v53 = vld [vmem:[%s12652_s4 + $0xd4] sm:$0xf0] }
 0x1d6   : > { %vm1201_vm13 = vmor %vm1199_vm11, %vm1200_vm10  ;;  %v6160_v9 = vor.u32 %v6692_v53, %v6159_v42  ;;  %2028 = vmatpush.bf16.msrb.mxu2 %v6148_v20  ;;  %v1208_v53 = vsel %vm994_vm0, %v7952_v18, %v8026_v62 }
 0x1d7   : > { %v1188_v19 = vmul.f32 %v6802_v60, %v1187_v26  ;;  %v1195_v7 = vmul.f32 %v6804_v13, %v1194_v37  ;;  %v6273_v37 = vld [vmem:[%s12652_s4 + $0x1b8] sm:$0xf0] }
 0x1d8   : > { %1929 = vmatpush.bf16.msrb.mxu0 %v6160_v9  ;;  %v1209_v9 = vrot.slane %v1208_v53, 1 }
 0x1d9   : > { %v1192_v10 = vsel %vm1191_vm9, %v6802_v60, %v1188_v19  ;;  %v1196_v47 = vmul.f32 0.5, %v1195_v7  ;;  %v6724_v60 = vld [vmem:[%s12652_s4 + $0x1d4] sm:$0xf0]  ;;  %v6143_v19 = vld [vmem:[%s12652_s4 + $0xa8] sm:$0xf] }
 0x1da   : > { %1264 = vst [vmem:[#allocation1] sm:$0xff] %v1192_v10  ;;  %v6288_v1 = vor.u32 %v6724_v60, %v6287_v30  ;;  %v6688_v7 = vld [vmem:[%s12652_s4 + $0xb4] sm:$0xf0]  ;;  %v6276_v10 = vor.u32 %v6718_v14, %v6273_v37  ;;  %2029 = vmatpush.bf16.msrb.mxu2 %v6132_v55  ;;  %v1210_v55 = vsel %vm996_vm2, %v7952_v18, %v8026_v62  ;;  %v6225_v18 = vld [vmem:[%s12652_s4 + $0x158] sm:$0xf0] }
 0x1db   : > { %v1197_v32 = vsub.f32 1.5, %v1196_v47  ;;  %v6144_v47 = vor.u32 %v6688_v7, %v6143_v19  ;;  %v6095_v62 = vld [vmem:[%s12652_s4 + $0x48] sm:$0xf] }
 0x1dc   : > { %1978 = vmatpush.bf16.msrb.mxu1 %v6288_v1  ;;  %2077 = vmatpush.bf16.msrb.mxu3 %v6276_v10  ;;  %v6257_v1 = vld [vmem:[%s12652_s4 + $0x198] sm:$0xf0] }
 0x1dd   : > { %v1198_v36 = vmul.f32 %v6804_v13, %v1197_v32  ;;  %v6271_v32 = vld [vmem:[%s12652_s4 + $0x1a8] sm:$0xf]  ;;  %1930 = vmatpush.bf16.msrb.mxu0 %v6144_v47 }
 0x1df   : > { %v1202_v0 = vsel %vm1201_vm13, %v6804_v13, %v1198_v36  ;;  %v6720_v36 = vld [vmem:[%s12652_s4 + $0x1b4] sm:$0xf0] }
 0x1e0   : > { %1265 = vst [vmem:[#allocation1 + $0x9] sm:$0xff] %v1202_v0  ;;  %v6272_v0 = vor.u32 %v6720_v36, %v6271_v32  ;;  %v6241_v32 = vld [vmem:[%s12652_s4 + $0x178] sm:$0xf0]  ;;  %v6111_v36 = vld [vmem:[%s12652_s4 + $0x68] sm:$0xf] }
 0x1e2   : > { %1979 = vmatpush.bf16.msrb.mxu1 %v6272_v0  ;;  %v6680_v0 = vld [vmem:[%s12652_s4 + $0x74] sm:$0xf0] }
 0x1e7   : > { %v1267_v11 = vld [vmem:[#allocation1 + $0x4] ss:$9 sm:$0xff] }
 0x1e8   : > { %v1274_v57 = vperm.slane %v1267_v11, 0  ;;  %v1275_v12 = vperm.slane %v1267_v11, 1  ;;  %v6128_v11 = vor.u32 %v6684_v56, %v6127_v3  ;;  %v1211_v56 = vrot.slane %v1210_v55, 2 }
 0x1ea   : > { %v1290_v46 = vmul.f32 %v1274_v57, %v1230_v24  ;;  %v1292_v61 = vmul.f32 %v1274_v57, %v1232_v45  ;;  %v1291_v21 = vmul.f32 %v1275_v12, %v1231_v54  ;;  %v1293_v4 = vmul.f32 %v1275_v12, %v1233_v35  ;;  %v1269_v24 = vld [vmem:[#allocation1 + $0x5] ss:$9 sm:$0xff]  ;;  %1931 = vmatpush.bf16.msrb.mxu0 %v6128_v11 }
 0x1eb   : > { %v1294_v51 = vmul.f32 %v1274_v57, %v1234_v58  ;;  %v1296_v23 = vmul.f32 %v1274_v57, %v1236_v22  ;;  %v1295_v42 = vmul.f32 %v1275_v12, %v1235_v33  ;;  %v1297_v38 = vmul.f32 %v1275_v12, %v1237_v29  ;;  %v6255_v57 = vld [vmem:[%s12652_s4 + $0x188] sm:$0xf]  ;;  %v6716_v54 = vld [vmem:[%s12652_s4 + $0x194] sm:$0xf0] }
 0x1ec   : > { %v8114_v13 = vpack.c.bf16 %v1292_v61, %v1290_v46  ;;  %v8116_v26 = vpack.c.bf16 %v1293_v4, %v1291_v21  ;;  %v6260_v45 = vor.u32 %v6714_v15, %v6257_v1  ;;  %v1216_v35 = vperm.slane %v1209_v9, 0  ;;  %v6239_v33 = vld [vmem:[%s12652_s4 + $0x168] sm:$0xf]  ;;  %v6712_v29 = vld [vmem:[%s12652_s4 + $0x174] sm:$0xf0] }
 0x1ed   : > { %v8153_v30 = vpack.c.bf16 %v1296_v23, %v1294_v51  ;;  %v8155_v60 = vpack.c.bf16 %v1297_v38, %v1295_v42  ;;  %v1217_v12 = vperm.slane %v1209_v9, 1  ;;  %v6256_v46 = vor.u32 %v6716_v54, %v6255_v57  ;;  %v6223_v54 = vld [vmem:[%s12652_s4 + $0x148] sm:$0xf] }
 0x1ee   : > { %1740 = vmatmul.bf16.vlgmr.msra.gmra.mxu0 %v8114_v13  ;;  %1789 = vmatmul.bf16.vlgmr.msra.gmra.mxu1 %v8116_v26  ;;  %v1276_v61 = vperm.slane %v1269_v24, 0  ;;  %v1277_v21 = vperm.slane %v1269_v24, 1  ;;  %v1238_v4 = vsub.f32 %v7609_v59, %v1216_v35  ;;  %v1240_v31 = vsub.f32 %v7431_v41, %v1216_v35  ;;  %v6678_v59 = vld [vmem:[%s12652_s4 + $0x6c] sm:$0xf]  ;;  %v6113_v41 = vld [vmem:[%s12652_s4 + $0x78] sm:$0xf0] }
 0x1ef   : > { %1838 = vmatmul.bf16.vlgmr.msra.gmra.mxu2 %v8114_v13  ;;  %1887 = vmatmul.bf16.vlgmr.msra.gmra.mxu3 %v8116_v26  ;;  %v1239_v48 = vsub.f32 %v7649_v2, %v1217_v12  ;;  %v1241_v14 = vsub.f32 %v7456_v17, %v1217_v12  ;;  %v6710_v17 = vld [vmem:[%s12652_s4 + $0x16c] sm:$0xf]  ;;  %v6116_v2 = vor.u32 %v6678_v59, %v6113_v41  ;;  %v6676_v24 = vld [vmem:[%s12652_s4 + $0x54] sm:$0xf0] }
 0x1f0   : > { %2078 = vmatpush.bf16.msrb.mxu3 %v6260_v45  ;;  %1980 = vmatpush.bf16.msrb.mxu1 %v6256_v46  ;;  %v1298_v20 = vmul.f32 %v1276_v61, %v1238_v4  ;;  %v1300_v37 = vmul.f32 %v1276_v61, %v1240_v31  ;;  %v6244_v58 = vor.u32 %v6710_v17, %v6241_v32  ;;  %v1271_v45 = vld [vmem:[#allocation1 + $0x6] ss:$9 sm:$0xff]  ;;  %v1219_v46 = vperm.slane %v1211_v56, 1 }
 0x1f1   : > { %v1299_v19 = vmul.f32 %v1277_v21, %v1239_v48  ;;  %v1301_v7 = vmul.f32 %v1277_v21, %v1241_v14  ;;  %v6112_v22 = vor.u32 %v6680_v0, %v6111_v36  ;;  %2030 = vmatpush.bf16.msrb.mxu2 %v6116_v2  ;;  %v6240_v51 = vor.u32 %v6712_v29, %v6239_v33  ;;  %v6209_v36 = vld [vmem:[%s12652_s4 + $0x138] sm:$0xf0]  ;;  %v6079_v0 = vld [vmem:[%s12652_s4 + $0x28] sm:$0xf] }
 0x1f2   : > { %v8189_v10 = vpack.c.bf16 %v1300_v37, %v1298_v20  ;;  %v1242_v23 = vsub.f32 %v7612_v6, %v1216_v35  ;;  %v1244_v42 = vsub.f32 %v7619_v5, %v1216_v35  ;;  %v1243_v38 = vsub.f32 %v7689_v25, %v1217_v12  ;;  %v6674_v6 = vld [vmem:[%s12652_s4 + $0x4c] sm:$0xf]  ;;  %v6097_v5 = vld [vmem:[%s12652_s4 + $0x58] sm:$0xf0]  ;;  %v6708_v35 = vld [vmem:[%s12652_s4 + $0x154] sm:$0xf0] }
 0x1f3   : > { %v8191_v47 = vpack.c.bf16 %v1301_v7, %v1299_v19  ;;  %1932 = vmatpush.bf16.msrb.mxu0 %v6112_v22  ;;  %v1245_v53 = vsub.f32 %v7704_v40, %v1217_v12  ;;  %v6706_v25 = vld [vmem:[%s12652_s4 + $0x14c] sm:$0xf]  ;;  %v6100_v40 = vor.u32 %v6674_v6, %v6097_v5  ;;  %v6096_v57 = vor.u32 %v6676_v24, %v6095_v62  ;;  %v12740_v20 = vld [vmem:[#allocation28_spill] sm:$0xff]  ;;  %v6207_v29 = vld [vmem:[%s12652_s4 + $0x128] sm:$0xf] }
 0x1f4   : > { %2079 = vmatpush.bf16.msrb.mxu3 %v6244_v58  ;;  %1981 = vmatpush.bf16.msrb.mxu1 %v6240_v51  ;;  %v1302_v9 = vmul.f32 %v1276_v61, %v1242_v23  ;;  %v1304_v16 = vmul.f32 %v1276_v61, %v1244_v42  ;;  %v1303_v27 = vmul.f32 %v1277_v21, %v1243_v38  ;;  %v1218_v12 = vperm.slane %v1211_v56, 0  ;;  %v6672_v58 = vld [vmem:[%s12652_s4 + $0x34] sm:$0xf0]  ;;  %v12741_v42 = vld [vmem:[#allocation26_spill] sm:$0xff]  ;;  %v6193_v62 = vld [vmem:[%s12652_s4 + $0x118] sm:$0xf0] }
 0x1f5   : > { %v1305_v15 = vmul.f32 %v1277_v21, %v1245_v53  ;;  %v6228_v11 = vor.u32 %v6706_v25, %v6225_v18  ;;  %2031 = vmatpush.bf16.msrb.mxu2 %v6100_v40  ;;  %v6224_v61 = vor.u32 %v6708_v35, %v6223_v54  ;;  %v1278_v21 = vperm.slane %v1271_v45, 0  ;;  %v6704_v51 = vld [vmem:[%s12652_s4 + $0x134] sm:$0xf0]  ;;  %v12742_v53 = vld [vmem:[#allocation27_spill] sm:$0xff]  ;;  %v6063_v24 = vld [vmem:[%s12652_s4 + $0x8] sm:$0xf] }
 0x1f6   : > { %v8228_v1 = vpack.c.bf16 %v1304_v16, %v1302_v9  ;;  %v1279_v4 = vperm.slane %v1271_v45, 1  ;;  %v1246_v31 = vsub.f32 %v7654_v50, %v1218_v12  ;;  %v1248_v48 = vsub.f32 %v7643_v39, %v1218_v12  ;;  %v6670_v50 = vld [vmem:[%s12652_s4 + $0x2c] sm:$0xf]  ;;  %v6081_v39 = vld [vmem:[%s12652_s4 + $0x38] sm:$0xf0] }
 0x1f7   : > { %v8230_v3 = vpack.c.bf16 %v1305_v15, %v1303_v27  ;;  %1933 = vmatpush.bf16.msrb.mxu0 %v6096_v57  ;;  %v1247_v14 = vsub.f32 %v7736_v52, %v1219_v46  ;;  %v1249_v37 = vsub.f32 %v12740_v20, %v1219_v46  ;;  %v6702_v52 = vld [vmem:[%s12652_s4 + $0x12c] sm:$0xf]  ;;  %v6084_v32 = vor.u32 %v6670_v50, %v6081_v39  ;;  %v6668_v45 = vld [vmem:[%s12652_s4 + $0x14] sm:$0xf0]  ;;  %v6191_v35 = vld [vmem:[%s12652_s4 + $0x108] sm:$0xf] }
 0x1f8   : > { %2080 = vmatpush.bf16.msrb.mxu3 %v6228_v11  ;;  %1982 = vmatpush.bf16.msrb.mxu1 %v6224_v61  ;;  %v1306_v19 = vmul.f32 %v1278_v21, %v1246_v31  ;;  %v1308_v7 = vmul.f32 %v1278_v21, %v1248_v48  ;;  %v6212_v22 = vor.u32 %v6702_v52, %v6209_v36  ;;  %v1213_v40 = vrot.slane %v8049_v28, 3  ;;  %v6698_v28 = vld [vmem:[%s12652_s4 + $0x10c] sm:$0xf]  ;;  %v1273_v11 = vld [vmem:[#allocation1 + $0x7] ss:$9 sm:$0xff] }
 0x1f9   : > { %v1307_v59 = vmul.f32 %v1279_v4, %v1247_v14  ;;  %v1309_v41 = vmul.f32 %v1279_v4, %v1249_v37  ;;  %v6080_v33 = vor.u32 %v6672_v58, %v6079_v0  ;;  %2032 = vmatpush.bf16.msrb.mxu2 %v6084_v32  ;;  %v6208_v23 = vor.u32 %v6704_v51, %v6207_v29  ;;  %v12743_v14 = vld [vmem:[#allocation29_spill] sm:$0xff]  ;;  %v12745_v32 = vld [vmem:[#allocation31_spill] sm:$0xff]  ;;  %v12746_v0 = vld [vmem:[#allocation32_spill] sm:$0xff] }
 0x1fa   : > { %v8264_v17 = vpack.c.bf16 %v1308_v7, %v1306_v19  ;;  %v1250_v38 = vsub.f32 %v12741_v42, %v1218_v12  ;;  %v1252_v9 = vsub.f32 %v12742_v53, %v1218_v12  ;;  %v1251_v16 = vsub.f32 %v7739_v63, %v1219_v46  ;;  %v6666_v63 = vld [vmem:[%s12652_s4 + $0xc] sm:$0xf]  ;;  %v6700_v12 = vld [vmem:[%s12652_s4 + $0x114] sm:$0xf0] }
 0x1fb   : > { %v8266_v2 = vpack.c.bf16 %v1309_v41, %v1307_v59  ;;  %1934 = vmatpush.bf16.msrb.mxu0 %v6080_v33  ;;  %v1253_v27 = vsub.f32 %v7762_v49, %v1219_v46  ;;  %v6065_v49 = vld [vmem:[%s12652_s4 + $0x18] sm:$0xf0]  ;;  %v6196_v57 = vor.u32 %v6698_v28, %v6193_v62  ;;  %v6064_v54 = vor.u32 %v6668_v45, %v6063_v24 }
 0x1fc   : > { %2081 = vmatpush.bf16.msrb.mxu3 %v6212_v22  ;;  %1983 = vmatpush.bf16.msrb.mxu1 %v6208_v23  ;;  %v1310_v15 = vmul.f32 %v1278_v21, %v1250_v38  ;;  %v1312_v55 = vmul.f32 %v1278_v21, %v1252_v9  ;;  %v1311_v56 = vmul.f32 %v1279_v4, %v1251_v16  ;;  %v1220_v46 = vperm.slane %v1213_v40, 0 }
 0x1fd   : > { %v1313_v6 = vmul.f32 %v1279_v4, %v1253_v27  ;;  %v6068_v18 = vor.u32 %v6666_v63, %v6065_v49  ;;  %v1221_v61 = vperm.slane %v1213_v40, 1  ;;  %v6192_v21 = vor.u32 %v6700_v12, %v6191_v35 }
 0x1fe   : > { %1745 = vmatmul.bf16.gmra.mxu0 %v8153_v30  ;;  %1794 = vmatmul.bf16.gmra.mxu1 %v8155_v60  ;;  %v8300_v5 = vpack.c.bf16 %v1312_v55, %v1310_v15  ;;  %v1280_v4 = vperm.slane %v1273_v11, 0  ;;  %v1281_v31 = vperm.slane %v1273_v11, 1  ;;  %v1254_v48 = vsub.f32 %v7788_v8, %v1220_v46  ;;  %v12744_v8 = vld [vmem:[#allocation30_spill] sm:$0xff] }
 0x1ff   : > { %1843 = vmatmul.bf16.gmra.mxu2 %v8153_v30  ;;  %1892 = vmatmul.bf16.gmra.mxu3 %v8155_v60  ;;  %v8302_v25 = vpack.c.bf16 %v1313_v6, %v1311_v56  ;;  %v1256_v20 = vsub.f32 %v12743_v14, %v1220_v46  ;;  %v1255_v37 = vsub.f32 %v7812_v44, %v1221_v61  ;;  %v6759_v14 = vld [vmem:[%s12654_s6 + $0xf4] sm:$0xf] }
 0x200   : > { %2033 = vmatpush.bf16.msrb.mxu2 %v6068_v18  ;;  %2082 = vmatpush.bf16.msrb.mxu3 %v6196_v57  ;;  %v1257_v19 = vsub.f32 %v7806_v43, %v1221_v61  ;;  %v1314_v7 = vmul.f32 %v1280_v4, %v1254_v48  ;;  %v1258_v44 = vsub.f32 %v7790_v34, %v1220_v46  ;;  %v1402_v34 = vld [vmem:[%s12653_s5] sm:$0xf] }
 0x201   : > { %1935 = vmatpush.bf16.msrb.mxu0 %v6064_v54  ;;  %1984 = vmatpush.bf16.msrb.mxu1 %v6192_v21  ;;  %v1316_v59 = vmul.f32 %v1280_v4, %v1256_v20  ;;  %v1315_v41 = vmul.f32 %v1281_v31, %v1255_v37  ;;  %v1260_v43 = vsub.f32 %v12744_v8, %v1220_v46  ;;  %v8360_v38 = vperm.slane %v1402_v34, 0 }
 0x202   : > { %v1317_v50 = vmul.f32 %v1281_v31, %v1257_v19  ;;  %v1259_v36 = vsub.f32 %v12745_v32, %v1221_v61  ;;  %v1261_v58 = vsub.f32 %v12746_v0, %v1221_v61  ;;  %v1318_v22 = vmul.f32 %v1280_v4, %v1258_v44  ;;  %v6399_v32 = vld [vmem:[%s12654_s6 + $0x70] sm:$0xf] }
 0x203   : > { %v8337_v39 = vpack.c.bf16 %v1316_v59, %v1314_v7  ;;  %v1320_v33 = vmul.f32 %v1280_v4, %v1260_v43  ;;  %v8369_v15 = vperm.slane %v1402_v34, 1 }
 0x204   : > { %v8339_v52 = vpack.c.bf16 %v1317_v50, %v1315_v41  ;;  %v1319_v29 = vmul.f32 %v1281_v31, %v1259_v36  ;;  %v1321_v51 = vmul.f32 %v1281_v31, %v1261_v58  ;;  %v6744_v36 = vld [vmem:[%s12654_s6 + $0x74] sm:$0xf0] }
 0x205   : > { %v8349_v23 = vpack.c.bf16 %v1320_v33, %v1318_v22  ;;  %v6400_v58 = vor.u32 %v6744_v36, %v6399_v32 }
 0x206   : > { %v8351_v42 = vpack.c.bf16 %v1321_v51, %v1319_v29 }
 0x207   : > { %3746 = vmatpush.bf16.msra.mxu0 %v6400_v58 }
 0x20e   : > { %1750 = vmatmul.bf16.gmra.mxu0 %v8189_v10  ;;  %1799 = vmatmul.bf16.gmra.mxu1 %v8191_v47 }
 0x20f   : > { %1848 = vmatmul.bf16.gmra.mxu2 %v8189_v10  ;;  %1897 = vmatmul.bf16.gmra.mxu3 %v8191_v47 }
 0x21e   : > { %1755 = vmatmul.bf16.gmra.mxu0 %v8228_v1  ;;  %1804 = vmatmul.bf16.gmra.mxu1 %v8230_v3 }
 0x21f   : > { %1853 = vmatmul.bf16.gmra.mxu2 %v8228_v1  ;;  %1902 = vmatmul.bf16.gmra.mxu3 %v8230_v3 }
 0x22e   : > { %1760 = vmatmul.bf16.gmra.mxu0 %v8264_v17  ;;  %1809 = vmatmul.bf16.gmra.mxu1 %v8266_v2 }
 0x22f   : > { %1858 = vmatmul.bf16.gmra.mxu2 %v8264_v17  ;;  %1907 = vmatmul.bf16.gmra.mxu3 %v8266_v2 }
 0x23e   : > { %1765 = vmatmul.bf16.gmra.mxu0 %v8300_v5  ;;  %1814 = vmatmul.bf16.gmra.mxu1 %v8302_v25 }
 0x23f   : > { %1863 = vmatmul.bf16.gmra.mxu2 %v8300_v5  ;;  %1912 = vmatmul.bf16.gmra.mxu3 %v8302_v25 }
 0x24e   : > { %1770 = vmatmul.bf16.gmra.mxu0 %v8337_v39  ;;  %1819 = vmatmul.bf16.gmra.mxu1 %v8339_v52 }
 0x24f   : > { %1868 = vmatmul.bf16.gmra.mxu2 %v8337_v39  ;;  %1917 = vmatmul.bf16.gmra.mxu3 %v8339_v52 }
 0x25e   : > { %1775 = vmatmul.bf16.gmra.mxu0 %v8349_v23  ;;  %1824 = vmatmul.bf16.gmra.mxu1 %v8351_v42 }
 0x25f   : > { %1873 = vmatmul.bf16.gmra.mxu2 %v8349_v23  ;;  %1922 = vmatmul.bf16.gmra.mxu3 %v8351_v42 }
 0x26b   : > { %v1741_v53 = vpop.f32.mrf.mxu0  ;;  %v1790_v9 = vpop.f32.mrf.mxu1 }
 0x26c   : > { %v1742_v16 = vadd.f32 %v1741_v53, %v8360_v38 }
 0x26e   : > { %v8363_v27 = vadd.f32 %v1790_v9, %v1742_v16  ;;  %1936 = vmatmul.bf16.vlgmr.msrb.gmra.mxu0 %v8114_v13  ;;  %1985 = vmatmul.bf16.vlgmr.msrb.gmra.mxu1 %v8116_v26 }
 0x26f   : > { %2034 = vmatmul.bf16.vlgmr.msrb.gmra.mxu2 %v8114_v13  ;;  %2083 = vmatmul.bf16.vlgmr.msrb.gmra.mxu3 %v8116_v26 }
 0x272   : > { %v1839_v55 = vpop.f32.mrf.mxu2  ;;  %v1888_v56 = vpop.f32.mrf.mxu3 }
 0x273   : > { %v1840_v6 = vadd.f32 %v1839_v55, %v8369_v15  ;;  %v1743_v40 = vpop.f32.mrf.mxu0  ;;  %v1792_v63 = vpop.f32.mrf.mxu1  ;;  %v6741_v55 = vld [vmem:[%s12654_s6 + $0x64] sm:$0xf] }
 0x274   : > { %v1744_v49 = vadd.f32 %v1743_v40, %v8360_v38  ;;  %v6457_v40 = vld [vmem:[%s12654_s6 + $0xe8] sm:$0xf0] }
 0x275   : > { %v8373_v28 = vadd.f32 %v1888_v56, %v1840_v6  ;;  %v6393_v56 = vld [vmem:[%s12654_s6 + $0x68] sm:$0xf0] }
 0x276   : > { %v8375_v18 = vadd.f32 %v1792_v63, %v1744_v49 }
 0x27a   : > { %v1841_v62 = vpop.f32.mrf.mxu2  ;;  %v1890_v45 = vpop.f32.mrf.mxu3 }
 0x27b   : > { %v1842_v24 = vadd.f32 %v1841_v62, %v8369_v15  ;;  %v1746_v13 = vpop.f32.mrf.mxu0  ;;  %v1795_v57 = vpop.f32.mrf.mxu1 }
 0x27c   : > { %v1747_v26 = vadd.f32 %v1746_v13, %v8360_v38  ;;  %v6742_v13 = vld [vmem:[%s12654_s6 + $0x64] sm:$0xf0] }
 0x27d   : > { %v8379_v11 = vadd.f32 %v1890_v45, %v1842_v24  ;;  %v6391_v24 = vld [vmem:[%s12654_s6 + $0x60] sm:$0xf] }
 0x27e   : > { %v8381_v54 = vadd.f32 %v1795_v57, %v1747_v26  ;;  %1941 = vmatmul.bf16.gmra.mxu0 %v8153_v30  ;;  %1990 = vmatmul.bf16.gmra.mxu1 %v8155_v60  ;;  %v6392_v26 = vor.u32 %v6742_v13, %v6391_v24 }
 0x27f   : > { %2039 = vmatmul.bf16.gmra.mxu2 %v8153_v30  ;;  %2088 = vmatmul.bf16.gmra.mxu3 %v8155_v60  ;;  %v6743_v60 = vld [vmem:[%s12654_s6 + $0x74] sm:$0xf]  ;;  %v8512_v36 = vmul.f32 0.70710677, %v8379_v11 }
 0x280   : > { %3747 = vmatpush.bf16.msra.mxu0 %v6392_v26 }
 0x282   : > { %v1844_v35 = vpop.f32.mrf.mxu2  ;;  %v1893_v21 = vpop.f32.mrf.mxu3 }
 0x283   : > { %v1748_v12 = vpop.f32.mrf.mxu0  ;;  %v1845_v46 = vadd.f32 %v1844_v35, %v8369_v15  ;;  %v1797_v4 = vpop.f32.mrf.mxu1 }
 0x284   : > { %v1749_v61 = vadd.f32 %v1748_v12, %v8360_v38 }
 0x285   : > { %v8393_v31 = vadd.f32 %v1893_v21, %v1845_v46 }
 0x286   : > { %v8395_v30 = vadd.f32 %v1797_v4, %v1749_v61  ;;  %v8482_v4 = vmul.f32 0.70710677, %v8373_v28 }
 0x28a   : > { %v1895_v37 = vpop.f32.mrf.mxu3 }
 0x28b   : > { %v1751_v19 = vpop.f32.mrf.mxu0  ;;  %v1800_v50 = vpop.f32.mrf.mxu1 }
 0x28c   : > { %v1752_v59 = vadd.f32 %v1751_v19, %v8360_v38  ;;  %v6455_v19 = vld [vmem:[%s12654_s6 + $0xe0] sm:$0xf] }
 0x28e   : > { %1946 = vmatmul.bf16.gmra.mxu0 %v8189_v10  ;;  %1995 = vmatmul.bf16.gmra.mxu1 %v8191_v47  ;;  %v8421_v44 = vadd.f32 %v1800_v50, %v1752_v59 }
 0x28f   : > { %2044 = vmatmul.bf16.gmra.mxu2 %v8189_v10  ;;  %2093 = vmatmul.bf16.gmra.mxu3 %v8191_v47  ;;  %v6401_v10 = vld [vmem:[%s12654_s6 + $0x78] sm:$0xf0]  ;;  %v1846_v47 = vpop.f32.mrf.mxu2 }
 0x290   : > { %v6404_v48 = vor.u32 %v6743_v60, %v6401_v10  ;;  %v1847_v20 = vadd.f32 %v1846_v47, %v8369_v15 }
 0x292   : > { %3844 = vmatpush.bf16.msra.mxu2 %v6404_v48  ;;  %v8414_v7 = vadd.f32 %v1895_v37, %v1847_v20  ;;  %v1898_v43 = vpop.f32.mrf.mxu3  ;;  %v8493_v20 = vmul.f32 0.70710677, %v8375_v18 }
 0x293   : > { %v1753_v33 = vpop.f32.mrf.mxu0  ;;  %v1802_v51 = vpop.f32.mrf.mxu1 }
 0x294   : > { %v1754_v29 = vadd.f32 %v1753_v33, %v8360_v38 }
 0x296   : > { %v8443_v34 = vadd.f32 %v1802_v51, %v1754_v29  ;;  %v2308_v51 = vmul.f32 %v8512_v36, %v8512_v36 }
 0x297   : > { %v1849_v41 = vpop.f32.mrf.mxu2 }
 0x298   : > { %v1850_v8 = vadd.f32 %v1849_v41, %v8369_v15  ;;  %v2268_v41 = vmul.f32 %v8493_v20, %v8493_v20 }
 0x29a   : > { %v8430_v0 = vadd.f32 %v1898_v43, %v1850_v8  ;;  %v1900_v9 = vpop.f32.mrf.mxu3  ;;  %v8509_v32 = vmin.f32 %v2268_v41, 16.0 }
 0x29b   : > { %v1756_v16 = vpop.f32.mrf.mxu0 }
 0x29c   : > { %v1757_v21 = vadd.f32 %v1756_v16, %v8360_v38 }
 0x29e   : > { %1951 = vmatmul.bf16.gmra.mxu0 %v8228_v1  ;;  %2000 = vmatmul.bf16.gmra.mxu1 %v8230_v3 }
 0x29f   : > { %2049 = vmatmul.bf16.gmra.mxu2 %v8228_v1  ;;  %2098 = vmatmul.bf16.gmra.mxu3 %v8230_v3  ;;  %v6465_v1 = vld [vmem:[%s12654_s6 + $0xf8] sm:$0xf0]  ;;  %v1851_v53 = vpop.f32.mrf.mxu2 }
 0x2a0   : > { %v6468_v3 = vor.u32 %v6759_v14, %v6465_v1  ;;  %v1852_v6 = vadd.f32 %v1851_v53, %v8369_v15  ;;  %v2228_v1 = vmul.f32 %v8482_v4, %v8482_v4 }
 0x2a2   : > { %3893 = vmatpush.bf16.msra.mxu3 %v6468_v3  ;;  %v8467_v62 = vadd.f32 %v1900_v9, %v1852_v6  ;;  %v1903_v35 = vpop.f32.mrf.mxu3  ;;  %v8503_v59 = vmin.f32 %v2228_v1, 16.0  ;;  %v8522_v9 = vmul.f32 0.70710677, %v8381_v54  ;;  %v8529_v6 = vmin.f32 %v2308_v51, 16.0 }
 0x2a3   : > { %v1758_v46 = vpop.f32.mrf.mxu0 }
 0x2a4   : > { %v2241_v8 = vmul.f32 3.8918573e-05, %v8503_v59  ;;  %v2230_v24 = vmul.f32 2.1237322e-06, %v8503_v59  ;;  %v2321_v26 = vmul.f32 3.8918573e-05, %v8529_v6 }
 0x2a6   : > { %v2242_v58 = vadd.f32 0.001143296, %v2241_v8 }
 0x2a7   : > { %v1854_v57 = vpop.f32.mrf.mxu2 }
 0x2a8   : > { %v1855_v47 = vadd.f32 %v1854_v57, %v8369_v15  ;;  %v2243_v53 = vmul.f32 %v2242_v58, %v8503_v59 }
 0x2aa   : > { %v1905_v14 = vpop.f32.mrf.mxu3  ;;  %v8495_v37 = vadd.f32 %v1903_v35, %v1855_v47  ;;  %v2231_v47 = vadd.f32 0.00028619796, %v2230_v24 }
 0x2ab   : > { %v1761_v57 = vpop.f32.mrf.mxu0 }
 0x2ac   : > { %12747 = vst [vmem:[#allocation28_spill] sm:$0xff] %v8495_v37  ;;  %v1762_v1 = vadd.f32 %v1761_v57, %v8360_v38 }
 0x2ae   : > { %1956 = vmatmul.bf16.gmra.mxu0 %v8264_v17  ;;  %2005 = vmatmul.bf16.gmra.mxu1 %v8266_v2 }
 0x2af   : > { %2054 = vmatmul.bf16.gmra.mxu2 %v8264_v17  ;;  %2103 = vmatmul.bf16.gmra.mxu3 %v8266_v2  ;;  %v6463_v17 = vld [vmem:[%s12654_s6 + $0xf0] sm:$0xf]  ;;  %v6760_v2 = vld [vmem:[%s12654_s6 + $0xf4] sm:$0xf0]  ;;  %v1856_v48 = vpop.f32.mrf.mxu2 }
 0x2b0   : > { %v6464_v22 = vor.u32 %v6760_v2, %v6463_v17  ;;  %v2281_v2 = vmul.f32 3.8918573e-05, %v8509_v32  ;;  %v1857_v33 = vadd.f32 %v1856_v48, %v8369_v15  ;;  %v6385_v48 = vld [vmem:[%s12654_s6 + $0x58] sm:$0xf0] }
 0x2b2   : > { %3795 = vmatpush.bf16.msra.mxu1 %v6464_v22  ;;  %v1759_v22 = vadd.f32 %v1758_v46, %v8360_v38  ;;  %v2282_v16 = vadd.f32 0.001143296, %v2281_v2 }
 0x2be   : > { %1961 = vmatmul.bf16.gmra.mxu0 %v8300_v5  ;;  %2010 = vmatmul.bf16.gmra.mxu1 %v8302_v25 }
 0x2bf   : > { %2059 = vmatmul.bf16.gmra.mxu2 %v8300_v5  ;;  %2108 = vmatmul.bf16.gmra.mxu3 %v8302_v25  ;;  %v8450_v5 = vmul.f32 0.70710677, %v8363_v27  ;;  %v1805_v25 = vpop.f32.mrf.mxu1 }
 0x2c0   : > { %v8484_v60 = vadd.f32 %v1805_v25, %v1757_v21 }
 0x2c1   : > { %v2188_v63 = vmul.f32 %v8450_v5, %v8450_v5 }
 0x2c3   : > { %v8475_v45 = vmin.f32 %v2188_v63, 16.0 }
 0x2c5   : > { %v2201_v61 = vmul.f32 3.8918573e-05, %v8475_v45  ;;  %v2190_v29 = vmul.f32 2.1237322e-06, %v8475_v45 }
 0x2c7   : > { %v1807_v12 = vpop.f32.mrf.mxu1  ;;  %v2202_v10 = vadd.f32 0.001143296, %v2201_v61  ;;  %v2270_v61 = vmul.f32 2.1237322e-06, %v8509_v32 }
 0x2c9   : > { %v2203_v3 = vmul.f32 %v2202_v10, %v8475_v45  ;;  %v6739_v10 = vld [vmem:[%s12654_s6 + $0x54] sm:$0xf]  ;;  %v2271_v58 = vadd.f32 0.00028619796, %v2270_v61 }
 0x2ce   : > { %1966 = vmatmul.bf16.gmra.mxu0 %v8337_v39  ;;  %2015 = vmatmul.bf16.gmra.mxu1 %v8339_v52 }
 0x2cf   : > { %2064 = vmatmul.bf16.gmra.mxu2 %v8337_v39  ;;  %2113 = vmatmul.bf16.gmra.mxu3 %v8339_v52  ;;  %v6757_v39 = vld [vmem:[%s12654_s6 + $0xe4] sm:$0xf]  ;;  %v6396_v52 = vor.u32 %v6741_v55, %v6393_v56  ;;  %v8525_v55 = vadd.f32 %v1807_v12, %v1759_v22  ;;  %v8527_v56 = vadd.f32 %v1905_v14, %v1857_v33  ;;  %v6755_v14 = vld [vmem:[%s12654_s6 + $0xd4] sm:$0xf]  ;;  %v1810_v2 = vpop.f32.mrf.mxu1 }
 0x2d0   : > { %v6460_v49 = vor.u32 %v6757_v39, %v6457_v40  ;;  %v2191_v39 = vadd.f32 0.00028619796, %v2190_v29  ;;  %v2348_v40 = vmul.f32 %v8522_v9, %v8522_v9  ;;  %v2232_v22 = vmul.f32 %v2231_v47, %v8503_v59 }
 0x2d1   : > { %3845 = vmatpush.bf16.msra.mxu2 %v6396_v52  ;;  %12748 = vst [vmem:[#allocation26_spill] sm:$0xff] %v8525_v55  ;;  %v2244_v52 = vadd.f32 0.014752088, %v2243_v53  ;;  %v8560_v33 = vadd.f32 %v1810_v2, %v1762_v1 }
 0x2d2   : > { %3894 = vmatpush.bf16.msra.mxu3 %v6460_v49  ;;  %12749 = vst [vmem:[#allocation27_spill] sm:$0xff] %v8527_v56  ;;  %v2283_v49 = vmul.f32 %v2282_v16, %v8509_v32  ;;  %v2192_v13 = vmul.f32 %v2191_v39, %v8475_v45  ;;  %v8538_v12 = vmin.f32 %v2348_v40, 16.0  ;;  %v2272_v16 = vmul.f32 %v2271_v58, %v8509_v32 }
 0x2d3   : > { %v2245_v35 = vmul.f32 %v2244_v52, %v8503_v59  ;;  %12750 = vst [vmem:[#allocation29_spill] sm:$0xff] %v8560_v33  ;;  %v2233_v52 = vadd.f32 0.0036580483, %v2232_v22 }
 0x2d4   : > { %v2284_v21 = vadd.f32 0.014752088, %v2283_v49  ;;  %v2361_v41 = vmul.f32 3.8918573e-05, %v8538_v12  ;;  %v2273_v57 = vadd.f32 0.0036580483, %v2272_v16 }
 0x2de   : > { %2020 = vmatmul.bf16.gmra.mxu1 %v8351_v42  ;;  %1971 = vmatmul.bf16.gmra.mxu0 %v8349_v23 }
 0x2df   : > { %2069 = vmatmul.bf16.gmra.mxu2 %v8349_v23  ;;  %2118 = vmatmul.bf16.gmra.mxu3 %v8351_v42  ;;  %v6758_v23 = vld [vmem:[%s12654_s6 + $0xe4] sm:$0xf0]  ;;  %v2204_v42 = vadd.f32 0.014752088, %v2203_v3  ;;  %v2193_v3 = vadd.f32 0.0036580483, %v2192_v13 }
 0x2e0   : > { %v6456_v50 = vor.u32 %v6758_v23, %v6455_v19  ;;  %v2322_v19 = vadd.f32 0.001143296, %v2321_v26  ;;  %v6449_v23 = vld [vmem:[%s12654_s6 + $0xd8] sm:$0xf0]  ;;  %v8570_v26 = vmul.f32 0.70710677, %v8393_v31 }
 0x2e1   : > { %v2205_v43 = vmul.f32 %v2204_v42, %v8475_v45  ;;  %v2246_v42 = vadd.f32 0.112945676, %v2245_v35  ;;  %v6452_v8 = vor.u32 %v6755_v14, %v6449_v23  ;;  %v2194_v29 = vmul.f32 %v2193_v3, %v8475_v45  ;;  %v6383_v23 = vld [vmem:[%s12654_s6 + $0x50] sm:$0xf] }
 0x2e2   : > { %3796 = vmatpush.bf16.msra.mxu1 %v6456_v50  ;;  %v6388_v50 = vor.u32 %v6739_v10, %v6385_v48  ;;  %v2323_v51 = vmul.f32 %v2322_v19, %v8529_v6  ;;  %v2388_v1 = vmul.f32 %v8570_v26, %v8570_v26  ;;  %v2274_v3 = vmul.f32 %v2273_v57, %v8509_v32 }
 0x2e3   : > { %v2206_v17 = vadd.f32 0.112945676, %v2205_v43  ;;  %3895 = vmatpush.bf16.msra.mxu3 %v6452_v8  ;;  %v2247_v53 = vmul.f32 %v2246_v42, %v8503_v59  ;;  %v2195_v40 = vadd.f32 0.05243302, %v2194_v29  ;;  %v6740_v42 = vld [vmem:[%s12654_s6 + $0x54] sm:$0xf0] }
 0x2e4   : > { %3846 = vmatpush.bf16.msra.mxu2 %v6388_v50  ;;  %v2324_v49 = vadd.f32 0.014752088, %v2323_v51  ;;  %v6384_v8 = vor.u32 %v6740_v42, %v6383_v23  ;;  %v2350_v29 = vmul.f32 2.1237322e-06, %v8538_v12  ;;  %v8625_v23 = vmul.f32 0.5, %v8375_v18 }
 0x2e5   : > { %v2207_v25 = vmul.f32 %v2206_v17, %v8475_v45  ;;  %v2285_v17 = vmul.f32 %v2284_v21, %v8509_v32  ;;  %v2248_v24 = vadd.f32 0.4994258, %v2247_v53  ;;  %v2196_v21 = vmul.f32 %v2195_v40, %v8475_v45 }
 0x2e6   : > { %v2325_v47 = vmul.f32 %v2324_v49, %v8529_v6  ;;  %v8595_v53 = vmin.f32 %v2388_v1, 16.0  ;;  %3748 = vmatpush.bf16.msra.mxu0 %v6384_v8  ;;  %v6756_v49 = vld [vmem:[%s12654_s6 + $0xd4] sm:$0xf0]  ;;  %v8621_v1 = vmul.f32 0.5, %v8373_v28  ;;  %v1859_v28 = vpop.f32.mrf.mxu2  ;;  %v8638_v18 = vmul.f32 0.70710677, %v8414_v7 }
 0x2e7   : > { %v2208_v63 = vadd.f32 0.4994258, %v2207_v25  ;;  %v2362_v25 = vadd.f32 0.001143296, %v2361_v41  ;;  %v2286_v39 = vadd.f32 0.112945676, %v2285_v17  ;;  %v2249_v48 = vmul.f32 %v2248_v24, %v8503_v59 }
 0x2e8   : > { %v2197_v58 = vadd.f32 0.18741608, %v2196_v21  ;;  %v2326_v2 = vadd.f32 0.112945676, %v2325_v47  ;;  %v8613_v47 = vmul.f32 0.5, %v8363_v27  ;;  %v8628_v27 = vmul.f32 0.5, %v8379_v11 }
 0x2e9   : > { %v2209_v46 = vmul.f32 %v2208_v63, %v8475_v45  ;;  %v2310_v63 = vmul.f32 2.1237322e-06, %v8529_v6  ;;  %v2363_v13 = vmul.f32 %v2362_v25, %v8538_v12  ;;  %v2287_v35 = vmul.f32 %v2286_v39, %v8509_v32 }
 0x2ea   : > { %v8591_v22 = vadd.f32 1.0, %v2249_v48  ;;  %v2275_v25 = vadd.f32 0.05243302, %v2274_v3  ;;  %v8599_v39 = vmul.f32 0.70710677, %v8395_v30  ;;  %v2198_v24 = vmul.f32 %v2197_v58, %v8475_v45 }
 0x2eb   : > { %v8556_v43 = vadd.f32 1.0, %v2209_v46  ;;  %v2234_v46 = vmul.f32 %v2233_v52, %v8503_v59  ;;  %v2311_v10 = vadd.f32 0.00028619796, %v2310_v63  ;;  %v2364_v14 = vadd.f32 0.014752088, %v2363_v13 }
 0x2ec   : > { %v2288_v19 = vadd.f32 0.4994258, %v2287_v35  ;;  %v6447_v63 = vld [vmem:[%s12654_s6 + $0xd0] sm:$0xf]  ;;  %v2327_v57 = vmul.f32 %v2326_v2, %v8529_v6  ;;  %vm2256_vm2 = vweird.f32 %v8591_v22 }
 0x2ed   : > { %6805 = vrcp.f32 %v8556_v43  ;;  %v2235_v50 = vadd.f32 0.05243302, %v2234_v46  ;;  %v2312_v17 = vmul.f32 %v2311_v10, %v8529_v6  ;;  %v2365_v51 = vmul.f32 %v2364_v14, %v8538_v12 }
 0x2ee   : > { %v2289_v16 = vmul.f32 %v2288_v19, %v8509_v32  ;;  %v6448_v35 = vor.u32 %v6756_v49, %v6447_v63  ;;  %6807 = vrcp.f32 %v8591_v22  ;;  %v2351_v46 = vadd.f32 0.00028619796, %v2350_v29 }
 0x2ef   : > { %v2236_v40 = vmul.f32 %v2235_v50, %v8503_v59  ;;  %v2313_v13 = vadd.f32 0.0036580483, %v2312_v17  ;;  %v2366_v21 = vadd.f32 0.112945676, %v2365_v51  ;;  %v2401_v10 = vmul.f32 3.8918573e-05, %v8595_v53 }
 0x2f0   : > { %v8615_v48 = vadd.f32 1.0, %v2289_v16  ;;  %v2428_v14 = vmul.f32 %v8599_v39, %v8599_v39  ;;  %3797 = vmatpush.bf16.msra.mxu1 %v6448_v35  ;;  %v2276_v19 = vmul.f32 %v2275_v25, %v8509_v32  ;;  %v2199_v50 = vadd.f32 1.1283791, %v2198_v24 }
 0x2f1   : > { %v2237_v3 = vadd.f32 0.18741608, %v2236_v40  ;;  %v2314_v42 = vmul.f32 %v2313_v13, %v8529_v6  ;;  %v2352_v8 = vmul.f32 %v2351_v46, %v8538_v12  ;;  %v2367_v58 = vmul.f32 %v2366_v21, %v8538_v12 }
 0x2f2   : > { %v2402_v17 = vadd.f32 0.001143296, %v2401_v10  ;;  %vm2216_vm14 = vweird.f32 %v8556_v43  ;;  %6809 = vrcp.f32 %v8615_v48  ;;  %v8635_v2 = vmin.f32 %v2428_v14, 16.0 }
 0x2f3   : > { %v8574_v61 = vpop.eup %6805  ;;  %v2238_v51 = vmul.f32 %v2237_v3, %v8503_v59  ;;  %v2277_v25 = vadd.f32 0.18741608, %v2276_v19  ;;  %v2222_v16 = vand.u32 2147483648, %v8556_v43  ;;  %v1860_v63 = vadd.f32 %v1859_v28, %v8369_v15  ;;  %v1908_v19 = vpop.f32.mrf.mxu3 }
 0x2f4   : > { %v2212_v41 = vmul.f32 %v8574_v61, %v8556_v43  ;;  %v8640_v11 = vpop.eup %6807  ;;  %vm2217_vm15 = vweird.f32 %v8574_v61  ;;  %v2220_v49 = vand.u32 2147483647, %v8556_v43  ;;  %v2353_v24 = vadd.f32 0.0036580483, %v2352_v8 }
 0x2f5   : > { %v2368_v13 = vadd.f32 0.4994258, %v2367_v58  ;;  %vm8652_vm0 = vmor %vm2216_vm14, %vm2217_vm15  ;;  %v2252_v59 = vmul.f32 %v8640_v11, %v8591_v22  ;;  %v8659_v46 = vmul.f32 0.5, %v8381_v54  ;;  %v2441_v21 = vmul.f32 3.8918573e-05, %v8635_v2 }
 0x2f6   : > { %v2213_v52 = vsub.f32 1.0, %v2212_v41  ;;  %v2328_v41 = vadd.f32 0.4994258, %v2327_v57  ;;  %v2403_v57 = vmul.f32 %v2402_v17, %v8595_v53  ;;  %v2468_v10 = vmul.f32 %v8638_v18, %v8638_v18 }
 0x2f7   : > { %v2200_v14 = vmul.f32 %v2199_v50, %v8450_v5  ;;  %v2278_v3 = vmul.f32 %v2277_v25, %v8509_v32  ;;  %v8674_v58 = vadd.f32 %v1908_v19, %v1860_v63  ;;  %vm2221_vm1 = vcmp.eq.f32.partialorder %v2220_v49, 8.507059e+37  ;;  %v8704_v19 = vpop.f32.mrf.mxu1 }
 0x2f8   : > { %v2214_v45 = vmul.f32 %v8574_v61, %v2213_v52  ;;  %v2315_v52 = vadd.f32 0.05243302, %v2314_v42  ;;  %v2329_v40 = vmul.f32 %v2328_v41, %v8529_v6  ;;  %v8669_v42 = vpop.eup %6809  ;;  %v2223_v41 = vor.u32 1.1754944e-38, %v2222_v16  ;;  %12756 = vst [vmem:[#allocation33_spill] sm:$0xff] %v8704_v19 }
 0x2f9   : > { %12753 = vst [vmem:[#allocation30_spill] sm:$0xff] %v8674_v58  ;;  %v2354_v5 = vmul.f32 %v2353_v24, %v8538_v12  ;;  %v2369_v50 = vmul.f32 %v2368_v13, %v8538_v12  ;;  %v2404_v17 = vadd.f32 0.014752088, %v2403_v57  ;;  %v2253_v32 = vsub.f32 1.0, %v2252_v59  ;;  %v8819_v58 = vpop.f32.mrf.mxu2 }
 0x2fa   : > { %v2215_v29 = vadd.f32 %v8574_v61, %v2214_v45  ;;  %v2239_v45 = vadd.f32 1.1283791, %v2238_v51  ;;  %v2316_v54 = vmul.f32 %v2315_v52, %v8529_v6  ;;  %v8672_v8 = vadd.f32 1.0, %v2329_v40 }
 0x2fb   : > { %v8680_v51 = vmin.f32 %v2468_v10, 16.0  ;;  %v2262_v16 = vand.u32 2147483648, %v8591_v22  ;;  %v2279_v52 = vadd.f32 1.1283791, %v2278_v3  ;;  %v2292_v40 = vmul.f32 %v8669_v42, %v8615_v48 }
 0x2fc   : > { %v2219_v43 = vsel %vm8652_vm0, %v8574_v61, %v2215_v29  ;;  %v8678_v61 = vpop.f32.mrf.mxu0  ;;  %v2442_v29 = vadd.f32 0.001143296, %v2441_v21  ;;  %v8683_v25 = vmul.f32 %v2239_v45, %v8482_v4  ;;  %v2260_v63 = vand.u32 2147483647, %v8591_v22 }
 0x2fd   : > { %12754 = vst [vmem:[#allocation31_spill] sm:$0xff] %v8678_v61  ;;  %v2224_v28 = vsel %vm2221_vm1, %v2223_v41, %v2219_v43  ;;  %v2317_v49 = vadd.f32 0.18741608, %v2316_v54  ;;  %6811 = vrcp.f32 %v8672_v8  ;;  %v2302_v13 = vand.u32 2147483648, %v8615_v48 }
 0x2fe   : > { %v2225_v24 = vmul.f32 %v2224_v28, %v2200_v14  ;;  %v8692_v57 = vadd.f32 1.0, %v2369_v50  ;;  %v2405_v4 = vmul.f32 %v2404_v17, %v8595_v53  ;;  %v2254_v35 = vmul.f32 %v8640_v11, %v2253_v32 }
 0x2ff   : > { %v2355_v59 = vadd.f32 0.05243302, %v2354_v5  ;;  %v2443_v21 = vmul.f32 %v2442_v29, %v8635_v2  ;;  %v2481_v10 = vmul.f32 3.8918573e-05, %v8680_v51  ;;  %v2263_v43 = vor.u32 1.1754944e-38, %v2262_v16 }
 0x300   : > { %v8699_v45 = vmul.f32 %v2279_v52, %v8493_v20  ;;  %v2293_v3 = vsub.f32 1.0, %v2292_v40  ;;  %v8702_v14 = vmul.f32 0.70710677, %v8421_v44  ;;  %vm2257_vm3 = vweird.f32 %v8640_v11 }
 0x301   : > { %vm8707_vm4 = vcmp.eq.f32.partialorder %v2260_v63, 8.507059e+37  ;;  %v2300_v54 = vand.u32 2147483647, %v8615_v48  ;;  %v2318_v5 = vmul.f32 %v2317_v49, %v8529_v6  ;;  %v8714_v50 = vmul.f32 0.70710677, %v8430_v0  ;;  %vm8747_vm7 = vmor %vm2256_vm2, %vm2257_vm3 }
 0x302   : > { %12755 = vst [vmem:[#allocation32_spill] sm:$0xff] %v8702_v14  ;;  %v6309_v20 = vclamps-f32 %v2225_v24, 1.0  ;;  %v8716_v17 = vor.u32 1.1754944e-38, %v2302_v13  ;;  %6813 = vrcp.f32 %v8692_v57  ;;  %v2406_v28 = vadd.f32 0.112945676, %v2405_v4 }
 0x303   : > { %12759 = vst [vmem:[#allocation34_spill] sm:$0xff] %v8714_v50  ;;  %v8719_v32 = vpop.eup %6811  ;;  %v2255_v29 = vadd.f32 %v8640_v11, %v2254_v35  ;;  %v2356_v16 = vmul.f32 %v2355_v59, %v8538_v12  ;;  %v2444_v52 = vadd.f32 0.014752088, %v2443_v21  ;;  %v2482_v40 = vadd.f32 0.001143296, %v2481_v10 }
 0x304   : > { %v6737_v6 = vld [vmem:[%s12654_s6 + $0x44] sm:$0xf]  ;;  %v2294_v63 = vmul.f32 %v8669_v42, %v2293_v3  ;;  %vm2296_vm5 = vweird.f32 %v8615_v48  ;;  %vm2297_vm6 = vweird.f32 %v8669_v42  ;;  %v2508_v49 = vmul.f32 %v8702_v14, %v8702_v14  ;;  %v6377_v24 = vld [vmem:[%s12654_s6 + $0x48] sm:$0xf0]  ;;  %v1766_v35 = vpop.f32.mrf.mxu0 }
 0x305   : > { %v6753_v13 = vld [vmem:[%s12654_s6 + $0xc4] sm:$0xf]  ;;  %v6441_v4 = vld [vmem:[%s12654_s6 + $0xc8] sm:$0xf0]  ;;  %v2319_v59 = vadd.f32 1.1283791, %v2318_v5  ;;  %v2548_v10 = vmul.f32 %v8714_v50, %v8714_v50  ;;  %v6380_v3 = vor.u32 %v6737_v6, %v6377_v24  ;;  %v2332_v5 = vmul.f32 %v8719_v32, %v8672_v8  ;;  %vm8787_vm9 = vmor %vm2296_vm5, %vm2297_vm6 }
 0x306   : > { %v2390_v21 = vmul.f32 2.1237322e-06, %v8595_v53  ;;  %v3468_v19 = vadd.f32 1.0, %v6309_v20  ;;  %vm8751_vm8 = vcmp.eq.f32.partialorder %v2300_v54, 8.507059e+37  ;;  %v2430_v33 = vmul.f32 2.1237322e-06, %v8635_v2 }
 0x307   : > { %v6444_v50 = vor.u32 %v6753_v13, %v6441_v4  ;;  %v2259_v20 = vsel %vm8747_vm7, %v8640_v11, %v2255_v29  ;;  %v2357_v6 = vadd.f32 0.18741608, %v2356_v16  ;;  %v2445_v22 = vmul.f32 %v2444_v52, %v8635_v2  ;;  %3847 = vmatpush.bf16.msra.mxu2 %v6380_v3 }
 0x308   : > { %v1767_v24 = vadd.f32 %v1766_v35, %v8360_v38  ;;  %v8763_v54 = vpop.eup %6813  ;;  %v2295_v56 = vadd.f32 %v8669_v42, %v2294_v63  ;;  %v2407_v14 = vmul.f32 %v2406_v28, %v8595_v53  ;;  %v2483_v55 = vmul.f32 %v2482_v40, %v8680_v51 }
 0x309   : > { %v8768_v37 = vmin.f32 %v2508_v49, 16.0  ;;  %3896 = vmatpush.bf16.msra.mxu3 %v6444_v50  ;;  %v8771_v61 = vmul.f32 %v2319_v59, %v8512_v36  ;;  %v8774_v11 = vmul.f32 0.5, %v8393_v31  ;;  %v2391_v29 = vadd.f32 0.00028619796, %v2390_v21  ;;  %v1815_v49 = vpop.f32.mrf.mxu1 }
 0x30a   : > { %v8776_v16 = vmin.f32 %v2548_v10, 16.0  ;;  %v8779_v52 = vmul.f32 %v3468_v19, %v8613_v47  ;;  %v2264_v28 = vsel %vm8707_vm4, %v2263_v43, %v2259_v20  ;;  %v2333_v63 = vsub.f32 1.0, %v2332_v5 }
 0x30b   : > { %v2431_v40 = vadd.f32 0.00028619796, %v2430_v33  ;;  %v2358_v31 = vmul.f32 %v2357_v6, %v8538_v12  ;;  %v2372_v47 = vmul.f32 %v8763_v54, %v8692_v57  ;;  %v2446_v19 = vadd.f32 0.112945676, %v2445_v22 }
 0x30c   : > { %12764 = vst [vmem:[#allocation35_spill] sm:$0xff] %v8779_v52  ;;  %v8794_v50 = vadd.f32 %v1815_v49, %v1767_v24  ;;  %v2299_v33 = vsel %vm8787_vm9, %v8669_v42, %v2295_v56  ;;  %v2408_v43 = vadd.f32 0.4994258, %v2407_v14  ;;  %v2484_v41 = vadd.f32 0.014752088, %v2483_v55  ;;  %v12794_v52 = vld [vmem:[#allocation26_spill] sm:$0xff] }
 0x30d   : > { %v2521_v48 = vmul.f32 3.8918573e-05, %v8768_v37  ;;  %v2265_v13 = vmul.f32 %v2264_v28, %v8683_v25  ;;  %v2340_v4 = vand.u32 2147483647, %v8672_v8  ;;  %v2392_v12 = vmul.f32 %v2391_v29, %v8595_v53  ;;  %v6738_v49 = vld [vmem:[%s12654_s6 + $0x44] sm:$0xf0] }
 0x30e   : > { %v2561_v35 = vmul.f32 3.8918573e-05, %v8776_v16  ;;  %v2334_v59 = vmul.f32 %v8719_v32, %v2333_v63  ;;  %vm2336_vm10 = vweird.f32 %v8672_v8  ;;  %v2342_v21 = vand.u32 2147483648, %v8672_v8 }
 0x30f   : > { %v2432_v56 = vmul.f32 %v2431_v40, %v8635_v2  ;;  %v2304_v55 = vsel %vm8751_vm8, %v8716_v17, %v2299_v33  ;;  %v2373_v42 = vsub.f32 1.0, %v2372_v47  ;;  %v2447_v25 = vmul.f32 %v2446_v19, %v8635_v2  ;;  %v6375_v40 = vld [vmem:[%s12654_s6 + $0x40] sm:$0xf] }
 0x310   : > { %v2470_v14 = vmul.f32 2.1237322e-06, %v8680_v51  ;;  %v2359_v10 = vadd.f32 1.1283791, %v2358_v31  ;;  %v2409_v3 = vmul.f32 %v2408_v43, %v8595_v53  ;;  %v2485_v5 = vmul.f32 %v2484_v41, %v8680_v51 }
 0x311   : > { %v2522_v20 = vadd.f32 0.001143296, %v2521_v48  ;;  %v6310_v6 = vclamps-f32 %v2265_v13, 1.0  ;;  %vm8815_vm11 = vcmp.eq.f32.partialorder %v2340_v4, 8.507059e+37  ;;  %v2393_v24 = vadd.f32 0.0036580483, %v2392_v12 }
 0x312   : > { %v2562_v29 = vadd.f32 0.001143296, %v2561_v35  ;;  %v2305_v17 = vmul.f32 %v2304_v55, %v8699_v45  ;;  %v2335_v28 = vadd.f32 %v8719_v32, %v2334_v59  ;;  %vm2337_vm12 = vweird.f32 %v8719_v32 }
 0x313   : > { %v2433_v63 = vadd.f32 0.0036580483, %v2432_v56  ;;  %v2343_v36 = vor.u32 1.1754944e-38, %v2342_v21  ;;  %v2374_v31 = vmul.f32 %v8763_v54, %v2373_v42  ;;  %v2448_v47 = vadd.f32 0.4994258, %v2447_v25  ;;  %vm8836_vm13 = vmor %vm2336_vm10, %vm2337_vm12  ;;  %v8854_v25 = vpop.f32.mrf.mxu3 }
 0x314   : > { %v2471_v19 = vadd.f32 0.00028619796, %v2470_v14  ;;  %v8831_v33 = vadd.f32 1.0, %v2409_v3  ;;  %v2486_v45 = vadd.f32 0.112945676, %v2485_v5  ;;  %v2523_v43 = vmul.f32 %v2522_v20, %v8768_v37 }
 0x315   : > { %v6376_v41 = vor.u32 %v6738_v49, %v6375_v40  ;;  %v3469_v48 = vadd.f32 1.0, %v6310_v6  ;;  %v2360_v4 = vmul.f32 %v2359_v10, %v8522_v9  ;;  %v2394_v12 = vmul.f32 %v2393_v24, %v8595_v53  ;;  %v1864_v49 = vpop.f32.mrf.mxu2 }
 0x316   : > { %v2563_v35 = vmul.f32 %v2562_v29, %v8776_v16  ;;  %v6311_v59 = vclamps-f32 %v2305_v17, 1.0  ;;  %v2339_v21 = vsel %vm8836_vm13, %v8719_v32, %v2335_v28  ;;  %v2434_v56 = vmul.f32 %v2433_v63, %v8635_v2 }
 0x317   : > { %v8848_v55 = vmul.f32 0.70710677, %v8443_v34  ;;  %3749 = vmatpush.bf16.msra.mxu0 %v6376_v41  ;;  %v2375_v8 = vadd.f32 %v8763_v54, %v2374_v31  ;;  %vm2377_vm14 = vweird.f32 %v8763_v54  ;;  %v2449_v9 = vmul.f32 %v2448_v47, %v8635_v2 }
 0x318   : > { %v2472_v42 = vmul.f32 %v2471_v19, %v8680_v51  ;;  %v2382_v14 = vand.u32 2147483648, %v8692_v57  ;;  %6815 = vrcp.f32 %v8831_v33  ;;  %v2487_v32 = vmul.f32 %v2486_v45, %v8680_v51 }
 0x319   : > { %v2524_v10 = vadd.f32 0.014752088, %v2523_v43  ;;  %vm2376_vm15 = vweird.f32 %v8692_v57  ;;  %v2380_v3 = vand.u32 2147483647, %v8692_v57  ;;  %v2395_v5 = vadd.f32 0.05243302, %v2394_v12 }
 0x31a   : > { %v2564_v20 = vadd.f32 0.014752088, %v2563_v35  ;;  %v2344_v6 = vsel %vm8815_vm11, %v2343_v36, %v2339_v21  ;;  %vm8863_vm0 = vmor %vm2376_vm15, %vm2377_vm14  ;;  %v8868_v29 = vmul.f32 0.5, %v8395_v30  ;;  %v2435_v17 = vadd.f32 0.05243302, %v2434_v56 }
 0x31b   : > { %v2588_v28 = vmul.f32 %v8848_v55, %v8848_v55  ;;  %v3470_v63 = vadd.f32 1.0, %v6311_v59  ;;  %v2379_v57 = vsel %vm8863_vm0, %v8763_v54, %v2375_v8  ;;  %v8875_v40 = vadd.f32 1.0, %v2449_v9  ;;  %v6439_v35 = vld [vmem:[%s12654_s6 + $0xc0] sm:$0xf]  ;;  %v6754_v8 = vld [vmem:[%s12654_s6 + $0xc4] sm:$0xf0] }
 0x31c   : > { %v2473_v22 = vadd.f32 0.0036580483, %v2472_v42  ;;  %v2383_v36 = vor.u32 1.1754944e-38, %v2382_v14  ;;  %v2488_v31 = vadd.f32 0.4994258, %v2487_v32  ;;  %v2525_v30 = vmul.f32 %v2524_v10, %v8768_v37 }
 0x31d   : > { %v2510_v47 = vmul.f32 2.1237322e-06, %v8768_v37  ;;  %v2345_v19 = vmul.f32 %v2344_v6, %v8771_v61  ;;  %vm2381_vm1 = vcmp.eq.f32.partialorder %v2380_v3, 8.507059e+37  ;;  %v2396_v45 = vmul.f32 %v2395_v5, %v8595_v53  ;;  %v1913_v6 = vpop.f32.mrf.mxu3 }
 0x31e   : > { %v2565_v43 = vmul.f32 %v2564_v20, %v8776_v16  ;;  %v8882_v41 = vpop.eup %6815  ;;  %v2384_v54 = vsel %vm2381_vm1, %v2383_v36, %v2379_v57  ;;  %v2436_v13 = vmul.f32 %v2435_v17, %v8635_v2  ;;  %v8885_v12 = vmin.f32 %v2588_v28, 16.0 }
 0x31f   : > { %v1865_v59 = vadd.f32 %v1864_v49, %v8369_v15  ;;  %6817 = vrcp.f32 %v8875_v40  ;;  %v2474_v61 = vmul.f32 %v2473_v22, %v8680_v51  ;;  %v2550_v21 = vmul.f32 2.1237322e-06, %v8776_v16 }
 0x320   : > { %v8895_v56 = vmul.f32 0.70710677, %v8467_v62  ;;  %v2489_v9 = vmul.f32 %v2488_v31, %v8680_v51  ;;  %v2511_v42 = vadd.f32 0.00028619796, %v2510_v47  ;;  %v2526_v14 = vadd.f32 0.112945676, %v2525_v30 }
 0x321   : > { %v6440_v32 = vor.u32 %v6754_v8, %v6439_v35  ;;  %v8902_v10 = vmul.f32 %v3469_v48, %v8621_v1  ;;  %v6312_v3 = vclamps-f32 %v2345_v19, 1.0  ;;  %v2412_v5 = vmul.f32 %v8882_v41, %v8831_v33 }
 0x322   : > { %v2566_v20 = vadd.f32 0.112945676, %v2565_v43  ;;  %v2385_v24 = vmul.f32 %v2384_v54, %v2360_v4  ;;  %v2397_v17 = vadd.f32 0.18741608, %v2396_v45  ;;  %v2601_v28 = vmul.f32 3.8918573e-05, %v8885_v12 }
 0x323   : > { %12773 = vst [vmem:[#allocation36_spill] sm:$0xff] %v8902_v10  ;;  %3798 = vmatpush.bf16.msra.mxu1 %v6440_v32  ;;  %v8907_v57 = vadd.f32 %v1913_v6, %v1865_v59  ;;  %v8910_v22 = vmul.f32 %v3470_v63, %v8625_v23  ;;  %v2437_v49 = vadd.f32 0.18741608, %v2436_v13  ;;  %v2475_v36 = vadd.f32 0.05243302, %v2474_v61 }
 0x324   : > { %v2628_v1 = vmul.f32 %v8895_v56, %v8895_v56  ;;  %v8914_v48 = vadd.f32 1.0, %v2489_v9  ;;  %v2512_v31 = vmul.f32 %v2511_v42, %v8768_v37  ;;  %v2527_v4 = vmul.f32 %v2526_v14, %v8768_v37 }
 0x325   : > { %12774 = vst [vmem:[#allocation37_spill] sm:$0xff] %v8910_v22  ;;  %v2551_v47 = vadd.f32 0.00028619796, %v2550_v21  ;;  %v8918_v30 = vpop.eup %6817  ;;  %v3471_v19 = vadd.f32 1.0, %v6312_v3  ;;  %v2413_v45 = vsub.f32 1.0, %v2412_v5  ;;  %v8921_v43 = vmul.f32 0.5, %v8414_v7 }
 0x326   : > { %v2567_v23 = vmul.f32 %v2566_v20, %v8776_v16  ;;  %v6313_v63 = vclamps-f32 %v2385_v24, 1.0  ;;  %v2398_v54 = vmul.f32 %v2397_v17, %v8595_v53  ;;  %v2420_v13 = vand.u32 2147483647, %v8831_v33  ;;  %v6735_v7 = vld [vmem:[%s12654_s6 + $0x34] sm:$0xf] }
 0x327   : > { %v2602_v35 = vadd.f32 0.001143296, %v2601_v28  ;;  %v2438_v59 = vmul.f32 %v2437_v49, %v8635_v2  ;;  %v2476_v61 = vmul.f32 %v2475_v36, %v8680_v51  ;;  %v8928_v21 = vmin.f32 %v2628_v1, 16.0  ;;  %v6369_v2 = vld [vmem:[%s12654_s6 + $0x38] sm:$0xf0] }
 0x328   : > { %v8931_v8 = vmul.f32 0.70710677, %v8484_v60  ;;  %6819 = vrcp.f32 %v8914_v48  ;;  %v2513_v9 = vadd.f32 0.0036580483, %v2512_v31  ;;  %v2528_v53 = vadd.f32 0.4994258, %v2527_v4 }
 0x329   : > { %v2552_v42 = vmul.f32 %v2551_v47, %v8776_v16  ;;  %v2414_v14 = vmul.f32 %v8882_v41, %v2413_v45  ;;  %v2452_v32 = vmul.f32 %v8918_v30, %v8875_v40  ;;  %v2568_v3 = vadd.f32 0.4994258, %v2567_v23 }
 0x32a   : > { %v6372_v5 = vor.u32 %v6735_v7, %v6369_v2  ;;  %v2399_v20 = vadd.f32 1.1283791, %v2398_v54  ;;  %v2422_v6 = vand.u32 2147483648, %v8831_v33  ;;  %v8946_v24 = vmul.f32 0.5, %v8421_v44 }
 0x32b   : > { %v2603_v17 = vmul.f32 %v2602_v35, %v8885_v12  ;;  %v3472_v28 = vadd.f32 1.0, %v6313_v63  ;;  %vm8949_vm2 = vcmp.eq.f32.partialorder %v2420_v13, 8.507059e+37  ;;  %v2439_v36 = vadd.f32 1.1283791, %v2438_v59 }
 0x32c   : > { %v2641_v1 = vmul.f32 3.8918573e-05, %v8928_v21  ;;  %v2668_v31 = vmul.f32 %v8931_v8, %v8931_v8  ;;  %3848 = vmatpush.bf16.msra.mxu2 %v6372_v5  ;;  %vm2417_vm3 = vweird.f32 %v8882_v41  ;;  %v2514_v4 = vmul.f32 %v2513_v9, %v8768_v37  ;;  %v6751_v9 = vld [vmem:[%s12654_s6 + $0xb4] sm:$0xf] }
 0x32d   : > { %v2529_v44 = vmul.f32 %v2528_v53, %v8768_v37  ;;  %v2553_v47 = vadd.f32 0.0036580483, %v2552_v42  ;;  %v2415_v45 = vadd.f32 %v8882_v41, %v2414_v14  ;;  %v2453_v23 = vsub.f32 1.0, %v2452_v32 }
 0x32e   : > { %v2477_v63 = vadd.f32 0.18741608, %v2476_v61  ;;  %v2569_v54 = vmul.f32 %v2568_v3, %v8776_v16  ;;  %v8961_v13 = vpop.eup %6819  ;;  %v8964_v35 = vmul.f32 %v3471_v19, %v8628_v27  ;;  %v2400_v59 = vmul.f32 %v2399_v20, %v8570_v26  ;;  %v6433_v61 = vld [vmem:[%s12654_s6 + $0xb8] sm:$0xf0] }
 0x32f   : > { %vm2416_vm4 = vweird.f32 %v8831_v33  ;;  %v2604_v7 = vadd.f32 0.014752088, %v2603_v17  ;;  %v2423_v53 = vor.u32 1.1754944e-38, %v2422_v6  ;;  %v2642_v42 = vadd.f32 0.001143296, %v2641_v1 }
 0x330   : > { %12777 = vst [vmem:[#allocation38_spill] sm:$0xff] %v8964_v35  ;;  %v8974_v2 = vmin.f32 %v2668_v31, 16.0  ;;  %v6436_v14 = vor.u32 %v6751_v9, %v6433_v61  ;;  %vm8978_vm5 = vmor %vm2416_vm4, %vm2417_vm3  ;;  %v2515_v27 = vadd.f32 0.05243302, %v2514_v4  ;;  %v8982_v33 = vadd.f32 1.0, %v2529_v44  ;;  %v9007_v4 = vpop.f32.mrf.mxu0  ;;  %v9009_v44 = vpop.f32.mrf.mxu2 }
 0x331   : > { %v8985_v19 = vmul.f32 0.5, %v8430_v0  ;;  %v2554_v32 = vmul.f32 %v2553_v47, %v8776_v16  ;;  %v2419_v3 = vsel %vm8978_vm5, %v8882_v41, %v2415_v45  ;;  %v2454_v5 = vmul.f32 %v8918_v30, %v2453_v23  ;;  %v6367_v41 = vld [vmem:[%s12654_s6 + $0x30] sm:$0xf]  ;;  %12782 = vst [vmem:[#allocation41_spill] sm:$0xff] %v9009_v44 }
 0x332   : > { %v2492_v20 = vmul.f32 %v8961_v13, %v8914_v48  ;;  %v8994_v6 = vadd.f32 1.0, %v2569_v54  ;;  %3897 = vmatpush.bf16.msra.mxu3 %v6436_v14  ;;  %v8997_v17 = vmul.f32 %v3472_v28, %v8659_v46  ;;  %v9000_v0 = vmul.f32 %v2439_v36, %v8599_v39 }
 0x333   : > { %12780 = vst [vmem:[#allocation39_spill] sm:$0xff] %v8985_v19  ;;  %v2478_v1 = vmul.f32 %v2477_v63, %v8680_v51  ;;  %v2605_v31 = vmul.f32 %v2604_v7, %v8885_v12  ;;  %vm2457_vm6 = vweird.f32 %v8918_v30  ;;  %v2460_v46 = vand.u32 2147483647, %v8875_v40  ;;  %v6736_v51 = vld [vmem:[%s12654_s6 + $0x34] sm:$0xf0] }
 0x334   : > { %12781 = vst [vmem:[#allocation40_spill] sm:$0xff] %v8997_v17  ;;  %v2643_v28 = vmul.f32 %v2642_v42, %v8928_v21  ;;  %v2681_v39 = vmul.f32 3.8918573e-05, %v8974_v2  ;;  %v2424_v36 = vsel %vm8949_vm2, %v2423_v53, %v2419_v3  ;;  %v2516_v47 = vmul.f32 %v2515_v27, %v8768_v37  ;;  %v9041_v3 = vpop.f32.mrf.mxu1 }
 0x335   : > { %6821 = vrcp.f32 %v8982_v33  ;;  %v2555_v45 = vadd.f32 0.05243302, %v2554_v32  ;;  %v2455_v23 = vadd.f32 %v8918_v30, %v2454_v5  ;;  %v2493_v63 = vsub.f32 1.0, %v2492_v20  ;;  %12787 = vst [vmem:[#allocation42_spill] sm:$0xff] %v9041_v3  ;;  %v9043_v5 = vpop.f32.mrf.mxu3  ;;  %v12804_v3 = vld [vmem:[#allocation29_spill] sm:$0xff] }
 0x336   : > { %6823 = vrcp.f32 %v8994_v6  ;;  %v6368_v54 = vor.u32 %v6736_v51, %v6367_v41  ;;  %vm2456_vm7 = vweird.f32 %v8875_v40  ;;  %v2462_v7 = vand.u32 2147483648, %v8875_v40  ;;  %12788 = vst [vmem:[#allocation43_spill] sm:$0xff] %v9043_v5 }
 0x337   : > { %v2479_v9 = vadd.f32 1.1283791, %v2478_v1  ;;  %v2606_v61 = vadd.f32 0.112945676, %v2605_v31  ;;  %v9026_v42 = vmul.f32 %v2424_v36, %v2400_v59  ;;  %v2502_v49 = vand.u32 2147483648, %v8914_v48  ;;  %vm9031_vm8 = vmor %vm2456_vm7, %vm2457_vm6  ;;  %v12789_v36 = vld [vmem:[#allocation28_spill] sm:$0xff] }
 0x338   : > { %v2644_v53 = vadd.f32 0.014752088, %v2643_v28  ;;  %v2682_v14 = vadd.f32 0.001143296, %v2681_v39  ;;  %3750 = vmatpush.bf16.msra.mxu0 %v6368_v54  ;;  %vm9035_vm9 = vcmp.eq.f32.partialorder %v2460_v46, 8.507059e+37  ;;  %v2556_v59 = vmul.f32 %v2555_v45, %v8776_v16  ;;  %v1771_v26 = vpop.f32.mrf.mxu0  ;;  %v1869_v17 = vpop.f32.mrf.mxu2 }
 0x339   : > { %v2500_v40 = vand.u32 2147483647, %v8914_v48  ;;  %v2517_v32 = vadd.f32 0.18741608, %v2516_v47  ;;  %v2459_v20 = vsel %vm9031_vm8, %v8918_v30, %v2455_v23  ;;  %v2494_v1 = vmul.f32 %v8961_v13, %v2493_v63 }
 0x33a   : > { %v2590_v31 = vmul.f32 2.1237322e-06, %v8885_v12  ;;  %v2630_v41 = vmul.f32 2.1237322e-06, %v8928_v21  ;;  %v2463_v28 = vor.u32 1.1754944e-38, %v2462_v7  ;;  %v9054_v39 = vmul.f32 %v2479_v9, %v8638_v18 }
 0x33b   : > { %v9051_v46 = vpop.eup %6821  ;;  %v2607_v51 = vmul.f32 %v2606_v61, %v8885_v12  ;;  %v9058_v47 = vmul.f32 0.70710677, %v12789_v36  ;;  %v2503_v23 = vor.u32 1.1754944e-38, %v2502_v49  ;;  %v2645_v63 = vmul.f32 %v2644_v53, %v8928_v21 }
 0x33c   : > { %v9060_v45 = vpop.eup %6823  ;;  %v2683_v54 = vmul.f32 %v2682_v14, %v8974_v2  ;;  %v2464_v7 = vsel %vm9035_vm9, %v2463_v28, %v2459_v20  ;;  %vm2497_vm10 = vweird.f32 %v8961_v13  ;;  %vm9068_vm11 = vcmp.eq.f32.partialorder %v2500_v40, 8.507059e+37 }
 0x33d   : > { %v2518_v9 = vmul.f32 %v2517_v32, %v8768_v37  ;;  %v2557_v61 = vadd.f32 0.18741608, %v2556_v59  ;;  %v2495_v49 = vadd.f32 %v8961_v13, %v2494_v1  ;;  %v2532_v53 = vmul.f32 %v9051_v46, %v8982_v33  ;;  %v6431_v37 = vld [vmem:[%s12654_s6 + $0xb0] sm:$0xf]  ;;  %v6752_v32 = vld [vmem:[%s12654_s6 + $0xb4] sm:$0xf0] }
 0x33e   : > { %v2591_v14 = vadd.f32 0.00028619796, %v2590_v31  ;;  %v2631_v30 = vadd.f32 0.00028619796, %v2630_v41  ;;  %vm2496_vm12 = vweird.f32 %v8914_v48  ;;  %v2572_v27 = vmul.f32 %v9060_v45, %v8994_v6 }
 0x33f   : > { %v2608_v40 = vadd.f32 0.4994258, %v2607_v51  ;;  %v2708_v20 = vmul.f32 %v9058_v47, %v9058_v47  ;;  %v2646_v59 = vadd.f32 0.112945676, %v2645_v63  ;;  %v2684_v1 = vadd.f32 0.014752088, %v2683_v54  ;;  %vm9094_vm13 = vmor %vm2496_vm12, %vm2497_vm10 }
 0x340   : > { %v1772_v31 = vadd.f32 %v1771_v26, %v8360_v38  ;;  %v1870_v48 = vadd.f32 %v1869_v17, %v8369_v15  ;;  %v9090_v41 = vmul.f32 %v2464_v7, %v9000_v0  ;;  %v2519_v51 = vadd.f32 1.1283791, %v2518_v9  ;;  %v1918_v9 = vpop.f32.mrf.mxu3 }
 0x341   : > { %v2558_v35 = vmul.f32 %v2557_v61, %v8776_v16  ;;  %v6432_v10 = vor.u32 %v6752_v32, %v6431_v37  ;;  %v2499_v63 = vsel %vm9094_vm13, %v8961_v13, %v2495_v49  ;;  %v2533_v54 = vsub.f32 1.0, %v2532_v53  ;;  %v1820_v16 = vpop.f32.mrf.mxu1 }
 0x342   : > { %v2592_v17 = vmul.f32 %v2591_v14, %v8885_v12  ;;  %v2632_v0 = vmul.f32 %v2631_v30, %v8928_v21  ;;  %v2573_v7 = vsub.f32 1.0, %v2572_v27  ;;  %v2609_v26 = vmul.f32 %v2608_v40, %v8885_v12  ;;  %v12797_v14 = vld [vmem:[#allocation32_spill] sm:$0xff] }
 0x343   : > { %v9105_v22 = vmin.f32 %v2708_v20, 16.0  ;;  %v9108_v5 = vmul.f32 0.70710677, %v12794_v52  ;;  %3799 = vmatpush.bf16.msra.mxu1 %v6432_v10  ;;  %v2647_v61 = vmul.f32 %v2646_v59, %v8928_v21  ;;  %v2685_v13 = vmul.f32 %v2684_v1, %v8974_v2 }
 0x344   : > { %v9112_v49 = vadd.f32 %v1820_v16, %v1772_v31  ;;  %v9114_v53 = vadd.f32 %v1918_v9, %v1870_v48  ;;  %v9118_v27 = vmul.f32 %v2519_v51, %v12797_v14  ;;  %v2559_v40 = vadd.f32 1.1283791, %v2558_v35  ;;  %v12798_v16 = vld [vmem:[#allocation27_spill] sm:$0xff]  ;;  %v6361_v9 = vld [vmem:[%s12654_s6 + $0x28] sm:$0xf0] }
 0x345   : > { %v2670_v20 = vmul.f32 2.1237322e-06, %v8974_v2  ;;  %v2504_v10 = vsel %vm9068_vm11, %v2503_v23, %v2499_v63  ;;  %v2534_v37 = vmul.f32 %v9051_v46, %v2533_v54  ;;  %v2593_v32 = vadd.f32 0.0036580483, %v2592_v17 }
 0x346   : > { %12795 = vst [vmem:[#allocation28_spill] sm:$0xff] %v9112_v49  ;;  %v2633_v59 = vadd.f32 0.0036580483, %v2632_v0  ;;  %v2574_v1 = vmul.f32 %v9060_v45, %v2573_v7  ;;  %v9125_v31 = vadd.f32 1.0, %v2609_v26  ;;  %v2721_v48 = vmul.f32 3.8918573e-05, %v9105_v22 }
 0x347   : > { %12796 = vst [vmem:[#allocation26_spill] sm:$0xff] %v9114_v53  ;;  %v2748_v28 = vmul.f32 %v9108_v5, %v9108_v5  ;;  %vm2536_vm14 = vweird.f32 %v8982_v33  ;;  %v2648_v35 = vadd.f32 0.4994258, %v2647_v61  ;;  %v2686_v51 = vadd.f32 0.112945676, %v2685_v13  ;;  %v12803_v53 = vld [vmem:[#allocation34_spill] sm:$0xff] }
 0x348   : > { %v9132_v18 = vmul.f32 0.70710677, %v12798_v16  ;;  %vm2537_vm15 = vweird.f32 %v9051_v46  ;;  %v2540_v23 = vand.u32 2147483647, %v8982_v33  ;;  %v2542_v63 = vand.u32 2147483648, %v8982_v33 }
 0x349   : > { %v2671_v54 = vadd.f32 0.00028619796, %v2670_v20  ;;  %v2535_v17 = vadd.f32 %v9051_v46, %v2534_v37  ;;  %vm2577_vm0 = vweird.f32 %v9060_v45  ;;  %v2594_v0 = vmul.f32 %v2593_v32, %v8885_v12  ;;  %v6733_v26 = vld [vmem:[%s12654_s6 + $0x24] sm:$0xf]  ;;  %vm9160_vm1 = vmor %vm2536_vm14, %vm2537_vm15 }
 0x34a   : > { %v2634_v7 = vmul.f32 %v2633_v59, %v8928_v21  ;;  %v2575_v61 = vadd.f32 %v9060_v45, %v2574_v1  ;;  %6825 = vrcp.f32 %v9125_v31  ;;  %v2722_v13 = vadd.f32 0.001143296, %v2721_v48 }
 0x34b   : > { %v9149_v14 = vmin.f32 %v2748_v28, 16.0  ;;  %v2582_v20 = vand.u32 2147483648, %v8994_v6  ;;  %v2649_v37 = vmul.f32 %v2648_v35, %v8928_v21  ;;  %v2687_v32 = vmul.f32 %v2686_v51, %v8974_v2 }
 0x34c   : > { %v2788_v59 = vmul.f32 %v9132_v18, %v9132_v18  ;;  %vm2576_vm2 = vweird.f32 %v8994_v6  ;;  %v2580_v48 = vand.u32 2147483647, %v8994_v6  ;;  %v2672_v28 = vmul.f32 %v2671_v54, %v8974_v2 }
 0x34d   : > { %v6364_v35 = vor.u32 %v6733_v26, %v6361_v9  ;;  %v2505_v51 = vmul.f32 %v2504_v10, %v9054_v39  ;;  %v2543_v30 = vor.u32 1.1754944e-38, %v2542_v63  ;;  %vm9170_vm3 = vmor %vm2576_vm2, %vm2577_vm0  ;;  %v2595_v33 = vadd.f32 0.05243302, %v2594_v0  ;;  %v6749_v10 = vld [vmem:[%s12654_s6 + $0xa4] sm:$0xf] }
 0x34e   : > { %v2635_v49 = vadd.f32 0.05243302, %v2634_v7  ;;  %v2539_v44 = vsel %vm9160_vm1, %v9051_v46, %v2535_v17  ;;  %v2579_v6 = vsel %vm9170_vm3, %v9060_v45, %v2575_v61  ;;  %v2723_v54 = vmul.f32 %v2722_v13, %v9105_v22  ;;  %v6425_v63 = vld [vmem:[%s12654_s6 + $0xa8] sm:$0xf0] }
 0x34f   : > { %v2761_v39 = vmul.f32 3.8918573e-05, %v9149_v14  ;;  %3849 = vmatpush.bf16.msra.mxu2 %v6364_v35  ;;  %v2583_v0 = vor.u32 1.1754944e-38, %v2582_v20  ;;  %v9188_v7 = vadd.f32 1.0, %v2649_v37  ;;  %v2688_v46 = vadd.f32 0.4994258, %v2687_v32 }
 0x350   : > { %v9190_v17 = vmin.f32 %v2788_v59, 16.0  ;;  %v9192_v45 = vpop.eup %6825  ;;  %vm2541_vm4 = vcmp.eq.f32.partialorder %v2540_v23, 8.507059e+37  ;;  %v2560_v26 = vmul.f32 %v2559_v40, %v12803_v53  ;;  %vm2581_vm5 = vcmp.eq.f32.partialorder %v2580_v48, 8.507059e+37 }
 0x351   : > { %v2673_v9 = vadd.f32 0.0036580483, %v2672_v28  ;;  %v2544_v61 = vsel %vm2541_vm4, %v2543_v30, %v2539_v44  ;;  %v2584_v13 = vsel %vm2581_vm5, %v2583_v0, %v2579_v6  ;;  %v2596_v1 = vmul.f32 %v2595_v33, %v8885_v12  ;;  %v6359_v30 = vld [vmem:[%s12654_s6 + $0x20] sm:$0xf] }
 0x352   : > { %v6428_v35 = vor.u32 %v6749_v10, %v6425_v63  ;;  %v2636_v19 = vmul.f32 %v2635_v49, %v8928_v21  ;;  %v2724_v20 = vadd.f32 0.014752088, %v2723_v54  ;;  %v2762_v37 = vadd.f32 0.001143296, %v2761_v39  ;;  %v6734_v49 = vld [vmem:[%s12654_s6 + $0x24] sm:$0xf0] }
 0x353   : > { %v9198_v32 = vmul.f32 0.70710677, %v12804_v3  ;;  %v2612_v59 = vmul.f32 %v9192_v45, %v9125_v31  ;;  %6827 = vrcp.f32 %v9188_v7  ;;  %v2689_v40 = vmul.f32 %v2688_v46, %v8974_v2 }
 0x354   : > { %v2801_v44 = vmul.f32 3.8918573e-05, %v9190_v17  ;;  %3898 = vmatpush.bf16.msra.mxu3 %v6428_v35  ;;  %v12805_v23 = vclamps-f32 %v9026_v42, 1.0  ;;  %v6316_v28 = vclamps-f32 %v2505_v51, 1.0  ;;  %v9214_v33 = vmul.f32 0.5, %v8443_v34 }
 0x355   : > { %v2674_v6 = vmul.f32 %v2673_v9, %v8974_v2  ;;  %v12807_v54 = vclamps-f32 %v9090_v41, 1.0  ;;  %v2545_v10 = vmul.f32 %v2544_v61, %v9118_v27  ;;  %v2585_v63 = vmul.f32 %v2584_v13, %v2560_v26 }
 0x356   : > { %v3473_v48 = vadd.f32 1.0, %v12805_v23  ;;  %12806 = vst [vmem:[#allocation32_spill] sm:$0xff] %v9214_v33  ;;  %v2597_v0 = vadd.f32 0.18741608, %v2596_v1  ;;  %v2725_v46 = vmul.f32 %v2724_v20, %v9105_v22  ;;  %v2763_v53 = vmul.f32 %v2762_v37, %v9149_v14 }
 0x357   : > { %v3474_v39 = vadd.f32 1.0, %v12807_v54  ;;  %v2828_v42 = vmul.f32 %v9198_v32, %v9198_v32  ;;  %v6360_v51 = vor.u32 %v6734_v49, %v6359_v30  ;;  %v2613_v35 = vsub.f32 1.0, %v2612_v59 }
 0x358   : > { %v2637_v34 = vadd.f32 0.18741608, %v2636_v19  ;;  %v9224_v23 = vadd.f32 1.0, %v2689_v40  ;;  %v2802_v9 = vadd.f32 0.001143296, %v2801_v44  ;;  %v9226_v33 = vadd.f32 1.0, %v6316_v28 }
 0x359   : > { %v9229_v41 = vmul.f32 0.5, %v8467_v62  ;;  %v2675_v27 = vadd.f32 0.05243302, %v2674_v6  ;;  %v2710_v26 = vmul.f32 2.1237322e-06, %v9105_v22  ;;  %3751 = vmatpush.bf16.msra.mxu0 %v6360_v51  ;;  %v9232_v61 = vpop.eup %6827  ;;  %v6317_v13 = vclamps-f32 %v2545_v10, 1.0  ;;  %v9249_v10 = vpop.f32.mrf.mxu0 }
 0x35a   : > { %v2598_v1 = vmul.f32 %v2597_v0, %v8885_v12  ;;  %v2620_v20 = vand.u32 2147483647, %v9125_v31  ;;  %v2622_v19 = vand.u32 2147483648, %v9125_v31  ;;  %v6318_v37 = vclamps-f32 %v2585_v63, 1.0 }
 0x35b   : > { %v2726_v59 = vadd.f32 0.112945676, %v2725_v46  ;;  %v2764_v40 = vadd.f32 0.014752088, %v2763_v53  ;;  %v9237_v44 = vmin.f32 %v2828_v42, 16.0  ;;  %v2614_v62 = vmul.f32 %v9192_v45, %v2613_v35  ;;  %v9330_v42 = vpop.f32.mrf.mxu2 }
 0x35c   : > { %v2638_v30 = vmul.f32 %v2637_v34, %v8928_v21  ;;  %6829 = vrcp.f32 %v9224_v23  ;;  %v2803_v49 = vmul.f32 %v2802_v9, %v9190_v17  ;;  %v2652_v12 = vmul.f32 %v9232_v61, %v9188_v7 }
 0x35d   : > { %v9246_v28 = vmul.f32 0.5, %v8484_v60  ;;  %v2676_v6 = vmul.f32 %v2675_v27, %v8974_v2  ;;  %v2711_v54 = vadd.f32 0.00028619796, %v2710_v26  ;;  %v9251_v63 = vadd.f32 1.0, %v6317_v13 }
 0x35e   : > { %v2599_v0 = vadd.f32 1.1283791, %v2598_v1  ;;  %v2623_v46 = vor.u32 1.1754944e-38, %v2622_v19  ;;  %v9254_v21 = vmul.f32 0.5, %v12789_v36  ;;  %v9256_v53 = vadd.f32 1.0, %v6318_v37 }
 0x35f   : > { %12808 = vst [vmem:[#allocation27_spill] sm:$0xff] %v9246_v28  ;;  %vm9258_vm6 = vcmp.eq.f32.partialorder %v2620_v20, 8.507059e+37  ;;  %v2727_v60 = vmul.f32 %v2726_v59, %v9105_v22  ;;  %v2765_v51 = vmul.f32 %v2764_v40, %v9149_v14  ;;  %v2841_v35 = vmul.f32 3.8918573e-05, %v9237_v44  ;;  %v9271_v20 = vpop.f32.mrf.mxu1 }
 0x360   : > { %12809 = vst [vmem:[#allocation34_spill] sm:$0xff] %v9254_v21  ;;  %v2615_v34 = vadd.f32 %v9192_v45, %v2614_v62  ;;  %vm2617_vm7 = vweird.f32 %v9192_v45  ;;  %v2639_v9 = vadd.f32 1.1283791, %v2638_v30  ;;  %v2804_v27 = vadd.f32 0.014752088, %v2803_v49 }
 0x361   : > { %v2653_v36 = vsub.f32 1.0, %v2652_v12  ;;  %v2677_v26 = vadd.f32 0.18741608, %v2676_v6  ;;  %v2712_v13 = vmul.f32 %v2711_v54, %v9105_v22  ;;  %v9269_v1 = vmul.f32 0.5, %v12794_v52  ;;  %12813 = vst [vmem:[#allocation44_spill] sm:$0xff] %v9271_v20 }
 0x362   : > { %v9273_v19 = vpop.eup %6829  ;;  %v9276_v37 = vmul.f32 %v3473_v48, %v8774_v11  ;;  %v9279_v59 = vmul.f32 %v3474_v39, %v8868_v29  ;;  %vm2616_vm8 = vweird.f32 %v9125_v31  ;;  %v2750_v40 = vmul.f32 2.1237322e-06, %v9149_v14  ;;  %v6423_v62 = vld [vmem:[%s12654_s6 + $0xa0] sm:$0xf]  ;;  %v6750_v52 = vld [vmem:[%s12654_s6 + $0xa4] sm:$0xf0] }
 0x363   : > { %12812 = vst [vmem:[#allocation29_spill] sm:$0xff] %v9269_v1  ;;  %v2600_v30 = vmul.f32 %v2599_v0, %v8848_v55  ;;  %vm9292_vm9 = vmor %vm2616_vm8, %vm2617_vm7  ;;  %v2728_v29 = vadd.f32 0.4994258, %v2727_v60  ;;  %v2766_v31 = vadd.f32 0.112945676, %v2765_v51  ;;  %v9300_v49 = vmul.f32 %v2639_v9, %v8895_v56 }
 0x364   : > { %12814 = vst [vmem:[#allocation45_spill] sm:$0xff] %v9276_v37  ;;  %v2842_v48 = vadd.f32 0.001143296, %v2841_v35  ;;  %v2619_v39 = vsel %vm9292_vm9, %v9192_v45, %v2615_v34  ;;  %v2660_v12 = vand.u32 2147483647, %v9188_v7  ;;  %v2805_v55 = vmul.f32 %v2804_v27, %v9190_v17 }
 0x365   : > { %12815 = vst [vmem:[#allocation46_spill] sm:$0xff] %v9279_v59  ;;  %v2654_v6 = vmul.f32 %v9232_v61, %v2653_v36  ;;  %v2692_v54 = vmul.f32 %v9273_v19, %v9224_v23  ;;  %v2713_v0 = vadd.f32 0.0036580483, %v2712_v13  ;;  %v6424_v60 = vor.u32 %v6750_v52, %v6423_v62  ;;  %v1776_v36 = vpop.f32.mrf.mxu0 }
 0x366   : > { %vm2656_vm10 = vweird.f32 %v9188_v7  ;;  %v2662_v51 = vand.u32 2147483648, %v9188_v7  ;;  %v2751_v35 = vadd.f32 0.00028619796, %v2750_v40  ;;  %v9310_v45 = vmul.f32 0.5, %v12798_v16  ;;  %v12819_v40 = vld [vmem:[#allocation30_spill] sm:$0xff] }
 0x367   : > { %v2678_v56 = vmul.f32 %v2677_v26, %v8974_v2  ;;  %v2729_v34 = vmul.f32 %v2728_v29, %v9105_v22  ;;  %v2767_v9 = vmul.f32 %v2766_v31, %v9149_v14  ;;  %v2843_v27 = vmul.f32 %v2842_v48, %v9237_v44  ;;  %3800 = vmatpush.bf16.msra.mxu1 %v6424_v60  ;;  %v12822_v29 = vld [vmem:[#allocation31_spill] sm:$0xff]  ;;  %v6353_v48 = vld [vmem:[%s12654_s6 + $0x18] sm:$0xf0]  ;;  %v1825_v59 = vpop.f32.mrf.mxu1 }
 0x368   : > { %12818 = vst [vmem:[#allocation47_spill] sm:$0xff] %v9310_v45  ;;  %v2624_v13 = vsel %vm9258_vm6, %v2623_v46, %v2619_v39  ;;  %vm2657_vm11 = vweird.f32 %v9232_v61  ;;  %v2806_v62 = vadd.f32 0.112945676, %v2805_v55  ;;  %v9320_v52 = vmul.f32 0.70710677, %v12819_v40 }
 0x369   : > { %v2655_v16 = vadd.f32 %v9232_v61, %v2654_v6  ;;  %vm9323_vm12 = vcmp.eq.f32.partialorder %v2660_v12, 8.507059e+37  ;;  %v2693_v26 = vsub.f32 1.0, %v2692_v54  ;;  %v2714_v11 = vmul.f32 %v2713_v0, %v9105_v22  ;;  %12823 = vst [vmem:[#allocation30_spill] sm:$0xff] %v9330_v42  ;;  %v6731_v46 = vld [vmem:[%s12654_s6 + $0x14] sm:$0xf]  ;;  %v9342_v6 = vpop.f32.mrf.mxu3  ;;  %vm9358_vm13 = vmor %vm2656_vm10, %vm2657_vm11 }
 0x36a   : > { %v1764_v31 = vadd.f32 %v12822_v29, %v8360_v38  ;;  %v2752_v39 = vmul.f32 %v2751_v35, %v9149_v14  ;;  %v2790_v12 = vmul.f32 2.1237322e-06, %v9190_v17  ;;  %v1862_v55 = vadd.f32 %v8819_v58, %v8369_v15  ;;  %12824 = vst [vmem:[#allocation31_spill] sm:$0xff] %v9342_v6 }
 0x36b   : > { %v1777_v54 = vadd.f32 %v1776_v36, %v8360_v38  ;;  %v9345_v0 = vmul.f32 %v2624_v13, %v2600_v30  ;;  %v9347_v60 = vadd.f32 1.0, %v2729_v34  ;;  %v2768_v29 = vadd.f32 0.4994258, %v2767_v9 }
 0x36c   : > { %v2844_v37 = vadd.f32 0.014752088, %v2843_v27  ;;  %v2807_v45 = vmul.f32 %v2806_v62, %v9190_v17  ;;  %v2868_v35 = vmul.f32 %v9320_v52, %v9320_v52  ;;  %v6356_v21 = vor.u32 %v6731_v46, %v6353_v48  ;;  %v12828_v27 = vld [vmem:[#allocation33_spill] sm:$0xff] }
 0x36d   : > { %v9352_v1 = vadd.f32 %v1825_v59, %v1777_v54  ;;  %v2663_v30 = vor.u32 1.1754944e-38, %v2662_v51  ;;  %v2679_v34 = vadd.f32 1.1283791, %v2678_v56  ;;  %v2694_v9 = vmul.f32 %v9273_v19, %v2693_v26 }
 0x36e   : > { %v9364_v36 = vadd.f32 %v12828_v27, %v1764_v31  ;;  %v2659_v59 = vsel %vm9358_vm13, %v9232_v61, %v2655_v16  ;;  %v2715_v13 = vadd.f32 0.05243302, %v2714_v11  ;;  %v2753_v62 = vadd.f32 0.0036580483, %v2752_v39  ;;  %3850 = vmatpush.bf16.msra.mxu2 %v6356_v21  ;;  %v6747_v21 = vld [vmem:[%s12654_s6 + $0x94] sm:$0xf] }
 0x36f   : > { %12825 = vst [vmem:[#allocation48_spill] sm:$0xff] %v9352_v1  ;;  %v9370_v46 = vadd.f32 %v8854_v25, %v1862_v55  ;;  %6831 = vrcp.f32 %v9347_v60  ;;  %v2769_v7 = vmul.f32 %v2768_v29, %v9149_v14  ;;  %v2791_v51 = vadd.f32 0.00028619796, %v2790_v12 }
 0x370   : > { %v2845_v56 = vmul.f32 %v2844_v37, %v9237_v44  ;;  %v6319_v26 = vclamps-f32 %v9345_v0, 1.0  ;;  %v2702_v31 = vand.u32 2147483648, %v9224_v23  ;;  %v2808_v48 = vadd.f32 0.4994258, %v2807_v45  ;;  %v6417_v37 = vld [vmem:[%s12654_s6 + $0x98] sm:$0xf0] }
 0x371   : > { %v9377_v54 = vmin.f32 %v2868_v35, 16.0  ;;  %v2695_v61 = vadd.f32 %v9273_v19, %v2694_v9  ;;  %vm2696_vm14 = vweird.f32 %v9224_v23  ;;  %vm2697_vm15 = vweird.f32 %v9273_v19  ;;  %v1874_v35 = vpop.f32.mrf.mxu2 }
 0x372   : > { %v9383_v25 = vmul.f32 0.70710677, %v9364_v36  ;;  %v2664_v45 = vsel %vm9323_vm12, %v2663_v30, %v2659_v59  ;;  %v2716_v16 = vmul.f32 %v2715_v13, %v9105_v22  ;;  %v2754_v11 = vmul.f32 %v2753_v62, %v9149_v14  ;;  %vm9402_vm0 = vmor %vm2696_vm14, %vm2697_vm15  ;;  %v1923_v59 = vpop.f32.mrf.mxu3 }
 0x373   : > { %v9396_v39 = vmul.f32 0.70710677, %v9370_v46  ;;  %v2700_v12 = vand.u32 2147483647, %v9224_v23  ;;  %v9399_v55 = vadd.f32 1.0, %v2769_v7  ;;  %v2792_v0 = vmul.f32 %v2791_v51, %v9190_v17 }
 0x374   : > { %v2846_v29 = vadd.f32 0.112945676, %v2845_v56  ;;  %v2703_v2 = vor.u32 1.1754944e-38, %v2702_v31  ;;  %v2809_v30 = vmul.f32 %v2808_v48, %v9190_v17  ;;  %v2830_v9 = vmul.f32 2.1237322e-06, %v9237_v44 }
 0x375   : > { %v6420_v27 = vor.u32 %v6747_v21, %v6417_v37  ;;  %v9408_v13 = vpop.eup %6831  ;;  %v2665_v23 = vmul.f32 %v2664_v45, %v9300_v49  ;;  %v2699_v62 = vsel %vm9402_vm0, %v9273_v19, %v2695_v61  ;;  %v2881_v7 = vmul.f32 3.8918573e-05, %v9377_v54  ;;  %v9420_v37 = vpop.f32.mrf.mxu0 }
 0x376   : > { %v2908_v51 = vmul.f32 %v9383_v25, %v9383_v25  ;;  %v2717_v56 = vadd.f32 0.18741608, %v2716_v16  ;;  %v2755_v31 = vadd.f32 0.05243302, %v2754_v11  ;;  %v2948_v48 = vmul.f32 %v9396_v39, %v9396_v39  ;;  %12831 = vst [vmem:[#allocation33_spill] sm:$0xff] %v9420_v37  ;;  %v9424_v61 = vpop.f32.mrf.mxu1 }
 0x377   : > { %3899 = vmatpush.bf16.msra.mxu3 %v6420_v27  ;;  %v1875_v21 = vadd.f32 %v1874_v35, %v8369_v15  ;;  %vm2701_vm1 = vcmp.eq.f32.partialorder %v2700_v12, 8.507059e+37  ;;  %6833 = vrcp.f32 %v9399_v55  ;;  %v2793_v49 = vadd.f32 0.0036580483, %v2792_v0  ;;  %12832 = vst [vmem:[#allocation49_spill] sm:$0xff] %v9424_v61 }
 0x378   : > { %v2847_v19 = vmul.f32 %v2846_v29, %v9237_v44  ;;  %v2704_v45 = vsel %vm2701_vm1, %v2703_v2, %v2699_v62  ;;  %v2732_v16 = vmul.f32 %v9408_v13, %v9347_v60  ;;  %v9428_v11 = vadd.f32 1.0, %v2809_v30 }
 0x379   : > { %v2831_v58 = vadd.f32 0.00028619796, %v2830_v9  ;;  %v6320_v27 = vclamps-f32 %v2665_v23, 1.0  ;;  %v2680_v35 = vmul.f32 %v2679_v34, %v8931_v8  ;;  %v2882_v1 = vadd.f32 0.001143296, %v2881_v7 }
 0x37a   : > { %v9431_v37 = vmin.f32 %v2908_v51, 16.0  ;;  %v2718_v12 = vmul.f32 %v2717_v56, %v9105_v22  ;;  %v2756_v0 = vmul.f32 %v2755_v31, %v9149_v14  ;;  %v9435_v29 = vmin.f32 %v2948_v48, 16.0 }
 0x37b   : > { %v9437_v61 = vadd.f32 %v1923_v59, %v1875_v21  ;;  %v9439_v2 = vadd.f32 1.0, %v6319_v26  ;;  %v9441_v62 = vmul.f32 %v2704_v45, %v2680_v35  ;;  %v2794_v30 = vmul.f32 %v2793_v49, %v9190_v17  ;;  %v9461_v49 = vpop.f32.mrf.mxu2 }
 0x37c   : > { %v2848_v9 = vadd.f32 0.4994258, %v2847_v19  ;;  %v2733_v23 = vsub.f32 1.0, %v2732_v16  ;;  %v2742_v8 = vand.u32 2147483648, %v9347_v60  ;;  %6835 = vrcp.f32 %v9428_v11  ;;  %12836 = vst [vmem:[#allocation53_spill] sm:$0xff] %v9461_v49  ;;  %v9463_v19 = vpop.f32.mrf.mxu3 }
 0x37d   : > { %12833 = vst [vmem:[#allocation50_spill] sm:$0xff] %v9437_v61  ;;  %v2832_v22 = vmul.f32 %v2831_v58, %v9237_v44  ;;  %v9447_v34 = vpop.eup %6833  ;;  %v9449_v7 = vadd.f32 1.0, %v6320_v27  ;;  %v9452_v59 = vmul.f32 0.5, %v12804_v3  ;;  %v2883_v26 = vmul.f32 %v2882_v1, %v9377_v54  ;;  %v9473_v35 = vpop.f32.mrf.mxu0 }
 0x37e   : > { %v2921_v51 = vmul.f32 3.8918573e-05, %v9431_v37  ;;  %v9458_v56 = vmul.f32 %v9226_v33, %v8921_v43  ;;  %v2719_v31 = vadd.f32 1.1283791, %v2718_v12  ;;  %v2757_v48 = vadd.f32 0.18741608, %v2756_v0 }
 0x37f   : > { %12834 = vst [vmem:[#allocation51_spill] sm:$0xff] %v9452_v59  ;;  %v2961_v21 = vmul.f32 3.8918573e-05, %v9435_v29  ;;  %v6321_v45 = vclamps-f32 %v9441_v62, 1.0  ;;  %v2740_v3 = vand.u32 2147483647, %v9347_v60  ;;  %v2849_v1 = vmul.f32 %v2848_v9, %v9237_v44 }
 0x380   : > { %12835 = vst [vmem:[#allocation52_spill] sm:$0xff] %v9458_v56  ;;  %v2795_v16 = vadd.f32 0.05243302, %v2794_v30  ;;  %v2734_v58 = vmul.f32 %v9408_v13, %v2733_v23  ;;  %v9469_v27 = vor.u32 1.1754944e-38, %v2742_v8  ;;  %v2772_v43 = vmul.f32 %v9447_v34, %v9399_v55  ;;  %v9480_v56 = vpop.f32.mrf.mxu1 }
 0x381   : > { %12837 = vst [vmem:[#allocation54_spill] sm:$0xff] %v9463_v19  ;;  %v2833_v33 = vadd.f32 0.0036580483, %v2832_v22  ;;  %v9477_v12 = vmul.f32 %v9251_v63, %v8946_v24  ;;  %v2870_v0 = vmul.f32 2.1237322e-06, %v9377_v54  ;;  %v9485_v23 = vmul.f32 %v2719_v31, %v9058_v47 }
 0x382   : > { %v2884_v62 = vadd.f32 0.014752088, %v2883_v26  ;;  %v2922_v30 = vadd.f32 0.001143296, %v2921_v51  ;;  %v9482_v9 = vpop.eup %6835  ;;  %vm2736_vm2 = vweird.f32 %v9347_v60  ;;  %v2758_v8 = vmul.f32 %v2757_v48, %v9149_v14  ;;  %v6351_v24 = vld [vmem:[%s12654_s6 + $0x10] sm:$0xf] }
 0x383   : > { %12838 = vst [vmem:[#allocation55_spill] sm:$0xff] %v9477_v12  ;;  %v2962_v22 = vadd.f32 0.001143296, %v2961_v21  ;;  %v6732_v63 = vld [vmem:[%s12654_s6 + $0x14] sm:$0xf0]  ;;  %vm9495_vm3 = vcmp.eq.f32.partialorder %v2740_v3, 8.507059e+37  ;;  %v2796_v51 = vmul.f32 %v2795_v16, %v9190_v17  ;;  %v2735_v48 = vadd.f32 %v9408_v13, %v2734_v58 }
 0x384   : > { %v2780_v47 = vand.u32 2147483647, %v9399_v55  ;;  %v9501_v31 = vadd.f32 1.0, %v2849_v1  ;;  %v9504_v14 = vmul.f32 0.70710677, %v8794_v50  ;;  %vm2737_vm4 = vweird.f32 %v9408_v13 }
 0x385   : > { %v2773_v21 = vsub.f32 1.0, %v2772_v43  ;;  %v2834_v12 = vmul.f32 %v2833_v33, %v9237_v44  ;;  %v6415_v3 = vld [vmem:[%s12654_s6 + $0x90] sm:$0xf]  ;;  %v6748_v16 = vld [vmem:[%s12654_s6 + $0x94] sm:$0xf0]  ;;  %v2812_v1 = vmul.f32 %v9482_v9, %v9428_v11  ;;  %v2885_v19 = vmul.f32 %v2884_v62, %v9377_v54  ;;  %vm9531_vm5 = vmor %vm2736_vm2, %vm2737_vm4 }
 0x386   : > { %12841 = vst [vmem:[#allocation56_spill] sm:$0xff] %v9504_v14  ;;  %v2923_v58 = vmul.f32 %v2922_v30, %v9431_v37  ;;  %v6352_v49 = vor.u32 %v6732_v63, %v6351_v24  ;;  %v2782_v43 = vand.u32 2147483648, %v9399_v55  ;;  %v2871_v61 = vadd.f32 0.00028619796, %v2870_v0  ;;  %v9536_v24 = vpop.f32.mrf.mxu2  ;;  %v9538_v63 = vpop.f32.mrf.mxu3 }
 0x387   : > { %v2910_v33 = vmul.f32 2.1237322e-06, %v9431_v37  ;;  %v2963_v59 = vmul.f32 %v2962_v22, %v9435_v29  ;;  %v2797_v6 = vadd.f32 0.18741608, %v2796_v51  ;;  %6837 = vrcp.f32 %v9501_v31 }
 0x388   : > { %v2988_v42 = vmul.f32 %v9504_v14, %v9504_v14  ;;  %3752 = vmatpush.bf16.msra.mxu0 %v6352_v49  ;;  %v6416_v20 = vor.u32 %v6748_v16, %v6415_v3  ;;  %v9525_v28 = vadd.f32 1.0, %v6321_v45  ;;  %v2759_v62 = vadd.f32 1.1283791, %v2758_v8 }
 0x389   : > { %v2774_v30 = vmul.f32 %v9447_v34, %v2773_v21  ;;  %v2835_v22 = vadd.f32 0.05243302, %v2834_v12  ;;  %v2739_v49 = vsel %vm9531_vm5, %v9408_v13, %v2735_v48  ;;  %v2813_v45 = vsub.f32 1.0, %v2812_v1  ;;  %v9545_v21 = vpop.f32.mrf.mxu0 }
 0x38a   : > { %12842 = vst [vmem:[#allocation57_spill] sm:$0xff] %v9525_v28  ;;  %v2886_v51 = vadd.f32 0.112945676, %v2885_v19  ;;  %v2924_v3 = vadd.f32 0.014752088, %v2923_v58  ;;  %3801 = vmatpush.bf16.msra.mxu1 %v6416_v20  ;;  %vm2776_vm6 = vweird.f32 %v9399_v55  ;;  %v2872_v60 = vmul.f32 %v2871_v61, %v9377_v54  ;;  %v9554_v19 = vpop.f32.mrf.mxu1 }
 0x38b   : > { %v2911_v8 = vadd.f32 0.00028619796, %v2910_v33  ;;  %v2964_v16 = vadd.f32 0.014752088, %v2963_v59  ;;  %vm9547_vm7 = vcmp.eq.f32.partialorder %v2780_v47, 8.507059e+37  ;;  %v2783_v14 = vor.u32 1.1754944e-38, %v2782_v43 }
 0x38c   : > { %v2798_v0 = vmul.f32 %v2797_v6, %v9190_v17  ;;  %v9552_v13 = vmin.f32 %v2988_v42, 16.0  ;;  %v2744_v20 = vsel %vm9495_vm3, %v9469_v27, %v2739_v49  ;;  %v2775_v61 = vadd.f32 %v9447_v34, %v2774_v30 }
 0x38d   : > { %vm2777_vm8 = vweird.f32 %v9447_v34  ;;  %v2836_v59 = vmul.f32 %v2835_v22, %v9237_v44  ;;  %v9562_v47 = vpop.eup %6837  ;;  %v2814_v48 = vmul.f32 %v9482_v9, %v2813_v45  ;;  %v9566_v17 = vmul.f32 0.5, %v12819_v40 }
 0x38e   : > { %v2887_v42 = vmul.f32 %v2886_v51, %v9377_v54  ;;  %v2925_v6 = vmul.f32 %v2924_v3, %v9431_v37  ;;  %v2873_v1 = vadd.f32 0.0036580483, %v2872_v60  ;;  %v2912_v27 = vmul.f32 %v2911_v8, %v9431_v37  ;;  %vm9576_vm9 = vmor %vm2776_vm6, %vm2777_vm8  ;;  %v9588_v55 = vpop.f32.mrf.mxu2  ;;  %v9590_v3 = vpop.f32.mrf.mxu3 }
 0x38f   : > { %12847 = vst [vmem:[#allocation58_spill] sm:$0xff] %v9566_v17  ;;  %v2950_v26 = vmul.f32 2.1237322e-06, %v9435_v29  ;;  %v2965_v58 = vmul.f32 %v2964_v16, %v9435_v29  ;;  %v2745_v43 = vmul.f32 %v2744_v20, %v9485_v23  ;;  %v2799_v40 = vadd.f32 1.1283791, %v2798_v0 }
 0x390   : > { %v2820_v30 = vand.u32 2147483647, %v9428_v11  ;;  %v3001_v22 = vmul.f32 3.8918573e-05, %v9552_v13  ;;  %v2779_v49 = vsel %vm9576_vm9, %v9447_v34, %v2775_v61  ;;  %v2822_v45 = vand.u32 2147483648, %v9428_v11 }
 0x391   : > { %v2837_v51 = vadd.f32 0.18741608, %v2836_v59  ;;  %v2852_v23 = vmul.f32 %v9562_v47, %v9501_v31  ;;  %v2815_v60 = vadd.f32 %v9482_v9, %v2814_v48  ;;  %vm2817_vm10 = vweird.f32 %v9482_v9  ;;  %v9595_v33 = vpop.f32.mrf.mxu0  ;;  %v6729_v48 = vld [vmem:[%s12654_s6 + $0x4] sm:$0xf] }
 0x392   : > { %v2888_v8 = vadd.f32 0.4994258, %v2887_v42  ;;  %v2926_v16 = vadd.f32 0.112945676, %v2925_v6  ;;  %v2874_v0 = vmul.f32 %v2873_v1, %v9377_v54  ;;  %v2913_v20 = vadd.f32 0.0036580483, %v2912_v27  ;;  %v9620_v12 = vpop.f32.mrf.mxu1 }
 0x393   : > { %v2951_v34 = vadd.f32 0.00028619796, %v2950_v26  ;;  %v2966_v61 = vadd.f32 0.112945676, %v2965_v58  ;;  %v2760_v59 = vmul.f32 %v2759_v62, %v9108_v5  ;;  %v2800_v17 = vmul.f32 %v2799_v40, %v9132_v18  ;;  %v6345_v42 = vld [vmem:[%s12654_s6 + $0x8] sm:$0xf0] }
 0x394   : > { %vm2816_vm11 = vweird.f32 %v9428_v11  ;;  %v3002_v28 = vadd.f32 0.001143296, %v3001_v22  ;;  %v6322_v6 = vclamps-f32 %v2745_v43, 1.0  ;;  %v2784_v1 = vsel %vm9547_vm7, %v2783_v14, %v2779_v49 }
 0x395   : > { %vm9610_vm12 = vmor %vm2816_vm11, %vm2817_vm10  ;;  %v2823_v18 = vor.u32 1.1754944e-38, %v2822_v45  ;;  %v2853_v11 = vsub.f32 1.0, %v2852_v23  ;;  %v2838_v27 = vmul.f32 %v2837_v51, %v9237_v44  ;;  %v2889_v26 = vmul.f32 %v2888_v8, %v9377_v54 }
 0x396   : > { %v2819_v62 = vsel %vm9610_vm12, %v9482_v9, %v2815_v60  ;;  %v2927_v58 = vmul.f32 %v2926_v16, %v9431_v37  ;;  %v2875_v14 = vadd.f32 0.05243302, %v2874_v0  ;;  %v2952_v43 = vmul.f32 %v2951_v34, %v9435_v29  ;;  %v9635_v8 = vpop.f32.mrf.mxu2  ;;  %v9641_v34 = vpop.f32.mrf.mxu3 }
 0x397   : > { %v2967_v40 = vmul.f32 %v2966_v61, %v9435_v29  ;;  %v6348_v22 = vor.u32 %v6729_v48, %v6345_v42  ;;  %v2785_v49 = vmul.f32 %v2784_v1, %v2760_v59  ;;  %v2914_v45 = vmul.f32 %v2913_v20, %v9431_v37 }
 0x398   : > { %v3003_v23 = vmul.f32 %v3002_v28, %v9552_v13  ;;  %v9627_v9 = vmul.f32 0.70710677, %v8907_v57  ;;  %v9629_v44 = vadd.f32 1.0, %v6322_v6  ;;  %vm2821_vm13 = vcmp.eq.f32.partialorder %v2820_v30, 8.507059e+37 }
 0x399   : > { %v2854_v51 = vmul.f32 %v9562_v47, %v2853_v11  ;;  %v9633_v60 = vmul.f32 0.5, %v9364_v36  ;;  %3851 = vmatpush.bf16.msra.mxu2 %v6348_v22  ;;  %v2824_v16 = vsel %vm2821_vm13, %v2823_v18, %v2819_v62  ;;  %v9637_v0 = vadd.f32 1.0, %v2889_v26  ;;  %v9644_v42 = vpop.f32.mrf.mxu0  ;;  %v12854_v26 = vld [vmem:[#allocation42_spill] sm:$0xff] }
 0x39a   : > { %12852 = vst [vmem:[#allocation59_spill] sm:$0xff] %v9627_v9  ;;  %v2928_v20 = vadd.f32 0.4994258, %v2927_v58  ;;  %v1769_v28 = vadd.f32 %v9007_v4, %v8360_v38  ;;  %v2839_v61 = vadd.f32 1.1283791, %v2838_v27  ;;  %v2876_v30 = vmul.f32 %v2875_v14, %v9377_v54 }
 0x39b   : > { %12853 = vst [vmem:[#allocation60_spill] sm:$0xff] %v9633_v60  ;;  %v2953_v59 = vadd.f32 0.0036580483, %v2952_v43  ;;  %v2968_v48 = vadd.f32 0.4994258, %v2967_v40  ;;  %v6323_v36 = vclamps-f32 %v2785_v49, 1.0  ;;  %v3028_v5 = vmul.f32 %v9627_v9, %v9627_v9 }
 0x39c   : > { %v2915_v6 = vadd.f32 0.05243302, %v2914_v45  ;;  %v3004_v1 = vadd.f32 0.014752088, %v3003_v23  ;;  %v2825_v18 = vmul.f32 %v2824_v16, %v2800_v17  ;;  %v2855_v11 = vadd.f32 %v9562_v47, %v2854_v51  ;;  %v9671_v51 = vpop.f32.mrf.mxu1  ;;  %v12860_v40 = vld [vmem:[#allocation39_spill] sm:$0xff] }
 0x39d   : > { %vm2857_vm14 = vweird.f32 %v9562_v47  ;;  %v2860_v4 = vand.u32 2147483647, %v9501_v31  ;;  %v2862_v62 = vand.u32 2147483648, %v9501_v31  ;;  %6839 = vrcp.f32 %v9637_v0 }
 0x39e   : > { %v2929_v27 = vmul.f32 %v2928_v20, %v9431_v37  ;;  %v9655_v58 = vadd.f32 %v12854_v26, %v1769_v28  ;;  %vm2856_vm15 = vweird.f32 %v9501_v31  ;;  %v2877_v14 = vadd.f32 0.18741608, %v2876_v30  ;;  %v9678_v28 = vpop.f32.mrf.mxu2 }
 0x39f   : > { %v2954_v17 = vmul.f32 %v2953_v59, %v9435_v29  ;;  %v2969_v43 = vmul.f32 %v2968_v48, %v9435_v29  ;;  %vm9660_vm0 = vmor %vm2856_vm15, %vm2857_vm14  ;;  %v2916_v22 = vmul.f32 %v2915_v6, %v9431_v37  ;;  %v9666_v49 = vmul.f32 0.5, %v9370_v46 }
 0x3a0   : > { %v3005_v45 = vmul.f32 %v3004_v1, %v9552_v13  ;;  %v9669_v23 = vmin.f32 %v3028_v5, 16.0  ;;  %v9673_v31 = vadd.f32 1.0, %v6323_v36  ;;  %v6324_v16 = vclamps-f32 %v2825_v18, 1.0 }
 0x3a1   : > { %12857 = vst [vmem:[#allocation42_spill] sm:$0xff] %v9666_v49  ;;  %v2859_v20 = vsel %vm9660_vm0, %v9562_v47, %v2855_v11  ;;  %vm2861_vm1 = vcmp.eq.f32.partialorder %v2860_v4, 8.507059e+37  ;;  %v2863_v30 = vor.u32 1.1754944e-38, %v2862_v62  ;;  %v9680_v59 = vadd.f32 1.0, %v2929_v27  ;;  %v9695_v27 = vpop.f32.mrf.mxu3  ;;  %v9697_v26 = vpop.f32.mrf.mxu0 }
 0x3a2   : > { %v2990_v46 = vmul.f32 2.1237322e-06, %v9552_v13  ;;  %v9684_v48 = vmul.f32 0.70710677, %v9655_v58  ;;  %v2878_v6 = vmul.f32 %v2877_v14, %v9377_v54  ;;  %v2955_v36 = vadd.f32 0.05243302, %v2954_v17 }
 0x3a3   : > { %v9687_v1 = vadd.f32 1.0, %v2969_v43  ;;  %v9690_v5 = vmul.f32 0.5, %v8794_v50  ;;  %v9692_v47 = vpop.eup %6839  ;;  %v2864_v18 = vsel %vm2861_vm1, %v2863_v30, %v2859_v20  ;;  %v2917_v11 = vadd.f32 0.18741608, %v2916_v22  ;;  %v6933_v17 = vld [vmem:[%s12653_s5] sm:$0xf] }
 0x3a4   : > { %12858 = vst [vmem:[#allocation61_spill] sm:$0xff] %v9684_v48  ;;  %v3006_v4 = vadd.f32 0.112945676, %v3005_v45  ;;  %v3041_v62 = vmul.f32 3.8918573e-05, %v9669_v23  ;;  %v9701_v54 = vmul.f32 %v9256_v53, %v12860_v40  ;;  %v9703_v14 = vadd.f32 1.0, %v6324_v16 }
 0x3a5   : > { %12859 = vst [vmem:[#allocation62_spill] sm:$0xff] %v9690_v5  ;;  %v2840_v50 = vmul.f32 %v2839_v61, %v9198_v32  ;;  %v9709_v43 = vperm.slane %v6933_v17, 2  ;;  %v6745_v22 = vld [vmem:[%s12654_s6 + $0x84] sm:$0xf]  ;;  %v6409_v45 = vld [vmem:[%s12654_s6 + $0x88] sm:$0xf0]  ;;  %6841 = vrcp.f32 %v9680_v59  ;;  %v3068_v61 = vmul.f32 %v9684_v48, %v9684_v48 }
 0x3a6   : > { %12861 = vst [vmem:[#allocation39_spill] sm:$0xff] %v9701_v54  ;;  %v12863_v53 = vld [vmem:[#allocation32_spill] sm:$0xff]  ;;  %v2991_v32 = vadd.f32 0.00028619796, %v2990_v46  ;;  %v6343_v20 = vld [vmem:[%s12654_s6] sm:$0xf]  ;;  %v2892_v54 = vmul.f32 %v9692_v47, %v9637_v0  ;;  %6843 = vrcp.f32 %v9687_v1  ;;  %v6412_v5 = vor.u32 %v6745_v22, %v6409_v45 }
 0x3a7   : > { %12862 = vst [vmem:[#allocation63_spill] sm:$0xff] %v9703_v14  ;;  %v9719_v16 = vmul.f32 %v9439_v2, %v12863_v53  ;;  %v6730_v30 = vld [vmem:[%s12654_s6 + $0x4] sm:$0xf0]  ;;  %v2865_v40 = vmul.f32 %v2864_v18, %v2840_v50  ;;  %v2956_v2 = vmul.f32 %v2955_v36, %v9435_v29  ;;  %v2879_v46 = vadd.f32 1.1283791, %v2878_v6  ;;  %v9740_v50 = vpop.f32.mrf.mxu2 }
 0x3a8   : > { %v2900_v53 = vand.u32 2147483647, %v9637_v0  ;;  %v3042_v48 = vadd.f32 0.001143296, %v3041_v62  ;;  %v1938_v49 = vadd.f32 %v9473_v35, %v9709_v43  ;;  %v9738_v60 = vperm.slane %v6933_v17, 3  ;;  %3900 = vmatpush.bf16.msra.mxu3 %v6412_v5 }
 0x3a9   : > { %12864 = vst [vmem:[#allocation32_spill] sm:$0xff] %v9719_v16  ;;  %v3007_v16 = vmul.f32 %v3006_v4, %v9552_v13  ;;  %v6344_v18 = vor.u32 %v6730_v30, %v6343_v20  ;;  %v2918_v14 = vmul.f32 %v2917_v11, %v9431_v37  ;;  %v2992_v36 = vmul.f32 %v2991_v32, %v9552_v13  ;;  %v9748_v4 = vpop.f32.mrf.mxu1  ;;  %v6746_v32 = vld [vmem:[%s12654_s6 + $0x84] sm:$0xf0] }
 0x3aa   : > { %v9744_v9 = vmin.f32 %v3068_v61, 16.0  ;;  %v1940_v6 = vadd.f32 %v9545_v21, %v9709_v43  ;;  %v6325_v62 = vclamps-f32 %v2865_v40, 1.0  ;;  %v2893_v22 = vsub.f32 1.0, %v2892_v54  ;;  %v6407_v54 = vld [vmem:[%s12654_s6 + $0x80] sm:$0xf]  ;;  %v9776_v40 = vpop.f32.mrf.mxu3 }
 0x3ab   : > { %v2902_v35 = vand.u32 2147483648, %v9637_v0  ;;  %v2957_v17 = vadd.f32 0.18741608, %v2956_v2  ;;  %3753 = vmatpush.bf16.msra.mxu0 %v6344_v18  ;;  %v9751_v45 = vpop.eup %6841  ;;  %v9755_v37 = vmul.f32 %v9449_v7, %v9229_v41  ;;  %v9758_v11 = vmul.f32 %v2879_v46, %v9320_v52  ;;  %v9778_v2 = vpop.f32.mrf.mxu0 }
 0x3ac   : > { %v3008_v5 = vadd.f32 0.4994258, %v3007_v16  ;;  %v1989_v21 = vadd.f32 %v9554_v19, %v1940_v6  ;;  %v9767_v61 = vpop.eup %6843  ;;  %v3030_v20 = vmul.f32 2.1237322e-06, %v9669_v23  ;;  %v3043_v41 = vmul.f32 %v3042_v48, %v9669_v23 }
 0x3ad   : > { %12865 = vst [vmem:[#allocation64_spill] sm:$0xff] %v9755_v37  ;;  %v1987_v52 = vadd.f32 %v9480_v56, %v1938_v49  ;;  %v2036_v7 = vadd.f32 %v9536_v24, %v9738_v60  ;;  %vm2896_vm2 = vweird.f32 %v9637_v0  ;;  %v2919_v19 = vadd.f32 1.1283791, %v2918_v14 }
 0x3ae   : > { %v2993_v16 = vadd.f32 0.0036580483, %v2992_v36  ;;  %v3081_v30 = vmul.f32 3.8918573e-05, %v9744_v9  ;;  %v2894_v46 = vmul.f32 %v9692_v47, %v2893_v22  ;;  %v6408_v6 = vor.u32 %v6746_v32, %v6407_v54 }
 0x3af   : > { %v3532_v18 = vpack.c.bf16 %v1989_v21, %v1987_v52  ;;  %v2038_v56 = vadd.f32 %v9588_v55, %v9738_v60  ;;  %v2932_v24 = vmul.f32 %v9751_v45, %v9680_v59  ;;  %v2958_v49 = vmul.f32 %v2957_v17, %v9435_v29 }
 0x3b0   : > { %v2972_v48 = vmul.f32 %v9767_v61, %v9687_v1  ;;  %v3009_v14 = vmul.f32 %v3008_v5, %v9552_v13  ;;  %vm9789_vm3 = vcmp.eq.f32.partialorder %v2900_v53, 8.507059e+37  ;;  %v3031_v22 = vadd.f32 0.00028619796, %v3030_v20  ;;  %3802 = vmatpush.bf16.msra.mxu1 %v6408_v6  ;;  %v9798_v5 = vpop.f32.mrf.mxu2  ;;  %v12868_v20 = vld [vmem:[#allocation41_spill] sm:$0xff] }
 0x3b1   : > { %v3044_v21 = vadd.f32 0.014752088, %v3043_v41  ;;  %v2085_v54 = vadd.f32 %v9538_v63, %v2036_v7  ;;  %v2087_v55 = vadd.f32 %v9590_v3, %v2038_v56  ;;  %3754 = vmatmul.bf16.vlgmr.msra.gmra.mxu0 %v3532_v18  ;;  %v9795_v32 = vadd.f32 1.0, %v6325_v62  ;;  %3852 = vmatmul.bf16.vlgmr.msra.gmra.mxu2 %v3532_v18 }
 0x3b2   : > { %v2903_v29 = vor.u32 1.1754944e-38, %v2902_v35  ;;  %v2994_v17 = vmul.f32 %v2993_v16, %v9552_v13  ;;  %v3082_v52 = vadd.f32 0.001143296, %v3081_v30  ;;  %v2895_v53 = vadd.f32 %v9692_v47, %v2894_v46  ;;  %v9809_v16 = vpop.f32.mrf.mxu1 }
 0x3b3   : > { %vm2897_vm4 = vweird.f32 %v9692_v47  ;;  %v1867_v63 = vadd.f32 %v12868_v20, %v8369_v15  ;;  %v3533_v41 = vpack.c.bf16 %v2087_v55, %v2085_v54  ;;  %v9805_v3 = vmul.f32 %v2919_v19, %v9383_v25  ;;  %v9839_v55 = vpop.f32.mrf.mxu3 }
 0x3b4   : > { %v2933_v62 = vsub.f32 1.0, %v2932_v24  ;;  %v2973_v7 = vsub.f32 1.0, %v2972_v48  ;;  %v9807_v35 = vadd.f32 1.0, %v3009_v14  ;;  %v9811_v30 = vadd.f32 1.1283791, %v2958_v49  ;;  %vm9819_vm5 = vmor %vm2896_vm2, %vm2897_vm4 }
 0x3b5   : > { %v3032_v18 = vmul.f32 %v3031_v22, %v9669_v23  ;;  %v3045_v46 = vmul.f32 %v3044_v21, %v9669_v23  ;;  %3803 = vmatmul.bf16.vlgmr.msra.gmra.mxu1 %v3533_v41  ;;  %3901 = vmatmul.bf16.vlgmr.msra.gmra.mxu3 %v3533_v41  ;;  %v1945_v6 = vadd.f32 %v9644_v42, %v9709_v43  ;;  %vm2936_vm6 = vweird.f32 %v9680_v59  ;;  %v12871_v42 = vld [vmem:[#allocation43_spill] sm:$0xff] }
 0x3b6   : > { %v2940_v19 = vand.u32 2147483647, %v9680_v59  ;;  %v2995_v56 = vadd.f32 0.05243302, %v2994_v17  ;;  %v3083_v24 = vmul.f32 %v3082_v52, %v9744_v9  ;;  %v2899_v49 = vsel %vm9819_vm5, %v9692_v47, %v2895_v53  ;;  %v9841_v17 = vpop.f32.mrf.mxu0 }
 0x3b7   : > { %v3070_v48 = vmul.f32 2.1237322e-06, %v9744_v9  ;;  %v9831_v14 = vadd.f32 %v12871_v42, %v1867_v63  ;;  %v1943_v0 = vadd.f32 %v9595_v33, %v9709_v43  ;;  %v2934_v22 = vmul.f32 %v9751_v45, %v2933_v62 }
 0x3b8   : > { %v2942_v21 = vand.u32 2147483648, %v9680_v59  ;;  %v2974_v54 = vmul.f32 %v9767_v61, %v2973_v7  ;;  %6845 = vrcp.f32 %v9807_v35  ;;  %v3033_v47 = vadd.f32 0.0036580483, %v3032_v18  ;;  %v9860_v36 = vpop.f32.mrf.mxu2 }
 0x3b9   : > { %v3046_v52 = vadd.f32 0.112945676, %v3045_v46  ;;  %v1994_v53 = vadd.f32 %v9671_v51, %v1945_v6  ;;  %v2043_v20 = vadd.f32 %v9678_v28, %v9738_v60  ;;  %v2904_v33 = vsel %vm9789_vm3, %v2903_v29, %v2899_v49 }
 0x3ba   : > { %v2982_v63 = vand.u32 2147483648, %v9687_v1  ;;  %v2996_v41 = vmul.f32 %v2995_v56, %v9552_v13  ;;  %v3084_v62 = vadd.f32 0.014752088, %v3083_v24  ;;  %v3071_v7 = vadd.f32 0.00028619796, %v3070_v48  ;;  %v9871_v42 = vpop.f32.mrf.mxu1 }
 0x3bb   : > { %v9851_v25 = vmul.f32 0.70710677, %v9831_v14  ;;  %v1992_v18 = vadd.f32 %v9620_v12, %v1943_v0  ;;  %v2041_v51 = vadd.f32 %v9635_v8, %v9738_v60  ;;  %v2935_v46 = vadd.f32 %v9751_v45, %v2934_v22 }
 0x3bc   : > { %vm2937_vm7 = vweird.f32 %v9751_v45  ;;  %v2975_v28 = vadd.f32 %v9767_v61, %v2974_v54  ;;  %vm2977_vm8 = vweird.f32 %v9767_v61  ;;  %v3034_v29 = vmul.f32 %v3033_v47, %v9669_v23 }
 0x3bd   : > { %v3047_v6 = vmul.f32 %v3046_v52, %v9669_v23  ;;  %v3534_v56 = vpack.c.bf16 %v1994_v53, %v1992_v18  ;;  %v2092_v12 = vadd.f32 %v9695_v27, %v2043_v20  ;;  %v2905_v8 = vmul.f32 %v2904_v33, %v9758_v11  ;;  %vm9875_vm10 = vmor %vm2936_vm6, %vm2937_vm7  ;;  %v9904_v18 = vpop.f32.mrf.mxu3 }
 0x3be   : > { %v9865_v24 = vpop.eup %6845  ;;  %vm2976_vm9 = vweird.f32 %v9687_v1  ;;  %v2980_v49 = vand.u32 2147483647, %v9687_v1  ;;  %v3085_v48 = vmul.f32 %v3084_v62, %v9744_v9  ;;  %v2997_v22 = vadd.f32 0.18741608, %v2996_v41  ;;  %v12878_v62 = vld [vmem:[#allocation28_spill] sm:$0xff] }
 0x3bf   : > { %v3072_v27 = vmul.f32 %v3071_v7, %v9744_v9  ;;  %v3108_v11 = vmul.f32 %v9851_v25, %v9851_v25  ;;  %v2090_v54 = vadd.f32 %v9641_v34, %v2041_v51  ;;  %v2939_v1 = vsel %vm9875_vm10, %v9751_v45, %v2935_v46  ;;  %vm9892_vm12 = vmor %vm2976_vm9, %vm2977_vm8 }
 0x3c0   : > { %vm9886_vm11 = vcmp.eq.f32.partialorder %v2940_v19, 8.507059e+37  ;;  %v2943_v59 = vor.u32 1.1754944e-38, %v2942_v21  ;;  %v2983_v53 = vor.u32 1.1754944e-38, %v2982_v63  ;;  %v2979_v34 = vsel %vm9892_vm12, %v9767_v61, %v2975_v28  ;;  %v9906_v63 = vpop.f32.mrf.mxu0 }
 0x3c1   : > { %v3035_v20 = vadd.f32 0.05243302, %v3034_v29  ;;  %v3048_v33 = vadd.f32 0.4994258, %v3047_v6  ;;  %v3535_v41 = vpack.c.bf16 %v2092_v12, %v2090_v54  ;;  %3759 = vmatmul.bf16.gmra.mxu0 %v3534_v56  ;;  %v6326_v45 = vclamps-f32 %v2905_v8, 1.0  ;;  %3857 = vmatmul.bf16.gmra.mxu2 %v3534_v56 }
 0x3c2   : > { %v3012_v19 = vmul.f32 %v9865_v24, %v9807_v35  ;;  %v3086_v21 = vadd.f32 0.112945676, %v3085_v48  ;;  %v9902_v7 = vmul.f32 0.70710677, %v12878_v62  ;;  %vm2981_vm13 = vcmp.eq.f32.partialorder %v2980_v49, 8.507059e+37  ;;  %v9941_v47 = vpop.f32.mrf.mxu1 }
 0x3c3   : > { %v2998_v61 = vmul.f32 %v2997_v22, %v9552_v13  ;;  %v3073_v51 = vadd.f32 0.0036580483, %v3072_v27  ;;  %v9909_v46 = vmin.f32 %v3108_v11, 16.0  ;;  %v2944_v28 = vsel %vm9886_vm11, %v2943_v59, %v2939_v1 }
 0x3c4   : > { %v2960_v29 = vmul.f32 %v9811_v30, %v9396_v39  ;;  %v2984_v6 = vsel %vm2981_vm13, %v2983_v53, %v2979_v34  ;;  %v9916_v12 = vmul.f32 0.5, %v8907_v57  ;;  %v3036_v56 = vmul.f32 %v3035_v20, %v9669_v23  ;;  %v9930_v30 = vpop.f32.mrf.mxu2 }
 0x3c5   : > { %v3049_v8 = vmul.f32 %v3048_v33, %v9669_v23  ;;  %v9921_v49 = vmul.f32 0.5, %v9655_v58  ;;  %3808 = vmatmul.bf16.gmra.mxu1 %v3535_v41  ;;  %3906 = vmatmul.bf16.gmra.mxu3 %v3535_v41  ;;  %v1950_v13 = vadd.f32 %v9778_v2, %v9709_v43  ;;  %v9925_v48 = vadd.f32 1.0, %v6326_v45 }
 0x3c6   : > { %v3013_v0 = vsub.f32 1.0, %v3012_v19  ;;  %v3087_v39 = vmul.f32 %v3086_v21, %v9744_v9  ;;  %v3148_v57 = vmul.f32 %v9902_v7, %v9902_v7  ;;  %v9932_v22 = vadd.f32 1.1283791, %v2998_v61 }
 0x3c7   : > { %v3074_v58 = vmul.f32 %v3073_v51, %v9744_v9  ;;  %v3121_v27 = vmul.f32 3.8918573e-05, %v9909_v46  ;;  %v1948_v11 = vadd.f32 %v9697_v26, %v9709_v43  ;;  %v2945_v2 = vmul.f32 %v2944_v28, %v9805_v3 }
 0x3c8   : > { %v2985_v54 = vmul.f32 %v2984_v6, %v2960_v29  ;;  %vm3016_vm14 = vweird.f32 %v9807_v35  ;;  %v3020_v1 = vand.u32 2147483647, %v9807_v35  ;;  %v3037_v59 = vadd.f32 0.18741608, %v3036_v56  ;;  %v9962_v29 = vpop.f32.mrf.mxu3  ;;  %v9964_v6 = vpop.f32.mrf.mxu0 }
 0x3c9   : > { %v9943_v52 = vadd.f32 1.0, %v3049_v8  ;;  %v1999_v53 = vadd.f32 %v9809_v16, %v1950_v13  ;;  %v2048_v34 = vadd.f32 %v9798_v5, %v9738_v60  ;;  %v3014_v20 = vmul.f32 %v9865_v24, %v3013_v0  ;;  %v12881_v5 = vld [vmem:[#allocation26_spill] sm:$0xff] }
 0x3ca   : > { %v3022_v26 = vand.u32 2147483648, %v9807_v35  ;;  %v3088_v3 = vadd.f32 0.4994258, %v3087_v39  ;;  %v9950_v33 = vmin.f32 %v3148_v57, 16.0  ;;  %v3075_v41 = vadd.f32 0.05243302, %v3074_v58 }
 0x3cb   : > { %v3122_v45 = vadd.f32 0.001143296, %v3121_v27  ;;  %v1997_v19 = vadd.f32 %v9748_v4, %v1948_v11  ;;  %v2046_v21 = vadd.f32 %v9740_v50, %v9738_v60  ;;  %v6327_v61 = vclamps-f32 %v2945_v2, 1.0 }
 0x3cc   : > { %v6328_v51 = vclamps-f32 %v2985_v54, 1.0  ;;  %vm9955_vm15 = vcmp.eq.f32.partialorder %v3020_v1, 8.507059e+37  ;;  %v9960_v28 = vmul.f32 0.70710677, %v12881_v5  ;;  %v3038_v56 = vmul.f32 %v3037_v59, %v9669_v23  ;;  %v9983_v54 = vpop.f32.mrf.mxu2  ;;  %v6625_v59 = vld [vmem:[%s12656_s8 + $0xf8] sm:$0xf0] }
 0x3cd   : > { %6847 = vrcp.f32 %v9943_v52  ;;  %v3536_v4 = vpack.c.bf16 %v1999_v53, %v1997_v19  ;;  %v2097_v50 = vadd.f32 %v9839_v55, %v2048_v34  ;;  %v3015_v8 = vadd.f32 %v9865_v24, %v3014_v20 }
 0x3ce   : > { %vm3017_vm0 = vweird.f32 %v9865_v24  ;;  %v3089_v13 = vmul.f32 %v3088_v3, %v9744_v9  ;;  %v3161_v0 = vmul.f32 3.8918573e-05, %v9950_v33  ;;  %v3076_v39 = vmul.f32 %v3075_v41, %v9744_v9  ;;  %v10006_v3 = vpop.f32.mrf.mxu1 }
 0x3cf   : > { %v3110_v57 = vmul.f32 2.1237322e-06, %v9909_v46  ;;  %v3123_v58 = vmul.f32 %v3122_v45, %v9909_v46  ;;  %v2095_v23 = vadd.f32 %v9776_v40, %v2046_v21  ;;  %v9977_v27 = vadd.f32 1.0, %v6327_v61  ;;  %vm9989_vm1 = vmor %vm3016_vm14, %vm3017_vm0  ;;  %v12885_v45 = vld [vmem:[#allocation27_spill] sm:$0xff] }
 0x3d0   : > { %v3023_v11 = vor.u32 1.1754944e-38, %v3022_v26  ;;  %v3188_v55 = vmul.f32 %v9960_v28, %v9960_v28  ;;  %v1774_v2 = vadd.f32 %v9249_v10, %v8360_v38  ;;  %v9985_v1 = vadd.f32 1.0, %v6328_v51 }
 0x3d1   : > { %v9993_v40 = vadd.f32 1.1283791, %v3038_v56  ;;  %v9996_v53 = vmul.f32 0.5, %v9831_v14  ;;  %v3537_v34 = vpack.c.bf16 %v2097_v50, %v2095_v23  ;;  %3764 = vmatmul.bf16.gmra.mxu0 %v3536_v4  ;;  %v3019_v10 = vsel %vm9989_vm1, %v9865_v24, %v3015_v8  ;;  %3862 = vmatmul.bf16.gmra.mxu2 %v3536_v4  ;;  %v12886_v14 = vld [vmem:[#allocation57_spill] sm:$0xff]  ;;  %v12888_v50 = vld [vmem:[#allocation44_spill] sm:$0xff]  ;;  %v12889_v4 = vld [vmem:[#allocation30_spill] sm:$0xff] }
 0x3d2   : > { %v10001_v20 = vadd.f32 1.0, %v3089_v13  ;;  %v10004_v26 = vmul.f32 0.5, %v12878_v62  ;;  %v3162_v35 = vadd.f32 0.001143296, %v3161_v0  ;;  %v10012_v19 = vmul.f32 %v12886_v14, %v12885_v45  ;;  %v12890_v13 = vld [vmem:[#allocation56_spill] sm:$0xff] }
 0x3d3   : > { %v10008_v41 = vpop.eup %6847  ;;  %v3077_v21 = vadd.f32 0.18741608, %v3076_v39  ;;  %v3111_v61 = vadd.f32 0.00028619796, %v3110_v57  ;;  %v3124_v51 = vadd.f32 0.014752088, %v3123_v58  ;;  %v10018_v62 = vadd.f32 %v12888_v50, %v1774_v2 }
 0x3d4   : > { %12884 = vst [vmem:[#allocation41_spill] sm:$0xff] %v10004_v26  ;;  %v3150_v24 = vmul.f32 2.1237322e-06, %v9950_v33  ;;  %v10015_v56 = vmin.f32 %v3188_v55, 16.0  ;;  %v1872_v8 = vadd.f32 %v12889_v4, %v8369_v15  ;;  %v3000_v0 = vmul.f32 %v9932_v22, %v12890_v13  ;;  %v6775_v57 = vld [vmem:[%s12656_s8 + $0x74] sm:$0xf]  ;;  %v10043_v55 = vpop.f32.mrf.mxu0 }
 0x3d5   : > { %12887 = vst [vmem:[#allocation43_spill] sm:$0xff] %v10012_v19  ;;  %v3024_v23 = vsel %vm9955_vm15, %v3023_v11, %v3019_v10  ;;  %3813 = vmatmul.bf16.gmra.mxu1 %v3537_v34  ;;  %3911 = vmatmul.bf16.gmra.mxu3 %v3537_v34  ;;  %v1955_v39 = vadd.f32 %v9906_v63, %v9709_v43  ;;  %v6561_v58 = vld [vmem:[%s12656_s8 + $0x78] sm:$0xf0]  ;;  %v6791_v22 = vld [vmem:[%s12656_s8 + $0xf4] sm:$0xf]  ;;  %6849 = vrcp.f32 %v10001_v20  ;;  %v10041_v63 = vpop.f32.mrf.mxu3  ;;  %v10058_v4 = vmul.f32 0.5, %v12881_v5 }
 0x3d6   : > { %v3052_v16 = vmul.f32 %v10008_v41, %v9943_v52  ;;  %v3163_v11 = vmul.f32 %v3162_v35, %v9950_v33  ;;  %v6564_v2 = vor.u32 %v6775_v57, %v6561_v58  ;;  %v6559_v34 = vld [vmem:[%s12656_s8 + $0x70] sm:$0xf]  ;;  %v6776_v10 = vld [vmem:[%s12656_s8 + $0x74] sm:$0xf0]  ;;  %v3125_v45 = vmul.f32 %v3124_v51, %v9909_v46 }
 0x3d7   : > { %v1953_v35 = vadd.f32 %v9841_v17, %v9709_v43  ;;  %v6628_v14 = vor.u32 %v6791_v22, %v6625_v59  ;;  %v6560_v50 = vor.u32 %v6776_v10, %v6559_v34  ;;  %12891 = vst [vmem:[#allocation28_spill] sm:$0xff] %v10058_v4  ;;  %v3201_v13 = vmul.f32 3.8918573e-05, %v10015_v56  ;;  %v12893_v58 = vld [vmem:[#allocation31_spill] sm:$0xff]  ;;  %v10074_v10 = vpop.f32.mrf.mxu2 }
 0x3d8   : > { %v10062_v57 = vmul.f32 0.70710677, %v10018_v62  ;;  %v10065_v19 = vadd.f32 %v12893_v58, %v1872_v8  ;;  %5694 = vmatpush.bf16.msrb.mxu2 %v6564_v2  ;;  %v10067_v37 = vmul.f32 %v3024_v23, %v3000_v0  ;;  %v3151_v51 = vadd.f32 0.00028619796, %v3150_v24 }
 0x3d9   : > { %v2004_v26 = vadd.f32 %v9941_v47, %v1955_v39  ;;  %v2053_v17 = vadd.f32 %v9930_v30, %v9738_v60  ;;  %5743 = vmatpush.bf16.msrb.mxu3 %v6628_v14  ;;  %5596 = vmatpush.bf16.msrb.mxu0 %v6560_v50  ;;  %v3053_v5 = vsub.f32 1.0, %v3052_v16  ;;  %v3062_v22 = vand.u32 2147483648, %v9943_v52 }
 0x3da   : > { %12892 = vst [vmem:[#allocation26_spill] sm:$0xff] %v10062_v57  ;;  %v3078_v59 = vmul.f32 %v3077_v21, %v9744_v9  ;;  %v3164_v34 = vadd.f32 0.014752088, %v3163_v11  ;;  %v3112_v8 = vmul.f32 %v3111_v61, %v9909_v46  ;;  %v3126_v0 = vadd.f32 0.112945676, %v3125_v45  ;;  %v10088_v21 = vpop.f32.mrf.mxu1 }
 0x3db   : > { %v2002_v24 = vadd.f32 %v9871_v42, %v1953_v35  ;;  %v2051_v47 = vadd.f32 %v9860_v36, %v9738_v60  ;;  %v10080_v23 = vpop.eup %6849  ;;  %v3060_v30 = vand.u32 2147483647, %v9943_v52  ;;  %v3202_v39 = vadd.f32 0.001143296, %v3201_v13 }
 0x3dc   : > { %v3228_v16 = vmul.f32 %v10062_v57, %v10062_v57  ;;  %v10086_v9 = vmul.f32 0.70710677, %v10065_v19  ;;  %v3152_v42 = vmul.f32 %v3151_v51, %v9950_v33  ;;  %v2102_v36 = vadd.f32 %v9962_v29, %v2053_v17 }
 0x3dd   : > { %v3538_v11 = vpack.c.bf16 %v2004_v26, %v2002_v24  ;;  %v3054_v2 = vmul.f32 %v10008_v41, %v3053_v5  ;;  %v10094_v45 = vor.u32 1.1754944e-38, %v3062_v22  ;;  %v10096_v35 = vadd.f32 1.1283791, %v3078_v59  ;;  %v10111_v5 = vpop.f32.mrf.mxu3  ;;  %v10113_v22 = vpop.f32.mrf.mxu0 }
 0x3de   : > { %12894 = vst [vmem:[#allocation27_spill] sm:$0xff] %v10086_v9  ;;  %v3165_v14 = vmul.f32 %v3164_v34, %v9950_v33  ;;  %v3113_v50 = vadd.f32 0.0036580483, %v3112_v8  ;;  %v3127_v13 = vmul.f32 %v3126_v0, %v9909_v46  ;;  %v3190_v58 = vmul.f32 2.1237322e-06, %v10015_v56  ;;  %v12897_v0 = vld [vmem:[#allocation34_spill] sm:$0xff] }
 0x3df   : > { %v2100_v61 = vadd.f32 %v9904_v18, %v2051_v47  ;;  %v10104_v26 = vmul.f32 %v10080_v23, %v10001_v20  ;;  %v3203_v29 = vmul.f32 %v3202_v39, %v10015_v56  ;;  %v10107_v51 = vmin.f32 %v3228_v16, 16.0  ;;  %v6792_v16 = vld [vmem:[%s12656_s8 + $0xf4] sm:$0xf0]  ;;  %v10144_v18 = vpop.f32.mrf.mxu2 }
 0x3e0   : > { %v3268_v17 = vmul.f32 %v10086_v9, %v10086_v9  ;;  %vm3057_vm2 = vweird.f32 %v10008_v41  ;;  %vm10116_vm3 = vcmp.eq.f32.partialorder %v3060_v30, 8.507059e+37  ;;  %v3153_v34 = vadd.f32 0.0036580483, %v3152_v42  ;;  %v6623_v30 = vld [vmem:[%s12656_s8 + $0xf0] sm:$0xf] }
 0x3e1   : > { %v3539_v8 = vpack.c.bf16 %v2102_v36, %v2100_v61  ;;  %3769 = vmatmul.bf16.gmra.mxu0 %v3538_v11  ;;  %v10123_v24 = vmul.f32 %v9629_v44, %v12897_v0  ;;  %v3055_v47 = vadd.f32 %v10008_v41, %v3054_v2  ;;  %vm3056_vm4 = vweird.f32 %v9943_v52  ;;  %3867 = vmatmul.bf16.gmra.mxu2 %v3538_v11 }
 0x3e2   : > { %v3166_v39 = vadd.f32 0.112945676, %v3165_v14  ;;  %v3114_v61 = vmul.f32 %v3113_v50, %v9909_v46  ;;  %v3128_v42 = vadd.f32 0.4994258, %v3127_v13  ;;  %v3191_v36 = vadd.f32 0.00028619796, %v3190_v58  ;;  %vm10136_vm5 = vmor %vm3056_vm4, %vm3057_vm2 }
 0x3e3   : > { %12898 = vst [vmem:[#allocation57_spill] sm:$0xff] %v10123_v24  ;;  %v6624_v44 = vor.u32 %v6792_v16, %v6623_v30  ;;  %v3093_v52 = vsub.f32 1.0, %v10104_v26  ;;  %v3204_v11 = vadd.f32 0.014752088, %v3203_v29  ;;  %v3241_v14 = vmul.f32 3.8918573e-05, %v10107_v51 }
 0x3e4   : > { %v10142_v0 = vmin.f32 %v3268_v17, 16.0  ;;  %v12901_v24 = vld [vmem:[#allocation29_spill] sm:$0xff]  ;;  %v3154_v13 = vmul.f32 %v3153_v34, %v9950_v33  ;;  %v1960_v58 = vadd.f32 %v10043_v55, %v9709_v43  ;;  %v6553_v29 = vld [vmem:[%s12656_s8 + $0x68] sm:$0xf0]  ;;  %v12903_v17 = vld [vmem:[#allocation59_spill] sm:$0xff]  ;;  %v3167_v55 = vmul.f32 %v3166_v39, %v9950_v33 }
 0x3e5   : > { %v10148_v50 = vmul.f32 %v9673_v31, %v12901_v24  ;;  %3818 = vmatmul.bf16.gmra.mxu1 %v3539_v8  ;;  %3916 = vmatmul.bf16.gmra.mxu3 %v3539_v8  ;;  %v6773_v26 = vld [vmem:[%s12656_s8 + $0x64] sm:$0xf]  ;;  %v3040_v34 = vmul.f32 %v9993_v40, %v12903_v17  ;;  %v3059_v8 = vsel %vm10136_vm5, %v10008_v41, %v3055_v47  ;;  %v10168_v24 = vpop.f32.mrf.mxu1  ;;  %v6617_v16 = vld [vmem:[%s12656_s8 + $0xe8] sm:$0xf0]  ;;  %v6774_v40 = vld [vmem:[%s12656_s8 + $0x64] sm:$0xf0]  ;;  %vm3096_vm6 = vweird.f32 %v10001_v20 }
 0x3e6   : > { %v6789_v31 = vld [vmem:[%s12656_s8 + $0xe4] sm:$0xf]  ;;  %5645 = vmatpush.bf16.msrb.mxu1 %v6624_v44  ;;  %v6556_v30 = vor.u32 %v6773_v26, %v6553_v29  ;;  %v3192_v41 = vmul.f32 %v3191_v36, %v10015_v56  ;;  %v1958_v47 = vadd.f32 %v9964_v6, %v9709_v43  ;;  %v3115_v2 = vadd.f32 0.05243302, %v3114_v61  ;;  %v12904_v17 = vld [vmem:[#allocation48_spill] sm:$0xff] }
 0x3e7   : > { %12902 = vst [vmem:[#allocation44_spill] sm:$0xff] %v10148_v50  ;;  %v6551_v50 = vld [vmem:[%s12656_s8 + $0x60] sm:$0xf]  ;;  %v6620_v39 = vor.u32 %v6789_v31, %v6617_v16  ;;  %v3205_v26 = vmul.f32 %v3204_v11, %v10015_v56  ;;  %v3281_v29 = vmul.f32 3.8918573e-05, %v10142_v0  ;;  %v3102_v4 = vand.u32 2147483648, %v10001_v20  ;;  %v1964_v16 = vpop.f32.mrf.mxu0 }
 0x3e8   : > { %v6552_v44 = vor.u32 %v6774_v40, %v6551_v50  ;;  %v10185_v9 = vmul.f32 0.70710677, %v12904_v17  ;;  %5695 = vmatpush.bf16.msrb.mxu2 %v6556_v30  ;;  %v3155_v57 = vadd.f32 0.05243302, %v3154_v13  ;;  %v2009_v36 = vadd.f32 %v10088_v21, %v1960_v58  ;;  %v10197_v30 = vpop.f32.mrf.mxu3 }
 0x3e9   : > { %v2058_v6 = vadd.f32 %v10074_v10, %v9738_v60  ;;  %5744 = vmatpush.bf16.msrb.mxu3 %v6620_v39  ;;  %v3064_v61 = vsel %vm10116_vm3, %v10094_v45, %v3059_v8  ;;  %v3094_v11 = vmul.f32 %v10080_v23, %v3093_v52  ;;  %v3129_v50 = vmul.f32 %v3128_v42, %v9909_v46 }
 0x3ea   : > { %5597 = vmatpush.bf16.msrb.mxu0 %v6552_v44  ;;  %v3242_v31 = vadd.f32 0.001143296, %v3241_v14  ;;  %v3168_v13 = vadd.f32 0.4994258, %v3167_v55  ;;  %v3193_v40 = vadd.f32 0.0036580483, %v3192_v41  ;;  %v2007_v21 = vadd.f32 %v10006_v3, %v1958_v47  ;;  %v10219_v47 = vpop.f32.mrf.mxu2 }
 0x3eb   : > { %v2056_v10 = vadd.f32 %v9983_v54, %v9738_v60  ;;  %v3116_v58 = vmul.f32 %v3115_v2, %v9909_v46  ;;  %v3206_v39 = vadd.f32 0.112945676, %v3205_v26  ;;  %v3282_v59 = vadd.f32 0.001143296, %v3281_v29 }
 0x3ec   : > { %v3308_v45 = vmul.f32 %v10185_v9, %v10185_v9  ;;  %v10205_v52 = vmul.f32 %v3064_v61, %v3040_v34  ;;  %v3156_v42 = vmul.f32 %v3155_v57, %v9950_v33  ;;  %v3540_v14 = vpack.c.bf16 %v2009_v36, %v2007_v21 }
 0x3ed   : > { %v2107_v8 = vadd.f32 %v10111_v5, %v2058_v6  ;;  %vm3097_vm7 = vweird.f32 %v10080_v23  ;;  %v12905_v3 = vand.u32 2147483647, %v10001_v20  ;;  %v10216_v55 = vadd.f32 1.0, %v3129_v50  ;;  %v2013_v6 = vpop.f32.mrf.mxu1 }
 0x3ee   : > { %v3243_v41 = vmul.f32 %v3242_v31, %v10107_v51  ;;  %v3095_v34 = vadd.f32 %v10080_v23, %v3094_v11  ;;  %v3169_v57 = vmul.f32 %v3168_v13, %v9950_v33  ;;  %v3194_v5 = vmul.f32 %v3193_v40, %v10015_v56  ;;  %v12908_v11 = vld [vmem:[#allocation47_spill] sm:$0xff]  ;;  %vm10242_vm9 = vmor %vm3096_vm6, %vm3097_vm7 }
 0x3ef   : > { %vm10212_vm8 = vcmp.eq.f32.partialorder %v12905_v3, 8.507059e+37  ;;  %v2105_v44 = vadd.f32 %v10041_v63, %v2056_v10  ;;  %v3103_v2 = vor.u32 1.1754944e-38, %v3102_v4  ;;  %v3207_v26 = vmul.f32 %v3206_v39, %v10015_v56  ;;  %v12909_v13 = vld [vmem:[#allocation63_spill] sm:$0xff]  ;;  %v6609_v4 = vld [vmem:[%s12656_s8 + $0xd8] sm:$0xf0] }
 0x3f0   : > { %v3283_v29 = vmul.f32 %v3282_v59, %v10142_v0  ;;  %v10227_v36 = vmin.f32 %v3308_v45, 16.0  ;;  %v6330_v61 = vclamps-f32 %v10205_v52, 1.0  ;;  %v3117_v50 = vadd.f32 0.18741608, %v3116_v58  ;;  %v12910_v40 = vld [vmem:[#allocation51_spill] sm:$0xff]  ;;  %v12914_v52 = vld [vmem:[#allocation58_spill] sm:$0xff] }
 0x3f1   : > { %v3157_v31 = vadd.f32 0.18741608, %v3156_v42  ;;  %v3541_v21 = vpack.c.bf16 %v2107_v8, %v2105_v44  ;;  %3774 = vmatmul.bf16.gmra.mxu0 %v3540_v14  ;;  %v10232_v3 = vmul.f32 %v12909_v13, %v12908_v11  ;;  %v10236_v63 = vmul.f32 %v9795_v32, %v12910_v40  ;;  %3872 = vmatmul.bf16.gmra.mxu2 %v3540_v14  ;;  %v6615_v58 = vld [vmem:[%s12656_s8 + $0xe0] sm:$0xf]  ;;  %v6790_v32 = vld [vmem:[%s12656_s8 + $0xe4] sm:$0xf0]  ;;  %v2111_v44 = vpop.f32.mrf.mxu3  ;;  %v10263_v11 = vpop.f32.mrf.mxu0 }
 0x3f2   : > { %6851 = vrcp.f32 %v10216_v55  ;;  %v3244_v10 = vadd.f32 0.014752088, %v3243_v41  ;;  %v3099_v20 = vsel %vm10242_vm9, %v10080_v23, %v3095_v34  ;;  %v10256_v39 = vadd.f32 1.0, %v3169_v57  ;;  %v12916_v13 = vld [vmem:[#allocation60_spill] sm:$0xff]  ;;  %v12917_v23 = vld [vmem:[#allocation42_spill] sm:$0xff] }
 0x3f3   : > { %12911 = vst [vmem:[#allocation30_spill] sm:$0xff] %v10236_v63  ;;  %v3195_v59 = vadd.f32 0.05243302, %v3194_v5  ;;  %v6616_v45 = vor.u32 %v6790_v32, %v6615_v58  ;;  %v10260_v42 = vmul.f32 %v9925_v48, %v12914_v52  ;;  %v3208_v14 = vadd.f32 0.4994258, %v3207_v26  ;;  %v12919_v26 = vld [vmem:[#allocation61_spill] sm:$0xff] }
 0x3f4   : > { %v3284_v8 = vadd.f32 0.014752088, %v3283_v29  ;;  %v3321_v41 = vmul.f32 3.8918573e-05, %v10227_v36  ;;  %v10267_v40 = vmul.f32 %v9977_v27, %v12916_v13  ;;  %v10271_v34 = vmul.f32 %v9985_v1, %v12917_v23  ;;  %v6771_v57 = vld [vmem:[%s12656_s8 + $0x54] sm:$0xf] }
 0x3f5   : > { %12915 = vst [vmem:[#allocation56_spill] sm:$0xff] %v10260_v42  ;;  %3823 = vmatmul.bf16.gmra.mxu1 %v3541_v21  ;;  %3921 = vmatmul.bf16.gmra.mxu3 %v3541_v21  ;;  %v1965_v48 = vadd.f32 %v1964_v16, %v9709_v43  ;;  %v6545_v5 = vld [vmem:[%s12656_s8 + $0x58] sm:$0xf0]  ;;  %v6787_v27 = vld [vmem:[%s12656_s8 + $0xd4] sm:$0xf]  ;;  %v3080_v1 = vmul.f32 %v10096_v35, %v12919_v26  ;;  %6853 = vrcp.f32 %v10256_v39  ;;  %vm3136_vm10 = vweird.f32 %v10216_v55 }
 0x3f6   : > { %12918 = vst [vmem:[#allocation31_spill] sm:$0xff] %v10271_v34  ;;  %v3104_v29 = vsel %vm10212_vm8, %v3103_v2, %v3099_v20  ;;  %v3245_v16 = vmul.f32 %v3244_v10, %v10107_v51  ;;  %5646 = vmatpush.bf16.msrb.mxu1 %v6616_v45  ;;  %v6548_v21 = vor.u32 %v6771_v57, %v6545_v5  ;;  %v6543_v58 = vld [vmem:[%s12656_s8 + $0x50] sm:$0xf]  ;;  %v6772_v32 = vld [vmem:[%s12656_s8 + $0x54] sm:$0xf0]  ;;  %v12920_v20 = vclamps-f32 %v10067_v37, 1.0  ;;  %v10306_v57 = vpop.f32.mrf.mxu2 }
 0x3f7   : > { %v1963_v35 = vadd.f32 %v10113_v22, %v9709_v43  ;;  %v6612_v54 = vor.u32 %v6787_v27, %v6609_v4  ;;  %v6544_v2 = vor.u32 %v6772_v32, %v6543_v58  ;;  %v3118_v52 = vmul.f32 %v3117_v50, %v9909_v46  ;;  %v10313_v50 = vpop.f32.mrf.mxu1 }
 0x3f8   : > { %v10300_v10 = vpop.eup %6851  ;;  %v3488_v45 = vadd.f32 1.0, %v12920_v20  ;;  %v3209_v13 = vmul.f32 %v3208_v14, %v10015_v56  ;;  %v3322_v23 = vadd.f32 0.001143296, %v3321_v41  ;;  %5696 = vmatpush.bf16.msrb.mxu2 %v6548_v21  ;;  %v3489_v5 = vadd.f32 1.0, %v6330_v61 }
 0x3f9   : > { %v3105_v26 = vmul.f32 %v3104_v29, %v3080_v1  ;;  %v2014_v34 = vadd.f32 %v2013_v6, %v1965_v48  ;;  %v2063_v22 = vadd.f32 %v10219_v47, %v9738_v60  ;;  %5745 = vmatpush.bf16.msrb.mxu3 %v6612_v54  ;;  %5598 = vmatpush.bf16.msrb.mxu0 %v6544_v2  ;;  %v3142_v27 = vand.u32 2147483648, %v10216_v55  ;;  %v10335_v32 = vpop.f32.mrf.mxu3 }
 0x3fa   : > { %v3158_v37 = vmul.f32 %v3157_v31, %v9950_v33  ;;  %v3246_v4 = vadd.f32 0.112945676, %v3245_v16  ;;  %v3285_v46 = vmul.f32 %v3284_v8, %v10142_v0  ;;  %v3132_v14 = vmul.f32 %v10300_v10, %v10216_v55 }
 0x3fb   : > { %v3196_v61 = vmul.f32 %v3195_v59, %v10015_v56  ;;  %v2012_v6 = vadd.f32 %v10168_v24, %v1963_v35  ;;  %v2061_v47 = vadd.f32 %v10144_v18, %v9738_v60  ;;  %v10321_v41 = vadd.f32 1.1283791, %v3118_v52  ;;  %v10327_v8 = vpop.eup %6853  ;;  %v1969_v35 = vpop.f32.mrf.mxu0 }
 0x3fc   : > { %v10323_v48 = vadd.f32 1.0, %v3209_v13  ;;  %v3230_v33 = vmul.f32 2.1237322e-06, %v10107_v51  ;;  %v3323_v31 = vmul.f32 %v3322_v23, %v10227_v36  ;;  %v6331_v1 = vclamps-f32 %v3105_v26, 1.0 }
 0x3fd   : > { %v3140_v29 = vand.u32 2147483647, %v10216_v55  ;;  %v3542_v16 = vpack.c.bf16 %v2014_v34, %v2012_v6  ;;  %v2112_v59 = vadd.f32 %v2111_v44, %v2063_v22  ;;  %v10330_v21 = vor.u32 1.1754944e-38, %v3142_v27  ;;  %v6607_v6 = vld [vmem:[%s12656_s8 + $0xd0] sm:$0xf] }
 0x3fe   : > { %v10332_v24 = vadd.f32 1.1283791, %v3158_v37  ;;  %v3247_v18 = vmul.f32 %v3246_v4, %v10107_v51  ;;  %v3286_v58 = vadd.f32 0.112945676, %v3285_v46  ;;  %v3133_v54 = vsub.f32 1.0, %v3132_v14  ;;  %v12921_v37 = vld [vmem:[#allocation62_spill] sm:$0xff] }
 0x3ff   : > { %v3182_v2 = vand.u32 2147483648, %v10256_v39  ;;  %v3197_v20 = vadd.f32 0.18741608, %v3196_v61  ;;  %v2110_v52 = vadd.f32 %v10197_v30, %v2061_v47  ;;  %v3172_v34 = vmul.f32 %v10327_v8, %v10256_v39  ;;  %v2067_v61 = vpop.f32.mrf.mxu2 }
 0x400   : > { %6855 = vrcp.f32 %v10323_v48  ;;  %v3231_v44 = vadd.f32 0.00028619796, %v3230_v33  ;;  %v3324_v13 = vadd.f32 0.014752088, %v3323_v31  ;;  %v10342_v23 = vadd.f32 1.0, %v6331_v1 }
 0x401   : > { %v10346_v22 = vmul.f32 0.5, %v10018_v62  ;;  %v3543_v27 = vpack.c.bf16 %v2112_v59, %v2110_v52  ;;  %3779 = vmatmul.bf16.gmra.mxu0 %v3542_v16  ;;  %v10349_v4 = vmul.f32 %v3488_v45, %v12921_v37  ;;  %v10352_v30 = vmul.f32 %v3489_v5, %v9916_v12  ;;  %3877 = vmatmul.bf16.gmra.mxu2 %v3542_v16  ;;  %v6788_v62 = vld [vmem:[%s12656_s8 + $0xd4] sm:$0xf0]  ;;  %v2018_v59 = vpop.f32.mrf.mxu1 }
 0x402   : > { %v3248_v46 = vadd.f32 0.4994258, %v3247_v18  ;;  %v3287_v14 = vmul.f32 %v3286_v58, %v10142_v0  ;;  %v3134_v47 = vmul.f32 %v10300_v10, %v3133_v54  ;;  %v10362_v45 = vor.u32 1.1754944e-38, %v3182_v2  ;;  %v6537_v58 = vld [vmem:[%s12656_s8 + $0x48] sm:$0xf0] }
 0x403   : > { %12922 = vst [vmem:[#allocation34_spill] sm:$0xff] %v10349_v4  ;;  %v3198_v12 = vmul.f32 %v3197_v20, %v10015_v56  ;;  %v6608_v5 = vor.u32 %v6788_v62, %v6607_v6  ;;  %v3173_v33 = vsub.f32 1.0, %v3172_v34  ;;  %v3232_v31 = vmul.f32 %v3231_v44, %v10107_v51  ;;  %v6769_v56 = vld [vmem:[%s12656_s8 + $0x44] sm:$0xf]  ;;  %v12924_v34 = vld [vmem:[#allocation50_spill] sm:$0xff] }
 0x404   : > { %12923 = vst [vmem:[#allocation29_spill] sm:$0xff] %v10352_v30  ;;  %v3270_v1 = vmul.f32 2.1237322e-06, %v10142_v0  ;;  %v3325_v16 = vmul.f32 %v3324_v13, %v10227_v36  ;;  %vm3137_vm11 = vweird.f32 %v10300_v10  ;;  %vm3177_vm12 = vweird.f32 %v10327_v8  ;;  %v6785_v54 = vld [vmem:[%s12656_s8 + $0xc4] sm:$0xf]  ;;  %v10402_v30 = vpop.f32.mrf.mxu0 }
 0x405   : > { %3828 = vmatmul.bf16.gmra.mxu1 %v3543_v27  ;;  %3926 = vmatmul.bf16.gmra.mxu3 %v3543_v27  ;;  %v1970_v18 = vadd.f32 %v1969_v35, %v9709_v43  ;;  %v3249_v20 = vmul.f32 %v3248_v46, %v10107_v51  ;;  %v3288_v52 = vadd.f32 0.4994258, %v3287_v14  ;;  %v10385_v44 = vmul.f32 0.70710677, %v12924_v34  ;;  %v6601_v13 = vld [vmem:[%s12656_s8 + $0xc8] sm:$0xf0]  ;;  %v2116_v34 = vpop.f32.mrf.mxu3  ;;  %vm10411_vm14 = vmor %vm3136_vm10, %vm3137_vm11 }
 0x406   : > { %v10381_v2 = vpop.eup %6855  ;;  %5647 = vmatpush.bf16.msrb.mxu1 %v6608_v5  ;;  %v6540_v35 = vor.u32 %v6769_v56, %v6537_v58  ;;  %v3135_v27 = vadd.f32 %v10300_v10, %v3134_v47  ;;  %v10391_v37 = vadd.f32 1.1283791, %v3198_v12  ;;  %v1968_v6 = vadd.f32 %v10263_v11, %v9709_v43  ;;  %v12927_v58 = vld [vmem:[#allocation33_spill] sm:$0xff] }
 0x407   : > { %v6604_v62 = vor.u32 %v6785_v54, %v6601_v13  ;;  %vm10395_vm13 = vcmp.eq.f32.partialorder %v3140_v29, 8.507059e+37  ;;  %v3174_v14 = vmul.f32 %v10327_v8, %v3173_v33  ;;  %v3233_v5 = vadd.f32 0.0036580483, %v3232_v31 }
 0x408   : > { %v3326_v56 = vadd.f32 0.112945676, %v3325_v16  ;;  %v1779_v26 = vadd.f32 %v12927_v58, %v8360_v38  ;;  %5697 = vmatpush.bf16.msrb.mxu2 %v6540_v35  ;;  %v3212_v47 = vmul.f32 %v10381_v2, %v10323_v48  ;;  %v3271_v11 = vadd.f32 0.00028619796, %v3270_v1 }
 0x409   : > { %v2019_v12 = vadd.f32 %v2018_v59, %v1970_v18  ;;  %v2068_v29 = vadd.f32 %v2067_v61, %v9738_v60  ;;  %5746 = vmatpush.bf16.msrb.mxu3 %v6604_v62  ;;  %v10415_v38 = vadd.f32 1.0, %v3249_v20  ;;  %v10418_v31 = vmul.f32 0.5, %v10065_v19 }
 0x40a   : > { %v3289_v16 = vmul.f32 %v3288_v52, %v10142_v0  ;;  %v3348_v1 = vmul.f32 %v10385_v44, %v10385_v44  ;;  %v3139_v61 = vsel %vm10411_vm14, %v10300_v10, %v3135_v27  ;;  %v3220_v55 = vand.u32 2147483647, %v10323_v48  ;;  %v12933_v10 = vld [vmem:[#allocation49_spill] sm:$0xff]  ;;  %v10442_v27 = vpop.f32.mrf.mxu2 }
 0x40b   : > { %v2017_v59 = vadd.f32 %v10313_v50, %v1968_v6  ;;  %v2066_v18 = vadd.f32 %v10306_v57, %v9738_v60  ;;  %v3175_v54 = vadd.f32 %v10327_v8, %v3174_v14  ;;  %v12930_v19 = vand.u32 2147483647, %v10256_v39 }
 0x40c   : > { %v3234_v52 = vmul.f32 %v3233_v5, %v10107_v51  ;;  %v3327_v35 = vmul.f32 %v3326_v56, %v10227_v36  ;;  %v10440_v13 = vadd.f32 %v12933_v10, %v1779_v26  ;;  %v3213_v50 = vsub.f32 1.0, %v3212_v47  ;;  %v10451_v5 = vpop.f32.mrf.mxu1  ;;  %v6535_v47 = vld [vmem:[%s12656_s8 + $0x40] sm:$0xf]  ;;  %v1974_v10 = vpop.f32.mrf.mxu0 }
 0x40d   : > { %vm10433_vm15 = vcmp.eq.f32.partialorder %v12930_v19, 8.507059e+37  ;;  %v3272_v57 = vmul.f32 %v3271_v11, %v10142_v0  ;;  %v3544_v6 = vpack.c.bf16 %v2019_v12, %v2017_v59  ;;  %v2117_v62 = vadd.f32 %v2116_v34, %v2068_v29  ;;  %v6770_v11 = vld [vmem:[%s12656_s8 + $0x44] sm:$0xf0]  ;;  %v6599_v12 = vld [vmem:[%s12656_s8 + $0xc0] sm:$0xf] }
 0x40e   : > { %6857 = vrcp.f32 %v10415_v38  ;;  %v10446_v14 = vadd.f32 1.0, %v3289_v16  ;;  %v3310_v58 = vmul.f32 2.1237322e-06, %v10227_v36  ;;  %v10449_v33 = vmin.f32 %v3348_v1, 16.0 }
 0x40f   : > { %v3120_v26 = vmul.f32 %v10321_v41, %v9851_v25  ;;  %v3160_v56 = vmul.f32 %v10332_v24, %v9902_v7  ;;  %vm3176_vm0 = vweird.f32 %v10256_v39  ;;  %v2115_v34 = vadd.f32 %v10335_v32, %v2066_v18  ;;  %v6786_v32 = vld [vmem:[%s12656_s8 + $0xc4] sm:$0xf0] }
 0x410   : > { %v10470_v25 = vmul.f32 %v10342_v23, %v9921_v49  ;;  %vm10474_vm1 = vmor %vm3176_vm0, %vm3177_vm12  ;;  %v3328_v39 = vadd.f32 0.4994258, %v3327_v35  ;;  %v10479_v41 = vmul.f32 0.70710677, %v10440_v13  ;;  %v6536_v24 = vor.u32 %v6770_v11, %v6535_v47  ;;  %v10491_v35 = vpop.f32.mrf.mxu3 }
 0x411   : > { %v3144_v49 = vsel %vm10395_vm13, %v10330_v21, %v3139_v61  ;;  %v3179_v23 = vsel %vm10474_vm1, %v10327_v8, %v3175_v54  ;;  %v3545_v29 = vpack.c.bf16 %v2117_v62, %v2115_v34  ;;  %3784 = vmatmul.bf16.gmra.mxu0 %v3544_v6  ;;  %v6600_v16 = vor.u32 %v6786_v32, %v6599_v12  ;;  %v12939_v62 = vld [vmem:[#allocation53_spill] sm:$0xff] }
 0x412   : > { %12934 = vst [vmem:[#allocation59_spill] sm:$0xff] %v10470_v25  ;;  %v3214_v1 = vmul.f32 %v10381_v2, %v3213_v50  ;;  %v3235_v59 = vadd.f32 0.05243302, %v3234_v52  ;;  %v3273_v18 = vadd.f32 0.0036580483, %v3272_v57  ;;  %3882 = vmatmul.bf16.gmra.mxu2 %v3544_v6  ;;  %5599 = vmatpush.bf16.msrb.mxu0 %v6536_v24  ;;  %vm3216_vm2 = vweird.f32 %v10323_v48  ;;  %v2072_v11 = vpop.f32.mrf.mxu2 }
 0x413   : > { %v3311_v19 = vadd.f32 0.00028619796, %v3310_v58  ;;  %v3222_v21 = vand.u32 2147483648, %v10323_v48  ;;  %6859 = vrcp.f32 %v10446_v14  ;;  %v3350_v8 = vmul.f32 2.1237322e-06, %v10449_v33  ;;  %5648 = vmatpush.bf16.msrb.mxu1 %v6600_v16 }
 0x414   : > { %v10497_v46 = vpop.eup %6857  ;;  %v3145_v61 = vmul.f32 %v3144_v49, %v3120_v26  ;;  %v3329_v54 = vmul.f32 %v3328_v39, %v10227_v36  ;;  %v3361_v52 = vmul.f32 3.8918573e-05, %v10449_v33  ;;  %v3388_v50 = vmul.f32 %v10479_v41, %v10479_v41 }
 0x415   : > { %v3184_v57 = vsel %vm10433_vm15, %v10362_v45, %v3179_v23  ;;  %vm3217_vm3 = vweird.f32 %v10381_v2  ;;  %vm10507_vm4 = vcmp.eq.f32.partialorder %v3220_v55, 8.507059e+37  ;;  %v1877_v58 = vadd.f32 %v12939_v62, %v8369_v15  ;;  %3833 = vmatmul.bf16.gmra.mxu1 %v3545_v29  ;;  %3931 = vmatmul.bf16.gmra.mxu3 %v3545_v29  ;;  %v2023_v23 = vpop.f32.mrf.mxu1 }
 0x416   : > { %v1975_v26 = vadd.f32 %v1974_v10, %v9709_v43  ;;  %v3215_v34 = vadd.f32 %v10381_v2, %v3214_v1  ;;  %v3236_v47 = vmul.f32 %v3235_v59, %v10107_v51  ;;  %v3274_v20 = vmul.f32 %v3273_v18, %v10142_v0  ;;  %vm10532_vm5 = vmor %vm3216_vm2, %vm3217_vm3  ;;  %v12942_v59 = vld [vmem:[#allocation54_spill] sm:$0xff] }
 0x417   : > { %v3312_v45 = vmul.f32 %v3311_v19, %v10227_v36  ;;  %v3223_v55 = vor.u32 1.1754944e-38, %v3222_v21  ;;  %v3252_v12 = vmul.f32 %v10497_v46, %v10415_v38  ;;  %v3351_v7 = vadd.f32 0.00028619796, %v3350_v8 }
 0x418   : > { %v1973_v15 = vadd.f32 %v10402_v30, %v9709_v43  ;;  %v6332_v39 = vclamps-f32 %v3145_v61, 1.0  ;;  %v10522_v24 = vadd.f32 1.0, %v3329_v54  ;;  %v3362_v32 = vadd.f32 0.001143296, %v3361_v52 }
 0x419   : > { %v10524_v49 = vmin.f32 %v3388_v50, 16.0  ;;  %v10526_v29 = vpop.eup %6859  ;;  %v3185_v16 = vmul.f32 %v3184_v57, %v3160_v56  ;;  %v10537_v43 = vadd.f32 %v12942_v59, %v1877_v58  ;;  %v2024_v30 = vadd.f32 %v2023_v23, %v1975_v26  ;;  %v2121_v57 = vpop.f32.mrf.mxu3 }
 0x41a   : > { %v2073_v18 = vadd.f32 %v2072_v11, %v9738_v60  ;;  %v3219_v19 = vsel %vm10532_vm5, %v10381_v2, %v3215_v34  ;;  %v3237_v10 = vadd.f32 0.18741608, %v3236_v47  ;;  %v3275_v56 = vadd.f32 0.05243302, %v3274_v20 }
 0x41b   : > { %12943 = vst [vmem:[#allocation48_spill] sm:$0xff] %v10537_v43  ;;  %v3313_v21 = vadd.f32 0.0036580483, %v3312_v45  ;;  %v3253_v8 = vsub.f32 1.0, %v3252_v12  ;;  %v3352_v48 = vmul.f32 %v3351_v7, %v10449_v33  ;;  %v2022_v61 = vadd.f32 %v10451_v5, %v1973_v15 }
 0x41c   : > { %v2071_v54 = vadd.f32 %v10442_v27, %v9738_v60  ;;  %v3292_v52 = vmul.f32 %v10526_v29, %v10446_v14  ;;  %6861 = vrcp.f32 %v10522_v24  ;;  %v3363_v50 = vmul.f32 %v3362_v32, %v10449_v33 }
 0x41d   : > { %v3401_v2 = vmul.f32 3.8918573e-05, %v10524_v49  ;;  %v3491_v62 = vadd.f32 1.0, %v6332_v39  ;;  %v10553_v58 = vmul.f32 0.70710677, %v10537_v43  ;;  %v3546_v26 = vpack.c.bf16 %v2024_v30, %v2022_v61  ;;  %v12946_v61 = vld [vmem:[#allocation26_spill] sm:$0xff] }
 0x41e   : > { %v2122_v34 = vadd.f32 %v2121_v57, %v2073_v18  ;;  %v6333_v5 = vclamps-f32 %v3185_v16, 1.0  ;;  %v3224_v60 = vsel %vm10507_vm4, %v3223_v55, %v3219_v19  ;;  %v3238_v27 = vmul.f32 %v3237_v10, %v10107_v51 }
 0x41f   : > { %v3276_v47 = vmul.f32 %v3275_v56, %v10142_v0  ;;  %v3254_v20 = vmul.f32 %v10497_v46, %v3253_v8  ;;  %v3314_v45 = vmul.f32 %v3313_v21, %v10227_v36  ;;  %v3353_v11 = vadd.f32 0.0036580483, %v3352_v48 }
 0x420   : > { %v2120_v12 = vadd.f32 %v10491_v35, %v2071_v54  ;;  %v3200_v7 = vmul.f32 %v10391_v37, %v9960_v28  ;;  %v3293_v15 = vsub.f32 1.0, %v3292_v52  ;;  %v3364_v39 = vadd.f32 0.014752088, %v3363_v50 }
 0x421   : > { %v3402_v32 = vadd.f32 0.001143296, %v3401_v2  ;;  %v10565_v6 = vmul.f32 %v3491_v62, %v9996_v53  ;;  %v10568_v51 = vmul.f32 0.5, %v12904_v17  ;;  %v3428_v55 = vmul.f32 %v10553_v58, %v10553_v58  ;;  %3789 = vmatmul.bf16.gmra.mxu0 %v3546_v26 }
 0x422   : > { %v3547_v23 = vpack.c.bf16 %v2122_v34, %v2120_v12  ;;  %v10572_v16 = vpop.eup %6861  ;;  %v3492_v35 = vadd.f32 1.0, %v6333_v5  ;;  %v3225_v1 = vmul.f32 %v3224_v60, %v3200_v7  ;;  %v3239_v59 = vadd.f32 1.1283791, %v3238_v27  ;;  %3887 = vmatmul.bf16.gmra.mxu2 %v3546_v26 }
 0x423   : > { %12944 = vst [vmem:[#allocation47_spill] sm:$0xff] %v10565_v6  ;;  %v3390_v28 = vmul.f32 2.1237322e-06, %v10524_v49  ;;  %v3255_v37 = vadd.f32 %v10497_v46, %v3254_v20  ;;  %vm3257_vm6 = vweird.f32 %v10497_v46  ;;  %v3277_v53 = vadd.f32 0.18741608, %v3276_v47 }
 0x424   : > { %12945 = vst [vmem:[#allocation63_spill] sm:$0xff] %v10568_v51  ;;  %v3315_v17 = vadd.f32 0.05243302, %v3314_v45  ;;  %v3294_v30 = vmul.f32 %v10526_v29, %v3293_v15  ;;  %v3354_v18 = vmul.f32 %v3353_v11, %v10449_v33  ;;  %v3365_v19 = vmul.f32 %v3364_v39, %v10449_v33  ;;  %v3580_v11 = vld [vmem:[%s12655_s7] sm:$0x3] }
 0x425   : > { %v3403_v10 = vmul.f32 %v3402_v32, %v10524_v49  ;;  %vm3256_vm7 = vweird.f32 %v10415_v38  ;;  %v3262_v56 = vand.u32 2147483648, %v10415_v38  ;;  %v3332_v21 = vmul.f32 %v10572_v16, %v10522_v24  ;;  %3838 = vmatmul.bf16.gmra.mxu1 %v3547_v23  ;;  %3936 = vmatmul.bf16.gmra.mxu3 %v3547_v23 }
 0x426   : > { %v10585_v8 = vmin.f32 %v3428_v55, 16.0  ;;  %v6334_v48 = vclamps-f32 %v3225_v1, 1.0  ;;  %v3240_v54 = vmul.f32 %v3239_v59, %v12946_v61  ;;  %vm10590_vm8 = vmor %vm3256_vm7, %vm3257_vm6  ;;  %v3260_v50 = vand.u32 2147483647, %v10415_v38 }
 0x427   : > { %v3391_v2 = vadd.f32 0.00028619796, %v3390_v28  ;;  %v3259_v57 = vsel %vm10590_vm8, %v10497_v46, %v3255_v37  ;;  %v3278_v62 = vmul.f32 %v3277_v53, %v10142_v0  ;;  %vm3297_vm9 = vweird.f32 %v10526_v29 }
 0x428   : > { %v3316_v26 = vmul.f32 %v3315_v17, %v10227_v36  ;;  %v3295_v34 = vadd.f32 %v10526_v29, %v3294_v30  ;;  %v3355_v5 = vadd.f32 0.05243302, %v3354_v18  ;;  %v3366_v60 = vadd.f32 0.112945676, %v3365_v19  ;;  %v12951_v17 = vld [vmem:[#allocation41_spill] sm:$0xff] }
 0x429   : > { %v3404_v27 = vadd.f32 0.014752088, %v3403_v10  ;;  %v3263_v47 = vor.u32 1.1754944e-38, %v3262_v56  ;;  %v3302_v20 = vand.u32 2147483648, %v10446_v14  ;;  %v3333_v38 = vsub.f32 1.0, %v3332_v21  ;;  %v12955_v21 = vld [vmem:[#allocation27_spill] sm:$0xff] }
 0x42a   : > { %v3441_v45 = vmul.f32 3.8918573e-05, %v10585_v8  ;;  %vm3261_vm10 = vcmp.eq.f32.partialorder %v3260_v50, 8.507059e+37  ;;  %vm3296_vm11 = vweird.f32 %v10446_v14  ;;  %v3300_v0 = vand.u32 2147483647, %v10446_v14 }
 0x42b   : > { %v3392_v46 = vmul.f32 %v3391_v2, %v10524_v49  ;;  %v3493_v12 = vadd.f32 1.0, %v6334_v48  ;;  %v3264_v7 = vsel %vm3261_vm10, %v3263_v47, %v3259_v57  ;;  %v3279_v15 = vadd.f32 1.1283791, %v3278_v62  ;;  %vm10612_vm12 = vmor %vm3296_vm11, %vm3297_vm9 }
 0x42c   : > { %v3317_v32 = vadd.f32 0.18741608, %v3316_v26  ;;  %v3299_v14 = vsel %vm10612_vm12, %v10526_v29, %v3295_v34  ;;  %v3356_v55 = vmul.f32 %v3355_v5, %v10449_v33  ;;  %v3367_v23 = vmul.f32 %v3366_v60, %v10449_v33  ;;  %v12953_v29 = vld [vmem:[#allocation28_spill] sm:$0xff] }
 0x42d   : > { %v3405_v1 = vmul.f32 %v3404_v27, %v10524_v49  ;;  %v3303_v59 = vor.u32 1.1754944e-38, %v3302_v20  ;;  %v3334_v28 = vmul.f32 %v10572_v16, %v3333_v38  ;;  %v3442_v37 = vadd.f32 0.001143296, %v3441_v45 }
 0x42e   : > { %v10623_v53 = vperm.slane %v3580_v11, 0  ;;  %v10626_v30 = vmul.f32 %v3492_v35, %v12951_v17  ;;  %v3265_v18 = vmul.f32 %v3264_v7, %v3240_v54  ;;  %vm3301_vm13 = vcmp.eq.f32.partialorder %v3300_v0, 8.507059e+37  ;;  %v3755_v10 = vpop.f32.mrf.mxu0 }
 0x42f   : > { %v3393_v19 = vadd.f32 0.0036580483, %v3392_v46  ;;  %v10629_v56 = vmul.f32 %v3493_v12, %v12953_v29  ;;  %v3280_v48 = vmul.f32 %v3279_v15, %v12955_v21  ;;  %v3304_v61 = vsel %vm3301_vm13, %v3303_v59, %v3299_v14 }
 0x430   : > { %12952 = vst [vmem:[#allocation51_spill] sm:$0xff] %v10626_v30  ;;  %v3318_v52 = vmul.f32 %v3317_v32, %v10227_v36  ;;  %vm3336_vm14 = vweird.f32 %v10522_v24  ;;  %v3357_v50 = vadd.f32 0.18741608, %v3356_v55  ;;  %v3368_v2 = vadd.f32 0.4994258, %v3367_v23 }
 0x431   : > { %12954 = vst [vmem:[#allocation58_spill] sm:$0xff] %v10629_v56  ;;  %v3406_v57 = vadd.f32 0.112945676, %v3405_v1  ;;  %v3335_v35 = vadd.f32 %v10572_v16, %v3334_v28  ;;  %vm3337_vm15 = vweird.f32 %v10572_v16  ;;  %v3443_v54 = vmul.f32 %v3442_v37, %v10585_v8 }
 0x432   : > { %v3756_v62 = vadd.f32 %v3755_v10, %v10623_v53  ;;  %v6335_v26 = vclamps-f32 %v3265_v18, 1.0  ;;  %v3305_v34 = vmul.f32 %v3304_v61, %v3280_v48  ;;  %v3342_v5 = vand.u32 2147483648, %v10522_v24  ;;  %v3804_v36 = vpop.f32.mrf.mxu1  ;;  %vm10648_vm0 = vmor %vm3336_vm14, %vm3337_vm15 }
 0x433   : > { %v3394_v60 = vmul.f32 %v3393_v19, %v10524_v49  ;;  %v3340_v27 = vand.u32 2147483647, %v10522_v24  ;;  %v3430_v47 = vmul.f32 2.1237322e-06, %v10585_v8  ;;  %v10644_v38 = vperm.slane %v3580_v11, 1 }
 0x434   : > { %v10642_v20 = vadd.f32 %v3804_v36, %v3756_v62  ;;  %v3358_v0 = vmul.f32 %v3357_v50, %v10449_v33  ;;  %v3369_v46 = vmul.f32 %v3368_v2, %v10449_v33  ;;  %v10655_v12 = vmul.f32 0.5, %v10440_v13  ;;  %v3853_v32 = vpop.f32.mrf.mxu2 }
 0x435   : > { %v3407_v7 = vmul.f32 %v3406_v57, %v10524_v49  ;;  %v3319_v15 = vadd.f32 1.1283791, %v3318_v52  ;;  %v3339_v11 = vsel %vm10648_vm0, %v10572_v16, %v3335_v35  ;;  %v3444_v39 = vadd.f32 0.014752088, %v3443_v54 }
 0x436   : > { %v10662_v24 = vmul.f32 0.70710677, %v10642_v20  ;;  %v3494_v14 = vadd.f32 1.0, %v6335_v26  ;;  %v6336_v55 = vclamps-f32 %v3305_v34, 1.0  ;;  %v3343_v23 = vor.u32 1.1754944e-38, %v3342_v5  ;;  %v3757_v33 = vpop.f32.mrf.mxu0 }
 0x437   : > { %v3395_v1 = vadd.f32 0.05243302, %v3394_v60  ;;  %vm3341_vm1 = vcmp.eq.f32.partialorder %v3340_v27, 8.507059e+37  ;;  %v3431_v13 = vadd.f32 0.00028619796, %v3430_v47  ;;  %v3854_v28 = vadd.f32 %v3853_v32, %v10644_v38 }
 0x438   : > { %v4006_v59 = vmul.f32 %v10662_v24, %v10662_v24  ;;  %v3344_v37 = vsel %vm3341_vm1, %v3343_v23, %v3339_v11  ;;  %v3359_v17 = vadd.f32 1.1283791, %v3358_v0  ;;  %v10667_v16 = vadd.f32 1.0, %v3369_v46  ;;  %v3902_v19 = vpop.f32.mrf.mxu3 }
 0x439   : > { %v3408_v18 = vadd.f32 0.4994258, %v3407_v7  ;;  %v3445_v10 = vmul.f32 %v3444_v39, %v10585_v8  ;;  %v3758_v21 = vadd.f32 %v3757_v33, %v10623_v53  ;;  %v10673_v48 = vadd.f32 %v3902_v19, %v3854_v28 }
 0x43a   : > { %v10670_v29 = vmin.f32 %v4006_v59, 16.0  ;;  %v10676_v61 = vmul.f32 %v3494_v14, %v10346_v22  ;;  %v10678_v52 = vadd.f32 1.0, %v6336_v55  ;;  %v3320_v50 = vmul.f32 %v3319_v15, %v10185_v9  ;;  %v3806_v57 = vpop.f32.mrf.mxu1 }
 0x43b   : > { %v3396_v2 = vmul.f32 %v3395_v1, %v10524_v49  ;;  %v3432_v35 = vmul.f32 %v3431_v13, %v10585_v8  ;;  %v10685_v26 = vadd.f32 %v3806_v57, %v3758_v21  ;;  %6863 = vrcp.f32 %v10667_v16 }
 0x43c   : > { %12958 = vst [vmem:[#allocation60_spill] sm:$0xff] %v10676_v61  ;;  %v4008_v54 = vmul.f32 2.1237322e-06, %v10670_v29  ;;  %v4019_v62 = vmul.f32 3.8918573e-05, %v10670_v29  ;;  %v10687_v34 = vmul.f32 %v3344_v37, %v3320_v50  ;;  %v3409_v22 = vmul.f32 %v3408_v18, %v10524_v49  ;;  %v3855_v47 = vpop.f32.mrf.mxu2 }
 0x43d   : > { %v10692_v5 = vmul.f32 0.70710677, %v10673_v48  ;;  %v10695_v9 = vmul.f32 %v3359_v17, %v10385_v44  ;;  %v3446_v60 = vadd.f32 0.112945676, %v3445_v10  ;;  %v3397_v0 = vadd.f32 0.18741608, %v3396_v2 }
 0x43e   : > { %v4009_v36 = vadd.f32 0.00028619796, %v4008_v54  ;;  %v4020_v27 = vadd.f32 0.001143296, %v4019_v62  ;;  %v10701_v7 = vmul.f32 0.70710677, %v10685_v26  ;;  %v3856_v44 = vadd.f32 %v3855_v47, %v10644_v38 }
 0x43f   : > { %12959 = vst [vmem:[#allocation42_spill] sm:$0xff] %v10695_v9  ;;  %v4046_v46 = vmul.f32 %v10692_v5, %v10692_v5  ;;  %v3433_v15 = vadd.f32 0.0036580483, %v3432_v35  ;;  %v10707_v14 = vadd.f32 1.0, %v3409_v22  ;;  %v3447_v33 = vmul.f32 %v3446_v60, %v10585_v8 }
 0x440   : > { %v4010_v11 = vmul.f32 %v4009_v36, %v10670_v29  ;;  %v4021_v39 = vmul.f32 %v4020_v27, %v10670_v29  ;;  %v4086_v23 = vmul.f32 %v10701_v7, %v10701_v7  ;;  %v3904_v1 = vpop.f32.mrf.mxu3  ;;  %v3398_v21 = vmul.f32 %v3397_v0, %v10524_v49  ;;  %v6767_v49 = vld [vmem:[%s12656_s8 + $0x34] sm:$0xf] }
 0x441   : > { %v10709_v55 = vmin.f32 %v4046_v46, 16.0  ;;  %v10714_v28 = vadd.f32 %v3904_v1, %v3856_v44  ;;  %v10716_v37 = vpop.eup %6863  ;;  %v3434_v50 = vmul.f32 %v3433_v15, %v10585_v8  ;;  %6865 = vrcp.f32 %v10707_v14  ;;  %v6529_v46 = vld [vmem:[%s12656_s8 + $0x38] sm:$0xf0] }
 0x442   : > { %v4011_v13 = vadd.f32 0.0036580483, %v4010_v11  ;;  %v4022_v59 = vadd.f32 0.014752088, %v4021_v39  ;;  %v10721_v10 = vmin.f32 %v4086_v23, 16.0  ;;  %v3372_v22 = vmul.f32 %v10716_v37, %v10667_v16 }
 0x443   : > { %v4048_v18 = vmul.f32 2.1237322e-06, %v10709_v55  ;;  %v4059_v19 = vmul.f32 3.8918573e-05, %v10709_v55  ;;  %v10727_v57 = vmul.f32 0.70710677, %v10714_v28  ;;  %v6532_v23 = vor.u32 %v6767_v49, %v6529_v46 }
 0x444   : > { %v4023_v2 = vmul.f32 %v4022_v59, %v10670_v29  ;;  %v4088_v62 = vmul.f32 2.1237322e-06, %v10721_v10  ;;  %v3448_v60 = vadd.f32 0.4994258, %v3447_v33  ;;  %v4012_v47 = vmul.f32 %v4011_v13, %v10670_v29 }
 0x445   : > { %v4049_v35 = vadd.f32 0.00028619796, %v4048_v18  ;;  %v4060_v54 = vadd.f32 0.001143296, %v4059_v19  ;;  %v4126_v27 = vmul.f32 %v10727_v57, %v10727_v57  ;;  %v4099_v11 = vmul.f32 3.8918573e-05, %v10721_v10  ;;  %5698 = vmatpush.bf16.msrb.mxu2 %v6532_v23 }
 0x446   : > { %v4024_v36 = vadd.f32 0.112945676, %v4023_v2  ;;  %v4089_v15 = vadd.f32 0.00028619796, %v4088_v62  ;;  %v3399_v33 = vadd.f32 1.1283791, %v3398_v21  ;;  %v10751_v19 = vmul.f32 %v10678_v52, %v10418_v31 }
 0x447   : > { %v4061_v0 = vmul.f32 %v4060_v54, %v10709_v55  ;;  %v4050_v44 = vmul.f32 %v4049_v35, %v10709_v55  ;;  %v10746_v1 = vmin.f32 %v4126_v27, 16.0  ;;  %v4100_v18 = vadd.f32 0.001143296, %v4099_v11  ;;  %v6527_v35 = vld [vmem:[%s12656_s8 + $0x30] sm:$0xf] }
 0x448   : > { %v4025_v39 = vmul.f32 %v4024_v36, %v10670_v29  ;;  %v4090_v13 = vmul.f32 %v4089_v15, %v10721_v10  ;;  %12960 = vst [vmem:[#allocation61_spill] sm:$0xff] %v10751_v19  ;;  %v3435_v2 = vadd.f32 0.05243302, %v3434_v50  ;;  %v3449_v54 = vmul.f32 %v3448_v60, %v10585_v8  ;;  %v10757_v36 = vpop.eup %6865  ;;  %v6768_v31 = vld [vmem:[%s12656_s8 + $0x34] sm:$0xf0]  ;;  %v3760_v60 = vpop.f32.mrf.mxu0 }
 0x449   : > { %v4062_v59 = vadd.f32 0.014752088, %v4061_v0  ;;  %v4013_v21 = vadd.f32 0.05243302, %v4012_v47  ;;  %v4101_v0 = vmul.f32 %v4100_v18, %v10721_v10  ;;  %v4051_v50 = vadd.f32 0.0036580483, %v4050_v44  ;;  %v3809_v44 = vpop.f32.mrf.mxu1 }
 0x44a   : > { %v4026_v62 = vadd.f32 0.4994258, %v4025_v39  ;;  %v4091_v27 = vadd.f32 0.0036580483, %v4090_v13  ;;  %v6528_v46 = vor.u32 %v6768_v31, %v6527_v35  ;;  %v4128_v15 = vmul.f32 2.1237322e-06, %v10746_v1 }
 0x44b   : > { %v4063_v49 = vmul.f32 %v4062_v59, %v10709_v55  ;;  %v3373_v11 = vsub.f32 1.0, %v3372_v22  ;;  %v10767_v39 = vmul.f32 %v3399_v33, %v10479_v41  ;;  %v4102_v23 = vadd.f32 0.014752088, %v4101_v0  ;;  %v6783_v33 = vld [vmem:[%s12656_s8 + $0xb4] sm:$0xf] }
 0x44c   : > { %v4027_v52 = vmul.f32 %v4026_v62, %v10670_v29  ;;  %v3412_v59 = vmul.f32 %v10757_v36, %v10707_v14  ;;  %v10771_v13 = vadd.f32 1.0, %v3449_v54  ;;  %v4092_v62 = vmul.f32 %v4091_v27, %v10721_v10  ;;  %5600 = vmatpush.bf16.msrb.mxu0 %v6528_v46  ;;  %v6593_v54 = vld [vmem:[%s12656_s8 + $0xb8] sm:$0xf0] }
 0x44d   : > { %v4064_v47 = vadd.f32 0.112945676, %v4063_v49  ;;  %v4014_v35 = vmul.f32 %v4013_v21, %v10670_v29  ;;  %v4103_v41 = vmul.f32 %v4102_v23, %v10721_v10  ;;  %v3761_v49 = vadd.f32 %v3760_v60, %v10623_v53 }
 0x44e   : > { %v10773_v18 = vadd.f32 1.0, %v4027_v52  ;;  %v4052_v21 = vmul.f32 %v4051_v50, %v10709_v55  ;;  %v4129_v0 = vadd.f32 0.00028619796, %v4128_v15  ;;  %v3422_v31 = vand.u32 2147483648, %v10707_v14 }
 0x44f   : > { %v4065_v22 = vmul.f32 %v4064_v47, %v10709_v55  ;;  %v3436_v52 = vmul.f32 %v3435_v2, %v10585_v8  ;;  %v10791_v47 = vadd.f32 %v3809_v44, %v3761_v49  ;;  %v3374_v23 = vmul.f32 %v10716_v37, %v3373_v11 }
 0x450   : > { %6867 = vrcp.f32 %v10773_v18  ;;  %v4093_v32 = vadd.f32 0.05243302, %v4092_v62  ;;  %v4104_v17 = vadd.f32 0.112945676, %v4103_v41  ;;  %v6596_v45 = vor.u32 %v6783_v33, %v6593_v54 }
 0x451   : > { %v4066_v46 = vadd.f32 0.4994258, %v4065_v22  ;;  %v3413_v60 = vsub.f32 1.0, %v3412_v59  ;;  %6869 = vrcp.f32 %v10771_v13  ;;  %v4015_v27 = vadd.f32 0.18741608, %v4014_v35  ;;  %v3858_v35 = vpop.f32.mrf.mxu2 }
 0x452   : > { %v4053_v50 = vadd.f32 0.05243302, %v4052_v21  ;;  %v4105_v15 = vmul.f32 %v4104_v17, %v10721_v10  ;;  %5747 = vmatpush.bf16.msrb.mxu3 %v6596_v45  ;;  %v4130_v2 = vmul.f32 %v4129_v0, %v10746_v1  ;;  %v4139_v44 = vmul.f32 3.8918573e-05, %v10746_v1  ;;  %v6591_v21 = vld [vmem:[%s12656_s8 + $0xb0] sm:$0xf] }
 0x453   : > { %v4067_v43 = vmul.f32 %v4066_v46, %v10709_v55  ;;  %v10799_v22 = vor.u32 1.1754944e-38, %v3422_v31  ;;  %v10801_v11 = vadd.f32 0.18741608, %v3436_v52  ;;  %v10806_v59 = vmul.f32 0.70710677, %v10791_v47  ;;  %v3907_v31 = vpop.f32.mrf.mxu3 }
 0x454   : > { %v10809_v33 = vadd.f32 %v10716_v37, %v3374_v23  ;;  %vm3416_vm2 = vweird.f32 %v10707_v14  ;;  %v4094_v45 = vmul.f32 %v4093_v32, %v10721_v10  ;;  %v4106_v17 = vadd.f32 0.4994258, %v4105_v15  ;;  %v6784_v0 = vld [vmem:[%s12656_s8 + $0xb4] sm:$0xf0] }
 0x455   : > { %v10803_v62 = vadd.f32 1.0, %v4067_v43  ;;  %v4140_v54 = vadd.f32 0.001143296, %v4139_v44  ;;  %v3414_v49 = vmul.f32 %v10757_v36, %v3413_v60  ;;  %vm3417_vm3 = vweird.f32 %v10757_v36 }
 0x456   : > { %v6868_v41 = vpop.eup %6867  ;;  %v4016_v32 = vmul.f32 %v4015_v27, %v10670_v29  ;;  %v4054_v52 = vmul.f32 %v4053_v50, %v10709_v55  ;;  %v4131_v46 = vadd.f32 0.0036580483, %v4130_v2  ;;  %v3859_v23 = vadd.f32 %v3858_v35, %v10644_v38  ;;  %vm10859_vm7 = vmor %vm3416_vm2, %vm3417_vm3 }
 0x457   : > { %v4030_v43 = vmul.f32 %v6868_v41, %v10773_v18  ;;  %6871 = vrcp.f32 %v10803_v62  ;;  %v10826_v60 = vpop.eup %6869  ;;  %v4107_v44 = vmul.f32 %v4106_v17, %v10721_v10  ;;  %v4141_v51 = vmul.f32 %v4140_v54, %v10746_v1 }
 0x458   : > { %v4166_v9 = vmul.f32 %v10806_v59, %v10806_v59  ;;  %v4040_v56 = vand.u32 2147483648, %v10773_v18  ;;  %v4095_v19 = vadd.f32 0.18741608, %v4094_v45  ;;  %v6592_v30 = vor.u32 %v6784_v0, %v6591_v21 }
 0x459   : > { %v4031_v15 = vsub.f32 1.0, %v4030_v43  ;;  %v10833_v29 = vadd.f32 %v3907_v31, %v3859_v23  ;;  %vm4035_vm4 = vweird.f32 %v6868_v41  ;;  %v10835_v50 = vadd.f32 1.0, %v4107_v44 }
 0x45a   : > { %v4142_v2 = vadd.f32 0.014752088, %v4141_v51  ;;  %v10838_v35 = vadd.f32 %v10757_v36, %v3414_v49  ;;  %v10842_v17 = vmul.f32 %v10826_v60, %v10771_v13  ;;  %v4038_v54 = vand.u32 2147483647, %v10773_v18  ;;  %5649 = vmatpush.bf16.msrb.mxu1 %v6592_v30 }
 0x45b   : > { %v4032_v27 = vmul.f32 %v6868_v41, %v4031_v15  ;;  %v4132_v43 = vmul.f32 %v4131_v46, %v10746_v1  ;;  %vm4034_vm5 = vweird.f32 %v10773_v18  ;;  %6873 = vrcp.f32 %v10835_v50 }
 0x45c   : > { %v10850_v51 = vmin.f32 %v4166_v9, 16.0  ;;  %v4017_v49 = vadd.f32 1.1283791, %v4016_v32  ;;  %vm4036_vm6 = vmor %vm4034_vm5, %vm4035_vm4  ;;  %v4055_v0 = vadd.f32 0.18741608, %v4054_v52  ;;  %v4096_v23 = vmul.f32 %v4095_v19, %v10721_v10  ;;  %v3762_v32 = vpop.f32.mrf.mxu0 }
 0x45d   : > { %v10846_v45 = vpop.eup %6871  ;;  %v4033_v21 = vadd.f32 %v6868_v41, %v4032_v27  ;;  %v4041_v46 = vor.u32 1.1754944e-38, %v4040_v56  ;;  %v4143_v9 = vmul.f32 %v4142_v2, %v10746_v1  ;;  %v10865_v52 = vmul.f32 0.70710677, %v10833_v29 }
 0x45e   : > { %v4070_v31 = vmul.f32 %v10846_v45, %v10803_v62  ;;  %vm4039_vm8 = vcmp.eq.f32.partialorder %v4038_v54, 8.507059e+37  ;;  %v4133_v15 = vadd.f32 0.05243302, %v4132_v43  ;;  %v4179_v56 = vmul.f32 3.8918573e-05, %v10850_v51 }
 0x45f   : > { %v4037_v18 = vsel %vm4036_vm6, %v6868_v41, %v4033_v21  ;;  %v4144_v61 = vadd.f32 0.112945676, %v4143_v9  ;;  %v10874_v41 = vmul.f32 0.5, %v10642_v20  ;;  %v4018_v2 = vmul.f32 %v4017_v49, %v10662_v24  ;;  %v6765_v24 = vld [vmem:[%s12656_s8 + $0x24] sm:$0xf] }
 0x460   : > { %v4042_v44 = vsel %vm4039_vm8, %v4041_v46, %v4037_v18  ;;  %v4071_v27 = vsub.f32 1.0, %v4070_v31  ;;  %v4097_v21 = vadd.f32 1.1283791, %v4096_v23  ;;  %v3763_v6 = vadd.f32 %v3762_v32, %v10623_v53  ;;  %v6519_v9 = vld [vmem:[%s12656_s8 + $0x20] sm:$0xf] }
 0x461   : > { %v6874_v4 = vpop.eup %6873  ;;  %v4056_v10 = vmul.f32 %v4055_v0, %v10709_v55  ;;  %v4145_v19 = vmul.f32 %v4144_v61, %v10746_v1  ;;  %v4180_v54 = vadd.f32 0.001143296, %v4179_v56  ;;  %v4206_v43 = vmul.f32 %v10865_v52, %v10865_v52  ;;  %v6521_v55 = vld [vmem:[%s12656_s8 + $0x28] sm:$0xf0] }
 0x462   : > { %v4043_v31 = vmul.f32 %v4042_v44, %v4018_v2  ;;  %vm4074_vm9 = vweird.f32 %v10803_v62  ;;  %v4078_v20 = vand.u32 2147483647, %v10803_v62  ;;  %v4110_v18 = vmul.f32 %v6874_v4, %v10835_v50 }
 0x463   : > { %v4072_v61 = vmul.f32 %v10846_v45, %v4071_v27  ;;  %v4134_v49 = vmul.f32 %v4133_v15, %v10746_v1  ;;  %v4146_v0 = vadd.f32 0.4994258, %v4145_v19  ;;  %v4181_v23 = vmul.f32 %v4180_v54, %v10850_v51  ;;  %v3811_v54 = vpop.f32.mrf.mxu1 }
 0x464   : > { %v12963_v46 = vand.u32 2147483647, %v10707_v14  ;;  %v4080_v32 = vand.u32 2147483648, %v10803_v62  ;;  %v4098_v44 = vmul.f32 %v4097_v21, %v10701_v7  ;;  %v4111_v56 = vsub.f32 1.0, %v4110_v18 }
 0x465   : > { %v6524_v2 = vor.u32 %v6765_v24, %v6521_v55  ;;  %v4118_v25 = vand.u32 2147483647, %v10835_v50  ;;  %v4120_v27 = vand.u32 2147483648, %v10835_v50  ;;  %v4147_v19 = vmul.f32 %v4146_v0, %v10746_v1 }
 0x466   : > { %vm10896_vm10 = vcmp.eq.f32.partialorder %v12963_v46, 8.507059e+37  ;;  %v10905_v15 = vmin.f32 %v4206_v43, 16.0  ;;  %v6469_v14 = vclamps-f32 %v4043_v31, 1.0  ;;  %v4112_v46 = vmul.f32 %v6874_v4, %v4111_v56 }
 0x467   : > { %vm4115_vm11 = vweird.f32 %v6874_v4  ;;  %v4182_v42 = vadd.f32 0.014752088, %v4181_v23  ;;  %5699 = vmatpush.bf16.msrb.mxu2 %v6524_v2  ;;  %v4073_v63 = vadd.f32 %v10846_v45, %v4072_v61  ;;  %vm4075_vm12 = vweird.f32 %v10846_v45 }
 0x468   : > { %v4135_v7 = vadd.f32 0.18741608, %v4134_v49  ;;  %v10909_v21 = vadd.f32 1.0, %v4147_v19  ;;  %v4113_v18 = vadd.f32 %v6874_v4, %v4112_v46  ;;  %vm4114_vm13 = vweird.f32 %v10835_v50  ;;  %vm10920_vm15 = vmor %vm4074_vm9, %vm4075_vm12 }
 0x469   : > { %v4183_v24 = vmul.f32 %v4182_v42, %v10850_v51  ;;  %v10913_v43 = vadd.f32 %v3811_v54, %v3763_v6  ;;  %vm4116_vm14 = vmor %vm4114_vm13, %vm4115_vm11  ;;  %v4121_v31 = vor.u32 1.1754944e-38, %v4120_v27  ;;  %v4168_v55 = vmul.f32 2.1237322e-06, %v10850_v51 }
 0x46a   : > { %6875 = vrcp.f32 %v10909_v21  ;;  %v4219_v61 = vmul.f32 3.8918573e-05, %v10905_v15  ;;  %v5286_v0 = vadd.f32 1.0, %v6469_v14  ;;  %v4117_v50 = vsel %vm4116_vm14, %v6874_v4, %v4113_v18 }
 0x46b   : > { %vm4119_vm0 = vcmp.eq.f32.partialorder %v4118_v25, 8.507059e+37  ;;  %v4184_v42 = vadd.f32 0.112945676, %v4183_v24  ;;  %v4057_v6 = vadd.f32 1.1283791, %v4056_v10  ;;  %v4077_v23 = vsel %vm10920_vm15, %v10846_v45, %v4073_v63 }
 0x46c   : > { %v4122_v56 = vsel %vm4119_vm0, %v4121_v31, %v4117_v50  ;;  %v4136_v2 = vmul.f32 %v4135_v7, %v10746_v1  ;;  %vm4079_vm1 = vcmp.eq.f32.partialorder %v4078_v20, 8.507059e+37  ;;  %v4081_v27 = vor.u32 1.1754944e-38, %v4080_v32 }
 0x46d   : > { %v4123_v19 = vmul.f32 %v4122_v56, %v4098_v44  ;;  %v4185_v62 = vmul.f32 %v4184_v42, %v10850_v51  ;;  %v12968_v4 = vsel %vm10859_vm7, %v10757_v36, %v10838_v35  ;;  %v4169_v10 = vadd.f32 0.00028619796, %v4168_v55  ;;  %v6781_v55 = vld [vmem:[%s12656_s8 + $0xa4] sm:$0xf]  ;;  %v6585_v42 = vld [vmem:[%s12656_s8 + $0xa8] sm:$0xf0] }
 0x46e   : > { %v10937_v25 = vsel %vm10896_vm10, %v10799_v22, %v12968_v4  ;;  %v4220_v63 = vadd.f32 0.001143296, %v4219_v61  ;;  %v10940_v45 = vmul.f32 0.70710677, %v10913_v43  ;;  %v5318_v1 = vmul.f32 %v5286_v0, %v10874_v41  ;;  %v6766_v41 = vld [vmem:[%s12656_s8 + $0x24] sm:$0xf0] }
 0x46f   : > { %v4082_v20 = vsel %vm4079_vm1, %v4081_v27, %v4077_v23  ;;  %v3944_v32 = vmul.f32 0.5, %v10685_v26  ;;  %v6471_v44 = vclamps-f32 %v4123_v19, 1.0  ;;  %v4058_v54 = vmul.f32 %v4057_v6, %v10692_v5  ;;  %v12969_v61 = vld [vmem:[#allocation35_spill] sm:$0xff]  ;;  %v3860_v27 = vpop.f32.mrf.mxu2  ;;  %v12970_v19 = vld [vmem:[#allocation37_spill] sm:$0xff] }
 0x470   : > { %v6876_v30 = vpop.eup %6875  ;;  %v4137_v36 = vadd.f32 1.1283791, %v4136_v2  ;;  %v4221_v35 = vmul.f32 %v4220_v63, %v10905_v15  ;;  %v4246_v22 = vmul.f32 %v10940_v45, %v10940_v45  ;;  %v4186_v46 = vadd.f32 0.4994258, %v4185_v62 }
 0x471   : > { %v5288_v14 = vadd.f32 1.0, %v6471_v44  ;;  %v4150_v26 = vmul.f32 %v6876_v30, %v10909_v21  ;;  %v4208_v5 = vmul.f32 2.1237322e-06, %v10905_v15  ;;  %v4083_v7 = vmul.f32 %v4082_v20, %v4058_v54  ;;  %v3765_v44 = vpop.f32.mrf.mxu0  ;;  %v3909_v54 = vpop.f32.mrf.mxu3 }
 0x472   : > { %v4170_v18 = vmul.f32 %v4169_v10, %v10850_v51  ;;  %v4222_v24 = vadd.f32 0.014752088, %v4221_v35  ;;  %v10957_v31 = vmin.f32 %v4246_v22, 16.0  ;;  %v5350_v0 = vadd.f32 %v5318_v1, %v12969_v61  ;;  %v3814_v61 = vpop.f32.mrf.mxu1 }
 0x473   : > { %v5320_v49 = vmul.f32 %v5288_v14, %v3944_v32  ;;  %v4151_v50 = vsub.f32 1.0, %v4150_v26  ;;  %v6520_v6 = vor.u32 %v6766_v41, %v6519_v9  ;;  %vm4155_vm2 = vweird.f32 %v6876_v30 }
 0x474   : > { %v4158_v23 = vand.u32 2147483647, %v10909_v21  ;;  %v4160_v56 = vand.u32 2147483648, %v10909_v21  ;;  %v4223_v2 = vmul.f32 %v4222_v24, %v10905_v15  ;;  %v4259_v10 = vmul.f32 3.8918573e-05, %v10957_v31 }
 0x475   : > { %v5352_v62 = vadd.f32 %v5320_v49, %v12970_v19  ;;  %v4152_v4 = vmul.f32 %v6876_v30, %v4151_v50  ;;  %v6588_v63 = vor.u32 %v6781_v55, %v6585_v42  ;;  %5601 = vmatpush.bf16.msrb.mxu0 %v6520_v6  ;;  %v6470_v1 = vclamps-f32 %v4083_v7, 1.0  ;;  %v6583_v24 = vld [vmem:[%s12656_s8 + $0xa0] sm:$0xf]  ;;  %v6782_v55 = vld [vmem:[%s12656_s8 + $0xa4] sm:$0xf0] }
 0x476   : > { %v4138_v20 = vmul.f32 %v4137_v36, %v10727_v57  ;;  %vm4154_vm3 = vweird.f32 %v10909_v21  ;;  %v4187_v32 = vmul.f32 %v4186_v46, %v10850_v51  ;;  %v4224_v9 = vadd.f32 0.112945676, %v4223_v2 }
 0x477   : > { %v10974_v35 = vpack.c.bf16 %v5352_v62, %v5350_v0  ;;  %v4153_v22 = vadd.f32 %v6876_v30, %v4152_v4  ;;  %v3861_v41 = vadd.f32 %v3860_v27, %v10644_v38  ;;  %5748 = vmatpush.bf16.msrb.mxu3 %v6588_v63  ;;  %vm4156_vm4 = vmor %vm4154_vm3, %vm4155_vm2  ;;  %vm4159_vm5 = vcmp.eq.f32.partialorder %v4158_v23, 8.507059e+37 }
 0x478   : > { %v4161_v14 = vor.u32 1.1754944e-38, %v4160_v56  ;;  %v4209_v26 = vadd.f32 0.00028619796, %v4208_v5  ;;  %v4260_v7 = vadd.f32 0.001143296, %v4259_v10  ;;  %v4225_v21 = vmul.f32 %v4224_v9, %v10905_v15 }
 0x479   : > { %v4157_v57 = vsel %vm4156_vm4, %v6876_v30, %v4153_v22  ;;  %v3766_v36 = vadd.f32 %v3765_v44, %v10623_v53  ;;  %v10980_v46 = vadd.f32 %v3909_v54, %v3861_v41  ;;  %v10988_v49 = vadd.f32 1.0, %v4187_v32 }
 0x47a   : > { %v4162_v0 = vsel %vm4159_vm5, %v4161_v14, %v4157_v57  ;;  %v4261_v30 = vmul.f32 %v4260_v7, %v10957_v31  ;;  %v6584_v5 = vor.u32 %v6782_v55, %v6583_v24  ;;  %vm3377_vm6 = vweird.f32 %v10716_v37 }
 0x47b   : > { %v5287_v50 = vadd.f32 1.0, %v6470_v1  ;;  %v4163_v42 = vmul.f32 %v4162_v0, %v4138_v20  ;;  %v4171_v6 = vadd.f32 0.0036580483, %v4170_v18  ;;  %v4226_v23 = vadd.f32 0.4994258, %v4225_v21 }
 0x47c   : > { %v4210_v56 = vmul.f32 %v4209_v26, %v10905_v15  ;;  %v4262_v2 = vadd.f32 0.014752088, %v4261_v30  ;;  %v10994_v27 = vmul.f32 0.70710677, %v10980_v46  ;;  %5650 = vmatpush.bf16.msrb.mxu1 %v6584_v5  ;;  %v10996_v19 = vadd.f32 %v3814_v61, %v3766_v36  ;;  %v12975_v61 = vld [vmem:[#allocation36_spill] sm:$0xff]  ;;  %v12976_v30 = vld [vmem:[#allocation38_spill] sm:$0xff] }
 0x47d   : > { %vm3376_vm7 = vweird.f32 %v10667_v16  ;;  %v12971_v62 = vsub.f32 1.0, %v10842_v17  ;;  %v3943_v10 = vmul.f32 0.5, %v10673_v48  ;;  %v6472_v63 = vclamps-f32 %v4163_v42, 1.0 }
 0x47e   : > { %v4248_v18 = vmul.f32 2.1237322e-06, %v10957_v31  ;;  %6877 = vrcp.f32 %v10988_v49  ;;  %v4227_v1 = vmul.f32 %v4226_v23, %v10905_v15  ;;  %v4263_v20 = vmul.f32 %v4262_v2, %v10957_v31  ;;  %vm11055_vm12 = vmor %vm3376_vm7, %vm3377_vm6 }
 0x47f   : > { %v3454_v4 = vmul.f32 %v10826_v60, %v12971_v62  ;;  %v4286_v32 = vmul.f32 %v10994_v27, %v10994_v27  ;;  %v5319_v44 = vmul.f32 %v5287_v50, %v3943_v10  ;;  %v3945_v54 = vmul.f32 0.5, %v10714_v28 }
 0x480   : > { %v5289_v17 = vadd.f32 1.0, %v6472_v63  ;;  %v11011_v22 = vmul.f32 0.70710677, %v10996_v19  ;;  %v3425_v48 = vmul.f32 %v10937_v25, %v10767_v39  ;;  %v4172_v9 = vmul.f32 %v4171_v6, %v10850_v51 }
 0x481   : > { %v4211_v41 = vadd.f32 0.0036580483, %v4210_v56  ;;  %v11016_v14 = vmin.f32 %v4286_v32, 16.0  ;;  %v3455_v26 = vadd.f32 %v10826_v60, %v3454_v4  ;;  %vm3457_vm8 = vweird.f32 %v10826_v60 }
 0x482   : > { %v5321_v7 = vmul.f32 %v5289_v17, %v3945_v54  ;;  %v4249_v57 = vadd.f32 0.00028619796, %v4248_v18  ;;  %v12972_v28 = vand.u32 2147483647, %v10667_v16  ;;  %v3438_v39 = vmul.f32 %v10801_v11, %v10585_v8 }
 0x483   : > { %v11028_v25 = vadd.f32 1.0, %v4227_v1  ;;  %v4264_v36 = vadd.f32 0.112945676, %v4263_v20  ;;  %v4326_v24 = vmul.f32 %v11011_v22, %v11011_v22  ;;  %vm3456_vm10 = vweird.f32 %v10771_v13 }
 0x484   : > { %vm11022_vm9 = vcmp.eq.f32.partialorder %v12972_v28, 8.507059e+37  ;;  %v3462_v55 = vand.u32 2147483648, %v10771_v13  ;;  %v5351_v0 = vadd.f32 %v5319_v44, %v12975_v61  ;;  %v5353_v5 = vadd.f32 %v5321_v7, %v12976_v30  ;;  %v11036_v50 = vpop.eup %6877  ;;  %vm11038_vm11 = vmor %vm3456_vm10, %vm3457_vm8  ;;  %v3863_v44 = vpop.f32.mrf.mxu2 }
 0x485   : > { %v3460_v8 = vand.u32 2147483647, %v10771_v13  ;;  %v4173_v11 = vadd.f32 0.05243302, %v4172_v9  ;;  %v4212_v6 = vmul.f32 %v4211_v41, %v10905_v15  ;;  %v4299_v23 = vmul.f32 3.8918573e-05, %v11016_v14  ;;  %v3912_v28 = vpop.f32.mrf.mxu3 }
 0x486   : > { %v6339_v56 = vclamps-f32 %v3425_v48, 1.0  ;;  %v3459_v2 = vsel %vm11038_vm11, %v10826_v60, %v3455_v26  ;;  %v11048_v62 = vpack.c.bf16 %v5353_v5, %v5351_v0  ;;  %v4250_v4 = vmul.f32 %v4249_v57, %v10957_v31 }
 0x487   : > { %6879 = vrcp.f32 %v11028_v25  ;;  %v4265_v10 = vmul.f32 %v4264_v36, %v10957_v31  ;;  %v4300_v63 = vadd.f32 0.001143296, %v4299_v23  ;;  %v11061_v18 = vmin.f32 %v4326_v24, 16.0  ;;  %v6763_v23 = vld [vmem:[%s12656_s8 + $0x14] sm:$0xf] }
 0x488   : > { %v3379_v60 = vsel %vm11055_vm12, %v10716_v37, %v10809_v33  ;;  %v3439_v1 = vadd.f32 1.1283791, %v3438_v39  ;;  %v3463_v20 = vor.u32 1.1754944e-38, %v3462_v55  ;;  %v4190_v32 = vmul.f32 %v11036_v50, %v10988_v49 }
 0x489   : > { %vm3461_vm13 = vcmp.eq.f32.partialorder %v3460_v8, 8.507059e+37  ;;  %v4174_v54 = vmul.f32 %v4173_v11, %v10850_v51  ;;  %v4213_v17 = vadd.f32 0.05243302, %v4212_v6  ;;  %v4301_v48 = vmul.f32 %v4300_v63, %v11016_v14 }
 0x48a   : > { %v12981_v9 = vand.u32 2147483648, %v10667_v16  ;;  %v3498_v26 = vadd.f32 1.0, %v6339_v56  ;;  %v3464_v7 = vsel %vm3461_vm13, %v3463_v20, %v3459_v2  ;;  %v4251_v57 = vadd.f32 0.0036580483, %v4250_v4 }
 0x48b   : > { %v4266_v37 = vadd.f32 0.4994258, %v4265_v10  ;;  %v4302_v33 = vadd.f32 0.014752088, %v4301_v48  ;;  %v4339_v39 = vmul.f32 3.8918573e-05, %v11061_v18  ;;  %v3864_v36 = vadd.f32 %v3863_v44, %v10644_v38 }
 0x48c   : > { %v3383_v41 = vor.u32 1.1754944e-38, %v12981_v9  ;;  %v12982_v24 = vclamps-f32 %v10687_v34, 1.0  ;;  %v3440_v16 = vmul.f32 %v3439_v1, %v10553_v58  ;;  %v4191_v0 = vsub.f32 1.0, %v4190_v32 }
 0x48d   : > { %v11084_v30 = vpop.eup %6879  ;;  %v11087_v5 = vmul.f32 0.5, %v10791_v47  ;;  %v4175_v42 = vadd.f32 0.18741608, %v4174_v54  ;;  %v4214_v8 = vmul.f32 %v4213_v17, %v10905_v15  ;;  %v11090_v11 = vadd.f32 %v3912_v28, %v3864_v36  ;;  %v6513_v47 = vld [vmem:[%s12656_s8 + $0x18] sm:$0xf0] }
 0x48e   : > { %v11077_v55 = vadd.f32 1.0, %v12982_v24  ;;  %v11081_v61 = vsel %vm11022_vm9, %v3383_v41, %v3379_v60  ;;  %v11093_v34 = vmul.f32 %v3498_v26, %v10655_v12  ;;  %v11095_v6 = vmul.f32 %v3464_v7, %v3440_v16 }
 0x48f   : > { %12984 = vst [vmem:[#allocation33_spill] sm:$0xff] %v11081_v61  ;;  %v4288_v21 = vmul.f32 2.1237322e-06, %v11016_v14  ;;  %v4303_v58 = vmul.f32 %v4302_v33, %v11016_v14  ;;  %v11106_v56 = vmul.f32 0.5, %v10833_v29  ;;  %v4252_v12 = vmul.f32 %v4251_v57, %v10957_v31 }
 0x490   : > { %12983 = vst [vmem:[#allocation62_spill] sm:$0xff] %v11077_v55  ;;  %v4267_v2 = vmul.f32 %v4266_v37, %v10957_v31  ;;  %v4340_v4 = vadd.f32 0.001143296, %v4339_v39  ;;  %v4192_v13 = vmul.f32 %v11036_v50, %v4191_v0  ;;  %v4230_v10 = vmul.f32 %v11084_v30, %v11028_v25  ;;  %v3767_v0 = vpop.f32.mrf.mxu0 }
 0x491   : > { %12985 = vst [vmem:[#allocation49_spill] sm:$0xff] %v11093_v34  ;;  %v11114_v63 = vmul.f32 0.5, %v10913_v43  ;;  %v4304_v60 = vadd.f32 0.112945676, %v4303_v58  ;;  %v4215_v1 = vadd.f32 0.18741608, %v4214_v8  ;;  %v6516_v32 = vor.u32 %v6763_v23, %v6513_v47 }
 0x492   : > { %12986 = vst [vmem:[#allocation53_spill] sm:$0xff] %v11095_v6  ;;  %v4341_v20 = vmul.f32 %v4340_v4, %v11061_v18  ;;  %v11118_v29 = vmul.f32 0.70710677, %v11090_v11  ;;  %v4176_v44 = vmul.f32 %v4175_v42, %v10850_v51  ;;  %v4198_v54 = vand.u32 2147483647, %v10988_v49  ;;  %v13024_v34 = vld [vmem:[#allocation46_spill] sm:$0xff] }
 0x493   : > { %v4289_v17 = vadd.f32 0.00028619796, %v4288_v21  ;;  %v4305_v48 = vmul.f32 %v4304_v60, %v11016_v14  ;;  %v4253_v9 = vadd.f32 0.05243302, %v4252_v12  ;;  %v11123_v41 = vadd.f32 1.0, %v4267_v2  ;;  %5700 = vmatpush.bf16.msrb.mxu2 %v6516_v32  ;;  %v3816_v12 = vpop.f32.mrf.mxu1 }
 0x494   : > { %v4342_v43 = vadd.f32 0.014752088, %v4341_v20  ;;  %v4366_v26 = vmul.f32 %v11118_v29, %v11118_v29  ;;  %v4193_v7 = vadd.f32 %v11036_v50, %v4192_v13  ;;  %vm4195_vm14 = vweird.f32 %v11036_v50 }
 0x495   : > { %v4200_v57 = vand.u32 2147483648, %v10988_v49  ;;  %v4231_v51 = vsub.f32 1.0, %v4230_v10  ;;  %v4216_v28 = vmul.f32 %v4215_v1, %v10905_v15  ;;  %v4306_v37 = vadd.f32 0.4994258, %v4305_v48  ;;  %v6779_v48 = vld [vmem:[%s12656_s8 + $0x94] sm:$0xf] }
 0x496   : > { %v4343_v33 = vmul.f32 %v4342_v43, %v11061_v18  ;;  %v11132_v39 = vmin.f32 %v4366_v26, 16.0  ;;  %v4177_v36 = vadd.f32 1.1283791, %v4176_v44  ;;  %vm4194_vm15 = vweird.f32 %v10988_v49  ;;  %v6577_v26 = vld [vmem:[%s12656_s8 + $0x98] sm:$0xf0] }
 0x497   : > { %v4290_v24 = vmul.f32 %v4289_v17, %v11016_v14  ;;  %v4328_v16 = vmul.f32 2.1237322e-06, %v11061_v18  ;;  %vm11137_vm0 = vmor %vm4194_vm15, %vm4195_vm14  ;;  %vm11141_vm1 = vcmp.eq.f32.partialorder %v4198_v54, 8.507059e+37  ;;  %v4254_v15 = vmul.f32 %v4253_v9, %v10957_v31 }
 0x498   : > { %6881 = vrcp.f32 %v11123_v41  ;;  %v4344_v21 = vadd.f32 0.112945676, %v4343_v33  ;;  %v4197_v49 = vsel %vm11137_vm0, %v11036_v50, %v4193_v7  ;;  %v4232_v58 = vmul.f32 %v11084_v30, %v4231_v51 }
 0x499   : > { %v4307_v23 = vmul.f32 %v4306_v37, %v11016_v14  ;;  %v4379_v47 = vmul.f32 3.8918573e-05, %v11132_v39  ;;  %v4201_v2 = vor.u32 1.1754944e-38, %v4200_v57  ;;  %v4217_v4 = vadd.f32 1.1283791, %v4216_v28 }
 0x49a   : > { %v4345_v13 = vmul.f32 %v4344_v21, %v11061_v18  ;;  %v3768_v10 = vadd.f32 %v3767_v0, %v10623_v53  ;;  %v4178_v60 = vmul.f32 %v4177_v36, %v10806_v59  ;;  %v4291_v1 = vadd.f32 0.0036580483, %v4290_v24  ;;  %v6511_v24 = vld [vmem:[%s12656_s8 + $0x10] sm:$0xf] }
 0x49b   : > { %v4329_v20 = vadd.f32 0.00028619796, %v4328_v16  ;;  %v4380_v32 = vadd.f32 0.001143296, %v4379_v47  ;;  %v4202_v50 = vsel %vm11141_vm1, %v4201_v2, %v4197_v49  ;;  %v4255_v44 = vadd.f32 0.18741608, %v4254_v15 }
 0x49c   : > { %v11159_v54 = vmul.f32 0.5, %v10980_v46  ;;  %v11161_v17 = vadd.f32 %v3816_v12, %v3768_v10  ;;  %v4233_v9 = vadd.f32 %v11084_v30, %v4232_v58  ;;  %vm4235_vm2 = vweird.f32 %v11084_v30  ;;  %v6764_v16 = vld [vmem:[%s12656_s8 + $0x14] sm:$0xf0] }
 0x49d   : > { %v11168_v59 = vadd.f32 1.0, %v4307_v23  ;;  %v4368_v43 = vmul.f32 2.1237322e-06, %v11132_v39  ;;  %vm4234_vm3 = vweird.f32 %v11028_v25  ;;  %v4238_v7 = vand.u32 2147483647, %v11028_v25  ;;  %v3865_v23 = vpop.f32.mrf.mxu2 }
 0x49e   : > { %v11174_v46 = vpop.eup %6881  ;;  %v4346_v57 = vadd.f32 0.4994258, %v4345_v13  ;;  %v4381_v51 = vmul.f32 %v4380_v32, %v11132_v39  ;;  %v4203_v28 = vmul.f32 %v4202_v50, %v4178_v60  ;;  %v4240_v37 = vand.u32 2147483648, %v11028_v25  ;;  %vm11190_vm4 = vmor %vm4234_vm3, %vm4235_vm2 }
 0x49f   : > { %v4292_v33 = vmul.f32 %v4291_v1, %v11016_v14  ;;  %v4330_v36 = vmul.f32 %v4329_v20, %v11061_v18  ;;  %v4256_v25 = vmul.f32 %v4255_v44, %v10957_v31  ;;  %v11196_v8 = vmul.f32 0.70710677, %v11161_v17  ;;  %v3914_v1 = vpop.f32.mrf.mxu3  ;;  %v6575_v44 = vld [vmem:[%s12656_s8 + $0x90] sm:$0xf] }
 0x4a0   : > { %v4382_v42 = vadd.f32 0.014752088, %v4381_v51  ;;  %v6580_v15 = vor.u32 %v6779_v48, %v6577_v26  ;;  %v4237_v21 = vsel %vm11190_vm4, %v11084_v30, %v4233_v9  ;;  %v4270_v49 = vmul.f32 %v11174_v46, %v11123_v41 }
 0x4a1   : > { %6883 = vrcp.f32 %v11168_v59  ;;  %v4369_v58 = vadd.f32 0.00028619796, %v4368_v43  ;;  %v4347_v47 = vmul.f32 %v4346_v57, %v11061_v18  ;;  %v4406_v12 = vmul.f32 %v11196_v8, %v11196_v8  ;;  %v6780_v57 = vld [vmem:[%s12656_s8 + $0x94] sm:$0xf0] }
 0x4a2   : > { %v4383_v31 = vmul.f32 %v4382_v42, %v11132_v39  ;;  %5749 = vmatpush.bf16.msrb.mxu3 %v6580_v15  ;;  %v6512_v2 = vor.u32 %v6764_v16, %v6511_v24  ;;  %v6473_v13 = vclamps-f32 %v4203_v28, 1.0  ;;  %v4241_v10 = vor.u32 1.1754944e-38, %v4240_v37 }
 0x4a3   : > { %v4293_v60 = vadd.f32 0.05243302, %v4292_v33  ;;  %v4331_v30 = vadd.f32 0.0036580483, %v4330_v36  ;;  %v4218_v20 = vmul.f32 %v4217_v4, %v10865_v52  ;;  %vm4239_vm5 = vcmp.eq.f32.partialorder %v4238_v7, 8.507059e+37 }
 0x4a4   : > { %v4257_v32 = vadd.f32 1.1283791, %v4256_v25  ;;  %v3866_v50 = vadd.f32 %v3865_v23, %v10644_v38  ;;  %5602 = vmatpush.bf16.msrb.mxu0 %v6512_v2  ;;  %v4242_v48 = vsel %vm4239_vm5, %v4241_v10, %v4237_v21  ;;  %v4271_v9 = vsub.f32 1.0, %v4270_v49 }
 0x4a5   : > { %v4384_v43 = vadd.f32 0.112945676, %v4383_v31  ;;  %v11213_v26 = vmin.f32 %v4406_v12, 16.0  ;;  %v11219_v52 = vmul.f32 0.5, %v10996_v19  ;;  %v11221_v4 = vadd.f32 1.0, %v4347_v47 }
 0x4a6   : > { %v4370_v7 = vmul.f32 %v4369_v58, %v11132_v39  ;;  %v11224_v51 = vadd.f32 %v3914_v1, %v3866_v50  ;;  %v5290_v37 = vadd.f32 1.0, %v6473_v13  ;;  %v4294_v33 = vmul.f32 %v4293_v60, %v11016_v14 }
 0x4a7   : > { %v11226_v28 = vpop.eup %6883  ;;  %v4332_v36 = vmul.f32 %v4331_v30, %v11061_v18  ;;  %v4419_v24 = vmul.f32 3.8918573e-05, %v11213_v26  ;;  %v4243_v16 = vmul.f32 %v4242_v48, %v4218_v20  ;;  %v11232_v0 = vmul.f32 %v4257_v32, %v10940_v45  ;;  %v3770_v48 = vpop.f32.mrf.mxu0 }
 0x4a8   : > { %v11235_v19 = vmul.f32 0.70710677, %v11224_v51  ;;  %v6576_v25 = vor.u32 %v6780_v57, %v6575_v44  ;;  %v4272_v42 = vmul.f32 %v11174_v46, %v4271_v9  ;;  %v4278_v15 = vand.u32 2147483647, %v11123_v41 }
 0x4a9   : > { %v4385_v21 = vmul.f32 %v4384_v43, %v11132_v39  ;;  %v4420_v49 = vadd.f32 0.001143296, %v4419_v24  ;;  %v4310_v58 = vmul.f32 %v11226_v28, %v11168_v59  ;;  %6885 = vrcp.f32 %v11221_v4 }
 0x4aa   : > { %v4371_v23 = vadd.f32 0.0036580483, %v4370_v7  ;;  %v4446_v45 = vmul.f32 %v11235_v19, %v11235_v19  ;;  %5651 = vmatpush.bf16.msrb.mxu1 %v6576_v25  ;;  %v4280_v47 = vand.u32 2147483648, %v11123_v41  ;;  %v4295_v31 = vadd.f32 0.18741608, %v4294_v33 }
 0x4ab   : > { %v4333_v12 = vadd.f32 0.05243302, %v4332_v36  ;;  %v4421_v2 = vmul.f32 %v4420_v49, %v11213_v26  ;;  %v11248_v13 = vmul.f32 %v5290_v37, %v11087_v5  ;;  %v6474_v10 = vclamps-f32 %v4243_v16, 1.0 }
 0x4ac   : > { %vm4274_vm6 = vweird.f32 %v11123_v41  ;;  %v11251_v60 = vmin.f32 %v4446_v45, 16.0  ;;  %v4273_v30 = vadd.f32 %v11174_v46, %v4272_v42  ;;  %vm4275_vm7 = vweird.f32 %v11174_v46 }
 0x4ad   : > { %v4386_v1 = vadd.f32 0.4994258, %v4385_v21  ;;  %v4422_v20 = vadd.f32 0.014752088, %v4421_v2  ;;  %v4311_v32 = vsub.f32 1.0, %v4310_v58  ;;  %v4372_v50 = vmul.f32 %v4371_v23, %v11132_v39  ;;  %vm11268_vm9 = vmor %vm4274_vm6, %vm4275_vm7  ;;  %v3819_v21 = vpop.f32.mrf.mxu1 }
 0x4ae   : > { %v4408_v44 = vmul.f32 2.1237322e-06, %v11213_v26  ;;  %v4459_v5 = vmul.f32 3.8918573e-05, %v11251_v60  ;;  %vm11258_vm8 = vcmp.eq.f32.partialorder %v4278_v15, 8.507059e+37  ;;  %v4281_v43 = vor.u32 1.1754944e-38, %v4280_v47 }
 0x4af   : > { %v4296_v57 = vmul.f32 %v4295_v31, %v11016_v14  ;;  %v4334_v7 = vmul.f32 %v4333_v12, %v11061_v18  ;;  %v11264_v37 = vpop.eup %6885  ;;  %v5291_v33 = vadd.f32 1.0, %v6474_v10  ;;  %v11273_v24 = vmul.f32 0.5, %v11090_v11 }
 0x4b0   : > { %v11276_v16 = vmul.f32 0.5, %v11161_v17  ;;  %v4423_v25 = vmul.f32 %v4422_v20, %v11213_v26  ;;  %v4277_v14 = vsel %vm11268_vm9, %v11174_v46, %v4273_v30  ;;  %v4387_v42 = vmul.f32 %v4386_v1, %v11132_v39  ;;  %v3868_v30 = vpop.f32.mrf.mxu2 }
 0x4b1   : > { %v3771_v41 = vadd.f32 %v3770_v48, %v10623_v53  ;;  %v4460_v15 = vadd.f32 0.001143296, %v4459_v5  ;;  %v4312_v49 = vmul.f32 %v11226_v28, %v4311_v32  ;;  %v4373_v58 = vadd.f32 0.05243302, %v4372_v50  ;;  %v3917_v5 = vpop.f32.mrf.mxu3 }
 0x4b2   : > { %v4409_v11 = vadd.f32 0.00028619796, %v4408_v44  ;;  %v4424_v23 = vadd.f32 0.112945676, %v4423_v25  ;;  %v4297_v45 = vadd.f32 1.1283791, %v4296_v57  ;;  %v4350_v47 = vmul.f32 %v11264_v37, %v11221_v4 }
 0x4b3   : > { %v4335_v17 = vadd.f32 0.18741608, %v4334_v7  ;;  %v4461_v31 = vmul.f32 %v4460_v15, %v11251_v60  ;;  %v11289_v46 = vmul.f32 %v5291_v33, %v11106_v56  ;;  %v4318_v12 = vand.u32 2147483647, %v11168_v59 }
 0x4b4   : > { %v4425_v2 = vmul.f32 %v4424_v23, %v11213_v26  ;;  %v11293_v10 = vadd.f32 %v3819_v21, %v3771_v41  ;;  %v4282_v1 = vsel %vm11258_vm8, %v4281_v43, %v4277_v14  ;;  %v4320_v20 = vand.u32 2147483648, %v11168_v59 }
 0x4b5   : > { %v11298_v32 = vadd.f32 1.0, %v4387_v42  ;;  %v4462_v50 = vadd.f32 0.014752088, %v4461_v31  ;;  %v4313_v44 = vadd.f32 %v11226_v28, %v4312_v49  ;;  %vm4315_vm10 = vweird.f32 %v11226_v28 }
 0x4b6   : > { %v4374_v56 = vmul.f32 %v4373_v58, %v11132_v39  ;;  %v4410_v48 = vmul.f32 %v4409_v11, %v11213_v26  ;;  %v4351_v57 = vsub.f32 1.0, %v4350_v47  ;;  %v4426_v7 = vadd.f32 0.4994258, %v4425_v2  ;;  %v3772_v2 = vpop.f32.mrf.mxu0 }
 0x4b7   : > { %v4463_v33 = vmul.f32 %v4462_v50, %v11251_v60  ;;  %v3869_v9 = vadd.f32 %v3868_v30, %v10644_v38  ;;  %vm4314_vm11 = vweird.f32 %v11168_v59  ;;  %v4336_v43 = vmul.f32 %v4335_v17, %v11061_v18 }
 0x4b8   : > { %v4448_v36 = vmul.f32 2.1237322e-06, %v11251_v60  ;;  %v11310_v25 = vmul.f32 0.70710677, %v11293_v10  ;;  %6887 = vrcp.f32 %v11298_v32  ;;  %v4427_v14 = vmul.f32 %v4426_v7, %v11213_v26  ;;  %vm11319_vm12 = vmor %vm4314_vm11, %vm4315_vm10 }
 0x4b9   : > { %v4464_v42 = vadd.f32 0.112945676, %v4463_v33  ;;  %v11314_v41 = vadd.f32 %v3917_v5, %v3869_v9  ;;  %v4283_v15 = vmul.f32 %v4282_v1, %v11232_v0  ;;  %vm11323_vm13 = vcmp.eq.f32.partialorder %v4318_v12, 8.507059e+37 }
 0x4ba   : > { %v4375_v21 = vadd.f32 0.18741608, %v4374_v56  ;;  %v4486_v49 = vmul.f32 %v11310_v25, %v11310_v25  ;;  %v4317_v58 = vsel %vm11319_vm12, %v11226_v28, %v4313_v44  ;;  %v4321_v11 = vor.u32 1.1754944e-38, %v4320_v20 }
 0x4bb   : > { %v4352_v0 = vmul.f32 %v11264_v37, %v4351_v57  ;;  %v4411_v23 = vadd.f32 0.0036580483, %v4410_v48  ;;  %v11333_v17 = vadd.f32 1.0, %v4427_v14  ;;  %v4449_v47 = vadd.f32 0.00028619796, %v4448_v36 }
 0x4bc   : > { %v4465_v31 = vmul.f32 %v4464_v42, %v11251_v60  ;;  %v11336_v12 = vmin.f32 %v4486_v49, 16.0  ;;  %v4298_v30 = vmul.f32 %v4297_v45, %v10994_v27  ;;  %v4337_v1 = vadd.f32 1.1283791, %v4336_v43  ;;  %v6761_v48 = vld [vmem:[%s12656_s8 + $0x4] sm:$0xf]  ;;  %v3821_v45 = vpop.f32.mrf.mxu1 }
 0x4bd   : > { %v4358_v50 = vand.u32 2147483647, %v11221_v4  ;;  %v11341_v56 = vmul.f32 0.70710677, %v11314_v41  ;;  %v6475_v28 = vclamps-f32 %v4283_v15, 1.0  ;;  %vm4355_vm14 = vweird.f32 %v11264_v37 }
 0x4be   : > { %v4360_v20 = vand.u32 2147483648, %v11221_v4  ;;  %v4376_v44 = vmul.f32 %v4375_v21, %v11132_v39  ;;  %v6505_v27 = vld [vmem:[%s12656_s8 + $0x8] sm:$0xf0]  ;;  %v11352_v5 = vpop.eup %6887  ;;  %v4322_v57 = vsel %vm11323_vm13, %v4321_v11, %v4317_v58  ;;  %v4353_v7 = vadd.f32 %v11264_v37, %v4352_v0 }
 0x4bf   : > { %v4499_v33 = vmul.f32 3.8918573e-05, %v11336_v12  ;;  %v3773_v39 = vadd.f32 %v3772_v2, %v10623_v53  ;;  %v4412_v9 = vmul.f32 %v4411_v23, %v11213_v26  ;;  %6889 = vrcp.f32 %v11333_v17 }
 0x4c0   : > { %v4450_v43 = vmul.f32 %v4449_v47, %v11251_v60  ;;  %v4466_v36 = vadd.f32 0.4994258, %v4465_v31  ;;  %v4526_v42 = vmul.f32 %v11341_v56, %v11341_v56  ;;  %v6508_v15 = vor.u32 %v6761_v48, %v6505_v27  ;;  %v6777_v48 = vld [vmem:[%s12656_s8 + $0x84] sm:$0xf] }
 0x4c1   : > { %v4500_v14 = vadd.f32 0.001143296, %v4499_v33  ;;  %v11364_v59 = vadd.f32 %v3821_v45, %v3773_v39  ;;  %v5292_v18 = vadd.f32 1.0, %v6475_v28  ;;  %v4323_v21 = vmul.f32 %v4322_v57, %v4298_v30 }
 0x4c2   : > { %vm4354_vm15 = vweird.f32 %v11221_v4  ;;  %v4390_v49 = vmul.f32 %v11352_v5, %v11298_v32  ;;  %v4338_v58 = vmul.f32 %v4337_v1, %v11011_v22  ;;  %vm11376_vm1 = vcmp.eq.f32.partialorder %v4358_v50, 8.507059e+37  ;;  %5701 = vmatpush.bf16.msrb.mxu2 %v6508_v15 }
 0x4c3   : > { %vm11372_vm0 = vmor %vm4354_vm15, %vm4355_vm14  ;;  %v4501_v23 = vmul.f32 %v4500_v14, %v11336_v12  ;;  %v11381_v47 = vmin.f32 %v4526_v42, 16.0  ;;  %v4413_v22 = vadd.f32 0.05243302, %v4412_v9  ;;  %v4451_v31 = vadd.f32 0.0036580483, %v4450_v43 }
 0x4c4   : > { %v4357_v4 = vsel %vm11372_vm0, %v11264_v37, %v4353_v7  ;;  %v11387_v2 = vmul.f32 0.70710677, %v11364_v59  ;;  %v4361_v30 = vor.u32 1.1754944e-38, %v4360_v20  ;;  %v4377_v1 = vadd.f32 1.1283791, %v4376_v44 }
 0x4c5   : > { %v11390_v50 = vmul.f32 0.5, %v11224_v51  ;;  %v4467_v28 = vmul.f32 %v4466_v36, %v11251_v60  ;;  %v11396_v27 = vpop.eup %6889  ;;  %v11399_v37 = vmul.f32 %v5292_v18, %v11114_v63  ;;  %v6476_v45 = vclamps-f32 %v4323_v21, 1.0  ;;  %v6569_v20 = vld [vmem:[%s12656_s8 + $0x88] sm:$0xf0]  ;;  %5702 = vmatmul.bf16.vlgmr.msrb.gmra.mxu2 %v10974_v35  ;;  %v6503_v14 = vld [vmem:[%s12656_s8] sm:$0xf] }
 0x4c6   : > { %v4391_v57 = vsub.f32 1.0, %v4390_v49  ;;  %v4502_v7 = vadd.f32 0.014752088, %v4501_v23  ;;  %v4362_v51 = vsel %vm11376_vm1, %v4361_v30, %v4357_v4  ;;  %v4398_v44 = vand.u32 2147483647, %v11298_v32 }
 0x4c7   : > { %v4488_v33 = vmul.f32 2.1237322e-06, %v11336_v12  ;;  %v4539_v39 = vmul.f32 3.8918573e-05, %v11381_v47  ;;  %vm4394_vm2 = vweird.f32 %v11298_v32  ;;  %v4414_v63 = vmul.f32 %v4413_v22, %v11213_v26  ;;  %v6762_v42 = vld [vmem:[%s12656_s8 + $0x4] sm:$0xf0] }
 0x4c8   : > { %v4452_v9 = vmul.f32 %v4451_v31, %v11251_v60  ;;  %v4503_v43 = vmul.f32 %v4502_v7, %v11336_v12  ;;  %v4566_v36 = vmul.f32 %v11387_v2, %v11387_v2  ;;  %v4400_v15 = vand.u32 2147483648, %v11298_v32  ;;  %v3870_v32 = vpop.f32.mrf.mxu2 }
 0x4c9   : > { %v11423_v18 = vadd.f32 1.0, %v4467_v28  ;;  %v4540_v21 = vadd.f32 0.001143296, %v4539_v39  ;;  %v6572_v49 = vor.u32 %v6777_v48, %v6569_v20  ;;  %v4363_v11 = vmul.f32 %v4362_v51, %v4338_v58 }
 0x4ca   : > { %v4392_v0 = vmul.f32 %v11352_v5, %v4391_v57  ;;  %v4430_v23 = vmul.f32 %v11396_v27, %v11333_v17  ;;  %v4504_v4 = vadd.f32 0.112945676, %v4503_v43  ;;  %v4489_v22 = vadd.f32 0.00028619796, %v4488_v33 }
 0x4cb   : > { %v4541_v31 = vmul.f32 %v4540_v21, %v11381_v47  ;;  %v11429_v30 = vmin.f32 %v4566_v36, 16.0  ;;  %5750 = vmatpush.bf16.msrb.mxu3 %v6572_v49  ;;  %v6504_v7 = vor.u32 %v6762_v42, %v6503_v14  ;;  %v5293_v6 = vadd.f32 1.0, %v6476_v45 }
 0x4cc   : > { %vm11431_vm3 = vcmp.eq.f32.partialorder %v4398_v44, 8.507059e+37  ;;  %v4415_v48 = vadd.f32 0.18741608, %v4414_v63  ;;  %v4453_v58 = vadd.f32 0.05243302, %v4452_v9  ;;  %6891 = vrcp.f32 %v11423_v18 }
 0x4cd   : > { %v4505_v57 = vmul.f32 %v4504_v4, %v11336_v12  ;;  %v4528_v20 = vmul.f32 2.1237322e-06, %v11381_v47  ;;  %v4542_v51 = vadd.f32 0.014752088, %v4541_v31  ;;  %5603 = vmatpush.bf16.msrb.mxu0 %v6504_v7  ;;  %v4393_v33 = vadd.f32 %v11352_v5, %v4392_v0 }
 0x4ce   : > { %vm4395_vm4 = vweird.f32 %v11352_v5  ;;  %v4401_v39 = vor.u32 1.1754944e-38, %v4400_v15  ;;  %v4431_v45 = vsub.f32 1.0, %v4430_v23  ;;  %5751 = vmatmul.bf16.vlgmr.msrb.gmra.mxu3 %v11048_v62  ;;  %v6477_v44 = vclamps-f32 %v4363_v11, 1.0 }
 0x4cf   : > { %v4490_v63 = vmul.f32 %v4489_v22, %v11336_v12  ;;  %v4543_v9 = vmul.f32 %v4542_v51, %v11381_v47  ;;  %v4579_v43 = vmul.f32 3.8918573e-05, %v11429_v30  ;;  %v4416_v36 = vmul.f32 %v4415_v48, %v11213_v26  ;;  %vm11451_vm5 = vmor %vm4394_vm2, %vm4395_vm4 }
 0x4d0   : > { %v4440_v14 = vand.u32 2147483648, %v11333_v17  ;;  %v4454_v42 = vmul.f32 %v4453_v58, %v11251_v60  ;;  %v4506_v21 = vadd.f32 0.4994258, %v4505_v57  ;;  %5604 = vmatmul.bf16.vlgmr.msrb.gmra.mxu0 %v10974_v35  ;;  %v4378_v15 = vmul.f32 %v4377_v1, %v11118_v29  ;;  %v3919_v57 = vpop.f32.mrf.mxu3 }
 0x4d1   : > { %v4529_v11 = vadd.f32 0.00028619796, %v4528_v20  ;;  %v4544_v0 = vadd.f32 0.112945676, %v4543_v9  ;;  %v4580_v23 = vadd.f32 0.001143296, %v4579_v43  ;;  %v11456_v26 = vmul.f32 %v5293_v6, %v11159_v54 }
 0x4d2   : > { %v4397_v4 = vsel %vm11451_vm5, %v11352_v5, %v4393_v33  ;;  %v4432_v35 = vmul.f32 %v11396_v27, %v4431_v45  ;;  %v11463_v29 = vmul.f32 0.5, %v11293_v10  ;;  %v11465_v1 = vpop.eup %6891  ;;  %v5294_v22 = vadd.f32 1.0, %v6477_v44  ;;  %v3775_v45 = vpop.f32.mrf.mxu0 }
 0x4d3   : > { %v4491_v31 = vadd.f32 0.0036580483, %v4490_v63  ;;  %v4545_v7 = vmul.f32 %v4544_v0, %v11381_v47  ;;  %v4581_v48 = vmul.f32 %v4580_v23, %v11429_v30  ;;  %v4417_v6 = vadd.f32 1.1283791, %v4416_v36  ;;  %v6567_v36 = vld [vmem:[%s12656_s8 + $0x80] sm:$0xf]  ;;  %v3873_v0 = vpop.f32.mrf.mxu2 }
 0x4d4   : > { %v4438_v54 = vand.u32 2147483647, %v11333_v17  ;;  %v4455_v58 = vadd.f32 0.18741608, %v4454_v42  ;;  %v4507_v5 = vmul.f32 %v4506_v21, %v11336_v12  ;;  %v4402_v10 = vsel %vm11431_vm3, %v4401_v39, %v4397_v4 }
 0x4d5   : > { %v4441_v20 = vor.u32 1.1754944e-38, %v4440_v14  ;;  %v4530_v51 = vmul.f32 %v4529_v11, %v11381_v47  ;;  %v3871_v33 = vadd.f32 %v3870_v32, %v10644_v38  ;;  %v4433_v44 = vadd.f32 %v11396_v27, %v4432_v35  ;;  %v6778_v14 = vld [vmem:[%s12656_s8 + $0x84] sm:$0xf0]  ;;  %v3824_v11 = vpop.f32.mrf.mxu1 }
 0x4d6   : > { %vm4435_vm6 = vweird.f32 %v11396_v27  ;;  %v4470_v63 = vmul.f32 %v11465_v1, %v11423_v18  ;;  %v4546_v9 = vadd.f32 0.4994258, %v4545_v7  ;;  %vm4434_vm7 = vweird.f32 %v11333_v17 }
 0x4d7   : > { %v4492_v43 = vmul.f32 %v4491_v31, %v11336_v12  ;;  %v4582_v28 = vadd.f32 0.014752088, %v4581_v48  ;;  %v11481_v39 = vadd.f32 %v3919_v57, %v3871_v33  ;;  %v4403_v42 = vmul.f32 %v4402_v10, %v4378_v15  ;;  %vm11493_vm8 = vmor %vm4434_vm7, %vm4435_vm6 }
 0x4d8   : > { %v11489_v21 = vadd.f32 1.0, %v4507_v5  ;;  %v4568_v49 = vmul.f32 2.1237322e-06, %v11429_v30  ;;  %v3776_v17 = vadd.f32 %v3775_v45, %v10623_v53  ;;  %v4531_v23 = vadd.f32 0.0036580483, %v4530_v51 }
 0x4d9   : > { %v4547_v4 = vmul.f32 %v4546_v9, %v11381_v47  ;;  %v4583_v35 = vmul.f32 %v4582_v28, %v11429_v30  ;;  %v11500_v32 = vmul.f32 0.70710677, %v11481_v39  ;;  %v4437_v15 = vsel %vm11493_vm8, %v11396_v27, %v4433_v44 }
 0x4da   : > { %v4456_v31 = vmul.f32 %v4455_v58, %v11251_v60  ;;  %v4471_v7 = vsub.f32 1.0, %v4470_v63  ;;  %v6568_v48 = vor.u32 %v6778_v14, %v6567_v36  ;;  %v4493_v5 = vadd.f32 0.05243302, %v4492_v43 }
 0x4db   : > { %v4584_v57 = vadd.f32 0.112945676, %v4583_v35  ;;  %v4606_v10 = vmul.f32 %v11500_v32, %v11500_v32  ;;  %v11508_v51 = vadd.f32 %v3824_v11, %v3776_v17  ;;  %v11511_v33 = vmul.f32 %v5294_v22, %v11219_v52 }
 0x4dc   : > { %vm4439_vm9 = vcmp.eq.f32.partialorder %v4438_v54, 8.507059e+37  ;;  %6893 = vrcp.f32 %v11489_v21  ;;  %v4569_v45 = vadd.f32 0.00028619796, %v4568_v49  ;;  %5652 = vmatpush.bf16.msrb.mxu1 %v6568_v48  ;;  %v11515_v60 = vmul.f32 0.5, %v11314_v41 }
 0x4dd   : > { %v4442_v27 = vsel %vm4439_vm9, %v4441_v20, %v4437_v15  ;;  %v4532_v58 = vmul.f32 %v4531_v23, %v11381_v47  ;;  %v11518_v44 = vadd.f32 1.0, %v4547_v4  ;;  %v4418_v63 = vmul.f32 %v4417_v6, %v11196_v8 }
 0x4de   : > { %v4472_v9 = vmul.f32 %v11465_v1, %v4471_v7  ;;  %v4585_v52 = vmul.f32 %v4584_v57, %v11429_v30  ;;  %v11523_v22 = vmin.f32 %v4606_v10, 16.0  ;;  %v6478_v54 = vclamps-f32 %v4403_v42, 1.0 }
 0x4df   : > { %v4457_v43 = vadd.f32 1.1283791, %v4456_v31  ;;  %v4494_v28 = vmul.f32 %v4493_v5, %v11336_v12  ;;  %v11527_v20 = vmul.f32 0.70710677, %v11508_v51  ;;  %5653 = vmatmul.bf16.vlgmr.msrb.gmra.mxu1 %v11048_v62  ;;  %v4443_v41 = vmul.f32 %v4442_v27, %v4418_v63  ;;  %v3922_v5 = vpop.f32.mrf.mxu3 }
 0x4e0   : > { %v11531_v36 = vmul.f32 0.5, %v11364_v59  ;;  %v4570_v8 = vmul.f32 %v4569_v45, %v11429_v30  ;;  %v4586_v6 = vadd.f32 0.4994258, %v4585_v52  ;;  %v4533_v14 = vadd.f32 0.05243302, %v4532_v58 }
 0x4e1   : > { %6895 = vrcp.f32 %v11518_v44  ;;  %v4619_v42 = vmul.f32 3.8918573e-05, %v11523_v22  ;;  %v4646_v49 = vmul.f32 %v11527_v20, %v11527_v20  ;;  %v4473_v11 = vadd.f32 %v11465_v1, %v4472_v9 }
 0x4e2   : > { %v11538_v17 = vpop.eup %6893  ;;  %vm4475_vm10 = vweird.f32 %v11465_v1  ;;  %v4478_v62 = vand.u32 2147483647, %v11423_v18  ;;  %v4587_v59 = vmul.f32 %v4586_v6, %v11429_v30  ;;  %v4480_v23 = vand.u32 2147483648, %v11423_v18 }
 0x4e3   : > { %v4495_v4 = vadd.f32 0.18741608, %v4494_v28  ;;  %v4620_v35 = vadd.f32 0.001143296, %v4619_v42  ;;  %v11545_v15 = vmin.f32 %v4646_v49, 16.0  ;;  %v5295_v31 = vadd.f32 1.0, %v6478_v54 }
 0x4e4   : > { %v6479_v7 = vclamps-f32 %v4443_v41, 1.0  ;;  %vm4474_vm11 = vweird.f32 %v11423_v18  ;;  %v4571_v48 = vadd.f32 0.0036580483, %v4570_v8  ;;  %v4510_v10 = vmul.f32 %v11538_v17, %v11489_v21 }
 0x4e5   : > { %vm11548_vm12 = vmor %vm4474_vm11, %vm4475_vm10  ;;  %v4534_v45 = vmul.f32 %v4533_v14, %v11381_v47  ;;  %v4621_v27 = vmul.f32 %v4620_v35, %v11523_v22  ;;  %v3874_v58 = vadd.f32 %v3873_v0, %v10644_v38  ;;  %v4458_v63 = vmul.f32 %v4457_v43, %v11235_v19 }
 0x4e6   : > { %v4477_v18 = vsel %vm11548_vm12, %v11465_v1, %v4473_v11  ;;  %v11561_v9 = vadd.f32 1.0, %v4587_v59  ;;  %v4659_v52 = vmul.f32 3.8918573e-05, %v11545_v15  ;;  %vm4479_vm13 = vcmp.eq.f32.partialorder %v4478_v62, 8.507059e+37 }
 0x4e7   : > { %v11564_v54 = vpop.eup %6895  ;;  %v4481_v28 = vor.u32 1.1754944e-38, %v4480_v23  ;;  %v4496_v41 = vmul.f32 %v4495_v4, %v11336_v12  ;;  %v11567_v8 = vadd.f32 %v3922_v5, %v3874_v58  ;;  %v5296_v6 = vadd.f32 1.0, %v6479_v7 }
 0x4e8   : > { %v4572_v14 = vmul.f32 %v4571_v48, %v11429_v30  ;;  %v4608_v19 = vmul.f32 2.1237322e-06, %v11523_v22  ;;  %v4622_v43 = vadd.f32 0.014752088, %v4621_v27  ;;  %v4511_v1 = vsub.f32 1.0, %v4510_v10 }
 0x4e9   : > { %v4482_v42 = vsel %vm4479_vm13, %v4481_v28, %v4477_v18  ;;  %v4535_v49 = vadd.f32 0.18741608, %v4534_v45  ;;  %v4660_v11 = vadd.f32 0.001143296, %v4659_v52  ;;  %v4550_v59 = vmul.f32 %v11564_v54, %v11518_v44 }
 0x4ea   : > { %6897 = vrcp.f32 %v11561_v9  ;;  %v4623_v62 = vmul.f32 %v4622_v43, %v11523_v22  ;;  %v4648_v12 = vmul.f32 2.1237322e-06, %v11545_v15  ;;  %v11577_v0 = vmul.f32 %v5295_v31, %v11273_v24  ;;  %v3777_v43 = vpop.f32.mrf.mxu0 }
 0x4eb   : > { %v4497_v23 = vadd.f32 1.1283791, %v4496_v41  ;;  %v4661_v4 = vmul.f32 %v4660_v11, %v11545_v15  ;;  %v11581_v35 = vmul.f32 0.70710677, %v11567_v8  ;;  %v11584_v7 = vmul.f32 %v5296_v6, %v11276_v16 }
 0x4ec   : > { %v4518_v48 = vand.u32 2147483647, %v11489_v21  ;;  %v4573_v5 = vadd.f32 0.05243302, %v4572_v14  ;;  %v4609_v57 = vadd.f32 0.00028619796, %v4608_v19  ;;  %v4483_v10 = vmul.f32 %v4482_v42, %v4458_v63 }
 0x4ed   : > { %v4512_v45 = vmul.f32 %v11538_v17, %v4511_v1  ;;  %v4662_v27 = vadd.f32 0.014752088, %v4661_v4  ;;  %v4686_v24 = vmul.f32 %v11581_v35, %v11581_v35  ;;  %v4536_v31 = vmul.f32 %v4535_v49, %v11381_v47 }
 0x4ee   : > { %v4551_v58 = vsub.f32 1.0, %v4550_v59  ;;  %v4624_v18 = vadd.f32 0.112945676, %v4623_v62  ;;  %v4649_v52 = vadd.f32 0.00028619796, %v4648_v12  ;;  %v4498_v28 = vmul.f32 %v4497_v23, %v11310_v25  ;;  %v3826_v12 = vpop.f32.mrf.mxu1 }
 0x4ef   : > { %vm4514_vm14 = vweird.f32 %v11489_v21  ;;  %v4663_v16 = vmul.f32 %v4662_v27, %v11545_v15  ;;  %v11594_v41 = vmin.f32 %v4686_v24, 16.0  ;;  %vm11598_vm15 = vcmp.eq.f32.partialorder %v4518_v48, 8.507059e+37 }
 0x4f0   : > { %v11596_v63 = vpop.eup %6897  ;;  %v4520_v14 = vand.u32 2147483648, %v11489_v21  ;;  %v4574_v47 = vmul.f32 %v4573_v5, %v11429_v30  ;;  %v4610_v19 = vmul.f32 %v4609_v57, %v11523_v22  ;;  %v6480_v25 = vclamps-f32 %v4483_v10, 1.0 }
 0x4f1   : > { %v4513_v42 = vadd.f32 %v11538_v17, %v4512_v45  ;;  %vm4515_vm0 = vweird.f32 %v11538_v17  ;;  %v4664_v1 = vadd.f32 0.112945676, %v4663_v16  ;;  %v4537_v49 = vadd.f32 1.1283791, %v4536_v31 }
 0x4f2   : > { %v4552_v11 = vmul.f32 %v11564_v54, %v4551_v58  ;;  %v4625_v59 = vmul.f32 %v4624_v18, %v11523_v22  ;;  %v4650_v62 = vmul.f32 %v4649_v52, %v11545_v15  ;;  %v4590_v23 = vmul.f32 %v11596_v63, %v11561_v9  ;;  %vm11617_vm1 = vmor %vm4514_vm14, %vm4515_vm0 }
 0x4f3   : > { %v4665_v4 = vmul.f32 %v4664_v1, %v11545_v15  ;;  %v3778_v48 = vadd.f32 %v3777_v43, %v10623_v53  ;;  %v4699_v5 = vmul.f32 3.8918573e-05, %v11594_v41  ;;  %v4521_v10 = vor.u32 1.1754944e-38, %v4520_v14 }
 0x4f4   : > { %v4560_v45 = vand.u32 2147483648, %v11518_v44  ;;  %v4575_v27 = vadd.f32 0.18741608, %v4574_v47  ;;  %v4611_v24 = vadd.f32 0.0036580483, %v4610_v19  ;;  %v11622_v31 = vadd.f32 1.0, %v6480_v25  ;;  %v3875_v25 = vpop.f32.mrf.mxu2 }
 0x4f5   : > { %v4517_v58 = vsel %vm11617_vm1, %v11538_v17, %v4513_v42  ;;  %vm4555_vm2 = vweird.f32 %v11564_v54  ;;  %v11628_v18 = vadd.f32 %v3826_v12, %v3778_v48  ;;  %v4553_v21 = vadd.f32 %v11564_v54, %v4552_v11 }
 0x4f6   : > { %v4626_v52 = vadd.f32 0.4994258, %v4625_v59  ;;  %v4651_v16 = vadd.f32 0.0036580483, %v4650_v62  ;;  %v4700_v43 = vadd.f32 0.001143296, %v4699_v5  ;;  %v4538_v14 = vmul.f32 %v4537_v49, %v11341_v56 }
 0x4f7   : > { %vm4554_vm3 = vweird.f32 %v11518_v44  ;;  %v4591_v47 = vsub.f32 1.0, %v4590_v23  ;;  %v4666_v19 = vadd.f32 0.4994258, %v4665_v4  ;;  %v4558_v1 = vand.u32 2147483647, %v11518_v44  ;;  %v3924_v23 = vpop.f32.mrf.mxu3 }
 0x4f8   : > { %v4561_v57 = vor.u32 1.1754944e-38, %v4560_v45  ;;  %v4576_v17 = vmul.f32 %v4575_v27, %v11429_v30  ;;  %v4612_v42 = vmul.f32 %v4611_v24, %v11523_v22  ;;  %v4522_v11 = vsel %vm11598_vm15, %v4521_v10, %v4517_v58  ;;  %vm11640_vm4 = vmor %vm4554_vm3, %vm4555_vm2 }
 0x4f9   : > { %v4688_v56 = vmul.f32 2.1237322e-06, %v11594_v41  ;;  %v4701_v49 = vmul.f32 %v4700_v43, %v11594_v41  ;;  %v11647_v44 = vmul.f32 0.70710677, %v11628_v18  ;;  %v4557_v30 = vsel %vm11640_vm4, %v11564_v54, %v4553_v21 }
 0x4fa   : > { %v4627_v6 = vmul.f32 %v4626_v52, %v11523_v22  ;;  %v4652_v62 = vmul.f32 %v4651_v16, %v11545_v15  ;;  %v3876_v12 = vadd.f32 %v3875_v25, %v10644_v38  ;;  %v4592_v4 = vmul.f32 %v11596_v63, %v4591_v47 }
 0x4fb   : > { %v4667_v48 = vmul.f32 %v4666_v19, %v11545_v15  ;;  %v4702_v5 = vadd.f32 0.014752088, %v4701_v49  ;;  %v4726_v10 = vmul.f32 %v11647_v44, %v11647_v44  ;;  %v4523_v45 = vmul.f32 %v4522_v11, %v4498_v28 }
 0x4fc   : > { %vm4559_vm5 = vcmp.eq.f32.partialorder %v4558_v1, 8.507059e+37  ;;  %v4577_v27 = vadd.f32 1.1283791, %v4576_v17  ;;  %v4613_v24 = vadd.f32 0.05243302, %v4612_v42  ;;  %v11660_v52 = vadd.f32 %v3924_v23, %v3876_v12 }
 0x4fd   : > { %v4562_v54 = vsel %vm4559_vm5, %v4561_v57, %v4557_v30  ;;  %v4689_v58 = vadd.f32 0.00028619796, %v4688_v56  ;;  %v4703_v21 = vmul.f32 %v4702_v5, %v11594_v41  ;;  %v4600_v16 = vand.u32 2147483648, %v11561_v9 }
 0x4fe   : > { %v11663_v43 = vadd.f32 1.0, %v4627_v6  ;;  %v4653_v47 = vadd.f32 0.05243302, %v4652_v62  ;;  %v11665_v19 = vmin.f32 %v4726_v10, 16.0  ;;  %v4593_v25 = vadd.f32 %v11596_v63, %v4592_v4 }
 0x4ff   : > { %vm4595_vm6 = vweird.f32 %v11596_v63  ;;  %v11669_v28 = vadd.f32 1.0, %v4667_v48  ;;  %v4704_v1 = vadd.f32 0.112945676, %v4703_v21  ;;  %v4563_v57 = vmul.f32 %v4562_v54, %v4538_v14  ;;  %v3780_v54 = vpop.f32.mrf.mxu0 }
 0x500   : > { %vm4594_vm7 = vweird.f32 %v11561_v9  ;;  %v4614_v17 = vmul.f32 %v4613_v24, %v11523_v22  ;;  %v4739_v42 = vmul.f32 3.8918573e-05, %v11665_v19  ;;  %v4598_v11 = vand.u32 2147483647, %v11561_v9 }
 0x501   : > { %v4690_v59 = vmul.f32 %v4689_v58, %v11594_v41  ;;  %v4705_v56 = vmul.f32 %v4704_v1, %v11594_v41  ;;  %v11678_v49 = vmul.f32 0.70710677, %v11660_v52  ;;  %v6481_v30 = vclamps-f32 %v4523_v45, 1.0  ;;  %vm11680_vm8 = vmor %vm4594_vm7, %vm4595_vm6 }
 0x502   : > { %6899 = vrcp.f32 %v11663_v43  ;;  %v4654_v14 = vmul.f32 %v4653_v47, %v11545_v15  ;;  %v4740_v62 = vadd.f32 0.001143296, %v4739_v42  ;;  %v4597_v9 = vsel %vm11680_vm8, %v11596_v63, %v4593_v25 }
 0x503   : > { %v4601_v12 = vor.u32 1.1754944e-38, %v4600_v16  ;;  %6901 = vrcp.f32 %v11669_v28  ;;  %v4706_v23 = vadd.f32 0.4994258, %v4705_v56  ;;  %v6482_v4 = vclamps-f32 %v4563_v57, 1.0 }
 0x504   : > { %v4615_v48 = vadd.f32 0.18741608, %v4614_v17  ;;  %v4741_v5 = vmul.f32 %v4740_v62, %v11665_v19  ;;  %v4766_v10 = vmul.f32 %v11678_v49, %v11678_v49  ;;  %v11695_v45 = vmul.f32 %v11622_v31, %v11390_v50  ;;  %v3829_v50 = vpop.f32.mrf.mxu1 }
 0x505   : > { %vm4599_vm9 = vcmp.eq.f32.partialorder %v4598_v11, 8.507059e+37  ;;  %v11698_v24 = vmul.f32 0.5, %v11481_v39  ;;  %v4691_v63 = vadd.f32 0.0036580483, %v4690_v59  ;;  %v4655_v21 = vadd.f32 0.18741608, %v4654_v14 }
 0x506   : > { %v4602_v58 = vsel %vm4599_vm9, %v4601_v12, %v4597_v9  ;;  %v4728_v16 = vmul.f32 2.1237322e-06, %v11665_v19  ;;  %v4742_v47 = vadd.f32 0.014752088, %v4741_v5  ;;  %v5298_v25 = vadd.f32 1.0, %v6481_v30 }
 0x507   : > { %v4578_v1 = vmul.f32 %v4577_v27, %v11387_v2  ;;  %v4707_v57 = vmul.f32 %v4706_v23, %v11594_v41  ;;  %v11703_v17 = vmin.f32 %v4766_v10, 16.0  ;;  %v5299_v42 = vadd.f32 1.0, %v6482_v4 }
 0x508   : > { %v11705_v31 = vpop.eup %6899  ;;  %v4616_v39 = vmul.f32 %v4615_v48, %v11523_v22  ;;  %v4743_v11 = vmul.f32 %v4742_v47, %v11665_v19  ;;  %v3781_v59 = vadd.f32 %v3780_v54, %v10623_v53  ;;  %v11713_v30 = vmul.f32 0.5, %v11508_v51 }
 0x509   : > { %v11710_v56 = vpop.eup %6901  ;;  %v4603_v6 = vmul.f32 %v4602_v58, %v4578_v1  ;;  %v11716_v2 = vmul.f32 0.5, %v11567_v8  ;;  %v4692_v27 = vmul.f32 %v4691_v63, %v11594_v41  ;;  %v4656_v14 = vmul.f32 %v4655_v21, %v11545_v15 }
 0x50a   : > { %v4729_v62 = vadd.f32 0.00028619796, %v4728_v16  ;;  %v4744_v9 = vadd.f32 0.112945676, %v4743_v11  ;;  %v11720_v22 = vadd.f32 %v3829_v50, %v3781_v59  ;;  %v11723_v12 = vmul.f32 %v5298_v25, %v11463_v29 }
 0x50b   : > { %v4630_v23 = vmul.f32 %v11705_v31, %v11663_v43  ;;  %v11727_v4 = vadd.f32 1.0, %v4707_v57  ;;  %v4779_v51 = vmul.f32 3.8918573e-05, %v11703_v17  ;;  %v11731_v8 = vmul.f32 %v5299_v42, %v11515_v60 }
 0x50c   : > { %v4617_v48 = vadd.f32 1.1283791, %v4616_v39  ;;  %v4670_v15 = vmul.f32 %v11710_v56, %v11669_v28  ;;  %v11736_v5 = vmul.f32 0.5, %v11628_v18  ;;  %v4640_v29 = vand.u32 2147483648, %v11663_v43 }
 0x50d   : > { %v4693_v10 = vadd.f32 0.05243302, %v4692_v27  ;;  %v4745_v63 = vmul.f32 %v4744_v9, %v11665_v19  ;;  %v4780_v54 = vadd.f32 0.001143296, %v4779_v51  ;;  %v6483_v58 = vclamps-f32 %v4603_v6, 1.0 }
 0x50e   : > { %v4657_v21 = vadd.f32 1.1283791, %v4656_v14  ;;  %v4730_v16 = vmul.f32 %v4729_v62, %v11665_v19  ;;  %v11742_v60 = vmul.f32 0.70710677, %v11720_v22  ;;  %v4631_v47 = vsub.f32 1.0, %v4630_v23 }
 0x50f   : > { %6903 = vrcp.f32 %v11727_v4  ;;  %v4746_v25 = vadd.f32 0.4994258, %v4745_v63  ;;  %v4781_v18 = vmul.f32 %v4780_v54, %v11703_v17  ;;  %v11747_v1 = vmul.f32 %v4617_v48, %v11500_v32  ;;  %v3878_v48 = vpop.f32.mrf.mxu2 }
 0x510   : > { %v4671_v57 = vsub.f32 1.0, %v4670_v15  ;;  %v4768_v50 = vmul.f32 2.1237322e-06, %v11703_v17  ;;  %v4806_v42 = vmul.f32 %v11742_v60, %v11742_v60  ;;  %v4638_v39 = vand.u32 2147483647, %v11663_v43 }
 0x511   : > { %v4694_v11 = vmul.f32 %v4693_v10, %v11594_v41  ;;  %v4747_v59 = vmul.f32 %v4746_v25, %v11665_v19  ;;  %v4782_v6 = vadd.f32 0.014752088, %v4781_v18  ;;  %vm4634_vm10 = vweird.f32 %v11663_v43  ;;  %v3927_v18 = vpop.f32.mrf.mxu3 }
 0x512   : > { %v4641_v27 = vor.u32 1.1754944e-38, %v4640_v29  ;;  %v4731_v14 = vadd.f32 0.0036580483, %v4730_v16  ;;  %v11756_v62 = vmin.f32 %v4806_v42, 16.0  ;;  %v5300_v32 = vadd.f32 1.0, %v6483_v58  ;;  %v3782_v42 = vpop.f32.mrf.mxu0 }
 0x513   : > { %v4632_v9 = vmul.f32 %v11705_v31, %v4631_v47  ;;  %v11760_v23 = vmul.f32 %v4657_v21, %v11527_v20  ;;  %v4783_v51 = vmul.f32 %v4782_v6, %v11703_v17  ;;  %v4672_v15 = vmul.f32 %v11710_v56, %v4671_v57 }
 0x514   : > { %vm4674_vm11 = vweird.f32 %v11669_v28  ;;  %v4769_v10 = vadd.f32 0.00028619796, %v4768_v50  ;;  %v4819_v63 = vmul.f32 3.8918573e-05, %v11756_v62  ;;  %vm4635_vm12 = vweird.f32 %v11705_v31 }
 0x515   : > { %v11766_v29 = vpop.eup %6903  ;;  %vm11769_vm13 = vcmp.eq.f32.partialorder %v4638_v39, 8.507059e+37  ;;  %v4680_v20 = vand.u32 2147483648, %v11669_v28  ;;  %v4695_v58 = vadd.f32 0.18741608, %v4694_v11  ;;  %v11774_v21 = vadd.f32 1.0, %v4747_v59  ;;  %v13023_v39 = vld [vmem:[#allocation40_spill] sm:$0xff]  ;;  %vm11797_vm15 = vmor %vm4634_vm10, %vm4635_vm12 }
 0x516   : > { %vm4675_vm14 = vweird.f32 %v11710_v56  ;;  %v4732_v16 = vmul.f32 %v4731_v14, %v11665_v19  ;;  %v4784_v47 = vadd.f32 0.112945676, %v4783_v51  ;;  %v3879_v25 = vadd.f32 %v3878_v48, %v10644_v38 }
 0x517   : > { %v4633_v57 = vadd.f32 %v11705_v31, %v4632_v9  ;;  %v4820_v50 = vadd.f32 0.001143296, %v4819_v63  ;;  %v5354_v6 = vadd.f32 %v11248_v13, %v13023_v39  ;;  %v5356_v11 = vadd.f32 %v11399_v37, %v13024_v34  ;;  %v3831_v13 = vpop.f32.mrf.mxu1  ;;  %vm11811_vm0 = vmor %vm4674_vm11, %vm4675_vm14 }
 0x518   : > { %v4673_v59 = vadd.f32 %v11710_v56, %v4672_v15  ;;  %v4710_v55 = vmul.f32 %v11766_v29, %v11727_v4  ;;  %v4770_v14 = vmul.f32 %v4769_v10, %v11703_v17  ;;  %v4785_v51 = vmul.f32 %v4784_v47, %v11703_v17 }
 0x519   : > { %6905 = vrcp.f32 %v11774_v21  ;;  %v4821_v9 = vmul.f32 %v4820_v50, %v11756_v62  ;;  %v5384_v48 = vpack.c.bf16 %v5356_v11, %v5354_v6  ;;  %v11791_v63 = vadd.f32 %v3927_v18, %v3879_v25 }
 0x51a   : > { %v4678_v37 = vand.u32 2147483647, %v11669_v28  ;;  %v4733_v15 = vadd.f32 0.05243302, %v4732_v16  ;;  %v4808_v10 = vmul.f32 2.1237322e-06, %v11756_v62  ;;  %v3783_v47 = vadd.f32 %v3782_v42, %v10623_v53 }
 0x51b   : > { %v4637_v25 = vsel %vm11797_vm15, %v11705_v31, %v4633_v57  ;;  %v4786_v18 = vadd.f32 0.4994258, %v4785_v51  ;;  %v4822_v50 = vadd.f32 0.014752088, %v4821_v9  ;;  %5609 = vmatmul.bf16.gmra.mxu0 %v5384_v48  ;;  %5707 = vmatmul.bf16.gmra.mxu2 %v5384_v48  ;;  %v11816_v16 = vmul.f32 0.70710677, %v11791_v63 }
 0x51c   : > { %v4677_v42 = vsel %vm11811_vm0, %v11710_v56, %v4673_v59  ;;  %v4711_v31 = vsub.f32 1.0, %v4710_v55  ;;  %v4771_v57 = vadd.f32 0.0036580483, %v4770_v14  ;;  %v11821_v39 = vadd.f32 %v3831_v13, %v3783_v47 }
 0x51d   : > { %v4681_v28 = vor.u32 1.1754944e-38, %v4680_v20  ;;  %v4696_v6 = vmul.f32 %v4695_v58, %v11594_v41  ;;  %v4823_v11 = vmul.f32 %v4822_v50, %v11756_v62  ;;  %v4846_v51 = vmul.f32 %v11816_v16, %v11816_v16 }
 0x51e   : > { %v11828_v9 = vmul.f32 %v5300_v32, %v11531_v36  ;;  %v4642_v48 = vsel %vm11769_vm13, %v4641_v27, %v4637_v25  ;;  %vm4679_vm1 = vcmp.eq.f32.partialorder %v4678_v37, 8.507059e+37  ;;  %v4809_v56 = vadd.f32 0.00028619796, %v4808_v10 }
 0x51f   : > { %v11832_v55 = vpop.eup %6905  ;;  %v4682_v59 = vsel %vm4679_vm1, %v4681_v28, %v4677_v42  ;;  %v11835_v20 = vmul.f32 0.5, %v11660_v52  ;;  %v4787_v41 = vmul.f32 %v4786_v18, %v11703_v17  ;;  %v11838_v58 = vmin.f32 %v4846_v51, 16.0 }
 0x520   : > { %v4712_v14 = vmul.f32 %v11766_v29, %v4711_v31  ;;  %v4734_v36 = vmul.f32 %v4733_v15, %v11665_v19  ;;  %v4772_v32 = vmul.f32 %v4771_v57, %v11703_v17  ;;  %v11844_v27 = vmul.f32 0.70710677, %v11821_v39 }
 0x521   : > { %v4643_v54 = vmul.f32 %v4642_v48, %v11747_v1  ;;  %v4697_v13 = vadd.f32 1.1283791, %v4696_v6  ;;  %v11848_v34 = vmul.f32 0.5, %v11720_v22  ;;  %v4824_v52 = vadd.f32 0.112945676, %v4823_v11 }
 0x522   : > { %v4683_v37 = vmul.f32 %v4682_v59, %v11760_v23  ;;  %vm4714_vm2 = vweird.f32 %v11727_v4  ;;  %v4750_v10 = vmul.f32 %v11832_v55, %v11774_v21  ;;  %v4810_v15 = vmul.f32 %v4809_v56, %v11756_v62  ;;  %v13031_v59 = vld [vmem:[#allocation45_spill] sm:$0xff] }
 0x523   : > { %v4720_v47 = vand.u32 2147483648, %v11727_v4  ;;  %v11856_v25 = vadd.f32 1.0, %v4787_v41  ;;  %v4859_v1 = vmul.f32 3.8918573e-05, %v11838_v58  ;;  %v4886_v22 = vmul.f32 %v11844_v27, %v11844_v27 }
 0x524   : > { %v4713_v43 = vadd.f32 %v11766_v29, %v4712_v14  ;;  %vm4715_vm3 = vweird.f32 %v11766_v29  ;;  %v4735_v23 = vadd.f32 0.18741608, %v4734_v36  ;;  %v4773_v18 = vadd.f32 0.05243302, %v4772_v32  ;;  %v13032_v14 = vld [vmem:[#allocation52_spill] sm:$0xff] }
 0x525   : > { %v4718_v50 = vand.u32 2147483647, %v11727_v4  ;;  %v4825_v42 = vmul.f32 %v4824_v52, %v11756_v62  ;;  %v4860_v31 = vadd.f32 0.001143296, %v4859_v1  ;;  %v11865_v57 = vmin.f32 %v4886_v22, 16.0  ;;  %vm11869_vm4 = vmor %vm4714_vm2, %vm4715_vm3 }
 0x526   : > { %v6484_v28 = vclamps-f32 %v4643_v54, 1.0  ;;  %v6485_v6 = vclamps-f32 %v4683_v37, 1.0  ;;  %v4751_v11 = vsub.f32 1.0, %v4750_v10  ;;  %v4811_v51 = vadd.f32 0.0036580483, %v4810_v15 }
 0x527   : > { %6907 = vrcp.f32 %v11856_v25  ;;  %v4861_v56 = vmul.f32 %v4860_v31, %v11838_v58  ;;  %v5355_v41 = vadd.f32 %v11289_v46, %v13031_v59  ;;  %v5357_v36 = vadd.f32 %v11456_v26, %v13032_v14  ;;  %v3880_v31 = vpop.f32.mrf.mxu2 }
 0x528   : > { %v4717_v32 = vsel %vm11869_vm4, %v11766_v29, %v4713_v43  ;;  %v4721_v54 = vor.u32 1.1754944e-38, %v4720_v47  ;;  %v4736_v4 = vmul.f32 %v4735_v23, %v11665_v19  ;;  %v4774_v52 = vmul.f32 %v4773_v18, %v11703_v17 }
 0x529   : > { %v4826_v37 = vadd.f32 0.4994258, %v4825_v42  ;;  %v4862_v10 = vadd.f32 0.014752088, %v4861_v56  ;;  %v4899_v15 = vmul.f32 3.8918573e-05, %v11865_v57  ;;  %v5385_v1 = vpack.c.bf16 %v5357_v36, %v5355_v41  ;;  %v3785_v56 = vpop.f32.mrf.mxu0 }
 0x52a   : > { %v4698_v22 = vmul.f32 %v4697_v13, %v11581_v35  ;;  %vm4719_vm5 = vcmp.eq.f32.partialorder %v4718_v50, 8.507059e+37  ;;  %v4812_v46 = vmul.f32 %v4811_v51, %v11756_v62  ;;  %v4848_v26 = vmul.f32 2.1237322e-06, %v11838_v58  ;;  %v3929_v35 = vpop.f32.mrf.mxu3 }
 0x52b   : > { %v5301_v48 = vadd.f32 1.0, %v6484_v28  ;;  %v5302_v29 = vadd.f32 1.0, %v6485_v6  ;;  %v4722_v47 = vsel %vm4719_vm5, %v4721_v54, %v4717_v32  ;;  %v4752_v19 = vmul.f32 %v11832_v55, %v4751_v11  ;;  %5658 = vmatmul.bf16.gmra.mxu1 %v5385_v1  ;;  %5756 = vmatmul.bf16.gmra.mxu3 %v5385_v1 }
 0x52c   : > { %v4737_v43 = vadd.f32 1.1283791, %v4736_v4  ;;  %v4758_v23 = vand.u32 2147483647, %v11774_v21  ;;  %v4775_v18 = vadd.f32 0.18741608, %v4774_v52  ;;  %v4863_v42 = vmul.f32 %v4862_v10, %v11838_v58  ;;  %v3834_v4 = vpop.f32.mrf.mxu1 }
 0x52d   : > { %v11891_v13 = vpop.eup %6907  ;;  %v4760_v50 = vand.u32 2147483648, %v11774_v21  ;;  %v4827_v51 = vmul.f32 %v4826_v37, %v11756_v62  ;;  %v4900_v28 = vadd.f32 0.001143296, %v4899_v15  ;;  %v3881_v6 = vadd.f32 %v3880_v31, %v10644_v38 }
 0x52e   : > { %v4723_v11 = vmul.f32 %v4722_v47, %v4698_v22  ;;  %v4813_v59 = vadd.f32 0.05243302, %v4812_v46  ;;  %v4849_v41 = vadd.f32 0.00028619796, %v4848_v26  ;;  %v4864_v14 = vadd.f32 0.112945676, %v4863_v42 }
 0x52f   : > { %v4753_v36 = vadd.f32 %v11832_v55, %v4752_v19  ;;  %vm4755_vm6 = vweird.f32 %v11832_v55  ;;  %v4901_v32 = vmul.f32 %v4900_v28, %v11865_v57  ;;  %v11899_v54 = vadd.f32 %v3929_v35, %v3881_v6 }
 0x530   : > { %v4776_v52 = vmul.f32 %v4775_v18, %v11703_v17  ;;  %v4790_v37 = vmul.f32 %v11891_v13, %v11856_v25  ;;  %v4865_v10 = vmul.f32 %v4864_v14, %v11838_v58  ;;  %v3786_v15 = vadd.f32 %v3785_v56, %v10623_v53 }
 0x531   : > { %vm4754_vm7 = vweird.f32 %v11774_v21  ;;  %v11907_v1 = vadd.f32 1.0, %v4827_v51  ;;  %v4888_v22 = vmul.f32 2.1237322e-06, %v11865_v57  ;;  %v4902_v46 = vadd.f32 0.014752088, %v4901_v32 }
 0x532   : > { %vm11910_vm8 = vmor %vm4754_vm7, %vm4755_vm6  ;;  %vm11914_vm9 = vcmp.eq.f32.partialorder %v4758_v23, 8.507059e+37  ;;  %v4814_v31 = vmul.f32 %v4813_v59, %v11756_v62  ;;  %v4850_v47 = vmul.f32 %v4849_v41, %v11838_v58  ;;  %v11920_v19 = vadd.f32 %v3834_v4, %v3786_v15 }
 0x533   : > { %v4757_v21 = vsel %vm11910_vm8, %v11832_v55, %v4753_v36  ;;  %v4866_v18 = vadd.f32 0.4994258, %v4865_v10  ;;  %v4903_v42 = vmul.f32 %v4902_v46, %v11865_v57  ;;  %v11927_v35 = vmul.f32 0.70710677, %v11899_v54 }
 0x534   : > { %v6486_v23 = vclamps-f32 %v4723_v11, 1.0  ;;  %v4761_v51 = vor.u32 1.1754944e-38, %v4760_v50  ;;  %v4777_v28 = vadd.f32 1.1283791, %v4776_v52  ;;  %v4791_v6 = vsub.f32 1.0, %v4790_v37 }
 0x535   : > { %6909 = vrcp.f32 %v11907_v1  ;;  %v4889_v56 = vadd.f32 0.00028619796, %v4888_v22  ;;  %v4904_v59 = vadd.f32 0.112945676, %v4903_v42  ;;  %v4926_v41 = vmul.f32 %v11927_v35, %v11927_v35 }
 0x536   : > { %v4762_v55 = vsel %vm11914_vm9, %v4761_v51, %v4757_v21  ;;  %v4815_v14 = vadd.f32 0.18741608, %v4814_v31  ;;  %v4851_v36 = vadd.f32 0.0036580483, %v4850_v47  ;;  %v11935_v32 = vmul.f32 0.70710677, %v11920_v19 }
 0x537   : > { %v4738_v11 = vmul.f32 %v4737_v43, %v11647_v44  ;;  %v4867_v50 = vmul.f32 %v4866_v18, %v11838_v58  ;;  %v4905_v4 = vmul.f32 %v4904_v59, %v11865_v57  ;;  %v11940_v52 = vmin.f32 %v4926_v41, 16.0 }
 0x538   : > { %v11943_v37 = vmul.f32 %v5301_v48, %v11698_v24  ;;  %v11946_v10 = vmul.f32 %v5302_v29, %v11713_v30  ;;  %v4792_v15 = vmul.f32 %v11891_v13, %v4791_v6  ;;  %v11950_v22 = vmul.f32 0.5, %v11791_v63 }
 0x539   : > { %v5303_v46 = vadd.f32 1.0, %v6486_v23  ;;  %v4763_v26 = vmul.f32 %v4762_v55, %v4738_v11  ;;  %v4890_v44 = vmul.f32 %v4889_v56, %v11865_v57  ;;  %v4966_v43 = vmul.f32 %v11935_v32, %v11935_v32 }
 0x53a   : > { %v4778_v17 = vmul.f32 %v4777_v28, %v11678_v49  ;;  %v4816_v24 = vmul.f32 %v4815_v14, %v11756_v62  ;;  %v4852_v48 = vmul.f32 %v4851_v36, %v11838_v58  ;;  %v4906_v30 = vadd.f32 0.4994258, %v4905_v4 }
 0x53b   : > { %v11958_v29 = vpop.eup %6909  ;;  %v4798_v31 = vand.u32 2147483647, %v11856_v25  ;;  %v11961_v63 = vadd.f32 1.0, %v4867_v50  ;;  %v11964_v47 = vmul.f32 0.5, %v11821_v39  ;;  %v4939_v21 = vmul.f32 3.8918573e-05, %v11940_v52 }
 0x53c   : > { %v4793_v18 = vadd.f32 %v11891_v13, %v4792_v15  ;;  %vm4795_vm10 = vweird.f32 %v11891_v13  ;;  %v4800_v49 = vand.u32 2147483648, %v11856_v25  ;;  %v4907_v62 = vmul.f32 %v4906_v30, %v11865_v57  ;;  %v13039_v50 = vld [vmem:[#allocation32_spill] sm:$0xff] }
 0x53d   : > { %v6487_v42 = vclamps-f32 %v4763_v26, 1.0  ;;  %v4891_v23 = vadd.f32 0.0036580483, %v4890_v44  ;;  %v4940_v51 = vadd.f32 0.001143296, %v4939_v21  ;;  %v11971_v28 = vmin.f32 %v4966_v43, 16.0  ;;  %v3883_v43 = vpop.f32.mrf.mxu2 }
 0x53e   : > { %vm4794_vm11 = vweird.f32 %v11856_v25  ;;  %v4817_v6 = vadd.f32 1.1283791, %v4816_v24  ;;  %v4830_v39 = vmul.f32 %v11958_v29, %v11907_v1  ;;  %v4853_v56 = vadd.f32 0.05243302, %v4852_v48  ;;  %v13040_v48 = vld [vmem:[#allocation55_spill] sm:$0xff] }
 0x53f   : > { %vm11976_vm12 = vmor %vm4794_vm11, %vm4795_vm10  ;;  %6911 = vrcp.f32 %v11961_v63  ;;  %v4928_v41 = vmul.f32 2.1237322e-06, %v11940_v52  ;;  %v4941_v55 = vmul.f32 %v4940_v51, %v11940_v52  ;;  %v4979_v14 = vmul.f32 3.8918573e-05, %v11971_v28 }
 0x540   : > { %v11985_v36 = vmul.f32 %v5303_v46, %v11716_v2  ;;  %v4797_v25 = vsel %vm11976_vm12, %v11891_v13, %v4793_v18  ;;  %v11990_v11 = vadd.f32 1.0, %v4907_v62  ;;  %v5360_v4 = vadd.f32 %v11584_v7, %v13039_v50  ;;  %v3932_v7 = vpop.f32.mrf.mxu3 }
 0x541   : > { %v5304_v15 = vadd.f32 1.0, %v6487_v42  ;;  %vm4799_vm13 = vcmp.eq.f32.partialorder %v4798_v31, 8.507059e+37  ;;  %v4801_v26 = vor.u32 1.1754944e-38, %v4800_v49  ;;  %v4892_v44 = vmul.f32 %v4891_v23, %v11865_v57  ;;  %v3787_v42 = vpop.f32.mrf.mxu0 }
 0x542   : > { %v11996_v24 = vmul.f32 %v4817_v6, %v11742_v60  ;;  %v4854_v2 = vmul.f32 %v4853_v56, %v11838_v58  ;;  %v4942_v46 = vadd.f32 0.014752088, %v4941_v55  ;;  %v5358_v13 = vadd.f32 %v11511_v33, %v13040_v48 }
 0x543   : > { %v4802_v30 = vsel %vm4799_vm13, %v4801_v26, %v4797_v25  ;;  %v4831_v21 = vsub.f32 1.0, %v4830_v39  ;;  %v4929_v18 = vadd.f32 0.00028619796, %v4928_v41  ;;  %v4980_v62 = vadd.f32 0.001143296, %v4979_v14  ;;  %v3836_v14 = vpop.f32.mrf.mxu1 }
 0x544   : > { %6913 = vrcp.f32 %v11990_v11  ;;  %v4943_v31 = vmul.f32 %v4942_v46, %v11940_v52  ;;  %v3884_v49 = vadd.f32 %v3883_v43, %v10644_v38  ;;  %v5386_v60 = vpack.c.bf16 %v5360_v4, %v5358_v13 }
 0x545   : > { %v12004_v23 = vpop.eup %6911  ;;  %v4838_v51 = vand.u32 2147483647, %v11907_v1  ;;  %v4840_v6 = vand.u32 2147483648, %v11907_v1  ;;  %v4893_v33 = vadd.f32 0.05243302, %v4892_v44  ;;  %v4981_v39 = vmul.f32 %v4980_v62, %v11971_v28 }
 0x546   : > { %v4803_v56 = vmul.f32 %v4802_v30, %v4778_v17  ;;  %vm4834_vm14 = vweird.f32 %v11907_v1  ;;  %v4855_v59 = vadd.f32 0.18741608, %v4854_v2  ;;  %v4944_v41 = vadd.f32 0.112945676, %v4943_v31  ;;  %5614 = vmatmul.bf16.gmra.mxu0 %v5386_v60  ;;  %5712 = vmatmul.bf16.gmra.mxu2 %v5386_v60 }
 0x547   : > { %v12010_v55 = vadd.f32 %v3932_v7, %v3884_v49  ;;  %v4832_v25 = vmul.f32 %v11958_v29, %v4831_v21  ;;  %v4930_v50 = vmul.f32 %v4929_v18, %v11940_v52  ;;  %v4982_v4 = vadd.f32 0.014752088, %v4981_v39 }
 0x548   : > { %v3788_v26 = vadd.f32 %v3787_v42, %v10623_v53  ;;  %v12016_v44 = vmul.f32 %v5304_v15, %v11736_v5  ;;  %v4870_v17 = vmul.f32 %v12004_v23, %v11961_v63  ;;  %v4945_v43 = vmul.f32 %v4944_v41, %v11940_v52 }
 0x549   : > { %v4968_v2 = vmul.f32 2.1237322e-06, %v11971_v28  ;;  %v4841_v46 = vor.u32 1.1754944e-38, %v4840_v6  ;;  %v4894_v48 = vmul.f32 %v4893_v33, %v11865_v57  ;;  %v4983_v13 = vmul.f32 %v4982_v4, %v11971_v28 }
 0x54a   : > { %v12024_v30 = vadd.f32 %v3836_v14, %v3788_v26  ;;  %v12026_v21 = vpop.eup %6913  ;;  %v6488_v18 = vclamps-f32 %v4803_v56, 1.0  ;;  %vm4835_vm15 = vweird.f32 %v11958_v29  ;;  %vm12029_vm0 = vcmp.eq.f32.partialorder %v4838_v51, 8.507059e+37 }
 0x54b   : > { %v4946_v15 = vadd.f32 0.4994258, %v4945_v43  ;;  %v12034_v62 = vmul.f32 0.70710677, %v12010_v55  ;;  %v4833_v7 = vadd.f32 %v11958_v29, %v4832_v25  ;;  %v4856_v31 = vmul.f32 %v4855_v59, %v11838_v58  ;;  %vm12063_vm1 = vmor %vm4834_vm14, %vm4835_vm15 }
 0x54c   : > { %v4931_v49 = vadd.f32 0.0036580483, %v4930_v50  ;;  %v4984_v42 = vadd.f32 0.112945676, %v4983_v13  ;;  %v4871_v60 = vsub.f32 1.0, %v4870_v17  ;;  %v4910_v56 = vmul.f32 %v12026_v21, %v11990_v11 }
 0x54d   : > { %v4947_v6 = vmul.f32 %v4946_v15, %v11940_v52  ;;  %v4969_v33 = vadd.f32 0.00028619796, %v4968_v2  ;;  %v5006_v51 = vmul.f32 %v12034_v62, %v12034_v62  ;;  %v4895_v39 = vadd.f32 0.18741608, %v4894_v48 }
 0x54e   : > { %v4985_v41 = vmul.f32 %v4984_v42, %v11971_v28  ;;  %v12045_v14 = vmul.f32 0.70710677, %v12024_v30  ;;  %v12048_v58 = vmul.f32 0.5, %v11899_v54  ;;  %v12053_v25 = vmul.f32 0.5, %v11920_v19 }
 0x54f   : > { %v12050_v59 = vadd.f32 1.0, %v4947_v6  ;;  %v12055_v50 = vmin.f32 %v5006_v51, 16.0  ;;  %v12057_v4 = vadd.f32 1.0, %v6488_v18  ;;  %v4857_v17 = vadd.f32 1.1283791, %v4856_v31 }
 0x550   : > { %13043 = vst [vmem:[#allocation54_spill] sm:$0xff] %v12053_v25  ;;  %v4986_v54 = vadd.f32 0.4994258, %v4985_v41  ;;  %v5046_v43 = vmul.f32 %v12045_v14, %v12045_v14  ;;  %v4837_v19 = vsel %vm12063_vm1, %v11958_v29, %v4833_v7  ;;  %v4872_v2 = vmul.f32 %v12004_v23, %v4871_v60 }
 0x551   : > { %v4932_v48 = vmul.f32 %v4931_v49, %v11940_v52  ;;  %v4970_v13 = vmul.f32 %v4969_v33, %v11971_v28  ;;  %v4878_v1 = vand.u32 2147483647, %v11961_v63  ;;  %v4880_v18 = vand.u32 2147483648, %v11961_v63 }
 0x552   : > { %v4896_v15 = vmul.f32 %v4895_v39, %v11865_v57  ;;  %v4911_v31 = vsub.f32 1.0, %v4910_v56  ;;  %6915 = vrcp.f32 %v12050_v59  ;;  %v4987_v42 = vmul.f32 %v4986_v54, %v11971_v28  ;;  %v3885_v39 = vpop.f32.mrf.mxu2 }
 0x553   : > { %v5019_v6 = vmul.f32 3.8918573e-05, %v12055_v50  ;;  %v12081_v29 = vmin.f32 %v5046_v43, 16.0  ;;  %v4842_v7 = vsel %vm12029_vm0, %v4841_v46, %v4837_v19  ;;  %v4858_v49 = vmul.f32 %v4857_v17, %v11816_v16 }
 0x554   : > { %vm4874_vm2 = vweird.f32 %v11961_v63  ;;  %vm4875_vm3 = vweird.f32 %v12004_v23  ;;  %v4873_v57 = vadd.f32 %v12004_v23, %v4872_v2  ;;  %v4933_v60 = vadd.f32 0.05243302, %v4932_v48 }
 0x555   : > { %v4971_v33 = vadd.f32 0.0036580483, %v4970_v13  ;;  %v5020_v51 = vadd.f32 0.001143296, %v5019_v6  ;;  %vm12089_vm4 = vcmp.eq.f32.partialorder %v4878_v1, 8.507059e+37  ;;  %v4881_v41 = vor.u32 1.1754944e-38, %v4880_v18  ;;  %vm12101_vm5 = vmor %vm4874_vm2, %vm4875_vm3 }
 0x556   : > { %v4912_v5 = vmul.f32 %v12026_v21, %v4911_v31  ;;  %v5059_v46 = vmul.f32 3.8918573e-05, %v12081_v29  ;;  %v4843_v16 = vmul.f32 %v4842_v7, %v11996_v24  ;;  %v4897_v26 = vadd.f32 1.1283791, %v4896_v15  ;;  %v3934_v24 = vpop.f32.mrf.mxu3  ;;  %v13050_v6 = vld [vmem:[#allocation39_spill] sm:$0xff] }
 0x557   : > { %v12096_v17 = vadd.f32 1.0, %v4987_v42  ;;  %v5008_v54 = vmul.f32 2.1237322e-06, %v12055_v50  ;;  %vm4915_vm6 = vweird.f32 %v12026_v21  ;;  %v4920_v19 = vand.u32 2147483648, %v11990_v11 }
 0x558   : > { %v5048_v2 = vmul.f32 2.1237322e-06, %v12081_v29  ;;  %v3886_v48 = vadd.f32 %v3885_v39, %v10644_v38  ;;  %v12109_v13 = vpop.eup %6915  ;;  %v4877_v1 = vsel %vm12101_vm5, %v12004_v23, %v4873_v57  ;;  %v4934_v63 = vmul.f32 %v4933_v60, %v11940_v52  ;;  %v13051_v39 = vld [vmem:[#allocation64_spill] sm:$0xff] }
 0x559   : > { %v4972_v18 = vmul.f32 %v4971_v33, %v11971_v28  ;;  %v5021_v15 = vmul.f32 %v5020_v51, %v12055_v50  ;;  %v4913_v31 = vadd.f32 %v12026_v21, %v4912_v5  ;;  %v5060_v42 = vadd.f32 0.001143296, %v5059_v46 }
 0x55a   : > { %v5359_v7 = vadd.f32 %v11577_v0, %v13050_v6  ;;  %v5361_v61 = vadd.f32 %v11695_v45, %v13051_v39  ;;  %6917 = vrcp.f32 %v12096_v17  ;;  %v5009_v25 = vadd.f32 0.00028619796, %v5008_v54 }
 0x55b   : > { %v5022_v43 = vadd.f32 0.014752088, %v5021_v15  ;;  %v12123_v23 = vadd.f32 %v3934_v24, %v3886_v48  ;;  %v4950_v57 = vmul.f32 %v12109_v13, %v12050_v59  ;;  %v5049_v60 = vadd.f32 0.00028619796, %v5048_v2 }
 0x55c   : > { %v5061_v33 = vmul.f32 %v5060_v42, %v12081_v29  ;;  %v5387_v51 = vpack.c.bf16 %v5361_v61, %v5359_v7  ;;  %v4882_v5 = vsel %vm12089_vm4, %v4881_v41, %v4877_v1  ;;  %v4935_v0 = vadd.f32 0.18741608, %v4934_v63 }
 0x55d   : > { %v5023_v46 = vmul.f32 %v5022_v43, %v12055_v50  ;;  %v12132_v45 = vmul.f32 0.70710677, %v12123_v23  ;;  %v6489_v54 = vclamps-f32 %v4843_v16, 1.0  ;;  %vm4914_vm7 = vweird.f32 %v11990_v11 }
 0x55e   : > { %v4918_v48 = vand.u32 2147483647, %v11990_v11  ;;  %v4973_v24 = vadd.f32 0.05243302, %v4972_v18  ;;  %5663 = vmatmul.bf16.gmra.mxu1 %v5387_v51  ;;  %5761 = vmatmul.bf16.gmra.mxu3 %v5387_v51  ;;  %vm12138_vm8 = vmor %vm4914_vm7, %vm4915_vm6  ;;  %v5010_v56 = vmul.f32 %v5009_v25, %v12055_v50  ;;  %v5062_v2 = vadd.f32 0.014752088, %v5061_v33  ;;  %v3790_v33 = vpop.f32.mrf.mxu0 }
 0x55f   : > { %v5024_v41 = vadd.f32 0.112945676, %v5023_v46  ;;  %v5086_v16 = vmul.f32 %v12132_v45, %v12132_v45  ;;  %v4883_v1 = vmul.f32 %v4882_v5, %v4858_v49  ;;  %v4917_v11 = vsel %vm12138_vm8, %v12026_v21, %v4913_v31 }
 0x560   : > { %v4951_v63 = vsub.f32 1.0, %v4950_v57  ;;  %v5050_v18 = vmul.f32 %v5049_v60, %v12081_v29  ;;  %v12149_v15 = vpop.eup %6917  ;;  %v4921_v42 = vor.u32 1.1754944e-38, %v4920_v19  ;;  %v4936_v6 = vmul.f32 %v4935_v0, %v11940_v52  ;;  %v3839_v0 = vpop.f32.mrf.mxu1 }
 0x561   : > { %v5025_v25 = vmul.f32 %v5024_v41, %v12055_v50  ;;  %v5063_v7 = vmul.f32 %v5062_v2, %v12081_v29  ;;  %v5306_v39 = vadd.f32 1.0, %v6489_v54  ;;  %v4898_v43 = vmul.f32 %v4897_v26, %v11844_v27 }
 0x562   : > { %vm4919_vm9 = vcmp.eq.f32.partialorder %v4918_v48, 8.507059e+37  ;;  %v4974_v49 = vmul.f32 %v4973_v24, %v11971_v28  ;;  %v5011_v31 = vadd.f32 0.0036580483, %v5010_v56  ;;  %v12156_v60 = vmin.f32 %v5086_v16, 16.0 }
 0x563   : > { %v4922_v21 = vsel %vm4919_vm9, %v4921_v42, %v4917_v11  ;;  %v5064_v57 = vadd.f32 0.112945676, %v5063_v7  ;;  %v6490_v51 = vclamps-f32 %v4883_v1, 1.0  ;;  %v4952_v19 = vmul.f32 %v12109_v13, %v4951_v63 }
 0x564   : > { %v4990_v52 = vmul.f32 %v12149_v15, %v12096_v17  ;;  %v5051_v5 = vadd.f32 0.0036580483, %v5050_v18  ;;  %v4937_v46 = vadd.f32 1.1283791, %v4936_v6  ;;  %v5026_v54 = vadd.f32 0.4994258, %v5025_v25 }
 0x565   : > { %v5065_v27 = vmul.f32 %v5064_v57, %v12081_v29  ;;  %v3791_v26 = vadd.f32 %v3790_v33, %v10623_v53  ;;  %v12165_v48 = vmul.f32 %v12057_v4, %v11835_v20  ;;  %v12168_v24 = vmul.f32 %v5306_v39, %v11848_v34 }
 0x566   : > { %v4923_v61 = vmul.f32 %v4922_v21, %v4898_v43  ;;  %v4975_v56 = vadd.f32 0.18741608, %v4974_v49  ;;  %v5012_v41 = vmul.f32 %v5011_v31, %v12055_v50  ;;  %v5099_v16 = vmul.f32 3.8918573e-05, %v12156_v60 }
 0x567   : > { %v5066_v2 = vadd.f32 0.4994258, %v5065_v27  ;;  %v12172_v1 = vadd.f32 %v3839_v0, %v3791_v26  ;;  %v4953_v11 = vadd.f32 %v12109_v13, %v4952_v19  ;;  %vm4955_vm10 = vweird.f32 %v12109_v13  ;;  %v3937_v26 = vpop.f32.mrf.mxu3 }
 0x568   : > { %v4991_v63 = vsub.f32 1.0, %v4990_v52  ;;  %v5052_v20 = vmul.f32 %v5051_v5, %v12081_v29  ;;  %v12177_v4 = vadd.f32 1.0, %v6490_v51  ;;  %v4938_v34 = vmul.f32 %v4937_v46, %v11927_v35  ;;  %v3888_v52 = vpop.f32.mrf.mxu2 }
 0x569   : > { %v12181_v18 = vmul.f32 0.5, %v12010_v55  ;;  %v5027_v42 = vmul.f32 %v5026_v54, %v12055_v50  ;;  %vm4954_vm11 = vweird.f32 %v12050_v59  ;;  %v4958_v6 = vand.u32 2147483647, %v12050_v59 }
 0x56a   : > { %v4960_v25 = vand.u32 2147483648, %v12050_v59  ;;  %v4976_v7 = vmul.f32 %v4975_v56, %v11971_v28  ;;  %vm12188_vm12 = vmor %vm4954_vm11, %vm4955_vm10  ;;  %v5013_v43 = vadd.f32 0.05243302, %v5012_v41  ;;  %v5067_v35 = vmul.f32 %v5066_v2, %v12081_v29 }
 0x56b   : > { %v5100_v49 = vadd.f32 0.001143296, %v5099_v16  ;;  %v12194_v55 = vmul.f32 0.70710677, %v12172_v1  ;;  %v6491_v33 = vclamps-f32 %v4923_v61, 1.0  ;;  %v4957_v21 = vsel %vm12188_vm12, %v12109_v13, %v4953_v11 }
 0x56c   : > { %v4992_v59 = vmul.f32 %v12149_v15, %v4991_v63  ;;  %v5053_v31 = vadd.f32 0.05243302, %v5052_v20  ;;  %v12200_v28 = vadd.f32 1.0, %v5027_v42  ;;  %v5088_v57 = vmul.f32 2.1237322e-06, %v12156_v60  ;;  %v13056_v20 = vld [vmem:[#allocation43_spill] sm:$0xff] }
 0x56d   : > { %v5101_v51 = vmul.f32 %v5100_v49, %v12156_v60  ;;  %v5126_v19 = vmul.f32 %v12194_v55, %v12194_v55  ;;  %vm4959_vm13 = vcmp.eq.f32.partialorder %v4958_v6, 8.507059e+37  ;;  %v4961_v5 = vor.u32 1.1754944e-38, %v4960_v25  ;;  %v13057_v6 = vld [vmem:[#allocation44_spill] sm:$0xff] }
 0x56e   : > { %vm4994_vm14 = vweird.f32 %v12096_v17  ;;  %v5000_v0 = vand.u32 2147483648, %v12096_v17  ;;  %v5014_v13 = vmul.f32 %v5013_v43, %v12055_v50  ;;  %v12209_v46 = vadd.f32 1.0, %v5067_v35 }
 0x56f   : > { %v5102_v54 = vadd.f32 0.014752088, %v5101_v51  ;;  %v12211_v27 = vmin.f32 %v5126_v19, 16.0  ;;  %v4962_v61 = vsel %vm4959_vm13, %v4961_v5, %v4957_v21  ;;  %vm4995_vm15 = vweird.f32 %v12149_v15 }
 0x570   : > { %v5054_v56 = vmul.f32 %v5053_v31, %v12081_v29  ;;  %v3889_v41 = vadd.f32 %v3888_v52, %v10644_v38  ;;  %v4993_v2 = vadd.f32 %v12149_v15, %v4992_v59  ;;  %6919 = vrcp.f32 %v12200_v28  ;;  %vm12232_vm0 = vmor %vm4994_vm14, %vm4995_vm15 }
 0x571   : > { %v5089_v16 = vadd.f32 0.00028619796, %v5088_v57  ;;  %v5103_v11 = vmul.f32 %v5102_v54, %v12156_v60  ;;  %v5139_v63 = vmul.f32 3.8918573e-05, %v12211_v27  ;;  %v5362_v42 = vadd.f32 %v11723_v12, %v13056_v20  ;;  %v3841_v54 = vpop.f32.mrf.mxu1 }
 0x572   : > { %v5364_v25 = vadd.f32 %v11828_v9, %v13057_v6  ;;  %v12224_v39 = vadd.f32 %v3937_v26, %v3889_v41  ;;  %v4998_v43 = vand.u32 2147483647, %v12096_v17  ;;  %v5015_v35 = vadd.f32 0.18741608, %v5014_v13  ;;  %v3792_v9 = vpop.f32.mrf.mxu0 }
 0x573   : > { %6921 = vrcp.f32 %v12209_v46  ;;  %v5104_v49 = vadd.f32 0.112945676, %v5103_v11  ;;  %v5308_v21 = vadd.f32 1.0, %v6491_v33  ;;  %v4977_v59 = vadd.f32 1.1283791, %v4976_v7 }
 0x574   : > { %v5140_v12 = vadd.f32 0.001143296, %v5139_v63  ;;  %v5388_v57 = vpack.c.bf16 %v5364_v25, %v5362_v42  ;;  %v4963_v51 = vmul.f32 %v4962_v61, %v4938_v34  ;;  %v4997_v19 = vsel %vm12232_vm0, %v12149_v15, %v4993_v2 }
 0x575   : > { %v5001_v52 = vor.u32 1.1754944e-38, %v5000_v0  ;;  %v5105_v33 = vmul.f32 %v5104_v49, %v12156_v60  ;;  %v5055_v7 = vadd.f32 0.18741608, %v5054_v56  ;;  %v5090_v5 = vmul.f32 %v5089_v16, %v12156_v60 }
 0x576   : > { %v5141_v17 = vmul.f32 %v5140_v12, %v12211_v27  ;;  %5619 = vmatmul.bf16.gmra.mxu0 %v5388_v57  ;;  %5717 = vmatmul.bf16.gmra.mxu2 %v5388_v57  ;;  %v12243_v13 = vmul.f32 0.70710677, %v12224_v39  ;;  %v12245_v26 = vpop.eup %6919  ;;  %vm4999_vm1 = vcmp.eq.f32.partialorder %v4998_v43, 8.507059e+37  ;;  %v5016_v34 = vmul.f32 %v5015_v35, %v12055_v50 }
 0x577   : > { %v5106_v15 = vadd.f32 0.4994258, %v5105_v33  ;;  %v3793_v0 = vadd.f32 %v3792_v9, %v10623_v53  ;;  %v5002_v61 = vsel %vm4999_vm1, %v5001_v52, %v4997_v19  ;;  %v12250_v56 = vmul.f32 0.5, %v12024_v30 }
 0x578   : > { %v5142_v41 = vadd.f32 0.014752088, %v5141_v17  ;;  %v5166_v2 = vmul.f32 %v12243_v13, %v12243_v13  ;;  %v12258_v11 = vmul.f32 %v12177_v4, %v11950_v22  ;;  %v4978_v63 = vmul.f32 %v4977_v59, %v11935_v32 }
 0x579   : > { %v12254_v16 = vpop.eup %6921  ;;  %v5107_v50 = vmul.f32 %v5106_v15, %v12156_v60  ;;  %v12262_v20 = vadd.f32 %v3841_v54, %v3793_v0  ;;  %v6492_v53 = vclamps-f32 %v4963_v51, 1.0  ;;  %v5056_v30 = vmul.f32 %v5055_v7, %v12081_v29  ;;  %v3890_v15 = vpop.f32.mrf.mxu2 }
 0x57a   : > { %v5091_v42 = vadd.f32 0.0036580483, %v5090_v5  ;;  %v5143_v6 = vmul.f32 %v5142_v41, %v12211_v27  ;;  %v12267_v25 = vmul.f32 %v5308_v21, %v11964_v47  ;;  %v12269_v43 = vmul.f32 %v5002_v61, %v4978_v63 }
 0x57b   : > { %v5017_v35 = vadd.f32 1.1283791, %v5016_v34  ;;  %v5030_v22 = vmul.f32 %v12245_v26, %v12200_v28  ;;  %v5070_v32 = vmul.f32 %v12254_v16, %v12209_v46  ;;  %v5128_v4 = vmul.f32 2.1237322e-06, %v12211_v27 }
 0x57c   : > { %v5144_v49 = vadd.f32 0.112945676, %v5143_v6  ;;  %v12276_v59 = vmin.f32 %v5166_v2, 16.0  ;;  %v5040_v29 = vand.u32 2147483648, %v12200_v28  ;;  %v12280_v31 = vmul.f32 0.5, %v12123_v23 }
 0x57d   : > { %v12282_v47 = vadd.f32 1.0, %v5107_v50  ;;  %v12285_v21 = vmul.f32 0.70710677, %v12262_v20  ;;  %v12287_v12 = vadd.f32 1.0, %v6492_v53  ;;  %v5057_v9 = vadd.f32 1.1283791, %v5056_v30 }
 0x57e   : > { %v5092_v57 = vmul.f32 %v5091_v42, %v12156_v60  ;;  %v12291_v51 = vmul.f32 0.5, %v12172_v1  ;;  %v12294_v19 = vmul.f32 %v5017_v35, %v12034_v62  ;;  %v5031_v52 = vsub.f32 1.0, %v5030_v22  ;;  %v3939_v35 = vpop.f32.mrf.mxu3 }
 0x57f   : > { %v5038_v23 = vand.u32 2147483647, %v12200_v28  ;;  %v5145_v33 = vmul.f32 %v5144_v49, %v12211_v27  ;;  %v6493_v7 = vclamps-f32 %v12269_v43, 1.0  ;;  %v5071_v5 = vsub.f32 1.0, %v5070_v32 }
 0x580   : > { %v5129_v17 = vadd.f32 0.00028619796, %v5128_v4  ;;  %v5179_v54 = vmul.f32 3.8918573e-05, %v12276_v59  ;;  %vm5034_vm2 = vweird.f32 %v12200_v28  ;;  %v12301_v34 = vor.u32 1.1754944e-38, %v5040_v29 }
 0x581   : > { %6923 = vrcp.f32 %v12282_v47  ;;  %v5146_v1 = vadd.f32 0.4994258, %v5145_v33  ;;  %v5206_v62 = vmul.f32 %v12285_v21, %v12285_v21  ;;  %v12307_v0 = vmul.f32 %v5057_v9, %v12045_v14 }
 0x582   : > { %vm5074_vm3 = vweird.f32 %v12209_v46  ;;  %v5093_v61 = vadd.f32 0.05243302, %v5092_v57  ;;  %v5180_v41 = vadd.f32 0.001143296, %v5179_v54  ;;  %v5032_v2 = vmul.f32 %v12245_v26, %v5031_v52 }
 0x583   : > { %v5078_v63 = vand.u32 2147483647, %v12209_v46  ;;  %v5147_v50 = vmul.f32 %v5146_v1, %v12211_v27  ;;  %v12313_v53 = vmin.f32 %v5206_v62, 16.0  ;;  %v5072_v30 = vmul.f32 %v12254_v16, %v5071_v5  ;;  %v13062_v5 = vld [vmem:[#allocation57_spill] sm:$0xff] }
 0x584   : > { %v5130_v42 = vmul.f32 %v5129_v17, %v12211_v27  ;;  %v5181_v6 = vmul.f32 %v5180_v41, %v12276_v59  ;;  %v3891_v14 = vadd.f32 %v3890_v15, %v10644_v38  ;;  %v5168_v32 = vmul.f32 2.1237322e-06, %v12276_v59 }
 0x585   : > { %v12319_v22 = vadd.f32 1.0, %v5147_v50  ;;  %v5208_v4 = vmul.f32 2.1237322e-06, %v12313_v53  ;;  %v5365_v49 = vadd.f32 %v11943_v37, %v10232_v3  ;;  %vm5035_vm4 = vweird.f32 %v12245_v26 }
 0x586   : > { %v5094_v29 = vmul.f32 %v5093_v61, %v12156_v60  ;;  %v5182_v9 = vadd.f32 0.014752088, %v5181_v6  ;;  %v5219_v57 = vmul.f32 3.8918573e-05, %v12313_v53  ;;  %v5033_v38 = vadd.f32 %v12245_v26, %v5032_v2  ;;  %vm12347_vm7 = vmor %vm5034_vm2, %vm5035_vm4 }
 0x587   : > { %v12328_v52 = vpop.eup %6923  ;;  %vm12331_vm5 = vcmp.eq.f32.partialorder %v5038_v23, 8.507059e+37  ;;  %vm5075_vm6 = vweird.f32 %v12254_v16  ;;  %v5363_v3 = vadd.f32 %v11731_v8, %v13062_v5  ;;  %v12338_v37 = vadd.f32 %v3939_v35, %v3891_v14 }
 0x588   : > { %v5073_v17 = vadd.f32 %v12254_v16, %v5072_v30  ;;  %v5131_v54 = vadd.f32 0.0036580483, %v5130_v42  ;;  %v5183_v1 = vmul.f32 %v5182_v9, %v12276_v59  ;;  %v5209_v62 = vadd.f32 0.00028619796, %v5208_v4  ;;  %vm12359_vm8 = vmor %vm5074_vm3, %vm5075_vm6 }
 0x589   : > { %6925 = vrcp.f32 %v12319_v22  ;;  %v5169_v15 = vadd.f32 0.00028619796, %v5168_v32  ;;  %v5220_v23 = vadd.f32 0.001143296, %v5219_v57  ;;  %v5389_v61 = vpack.c.bf16 %v5365_v49, %v5363_v3 }
 0x58a   : > { %v5080_v8 = vand.u32 2147483648, %v12209_v46  ;;  %v5110_v2 = vmul.f32 %v12328_v52, %v12282_v47  ;;  %v5184_v50 = vadd.f32 0.112945676, %v5183_v1  ;;  %v5210_v30 = vmul.f32 %v5209_v62, %v12313_v53 }
 0x58b   : > { %vm12363_vm9 = vcmp.eq.f32.partialorder %v5078_v63, 8.507059e+37  ;;  %v5095_v6 = vadd.f32 0.18741608, %v5094_v29  ;;  %v5221_v14 = vmul.f32 %v5220_v23, %v12313_v53  ;;  %5668 = vmatmul.bf16.gmra.mxu1 %v5389_v61  ;;  %5766 = vmatmul.bf16.gmra.mxu3 %v5389_v61  ;;  %v12369_v35 = vmul.f32 0.70710677, %v12338_v37 }
 0x58c   : > { %v5037_v46 = vsel %vm12347_vm7, %v12245_v26, %v5033_v38  ;;  %v5077_v32 = vsel %vm12359_vm8, %v12254_v16, %v5073_v17  ;;  %v5132_v63 = vmul.f32 %v5131_v54, %v12211_v27  ;;  %v5185_v4 = vmul.f32 %v5184_v50, %v12276_v59  ;;  %v13069_v38 = vld [vmem:[#allocation30_spill] sm:$0xff] }
 0x58d   : > { %v5170_v49 = vmul.f32 %v5169_v15, %v12276_v59  ;;  %v5222_v29 = vadd.f32 0.014752088, %v5221_v14  ;;  %v5246_v9 = vmul.f32 %v12369_v35, %v12369_v35  ;;  %v5368_v57 = vadd.f32 %v12016_v44, %v10267_v40 }
 0x58e   : > { %v5081_v5 = vor.u32 1.1754944e-38, %v5080_v8  ;;  %v5111_v3 = vsub.f32 1.0, %v5110_v2  ;;  %v5211_v26 = vadd.f32 0.0036580483, %v5210_v30  ;;  %v5366_v1 = vadd.f32 %v11946_v10, %v13069_v38 }
 0x58f   : > { %v12386_v16 = vpop.eup %6925  ;;  %v5096_v17 = vmul.f32 %v5095_v6, %v12156_v60  ;;  %v5186_v54 = vadd.f32 0.4994258, %v5185_v4  ;;  %v5223_v62 = vmul.f32 %v5222_v29, %v12313_v53  ;;  %v12390_v15 = vmin.f32 %v5246_v9, 16.0 }
 0x590   : > { %v5042_v23 = vsel %vm12331_vm5, %v12301_v34, %v5037_v46  ;;  %v5082_v40 = vsel %vm12363_vm9, %v5081_v5, %v5077_v32  ;;  %v5133_v44 = vadd.f32 0.05243302, %v5132_v63  ;;  %v5390_v61 = vpack.c.bf16 %v5368_v57, %v5366_v1 }
 0x591   : > { %v5171_v41 = vadd.f32 0.0036580483, %v5170_v49  ;;  %v5187_v10 = vmul.f32 %v5186_v54, %v12276_v59  ;;  %v5224_v8 = vadd.f32 0.112945676, %v5223_v62  ;;  %v5248_v60 = vmul.f32 2.1237322e-06, %v12390_v15 }
 0x592   : > { %v5112_v2 = vmul.f32 %v12328_v52, %v5111_v3  ;;  %v5150_v50 = vmul.f32 %v12386_v16, %v12319_v22  ;;  %v5212_v30 = vmul.f32 %v5211_v26, %v12313_v53  ;;  %v5259_v34 = vmul.f32 3.8918573e-05, %v12390_v15  ;;  %5624 = vmatmul.bf16.gmra.mxu0 %v5390_v61  ;;  %5722 = vmatmul.bf16.gmra.mxu2 %v5390_v61  ;;  %v13072_v62 = vld [vmem:[#allocation56_spill] sm:$0xff] }
 0x593   : > { %v12406_v33 = vadd.f32 1.0, %v6493_v7  ;;  %v12408_v42 = vadd.f32 1.0, %v5187_v10  ;;  %v5225_v28 = vmul.f32 %v5224_v8, %v12313_v53  ;;  %v5249_v6 = vadd.f32 0.00028619796, %v5248_v60 }
 0x594   : > { %v5083_v14 = vmul.f32 %v5082_v40, %v12307_v0  ;;  %v5097_v46 = vadd.f32 1.1283791, %v5096_v17  ;;  %v5134_v32 = vmul.f32 %v5133_v44, %v12211_v27  ;;  %v5260_v63 = vadd.f32 0.001143296, %v5259_v34  ;;  %v13073_v40 = vld [vmem:[#allocation31_spill] sm:$0xff] }
 0x595   : > { %v12414_v4 = vmul.f32 %v5042_v23, %v12294_v19  ;;  %vm5114_vm10 = vweird.f32 %v12282_v47  ;;  %vm5115_vm11 = vweird.f32 %v12328_v52  ;;  %v5172_v43 = vmul.f32 %v5171_v41, %v12276_v59 }
 0x596   : > { %v5113_v7 = vadd.f32 %v12328_v52, %v5112_v2  ;;  %v5151_v49 = vsub.f32 1.0, %v5150_v50  ;;  %v5213_v29 = vadd.f32 0.05243302, %v5212_v30  ;;  %v5226_v9 = vadd.f32 0.4994258, %v5225_v28  ;;  %vm12428_vm12 = vmor %vm5114_vm10, %vm5115_vm11  ;;  %v13074_v50 = vld [vmem:[#allocation59_spill] sm:$0xff] }
 0x597   : > { %v5118_v0 = vand.u32 2147483647, %v12282_v47  ;;  %6927 = vrcp.f32 %v12408_v42  ;;  %v5250_v57 = vmul.f32 %v5249_v6, %v12390_v15  ;;  %v5261_v19 = vmul.f32 %v5260_v63, %v12390_v15 }
 0x598   : > { %v6495_v5 = vclamps-f32 %v5083_v14, 1.0  ;;  %v5120_v3 = vand.u32 2147483648, %v12282_v47  ;;  %v5135_v26 = vadd.f32 0.18741608, %v5134_v32  ;;  %v5227_v38 = vmul.f32 %v5226_v9, %v12313_v53  ;;  %v13075_v14 = vld [vmem:[#allocation34_spill] sm:$0xff] }
 0x599   : > { %v5173_v17 = vadd.f32 0.05243302, %v5172_v43  ;;  %v5262_v54 = vadd.f32 0.014752088, %v5261_v19  ;;  %v5367_v23 = vadd.f32 %v11985_v36, %v13072_v62  ;;  %v5369_v44 = vadd.f32 %v12165_v48, %v13073_v40  ;;  %v13076_v19 = vld [vmem:[#allocation54_spill] sm:$0xff] }
 0x59a   : > { %v5117_v61 = vsel %vm12428_vm12, %v12328_v52, %v5113_v7  ;;  %v5152_v41 = vmul.f32 %v12386_v16, %v5151_v49  ;;  %v5214_v47 = vmul.f32 %v5213_v29, %v12313_v53  ;;  %v12441_v10 = vadd.f32 1.0, %v5227_v38 }
 0x59b   : > { %v5251_v8 = vadd.f32 0.0036580483, %v5250_v57  ;;  %v5263_v60 = vmul.f32 %v5262_v54, %v12390_v15  ;;  %v5391_v2 = vpack.c.bf16 %v5369_v44, %v5367_v23  ;;  %v5372_v36 = vadd.f32 %v12267_v25, %v13074_v50  ;;  %v13080_v50 = vld [vmem:[#allocation29_spill] sm:$0xff] }
 0x59c   : > { %v6494_v30 = vclamps-f32 %v12414_v4, 1.0  ;;  %v5098_v48 = vmul.f32 %v5097_v46, %v12132_v45  ;;  %v5121_v34 = vor.u32 1.1754944e-38, %v5120_v3  ;;  %v5136_v52 = vmul.f32 %v5135_v26, %v12211_v27 }
 0x59d   : > { %v12449_v28 = vpop.eup %6927  ;;  %v5312_v6 = vadd.f32 1.0, %v6495_v5  ;;  %vm5119_vm13 = vcmp.eq.f32.partialorder %v5118_v0, 8.507059e+37  ;;  %6929 = vrcp.f32 %v12441_v10  ;;  %5673 = vmatmul.bf16.gmra.mxu1 %v5391_v2  ;;  %5771 = vmatmul.bf16.gmra.mxu3 %v5391_v2  ;;  %v5370_v32 = vadd.f32 %v12168_v24, %v13075_v14 }
 0x59e   : > { %v5122_v63 = vsel %vm5119_vm13, %v5121_v34, %v5117_v61  ;;  %v5174_v25 = vmul.f32 %v5173_v17, %v12276_v59  ;;  %v5215_v4 = vadd.f32 0.18741608, %v5214_v47  ;;  %v5264_v43 = vadd.f32 0.112945676, %v5263_v60  ;;  %v13079_v61 = vld [vmem:[#allocation47_spill] sm:$0xff] }
 0x59f   : > { %v5153_v45 = vadd.f32 %v12386_v16, %v5152_v41  ;;  %vm5155_vm14 = vweird.f32 %v12386_v16  ;;  %v5252_v27 = vmul.f32 %v5251_v8, %v12390_v15  ;;  %v5392_v46 = vpack.c.bf16 %v5372_v36, %v5370_v32  ;;  %v13081_v32 = vld [vmem:[#allocation60_spill] sm:$0xff] }
 0x5a0   : > { %v5137_v7 = vadd.f32 1.1283791, %v5136_v52  ;;  %v5160_v49 = vand.u32 2147483648, %v12319_v22  ;;  %v5190_v29 = vmul.f32 %v12449_v28, %v12408_v42  ;;  %v5265_v24 = vmul.f32 %v5264_v43, %v12390_v15 }
 0x5a1   : > { %v5341_v9 = vmul.f32 %v12287_v12, %v12048_v58  ;;  %v5123_v0 = vmul.f32 %v5122_v63, %v5098_v48  ;;  %vm5154_vm15 = vweird.f32 %v12319_v22  ;;  %v5158_v57 = vand.u32 2147483647, %v12319_v22 }
 0x5a2   : > { %v5342_v5 = vmul.f32 %v12406_v33, %v13076_v19  ;;  %vm12468_vm0 = vmor %vm5154_vm15, %vm5155_vm14  ;;  %v5175_v26 = vadd.f32 0.18741608, %v5174_v25  ;;  %v5216_v38 = vmul.f32 %v5215_v4, %v12313_v53  ;;  %v5266_v1 = vadd.f32 0.4994258, %v5265_v24  ;;  %5629 = vmatmul.bf16.gmra.mxu0 %v5392_v46  ;;  %5727 = vmatmul.bf16.gmra.mxu2 %v5392_v46  ;;  %v5605_v24 = vpop.f32.mrf.mxu0 }
 0x5a3   : > { %v6930_v17 = vpop.eup %6929  ;;  %v5311_v58 = vadd.f32 1.0, %v6494_v30  ;;  %v5344_v12 = vmul.f32 %v5312_v6, %v12250_v56  ;;  %v5157_v22 = vsel %vm12468_vm0, %v12386_v16, %v5153_v45  ;;  %v5253_v54 = vadd.f32 0.05243302, %v5252_v27  ;;  %v13082_v27 = vld [vmem:[#allocation51_spill] sm:$0xff] }
 0x5a4   : > { %v5138_v33 = vmul.f32 %v5137_v7, %v12194_v55  ;;  %v5161_v62 = vor.u32 1.1754944e-38, %v5160_v49  ;;  %v5191_v23 = vsub.f32 1.0, %v5190_v29  ;;  %v5230_v40 = vmul.f32 %v6930_v17, %v12441_v10 }
 0x5a5   : > { %v6496_v44 = vclamps-f32 %v5123_v0, 1.0  ;;  %vm5159_vm1 = vcmp.eq.f32.partialorder %v5158_v57, 8.507059e+37  ;;  %v5267_v53 = vmul.f32 %v5266_v1, %v12390_v15  ;;  %v5373_v41 = vadd.f32 %v5341_v9, %v13079_v61  ;;  %v5654_v9 = vpop.f32.mrf.mxu1 }
 0x5a6   : > { %v5162_v47 = vsel %vm5159_vm1, %v5161_v62, %v5157_v22  ;;  %v5176_v56 = vmul.f32 %v5175_v26, %v12276_v59  ;;  %v5217_v8 = vadd.f32 1.1283791, %v5216_v38  ;;  %v5231_v60 = vsub.f32 1.0, %v5230_v40  ;;  %v5752_v26 = vpop.f32.mrf.mxu3 }
 0x5a7   : > { %v5240_v16 = vand.u32 2147483648, %v12441_v10  ;;  %v5254_v2 = vmul.f32 %v5253_v54, %v12390_v15  ;;  %v12484_v55 = vadd.f32 1.0, %v5267_v53  ;;  %v5371_v36 = vadd.f32 %v12258_v11, %v13080_v50  ;;  %v13085_v50 = vld [vmem:[#allocation61_spill] sm:$0xff] }
 0x5a8   : > { %v5192_v30 = vmul.f32 %v12449_v28, %v5191_v23  ;;  %v5232_v48 = vmul.f32 %v6930_v17, %v5231_v60  ;;  %vm5235_vm2 = vweird.f32 %v6930_v17  ;;  %v5238_v34 = vand.u32 2147483647, %v12441_v10 }
 0x5a9   : > { %v5313_v52 = vadd.f32 1.0, %v6496_v44  ;;  %v5163_v6 = vmul.f32 %v5162_v47, %v5138_v33  ;;  %6931 = vrcp.f32 %v12484_v55  ;;  %v5393_v59 = vpack.c.bf16 %v5373_v41, %v5371_v36 }
 0x5aa   : > { %vm5194_vm3 = vweird.f32 %v12408_v42  ;;  %v5233_v14 = vadd.f32 %v6930_v17, %v5232_v48  ;;  %vm5234_vm4 = vweird.f32 %v12441_v10  ;;  %v5376_v63 = vadd.f32 %v5344_v12, %v13081_v32  ;;  %v6935_v48 = vld [vmem:[%s7215_s21 + $0x8] sm:$0xff] }
 0x5ab   : > { %vm5195_vm5 = vweird.f32 %v12449_v28  ;;  %v5218_v11 = vmul.f32 %v5217_v8, %v12285_v21  ;;  %vm5236_vm6 = vmor %vm5234_vm4, %vm5235_vm2  ;;  %v5241_v25 = vor.u32 1.1754944e-38, %v5240_v16  ;;  %v5255_v4 = vadd.f32 0.18741608, %v5254_v2  ;;  %v5430_v21 = vld [vmem:[%s12657_s9] sm:$0x3] }
 0x5ac   : > { %v5193_v43 = vadd.f32 %v12449_v28, %v5192_v30  ;;  %v5237_v45 = vsel %vm5236_vm6, %v6930_v17, %v5233_v14  ;;  %vm5239_vm7 = vcmp.eq.f32.partialorder %v5238_v34, 8.507059e+37  ;;  %v5374_v46 = vadd.f32 %v5342_v5, %v13082_v27  ;;  %v5703_v5 = vpop.f32.mrf.mxu2  ;;  %vm12512_vm8 = vmor %vm5194_vm3, %vm5195_vm5  ;;  %v6934_v8 = vld [vmem:[%s7215_s21] sm:$0xff]  ;;  %v5607_v30 = vpop.f32.mrf.mxu0  ;;  %v13087_v27 = vld [vmem:[#allocation42_spill] sm:$0xff] }
 0x5ad   : > { %v6497_v7 = vclamps-f32 %v5163_v6, 1.0  ;;  %v5198_v49 = vand.u32 2147483647, %v12408_v42  ;;  %v5200_v10 = vand.u32 2147483648, %v12408_v42  ;;  %v5242_v29 = vsel %vm5239_vm7, %v5241_v25, %v5237_v45  ;;  %5678 = vmatmul.bf16.gmra.mxu1 %v5393_v59  ;;  %5776 = vmatmul.bf16.gmra.mxu3 %v5393_v59 }
 0x5ae   : > { %v5243_v0 = vmul.f32 %v5242_v29, %v5218_v11  ;;  %v5394_v57 = vpack.c.bf16 %v5376_v63, %v5374_v46  ;;  %v12503_v19 = vperm.slane %v5430_v21, 0  ;;  %v12505_v3 = vperm.slane %v5430_v21, 1  ;;  %v5754_v63 = vpop.f32.mrf.mxu3  ;;  %v13088_v46 = vld [vmem:[#allocation33_spill] sm:$0xff]  ;;  %v13089_v21 = vld [vmem:[#allocation63_spill] sm:$0xff] }
 0x5af   : > { %v6932_v38 = vpop.eup %6931  ;;  %v5343_v1 = vmul.f32 %v5311_v58, %v12181_v18  ;;  %v5177_v17 = vadd.f32 1.1283791, %v5176_v56  ;;  %v3972_v22 = vmul.f32 0.5, %v12262_v20  ;;  %v5256_v54 = vmul.f32 %v5255_v4, %v12390_v15 }
 0x5b0   : > { %v5197_v33 = vsel %vm12512_vm8, %v12449_v28, %v5193_v43  ;;  %v6499_v62 = vclamps-f32 %v5243_v0, 1.0  ;;  %v5270_v18 = vmul.f32 %v6932_v38, %v12484_v55  ;;  %v5606_v58 = vadd.f32 %v5605_v24, %v12503_v19  ;;  %v13090_v24 = vld [vmem:[#allocation62_spill] sm:$0xff] }
 0x5b1   : > { %v5345_v42 = vmul.f32 %v5313_v52, %v12280_v31  ;;  %v5314_v23 = vadd.f32 1.0, %v6497_v7  ;;  %v5201_v40 = vor.u32 1.1754944e-38, %v5200_v10  ;;  %v5704_v44 = vadd.f32 %v5703_v5, %v12505_v3  ;;  %v5656_v52 = vpop.f32.mrf.mxu1 }
 0x5b2   : > { %vm5199_vm9 = vcmp.eq.f32.partialorder %v5198_v49, 8.507059e+37  ;;  %v5316_v20 = vadd.f32 1.0, %v6499_v62  ;;  %v5271_v53 = vsub.f32 1.0, %v5270_v18  ;;  %5634 = vmatmul.bf16.gmra.mxu0 %v5394_v57  ;;  %5732 = vmatmul.bf16.gmra.mxu2 %v5394_v57  ;;  %v5655_v15 = vadd.f32 %v5654_v9, %v5606_v58  ;;  %v13091_v57 = vld [vmem:[#allocation49_spill] sm:$0xff] }
 0x5b3   : > { %v5202_v28 = vsel %vm5199_vm9, %v5201_v40, %v5197_v33  ;;  %v5257_v31 = vadd.f32 1.1283791, %v5256_v54  ;;  %v5280_v61 = vand.u32 2147483648, %v12484_v55  ;;  %v5753_v41 = vadd.f32 %v5752_v26, %v5704_v44 }
 0x5b4   : > { %v5272_v47 = vmul.f32 %v6932_v38, %v5271_v53  ;;  %vm5275_vm10 = vweird.f32 %v6932_v38  ;;  %v5278_v56 = vand.u32 2147483647, %v12484_v55  ;;  %v5792_v60 = vadd.f32 %v6934_v8, %v5655_v15  ;;  %v5705_v32 = vpop.f32.mrf.mxu2  ;;  %v5610_v18 = vpop.f32.mrf.mxu0 }
 0x5b5   : > { %v5346_v16 = vmul.f32 %v5314_v23, %v12291_v51  ;;  %v5178_v2 = vmul.f32 %v5177_v17, %v12243_v13  ;;  %v5377_v36 = vadd.f32 %v5345_v42, %v13085_v50  ;;  %v5793_v34 = vadd.f32 %v6935_v48, %v5753_v41  ;;  %v13086_v51 = vld [vmem:[#allocation58_spill] sm:$0xff] }
 0x5b6   : > { %v5348_v6 = vmul.f32 %v5316_v20, %v3972_v22  ;;  %v5273_v59 = vadd.f32 %v6932_v38, %v5272_v47  ;;  %vm5274_vm11 = vweird.f32 %v12484_v55  ;;  %5824 = vst [vmem:[%s12530_s16] sm:$0xff] %v5792_v60  ;;  %v5608_v14 = vadd.f32 %v5607_v30, %v12503_v19  ;;  %v5757_v20 = vpop.f32.mrf.mxu3 }
 0x5b7   : > { %v5203_v11 = vmul.f32 %v5202_v28, %v5178_v2  ;;  %vm5276_vm12 = vmor %vm5274_vm11, %vm5275_vm10  ;;  %v5281_v13 = vor.u32 1.1754944e-38, %v5280_v61  ;;  %v5375_v25 = vadd.f32 %v5343_v1, %v13086_v51  ;;  %5825 = vst [vmem:[%s12530_s16 + $0x8] sm:$0xff] %v5793_v34  ;;  %v5706_v4 = vadd.f32 %v5705_v32, %v12505_v3  ;;  %v13093_v61 = vld [vmem:[#allocation48_spill] sm:$0xff] }
 0x5b8   : > { %v5258_v43 = vmul.f32 %v5257_v31, %v12369_v35  ;;  %v5277_v45 = vsel %vm5276_vm12, %v6932_v38, %v5273_v59  ;;  %vm5279_vm13 = vcmp.eq.f32.partialorder %v5278_v56, 8.507059e+37  ;;  %v5657_v55 = vadd.f32 %v5656_v52, %v5608_v14  ;;  %v13092_v35 = vld [vmem:[#allocation53_spill] sm:$0xff] }
 0x5b9   : > { %v3385_v7 = vmul.f32 %v13088_v46, %v13087_v27  ;;  %v5282_v49 = vsel %vm5279_vm13, %v5281_v13, %v5277_v45  ;;  %v5395_v10 = vpack.c.bf16 %v5377_v36, %v5375_v25  ;;  %v5755_v29 = vadd.f32 %v5754_v63, %v5706_v4  ;;  %v5659_v58 = vpop.f32.mrf.mxu1  ;;  %v13094_v36 = vld [vmem:[#allocation50_spill] sm:$0xff] }
 0x5ba   : > { %v3528_v9 = vmul.f32 %v13090_v24, %v13089_v21  ;;  %v5283_v0 = vmul.f32 %v5282_v49, %v5258_v43  ;;  %v5380_v5 = vadd.f32 %v5348_v6, %v13091_v57  ;;  %v6340_v38 = vclamps-f32 %v13092_v35, 1.0  ;;  %v13095_v24 = vld [vmem:[#allocation2_spill] sm:$0xff] }
 0x5bb   : > { %v6498_v17 = vclamps-f32 %v5203_v11, 1.0  ;;  %v6338_v62 = vclamps-f32 %v3385_v7, 1.0  ;;  %v5611_v40 = vadd.f32 %v5610_v18, %v12503_v19  ;;  %v3973_v28 = vmul.f32 0.5, %v12338_v37 }
 0x5bc   : > { %v6500_v54 = vclamps-f32 %v5283_v0, 1.0  ;;  %v5378_v33 = vadd.f32 %v5346_v16, %v3528_v9  ;;  %v5708_v44 = vpop.f32.mrf.mxu2  ;;  %v3499_v53 = vadd.f32 1.0, %v6340_v38  ;;  %v2155_v41 = vmul.f32 0.5, %v13093_v61  ;;  %v13096_v38 = vld [vmem:[#allocation4_spill] sm:$0xff] }
 0x5bd   : > { %5683 = vmatmul.bf16.gmra.mxu1 %v5395_v10  ;;  %5781 = vmatmul.bf16.gmra.mxu3 %v5395_v10  ;;  %v5315_v15 = vadd.f32 1.0, %v6498_v17  ;;  %v5709_v31 = vadd.f32 %v5708_v44, %v12505_v3  ;;  %v5660_v47 = vadd.f32 %v5659_v58, %v5611_v40  ;;  %v3497_v56 = vadd.f32 1.0, %v6338_v62 }
 0x5be   : > { %v6936_v26 = vld [vmem:[%s7215_s21 + $0x10] sm:$0xff]  ;;  %v6937_v12 = vld [vmem:[%s7215_s21 + $0x18] sm:$0xff]  ;;  %v5317_v42 = vadd.f32 1.0, %v6500_v54  ;;  %v5396_v23 = vpack.c.bf16 %v5380_v5, %v5378_v33  ;;  %v3971_v8 = vmul.f32 0.5, %v12224_v39  ;;  %v2153_v30 = vmul.f32 0.5, %v13094_v36  ;;  %v5612_v39 = vpop.f32.mrf.mxu0  ;;  %v5759_v11 = vpop.f32.mrf.mxu3 }
 0x5bf   : > { %v5794_v1 = vadd.f32 %v6936_v26, %v5657_v55  ;;  %v5795_v22 = vadd.f32 %v6937_v12, %v5755_v29  ;;  %v5758_v16 = vadd.f32 %v5757_v20, %v5709_v31  ;;  %v3531_v48 = vmul.f32 %v3499_v53, %v2155_v41  ;;  %v13097_v54 = vld [vmem:[#allocation3_spill] sm:$0xff]  ;;  %v13099_v31 = vld [vmem:[#allocation6_spill] sm:$0xff] }
 0x5c0   : > { %v5349_v60 = vmul.f32 %v5317_v42, %v3973_v28  ;;  %v5347_v37 = vmul.f32 %v5315_v15, %v3971_v8  ;;  %v3529_v6 = vmul.f32 %v3497_v56, %v2153_v30  ;;  %v5613_v32 = vadd.f32 %v5612_v39, %v12503_v19  ;;  %v13098_v42 = vld [vmem:[#allocation5_spill] sm:$0xff] }
 0x5c1   : > { %5826 = vst [vmem:[%s12530_s16 + $0x10] sm:$0xff] %v5794_v1  ;;  %v5661_v14 = vpop.f32.mrf.mxu1 }
 0x5c2   : > { %5827 = vst [vmem:[%s12530_s16 + $0x18] sm:$0xff] %v5795_v22  ;;  %5639 = vmatmul.bf16.gmra.mxu0 %v5396_v23  ;;  %5737 = vmatmul.bf16.gmra.mxu2 %v5396_v23  ;;  %v5381_v59 = vadd.f32 %v5349_v60, %v3531_v48  ;;  %v5379_v13 = vadd.f32 %v5347_v37, %v3529_v6  ;;  %v13101_v48 = vld [vmem:[#allocation7_spill] sm:$0xff] }
 0x5c3   : > { %v5662_v25 = vadd.f32 %v5661_v14, %v5613_v32  ;;  %v13102_v32 = vld [vmem:[#allocation9_spill] sm:$0xff] }
 0x5c4   : > { %v5710_v63 = vpop.f32.mrf.mxu2  ;;  %v5397_v4 = vpack.c.bf16 %v5381_v59, %v5379_v13 }
 0x5c5   : > { %v5711_v51 = vadd.f32 %v5710_v63, %v12505_v3 }
 0x5c6   : > { %v5615_v7 = vpop.f32.mrf.mxu0 }
 0x5c7   : > { %v5760_v43 = vadd.f32 %v5759_v11, %v5711_v51  ;;  %v5616_v49 = vadd.f32 %v5615_v7, %v12503_v19  ;;  %v13103_v51 = vld [vmem:[#allocation10_spill] sm:$0xff] }
 0x5c9   : > { %v6938_v2 = vld [vmem:[%s7215_s21 + $0x20] sm:$0xff]  ;;  %v6939_v34 = vld [vmem:[%s7215_s21 + $0x28] sm:$0xff] }
 0x5ca   : > { %v5796_v50 = vadd.f32 %v6938_v2, %v5660_v47  ;;  %v5797_v52 = vadd.f32 %v6939_v34, %v5758_v16 }
 0x5cc   : > { %5828 = vst [vmem:[%s12530_s16 + $0x20] sm:$0xff] %v5796_v50  ;;  %v5713_v29 = vpop.f32.mrf.mxu2  ;;  %v13100_v50 = vld [vmem:[#allocation8_spill] sm:$0xff] }
 0x5cd   : > { %5829 = vst [vmem:[%s12530_s16 + $0x28] sm:$0xff] %v5797_v52  ;;  %5688 = vmatmul.bf16.gmra.mxu1 %v5397_v4  ;;  %5786 = vmatmul.bf16.gmra.mxu3 %v5397_v4  ;;  %v5714_v57 = vadd.f32 %v5713_v29, %v12505_v3 }
 0x5ce   : > { %v5617_v0 = vpop.f32.mrf.mxu0 }
 0x5cf   : > { %v5618_v26 = vadd.f32 %v5617_v0, %v12503_v19 }
 0x5d4   : > { %v6940_v45 = vld [vmem:[%s7215_s21 + $0x30] sm:$0xff]  ;;  %v6941_v27 = vld [vmem:[%s7215_s21 + $0x38] sm:$0xff]  ;;  %v5715_v22 = vpop.f32.mrf.mxu2 }
 0x5d5   : > { %v5798_v55 = vadd.f32 %v6940_v45, %v5662_v25  ;;  %v5799_v46 = vadd.f32 %v6941_v27, %v5760_v43  ;;  %v5716_v62 = vadd.f32 %v5715_v22, %v12505_v3  ;;  %v13107_v22 = vld [vmem:[#allocation14_spill] sm:$0xff] }
 0x5d7   : > { %5830 = vst [vmem:[%s12530_s16 + $0x30] sm:$0xff] %v5798_v55 }
 0x5d8   : > { %5831 = vst [vmem:[%s12530_s16 + $0x38] sm:$0xff] %v5799_v46 }
 0x5db   : > { %v5664_v10 = vpop.f32.mrf.mxu1 }
 0x5dc   : > { %v5665_v21 = vadd.f32 %v5664_v10, %v5616_v49  ;;  %v13104_v49 = vld [vmem:[#allocation12_spill] sm:$0xff] }
 0x5de   : > { %v5800_v9 = vadd.f32 %v5665_v21, %v13095_v24  ;;  %v13105_v21 = vld [vmem:[#allocation11_spill] sm:$0xff] }
 0x5e0   : > { %5832 = vst [vmem:[%s12530_s16 + $0x40] sm:$0xff] %v5800_v9 }
 0x5e1   : > { %v5762_v5 = vpop.f32.mrf.mxu3 }
 0x5e2   : > { %v5763_v1 = vadd.f32 %v5762_v5, %v5714_v57 }
 0x5e3   : > { %v5666_v35 = vpop.f32.mrf.mxu1 }
 0x5e4   : > { %v5801_v17 = vadd.f32 %v5763_v1, %v13096_v38  ;;  %v5667_v12 = vadd.f32 %v5666_v35, %v5618_v26  ;;  %v13106_v38 = vld [vmem:[#allocation13_spill] sm:$0xff] }
 0x5e6   : > { %5833 = vst [vmem:[%s12530_s16 + $0x48] sm:$0xff] %v5801_v17  ;;  %v5802_v33 = vadd.f32 %v5667_v12, %v13097_v54 }
 0x5e8   : > { %5834 = vst [vmem:[%s12530_s16 + $0x50] sm:$0xff] %v5802_v33 }
 0x5e9   : > { %v5764_v18 = vpop.f32.mrf.mxu3 }
 0x5ea   : > { %v5765_v58 = vadd.f32 %v5764_v18, %v5716_v62 }
 0x5ec   : > { %v5803_v23 = vadd.f32 %v5765_v58, %v13098_v42 }
 0x5ee   : > { %5835 = vst [vmem:[%s12530_s16 + $0x58] sm:$0xff] %v5803_v23 }
 0x5f3   : > { %v5620_v40 = vpop.f32.mrf.mxu0 }
 0x5f4   : > { %v5621_v53 = vadd.f32 %v5620_v40, %v12503_v19 }
 0x5f9   : > { %v5718_v44 = vpop.f32.mrf.mxu2 }
 0x5fa   : > { %v5719_v47 = vadd.f32 %v5718_v44, %v12505_v3  ;;  %v13108_v44 = vld [vmem:[#allocation16_spill] sm:$0xff] }
 0x5fb   : > { %v5622_v20 = vpop.f32.mrf.mxu0 }
 0x5fc   : > { %v5623_v8 = vadd.f32 %v5622_v20, %v12503_v19 }
 0x601   : > { %v5720_v41 = vpop.f32.mrf.mxu2 }
 0x602   : > { %v5721_v34 = vadd.f32 %v5720_v41, %v12505_v3 }
 0x608   : > { %v5669_v15 = vpop.f32.mrf.mxu1 }
 0x609   : > { %v5670_v28 = vadd.f32 %v5669_v15, %v5621_v53  ;;  %v13109_v15 = vld [vmem:[#allocation15_spill] sm:$0xff] }
 0x60b   : > { %v5804_v61 = vadd.f32 %v5670_v28, %v13099_v31 }
 0x60d   : > { %5836 = vst [vmem:[%s12530_s16 + $0x60] sm:$0xff] %v5804_v61 }
 0x60e   : > { %v5767_v56 = vpop.f32.mrf.mxu3 }
 0x60f   : > { %v5768_v60 = vadd.f32 %v5767_v56, %v5719_v47  ;;  %v5625_v16 = vpop.f32.mrf.mxu0 }
 0x610   : > { %v5671_v2 = vpop.f32.mrf.mxu1  ;;  %v5626_v14 = vadd.f32 %v5625_v16, %v12503_v19  ;;  %v13110_v16 = vld [vmem:[#allocation17_spill] sm:$0xff] }
 0x611   : > { %v5805_v36 = vadd.f32 %v5768_v60, %v13100_v50  ;;  %v5672_v30 = vadd.f32 %v5671_v2, %v5623_v8 }
 0x613   : > { %5837 = vst [vmem:[%s12530_s16 + $0x68] sm:$0xff] %v5805_v36  ;;  %v5806_v37 = vadd.f32 %v5672_v30, %v13101_v48  ;;  %v13111_v36 = vld [vmem:[#allocation18_spill] sm:$0xff] }
 0x615   : > { %5838 = vst [vmem:[%s12530_s16 + $0x70] sm:$0xff] %v5806_v37  ;;  %v5723_v52 = vpop.f32.mrf.mxu2 }
 0x616   : > { %v5769_v6 = vpop.f32.mrf.mxu3  ;;  %v5724_v43 = vadd.f32 %v5723_v52, %v12505_v3 }
 0x617   : > { %v5770_v59 = vadd.f32 %v5769_v6, %v5721_v34  ;;  %v5627_v39 = vpop.f32.mrf.mxu0 }
 0x618   : > { %v5628_v27 = vadd.f32 %v5627_v39, %v12503_v19  ;;  %v13112_v39 = vld [vmem:[#allocation20_spill] sm:$0xff] }
 0x619   : > { %v5807_v63 = vadd.f32 %v5770_v59, %v13102_v32 }
 0x61a   : > { %v5674_v11 = vpop.f32.mrf.mxu1 }
 0x61b   : > { %5839 = vst [vmem:[%s12530_s16 + $0x78] sm:$0xff] %v5807_v63  ;;  %v5675_v13 = vadd.f32 %v5674_v11, %v5626_v14  ;;  %v13113_v11 = vld [vmem:[#allocation19_spill] sm:$0xff] }
 0x61d   : > { %v5808_v25 = vadd.f32 %v5675_v13, %v13103_v51  ;;  %v5725_v4 = vpop.f32.mrf.mxu2 }
 0x61e   : > { %v5726_v0 = vadd.f32 %v5725_v4, %v12505_v3 }
 0x61f   : > { %5840 = vst [vmem:[%s12530_s16 + $0x80] sm:$0xff] %v5808_v25  ;;  %v5630_v45 = vpop.f32.mrf.mxu0 }
 0x620   : > { %v5772_v55 = vpop.f32.mrf.mxu3  ;;  %v5631_v26 = vadd.f32 %v5630_v45, %v12503_v19 }
 0x621   : > { %v5773_v46 = vadd.f32 %v5772_v55, %v5724_v43 }
 0x622   : > { %v5676_v7 = vpop.f32.mrf.mxu1 }
 0x623   : > { %v5809_v10 = vadd.f32 %v5773_v46, %v13104_v49  ;;  %v5677_v29 = vadd.f32 %v5676_v7, %v5628_v27  ;;  %v13114_v27 = vld [vmem:[#allocation21_spill] sm:$0xff]  ;;  %v13115_v49 = vld [vmem:[#allocation22_spill] sm:$0xff] }
 0x625   : > { %5841 = vst [vmem:[%s12530_s16 + $0x88] sm:$0xff] %v5809_v10  ;;  %v5810_v24 = vadd.f32 %v5677_v29, %v13105_v21  ;;  %v5728_v9 = vpop.f32.mrf.mxu2 }
 0x626   : > { %v5729_v62 = vadd.f32 %v5728_v9, %v12505_v3 }
 0x627   : > { %5842 = vst [vmem:[%s12530_s16 + $0x90] sm:$0xff] %v5810_v24  ;;  %v5632_v57 = vpop.f32.mrf.mxu0 }
 0x628   : > { %v5774_v5 = vpop.f32.mrf.mxu3  ;;  %v5633_v42 = vadd.f32 %v5632_v57, %v12503_v19 }
 0x629   : > { %v5775_v1 = vadd.f32 %v5774_v5, %v5726_v0  ;;  %v13116_v5 = vld [vmem:[#allocation24_spill] sm:$0xff] }
 0x62a   : > { %v5679_v35 = vpop.f32.mrf.mxu1 }
 0x62b   : > { %v5811_v17 = vadd.f32 %v5775_v1, %v13106_v38  ;;  %v5680_v12 = vadd.f32 %v5679_v35, %v5631_v26  ;;  %v13117_v38 = vld [vmem:[#allocation23_spill] sm:$0xff] }
 0x62d   : > { %5843 = vst [vmem:[%s12530_s16 + $0x98] sm:$0xff] %v5811_v17  ;;  %v5812_v54 = vadd.f32 %v5680_v12, %v13107_v22  ;;  %v5730_v33 = vpop.f32.mrf.mxu2 }
 0x62e   : > { %v5731_v61 = vadd.f32 %v5730_v33, %v12505_v3  ;;  %v13118_v33 = vld [vmem:[#allocation25_spill] sm:$0xff] }
 0x62f   : > { %5844 = vst [vmem:[%s12530_s16 + $0xa0] sm:$0xff] %v5812_v54  ;;  %v5635_v58 = vpop.f32.mrf.mxu0 }
 0x630   : > { %v5777_v18 = vpop.f32.mrf.mxu3  ;;  %v5636_v47 = vadd.f32 %v5635_v58, %v12503_v19 }
 0x631   : > { %v5778_v23 = vadd.f32 %v5777_v18, %v5729_v62 }
 0x632   : > { %v5681_v40 = vpop.f32.mrf.mxu1 }
 0x633   : > { %v5813_v20 = vadd.f32 %v5778_v23, %v13108_v44  ;;  %v5682_v53 = vadd.f32 %v5681_v40, %v5633_v42 }
 0x635   : > { %5845 = vst [vmem:[%s12530_s16 + $0xa8] sm:$0xff] %v5813_v20  ;;  %v5814_v28 = vadd.f32 %v5682_v53, %v13109_v15  ;;  %v5733_v31 = vpop.f32.mrf.mxu2 }
 0x636   : > { %v5734_v48 = vadd.f32 %v5733_v31, %v12505_v3 }
 0x637   : > { %5846 = vst [vmem:[%s12530_s16 + $0xb0] sm:$0xff] %v5814_v28  ;;  %v5637_v60 = vpop.f32.mrf.mxu0 }
 0x638   : > { %v5779_v41 = vpop.f32.mrf.mxu3  ;;  %v5638_v52 = vadd.f32 %v5637_v60, %v12503_v19 }
 0x639   : > { %v5780_v56 = vadd.f32 %v5779_v41, %v5731_v61 }
 0x63a   : > { %v5684_v8 = vpop.f32.mrf.mxu1 }
 0x63b   : > { %v5815_v2 = vadd.f32 %v5780_v56, %v13110_v16  ;;  %v5685_v50 = vadd.f32 %v5684_v8, %v5636_v47 }
 0x63d   : > { %5847 = vst [vmem:[%s12530_s16 + $0xb8] sm:$0xff] %v5815_v2  ;;  %v5816_v30 = vadd.f32 %v5685_v50, %v13111_v36  ;;  %v5735_v34 = vpop.f32.mrf.mxu2 }
 0x63e   : > { %v5736_v51 = vadd.f32 %v5735_v34, %v12505_v3 }
 0x63f   : > { %5848 = vst [vmem:[%s12530_s16 + $0xc0] sm:$0xff] %v5816_v30  ;;  %v5640_v63 = vpop.f32.mrf.mxu0 }
 0x640   : > { %v5782_v37 = vpop.f32.mrf.mxu3  ;;  %v5641_v4 = vadd.f32 %v5640_v63, %v12503_v19 }
 0x641   : > { %v5783_v6 = vadd.f32 %v5782_v37, %v5734_v48 }
 0x642   : > { %v5686_v59 = vpop.f32.mrf.mxu1 }
 0x643   : > { %v5817_v14 = vadd.f32 %v5783_v6, %v13112_v39  ;;  %v5687_v32 = vadd.f32 %v5686_v59, %v5638_v52 }
 0x645   : > { %5849 = vst [vmem:[%s12530_s16 + $0xc8] sm:$0xff] %v5817_v14  ;;  %v5818_v13 = vadd.f32 %v5687_v32, %v13113_v11  ;;  %v5738_v55 = vpop.f32.mrf.mxu2 }
 0x646   : > { %v5739_v21 = vadd.f32 %v5738_v55, %v12505_v3 }
 0x647   : > { %5850 = vst [vmem:[%s12530_s16 + $0xd0] sm:$0xff] %v5818_v13  ;;  %v5642_v29 = vpop.f32.mrf.mxu0 }
 0x648   : > { %v5784_v25 = vpop.f32.mrf.mxu3  ;;  %v5643_v9 = vadd.f32 %v5642_v29, %v12503_v19 }
 0x649   : > { %v5785_v43 = vadd.f32 %v5784_v25, %v5736_v51 }
 0x64a   : > { %v5689_v45 = vpop.f32.mrf.mxu1 }
 0x64b   : > { %v5819_v46 = vadd.f32 %v5785_v43, %v13114_v27  ;;  %v5690_v7 = vadd.f32 %v5689_v45, %v5641_v4 }
 0x64d   : > { %5851 = vst [vmem:[%s12530_s16 + $0xd8] sm:$0xff] %v5819_v46  ;;  %v5820_v10 = vadd.f32 %v5690_v7, %v13115_v49  ;;  %v5740_v35 = vpop.f32.mrf.mxu2 }
 0x64e   : > { %v5741_v12 = vadd.f32 %v5740_v35, %v12505_v3 }
 0x64f   : > { %5852 = vst [vmem:[%s12530_s16 + $0xe0] sm:$0xff] %v5820_v10 }
 0x650   : > { %v5787_v24 = vpop.f32.mrf.mxu3 }
 0x651   : > { %v5788_v0 = vadd.f32 %v5787_v24, %v5739_v21 }
 0x652   : > { %v5691_v57 = vpop.f32.mrf.mxu1 }
 0x653   : > { %v5821_v26 = vadd.f32 %v5788_v0, %v13116_v5  ;;  %v5692_v1 = vadd.f32 %v5691_v57, %v5643_v9 }
 0x655   : > { %5853 = vst [vmem:[%s12530_s16 + $0xe8] sm:$0xff] %v5821_v26  ;;  %v5822_v17 = vadd.f32 %v5692_v1, %v13117_v38 }
 0x657   : > { %5854 = vst [vmem:[%s12530_s16 + $0xf0] sm:$0xff] %v5822_v17 }
 0x658   : > { %v5789_v22 = vpop.f32.mrf.mxu3 }
 0x659   : > { %v5790_v54 = vadd.f32 %v5789_v22, %v5741_v12 }
 0x65b   : > { %v5823_v62 = vadd.f32 %v5790_v54, %v13118_v33 }
 0x65d   : > { %5855 = vst [vmem:[%s12530_s16 + $0xf8] sm:$0xff] %v5823_v62 }
 0x65e PF: > { %s20_s13 = sadd.s32 1, %s6948_s13  }
 0x65f   : > { %p17_p4 = scmp.ge.s32.totalorder %s20_s13, 4  }
 0x661   :  { %19 = sbr.rel (!%p17_p4) target bundleno = 1 (0x1), region = 94 }

</bundles_post_ra>
